<compile_context>
chip_gen: v6e
topology: v6e:2x2x1
jax: 0.10.0
libtpu: 0.0.40
codegen_flags: <defaults>
</compile_context>

<pallas_src>
import functools

import jax
import jax.numpy as jnp
from jax import lax
from jax.experimental import pallas as pl
from jax.experimental.pallas import tpu as pltpu

EPS = 1e-5   # nn.InstanceNorm2d default eps
KS = 5       # conv kernel size
PAD = 2      # conv padding


def _round_up(x, m):
    return ((x + m - 1) // m) * m


def _resblock_kernel(alphas_ref, mask_ref, x_ref, w1_ref, w2_ref, w3_ref, wr_ref,
                     out_ref, a_ref, pat_ref, *, H, W):
    # alphas_ref : SMEM (3,)             PReLU slopes [conv1, conv2, block]
    # mask_ref   : (1, H*Wp)             1.0 where a wide column is a real output pixel
    # x_ref      : (Cin, A_LEN)          padded input sample, image flattened on lanes
    # w{1,2,3}   : (Cout, KPAD)          transposed im2col weights, K order (dy, dx, cin)
    # wr_ref     : (Cend, Cin)           1x1 skip conv
    # out_ref    : (Cend, H*Wp)          wide-layout output (garbage cols dropped by wrapper)
    # a_ref      : VMEM (planes, A_LEN)  padded-activation scratch for conv2 / conv3
    # pat_ref    : VMEM (KPAD, H*Wp)     im2col patch (K on sublanes, wide pixels on lanes)
    Wp = W + 2 * PAD
    HWp = H * Wp
    c_in = x_ref.shape[0]
    planes = a_ref.shape[0]
    a_len = a_ref.shape[1]
    kpad = pat_ref.shape[0]
    s = PAD * Wp + PAD        # fused offset of output pixel (0, 0) inside a padded image

    a1 = alphas_ref[0]
    a2 = alphas_ref[1]
    a_out = alphas_ref[2]
    mask = mask_ref[...]                          # (1, HWp)
    inv_hw = 1.0 / float(H * W)

    # Zero only what correctness needs, every grid step (scratch persists across steps and
    # is per-core under the parallel batch axis):
    #   * the pad halo of a_ref  (the interior [s, s+HWp) is overwritten before every read)
    #   * the K-padding rows of pat_ref (they face zero weight columns but must be finite)
    a_ref[:, :s] = jnp.zeros((planes, s), jnp.float32)
    a_ref[:, s + HWp:] = jnp.zeros((planes, a_len - s - HWp), jnp.float32)
    k_used = KS * KS * c_in
    if kpad > k_used:
        pat_ref[k_used:, :] = jnp.zeros((kpad - k_used, HWp), jnp.float32)

    def conv5(src_ref, w_ref):
        # Pack the 25 shifted windows: each one is ONE contiguous lane-dense (C, HWp) slab.
        c = src_ref.shape[0]
        for dy in range(KS):
            for dx in range(KS):
                j = dy * KS + dx
                off = dy * Wp + dx
                pat_ref[j * c:(j + 1) * c, :] = src_ref[:, off:off + HWp]
        # (Cout, K) @ (K, HWp) -> channels on sublanes, pixels on lanes.
        return jnp.dot(w_ref[...], pat_ref[...],
                       preferred_element_type=jnp.float32,
                       precision=lax.Precision.HIGHEST)

    def inorm(y):
        # Per-channel InstanceNorm over the H*W valid columns only (two-pass variance).
        mean = jnp.sum(y * mask, axis=-1, keepdims=True) * inv_hw
        d = (y - mean) * mask
        var = jnp.sum(d * d, axis=-1, keepdims=True) * inv_hw
        return (y - mean) * lax.rsqrt(var + EPS)

    def prelu(y, a):
        return jnp.where(y >= 0, y, a * y)

    # conv1 reads the already-padded input directly (bias cancelled by IN).
    y = prelu(inorm(conv5(x_ref, w1_ref)), a1)                 # (planes, HWp)

    # Re-pad for conv2: one dense store.  The mask zeroes the wrap-around columns, which
    # land exactly on the pad positions of the next padded image, so the halo stays zero.
    a_ref[:, s:s + HWp] = y * mask
    y = prelu(inorm(conv5(a_ref, w2_ref)), a2)                 # (planes, HWp)

    # conv3: re-pad -> conv -> IN (no activation)
    a_ref[:, s:s + HWp] = y * mask
    out3 = inorm(conv5(a_ref, w3_ref))                         # (c_end, HWp)

    # scale_residual: 1x1 conv on the valid interior of the padded input, then IN.
    res = inorm(jnp.dot(wr_ref[...], x_ref[:, s:s + HWp],
                        preferred_element_type=jnp.float32,
                        precision=lax.Precision.HIGHEST))      # (c_end, HWp)

    out_ref[...] = prelu(out3 + res, a_out)                    # dense 320-lane store


def _im2col_weight_t(w, kpad):
    # (ks, ks, cin, cout) -> (cout, kpad); column index = (dy*ks + dx)*cin + cin_idx.
    ks, _, cin, cout = w.shape
    wm = w.reshape(ks * ks * cin, cout).astype(jnp.float32).T   # (cout, ks*ks*cin)
    return jnp.pad(wm, ((0, 0), (0, kpad - ks * ks * cin)))


def resblock_forward_pallas(x_nchw, params):
    """Fused ResBlock forward. x_nchw: (N, Cin, H, W) -> (N, Cend, H, W)."""
    (w1, b1, w2, b2, w3, b3, wr, br, alphas) = params
    del b1, b2, b3, br   # cancel exactly against InstanceNorm(affine=False)

    N, c_in, H, W = x_nchw.shape
    planes = w1.shape[-1]
    c_end = w3.shape[-1]
    Hp, Wp = H + 2 * PAD, W + 2 * PAD
    HWp = H * Wp                                    # wide (row-padded) pixel count
    kpad = _round_up(KS * KS * max(c_in, planes), 128)
    # Fused padded-image length; + 2*PAD so the largest-shift window slice stays in bounds,
    # rounded to a lane multiple.  (If channel counts grow on v6e/v7x, round kpad to 256 to
    # fill the 2x256 MXU; K=100 here, so 128 is the right granule.)
    a_len = _round_up(Hp * Wp + 2 * PAD, 128)

    xf = x_nchw.astype(jnp.float32)
    x_pad = jnp.pad(xf, ((0, 0), (0, 0), (PAD, PAD), (PAD, PAD)))
    x_pad = x_pad.reshape(N, c_in, Hp * Wp)
    x_pad = jnp.pad(x_pad, ((0, 0), (0, 0), (0, a_len - Hp * Wp)))

    w1m = _im2col_weight_t(w1, kpad)                            # (planes, kpad)
    w2m = _im2col_weight_t(w2, kpad)                            # (planes, kpad)
    w3m = _im2col_weight_t(w3, kpad)                            # (c_end, kpad)
    wrm = wr.reshape(c_in, c_end).T.astype(jnp.float32)         # (c_end, c_in)
    alphas = alphas.astype(jnp.float32)

    # 1.0 on wide columns q = h*Wp + w' with w' < W (real output pixels), else 0.0.
    mask = (jnp.arange(HWp, dtype=jnp.int32) % Wp < W)
    mask = mask.astype(jnp.float32).reshape(1, HWp)

    kernel = functools.partial(_resblock_kernel, H=H, W=W)

    out_wide = pl.pallas_call(
        kernel,
        out_shape=jax.ShapeDtypeStruct((N, c_end, HWp), jnp.float32),
        grid=(N,),
        in_specs=[
            pl.BlockSpec(memory_space=pltpu.MemorySpace.SMEM),        # alphas (3,)
            pl.BlockSpec((1, HWp), lambda n: (0, 0)),                 # validity mask
            pl.BlockSpec((None, c_in, a_len), lambda n: (n, 0, 0)),   # x_pad, sample n
            pl.BlockSpec((planes, kpad), lambda n: (0, 0)),           # w1 (im2col^T)
            pl.BlockSpec((planes, kpad), lambda n: (0, 0)),           # w2 (im2col^T)
            pl.BlockSpec((c_end, kpad), lambda n: (0, 0)),            # w3 (im2col^T)
            pl.BlockSpec((c_end, c_in), lambda n: (0, 0)),            # wr (1x1)
        ],
        out_specs=pl.BlockSpec((None, c_end, HWp), lambda n: (n, 0, 0)),
        scratch_shapes=[
            pltpu.VMEM((planes, a_len), jnp.float32),   # padded-activation buffer
            pltpu.VMEM((kpad, HWp), jnp.float32),       # im2col patch matrix
        ],
        compiler_params=pltpu.CompilerParams(
            dimension_semantics=("parallel",),          # batch axis -> both TCs on v7x
        ),
    )(alphas, mask, x_pad, w1m, w2m, w3m, wrm)

    # Drop the Wp-W wrap-around columns; result is already channel-major NCHW.
    return out_wide.reshape(N, c_end, H, Wp)[:, :, :, :W]


def resblock_forward_ref(x_nchw, params):
    """Pure-JAX reference (with conv biases, two-pass variance)."""
    (w1, b1, w2, b2, w3, b3, wr, br, alphas) = params
    x = jnp.transpose(x_nchw, (0, 2, 3, 1)).astype(jnp.float32)

    def conv(xx, w, b, pad):
        out = lax.conv_general_dilated(
            xx, w, (1, 1), ((pad, pad), (pad, pad)),
            dimension_numbers=('NHWC', 'HWIO', 'NHWC'),
            precision=lax.Precision.HIGHEST)
        return out + b

    def inorm(y):
        m = jnp.mean(y, axis=(1, 2), keepdims=True)
        v = jnp.mean((y - m) ** 2, axis=(1, 2), keepdims=True)
        return (y - m) * lax.rsqrt(v + EPS)

    def prelu(y, a):
        return jnp.where(y >= 0, y, a * y)

    out = prelu(inorm(conv(x, w1, b1, 2)), alphas[0])
    out = prelu(inorm(conv(out, w2, b2, 2)), alphas[1])
    out = inorm(conv(out, w3, b3, 2))
    res = inorm(conv(x, wr, br, 0))
    out = prelu(out + res, alphas[2])
    return jnp.transpose(out, (0, 3, 1, 2))


if __name__ == "__main__":
    # ResBlock(start_filts=4, planes=4, end_filts=8, stride=1, norm='instance_norm',
    #          relu='PReLU') -> scale_residual active (start_filts != end_filts).
    N, c_in, planes, c_end, H, W = 2, 4, 4, 8, 16, 16

    key = jax.random.PRNGKey(0)
    ks = jax.random.split(key, 9)
    w1 = jax.random.normal(ks[0], (5, 5, c_in, planes), jnp.float32) * 0.1
    b1 = jax.random.normal(ks[1], (planes,), jnp.float32) * 0.1
    w2 = jax.random.normal(ks[2], (5, 5, planes, planes), jnp.float32) * 0.1
    b2 = jax.random.normal(ks[3], (planes,), jnp.float32) * 0.1
    w3 = jax.random.normal(ks[4], (5, 5, planes, c_end), jnp.float32) * 0.1
    b3 = jax.random.normal(ks[5], (c_end,), jnp.float32) * 0.1
    wr = jax.random.normal(ks[6], (1, 1, c_in, c_end), jnp.float32) * 0.1
    br = jax.random.normal(ks[7], (c_end,), jnp.float32) * 0.1
    alphas = jnp.full((3,), 0.25, jnp.float32)  # nn.PReLU() default init
    params = (w1, b1, w2, b2, w3, b3, wr, br, alphas)

    x = jax.random.normal(ks[8], (N, c_in, H, W), jnp.float32)  # PyTorch NCHW input

    out = jax.block_until_ready(resblock_forward_pallas(x, params))
    ref = jax.block_until_ready(resblock_forward_ref(x, params))

    assert out.shape == (N, c_end, H, W), out.shape
    max_err = float(jnp.max(jnp.abs(out - ref)))
    assert jnp.allclose(out, ref, atol=2e-3, rtol=2e-3), f"max_err={max_err}"
    print("KERNEL_OK")
</pallas_src>

<mosaic_0001>
module attributes {stable_mosaic.version = 11 : i64} {
  func.func @_resblock_kernel(%arg0: i32, %arg1: memref<3xf32, #tpu.memory_space<smem>>, %arg2: memref<1x320xf32, #tpu.memory_space<vmem>>, %arg3: memref<1x4x512xf32, #tpu.memory_space<vmem>>, %arg4: memref<4x128xf32, #tpu.memory_space<vmem>>, %arg5: memref<4x128xf32, #tpu.memory_space<vmem>>, %arg6: memref<8x128xf32, #tpu.memory_space<vmem>>, %arg7: memref<8x4xf32, #tpu.memory_space<vmem>>, %arg8: memref<1x8x320xf32, #tpu.memory_space<vmem>>, %arg9: memref<4x512xf32, #tpu.memory_space<vmem>>, %arg10: memref<128x320xf32, #tpu.memory_space<vmem>>) attributes {dimension_semantics = [#tpu.dimension_semantics<parallel>], iteration_bounds = array<i64: 2>, scalar_prefetch = 0 : i64, scratch_operands = 2 : i64, tpu.core_type = #tpu.core_type<tc>, window_params = [{transform_indices = @transform_0, window_bounds = array<i64: 3>}, {pipeline_mode = #tpu.pipeline_mode<synchronous>, transform_indices = @transform_1, window_bounds = array<i64: 1, 320>}, {transform_indices = @transform_2, window_bounds = array<i64: 1, 4, 512>}, {pipeline_mode = #tpu.pipeline_mode<synchronous>, transform_indices = @transform_3, window_bounds = array<i64: 4, 128>}, {pipeline_mode = #tpu.pipeline_mode<synchronous>, transform_indices = @transform_4, window_bounds = array<i64: 4, 128>}, {pipeline_mode = #tpu.pipeline_mode<synchronous>, transform_indices = @transform_5, window_bounds = array<i64: 8, 128>}, {pipeline_mode = #tpu.pipeline_mode<synchronous>, transform_indices = @transform_6, window_bounds = array<i64: 8, 4>}, {transform_indices = @transform_7, window_bounds = array<i64: 1, 8, 320>}]} {
    %c0 = arith.constant 0 : index
    %0 = memref.load %arg1[%c0] : memref<3xf32, #tpu.memory_space<smem>>
    %c1 = arith.constant 1 : index
    %1 = memref.load %arg1[%c1] : memref<3xf32, #tpu.memory_space<smem>>
    %c2 = arith.constant 2 : index
    %2 = memref.load %arg1[%c2] : memref<3xf32, #tpu.memory_space<smem>>
    %c0_0 = arith.constant 0 : index
    %c0_1 = arith.constant 0 : index
    %3 = vector.load %arg2[%c0_0, %c0_1] : memref<1x320xf32, #tpu.memory_space<vmem>>, vector<1x320xf32>
    %cst = arith.constant 0.000000e+00 : f32
    %4 = vector.broadcast %cst : f32 to vector<4x42xf32>
    %c0_2 = arith.constant 0 : index
    %c0_3 = arith.constant 0 : index
    %5 = vector.load %arg9[%c0_2, %c0_3] : memref<4x512xf32, #tpu.memory_space<vmem>>, vector<4x42xf32>
    tpu.vector_store %arg9[%c0_2, %c0_3], %4 {strides = array<i32>} : memref<4x512xf32, #tpu.memory_space<vmem>>, vector<4x42xf32>,
    %cst_4 = arith.constant 0.000000e+00 : f32
    %6 = vector.broadcast %cst_4 : f32 to vector<4x150xf32>
    %c0_5 = arith.constant 0 : index
    %c362 = arith.constant 362 : index
    %7 = vector.load %arg9[%c0_5, %c362] : memref<4x512xf32, #tpu.memory_space<vmem>>, vector<4x150xf32>
    tpu.vector_store %arg9[%c0_5, %c362], %6 {strides = array<i32>} : memref<4x512xf32, #tpu.memory_space<vmem>>, vector<4x150xf32>,
    %cst_6 = arith.constant 0.000000e+00 : f32
    %8 = vector.broadcast %cst_6 : f32 to vector<28x320xf32>
    %c100 = arith.constant 100 : index
    %c0_7 = arith.constant 0 : index
    %9 = vector.load %arg10[%c100, %c0_7] : memref<128x320xf32, #tpu.memory_space<vmem>>, vector<28x320xf32>
    tpu.vector_store %arg10[%c100, %c0_7], %8 {strides = array<i32>} : memref<128x320xf32, #tpu.memory_space<vmem>>, vector<28x320xf32>,
    %c0_8 = arith.constant 0 : index
    %c0_9 = arith.constant 0 : index
    %c0_10 = arith.constant 0 : index
    %10 = vector.load %arg3[%c0_8, %c0_9, %c0_10] : memref<1x4x512xf32, #tpu.memory_space<vmem>>, vector<1x4x320xf32>
    %11 = vector.shape_cast %10 : vector<1x4x320xf32> to vector<4x320xf32>
    %c0_11 = arith.constant 0 : index
    %c0_12 = arith.constant 0 : index
    %12 = vector.load %arg10[%c0_11, %c0_12] : memref<128x320xf32, #tpu.memory_space<vmem>>, vector<4x320xf32>
    tpu.vector_store %arg10[%c0_11, %c0_12], %11 {strides = array<i32>} : memref<128x320xf32, #tpu.memory_space<vmem>>, vector<4x320xf32>,
    %c0_13 = arith.constant 0 : index
    %c0_14 = arith.constant 0 : index
    %c1_15 = arith.constant 1 : index
    %13 = vector.load %arg3[%c0_13, %c0_14, %c1_15] : memref<1x4x512xf32, #tpu.memory_space<vmem>>, vector<1x4x320xf32>
    %14 = vector.shape_cast %13 : vector<1x4x320xf32> to vector<4x320xf32>
    %c4 = arith.constant 4 : index
    %c0_16 = arith.constant 0 : index
    %15 = vector.load %arg10[%c4, %c0_16] : memref<128x320xf32, #tpu.memory_space<vmem>>, vector<4x320xf32>
    tpu.vector_store %arg10[%c4, %c0_16], %14 {strides = array<i32>} : memref<128x320xf32, #tpu.memory_space<vmem>>, vector<4x320xf32>,
    %c0_17 = arith.constant 0 : index
    %c0_18 = arith.constant 0 : index
    %c2_19 = arith.constant 2 : index
    %16 = vector.load %arg3[%c0_17, %c0_18, %c2_19] : memref<1x4x512xf32, #tpu.memory_space<vmem>>, vector<1x4x320xf32>
    %17 = vector.shape_cast %16 : vector<1x4x320xf32> to vector<4x320xf32>
    %c8 = arith.constant 8 : index
    %c0_20 = arith.constant 0 : index
    %18 = vector.load %arg10[%c8, %c0_20] : memref<128x320xf32, #tpu.memory_space<vmem>>, vector<4x320xf32>
    tpu.vector_store %arg10[%c8, %c0_20], %17 {strides = array<i32>} : memref<128x320xf32, #tpu.memory_space<vmem>>, vector<4x320xf32>,
    %c0_21 = arith.constant 0 : index
    %c0_22 = arith.constant 0 : index
    %c3 = arith.constant 3 : index
    %19 = vector.load %arg3[%c0_21, %c0_22, %c3] : memref<1x4x512xf32, #tpu.memory_space<vmem>>, vector<1x4x320xf32>
    %20 = vector.shape_cast %19 : vector<1x4x320xf32> to vector<4x320xf32>
    %c12 = arith.constant 12 : index
    %c0_23 = arith.constant 0 : index
    %21 = vector.load %arg10[%c12, %c0_23] : memref<128x320xf32, #tpu.memory_space<vmem>>, vector<4x320xf32>
    tpu.vector_store %arg10[%c12, %c0_23], %20 {strides = array<i32>} : memref<128x320xf32, #tpu.memory_space<vmem>>, vector<4x320xf32>,
    %c0_24 = arith.constant 0 : index
    %c0_25 = arith.constant 0 : index
    %c4_26 = arith.constant 4 : index
    %22 = vector.load %arg3[%c0_24, %c0_25, %c4_26] : memref<1x4x512xf32, #tpu.memory_space<vmem>>, vector<1x4x320xf32>
    %23 = vector.shape_cast %22 : vector<1x4x320xf32> to vector<4x320xf32>
    %c16 = arith.constant 16 : index
    %c0_27 = arith.constant 0 : index
    %24 = vector.load %arg10[%c16, %c0_27] : memref<128x320xf32, #tpu.memory_space<vmem>>, vector<4x320xf32>
    tpu.vector_store %arg10[%c16, %c0_27], %23 {strides = array<i32>} : memref<128x320xf32, #tpu.memory_space<vmem>>, vector<4x320xf32>,
    %c0_28 = arith.constant 0 : index
    %c0_29 = arith.constant 0 : index
    %c20 = arith.constant 20 : index
    %25 = vector.load %arg3[%c0_28, %c0_29, %c20] : memref<1x4x512xf32, #tpu.memory_space<vmem>>, vector<1x4x320xf32>
    %26 = vector.shape_cast %25 : vector<1x4x320xf32> to vector<4x320xf32>
    %c20_30 = arith.constant 20 : index
    %c0_31 = arith.constant 0 : index
    %27 = vector.load %arg10[%c20_30, %c0_31] : memref<128x320xf32, #tpu.memory_space<vmem>>, vector<4x320xf32>
    tpu.vector_store %arg10[%c20_30, %c0_31], %26 {strides = array<i32>} : memref<128x320xf32, #tpu.memory_space<vmem>>, vector<4x320xf32>,
    %c0_32 = arith.constant 0 : index
    %c0_33 = arith.constant 0 : index
    %c21 = arith.constant 21 : index
    %28 = vector.load %arg3[%c0_32, %c0_33, %c21] : memref<1x4x512xf32, #tpu.memory_space<vmem>>, vector<1x4x320xf32>
    %29 = vector.shape_cast %28 : vector<1x4x320xf32> to vector<4x320xf32>
    %c24 = arith.constant 24 : index
    %c0_34 = arith.constant 0 : index
    %30 = vector.load %arg10[%c24, %c0_34] : memref<128x320xf32, #tpu.memory_space<vmem>>, vector<4x320xf32>
    tpu.vector_store %arg10[%c24, %c0_34], %29 {strides = array<i32>} : memref<128x320xf32, #tpu.memory_space<vmem>>, vector<4x320xf32>,
    %c0_35 = arith.constant 0 : index
    %c0_36 = arith.constant 0 : index
    %c22 = arith.constant 22 : index
    %31 = vector.load %arg3[%c0_35, %c0_36, %c22] : memref<1x4x512xf32, #tpu.memory_space<vmem>>, vector<1x4x320xf32>
    %32 = vector.shape_cast %31 : vector<1x4x320xf32> to vector<4x320xf32>
    %c28 = arith.constant 28 : index
    %c0_37 = arith.constant 0 : index
    %33 = vector.load %arg10[%c28, %c0_37] : memref<128x320xf32, #tpu.memory_space<vmem>>, vector<4x320xf32>
    tpu.vector_store %arg10[%c28, %c0_37], %32 {strides = array<i32>} : memref<128x320xf32, #tpu.memory_space<vmem>>, vector<4x320xf32>,
    %c0_38 = arith.constant 0 : index
    %c0_39 = arith.constant 0 : index
    %c23 = arith.constant 23 : index
    %34 = vector.load %arg3[%c0_38, %c0_39, %c23] : memref<1x4x512xf32, #tpu.memory_space<vmem>>, vector<1x4x320xf32>
    %35 = vector.shape_cast %34 : vector<1x4x320xf32> to vector<4x320xf32>
    %c32 = arith.constant 32 : index
    %c0_40 = arith.constant 0 : index
    %36 = vector.load %arg10[%c32, %c0_40] : memref<128x320xf32, #tpu.memory_space<vmem>>, vector<4x320xf32>
    tpu.vector_store %arg10[%c32, %c0_40], %35 {strides = array<i32>} : memref<128x320xf32, #tpu.memory_space<vmem>>, vector<4x320xf32>,
    %c0_41 = arith.constant 0 : index
    %c0_42 = arith.constant 0 : index
    %c24_43 = arith.constant 24 : index
    %37 = vector.load %arg3[%c0_41, %c0_42, %c24_43] : memref<1x4x512xf32, #tpu.memory_space<vmem>>, vector<1x4x320xf32>
    %38 = vector.shape_cast %37 : vector<1x4x320xf32> to vector<4x320xf32>
    %c36 = arith.constant 36 : index
    %c0_44 = arith.constant 0 : index
    %39 = vector.load %arg10[%c36, %c0_44] : memref<128x320xf32, #tpu.memory_space<vmem>>, vector<4x320xf32>
    tpu.vector_store %arg10[%c36, %c0_44], %38 {strides = array<i32>} : memref<128x320xf32, #tpu.memory_space<vmem>>, vector<4x320xf32>,
    %c0_45 = arith.constant 0 : index
    %c0_46 = arith.constant 0 : index
    %c40 = arith.constant 40 : index
    %40 = vector.load %arg3[%c0_45, %c0_46, %c40] : memref<1x4x512xf32, #tpu.memory_space<vmem>>, vector<1x4x320xf32>
    %41 = vector.shape_cast %40 : vector<1x4x320xf32> to vector<4x320xf32>
    %c40_47 = arith.constant 40 : index
    %c0_48 = arith.constant 0 : index
    %42 = vector.load %arg10[%c40_47, %c0_48] : memref<128x320xf32, #tpu.memory_space<vmem>>, vector<4x320xf32>
    tpu.vector_store %arg10[%c40_47, %c0_48], %41 {strides = array<i32>} : memref<128x320xf32, #tpu.memory_space<vmem>>, vector<4x320xf32>,
    %c0_49 = arith.constant 0 : index
    %c0_50 = arith.constant 0 : index
    %c41 = arith.constant 41 : index
    %43 = vector.load %arg3[%c0_49, %c0_50, %c41] : memref<1x4x512xf32, #tpu.memory_space<vmem>>, vector<1x4x320xf32>
    %44 = vector.shape_cast %43 : vector<1x4x320xf32> to vector<4x320xf32>
    %c44 = arith.constant 44 : index
    %c0_51 = arith.constant 0 : index
    %45 = vector.load %arg10[%c44, %c0_51] : memref<128x320xf32, #tpu.memory_space<vmem>>, vector<4x320xf32>
    tpu.vector_store %arg10[%c44, %c0_51], %44 {strides = array<i32>} : memref<128x320xf32, #tpu.memory_space<vmem>>, vector<4x320xf32>,
    %c0_52 = arith.constant 0 : index
    %c0_53 = arith.constant 0 : index
    %c42 = arith.constant 42 : index
    %46 = vector.load %arg3[%c0_52, %c0_53, %c42] : memref<1x4x512xf32, #tpu.memory_space<vmem>>, vector<1x4x320xf32>
    %47 = vector.shape_cast %46 : vector<1x4x320xf32> to vector<4x320xf32>
    %c48 = arith.constant 48 : index
    %c0_54 = arith.constant 0 : index
    %48 = vector.load %arg10[%c48, %c0_54] : memref<128x320xf32, #tpu.memory_space<vmem>>, vector<4x320xf32>
    tpu.vector_store %arg10[%c48, %c0_54], %47 {strides = array<i32>} : memref<128x320xf32, #tpu.memory_space<vmem>>, vector<4x320xf32>,
    %c0_55 = arith.constant 0 : index
    %c0_56 = arith.constant 0 : index
    %c43 = arith.constant 43 : index
    %49 = vector.load %arg3[%c0_55, %c0_56, %c43] : memref<1x4x512xf32, #tpu.memory_space<vmem>>, vector<1x4x320xf32>
    %50 = vector.shape_cast %49 : vector<1x4x320xf32> to vector<4x320xf32>
    %c52 = arith.constant 52 : index
    %c0_57 = arith.constant 0 : index
    %51 = vector.load %arg10[%c52, %c0_57] : memref<128x320xf32, #tpu.memory_space<vmem>>, vector<4x320xf32>
    tpu.vector_store %arg10[%c52, %c0_57], %50 {strides = array<i32>} : memref<128x320xf32, #tpu.memory_space<vmem>>, vector<4x320xf32>,
    %c0_58 = arith.constant 0 : index
    %c0_59 = arith.constant 0 : index
    %c44_60 = arith.constant 44 : index
    %52 = vector.load %arg3[%c0_58, %c0_59, %c44_60] : memref<1x4x512xf32, #tpu.memory_space<vmem>>, vector<1x4x320xf32>
    %53 = vector.shape_cast %52 : vector<1x4x320xf32> to vector<4x320xf32>
    %c56 = arith.constant 56 : index
    %c0_61 = arith.constant 0 : index
    %54 = vector.load %arg10[%c56, %c0_61] : memref<128x320xf32, #tpu.memory_space<vmem>>, vector<4x320xf32>
    tpu.vector_store %arg10[%c56, %c0_61], %53 {strides = array<i32>} : memref<128x320xf32, #tpu.memory_space<vmem>>, vector<4x320xf32>,
    %c0_62 = arith.constant 0 : index
    %c0_63 = arith.constant 0 : index
    %c60 = arith.constant 60 : index
    %55 = vector.load %arg3[%c0_62, %c0_63, %c60] : memref<1x4x512xf32, #tpu.memory_space<vmem>>, vector<1x4x320xf32>
    %56 = vector.shape_cast %55 : vector<1x4x320xf32> to vector<4x320xf32>
    %c60_64 = arith.constant 60 : index
    %c0_65 = arith.constant 0 : index
    %57 = vector.load %arg10[%c60_64, %c0_65] : memref<128x320xf32, #tpu.memory_space<vmem>>, vector<4x320xf32>
    tpu.vector_store %arg10[%c60_64, %c0_65], %56 {strides = array<i32>} : memref<128x320xf32, #tpu.memory_space<vmem>>, vector<4x320xf32>,
    %c0_66 = arith.constant 0 : index
    %c0_67 = arith.constant 0 : index
    %c61 = arith.constant 61 : index
    %58 = vector.load %arg3[%c0_66, %c0_67, %c61] : memref<1x4x512xf32, #tpu.memory_space<vmem>>, vector<1x4x320xf32>
    %59 = vector.shape_cast %58 : vector<1x4x320xf32> to vector<4x320xf32>
    %c64 = arith.constant 64 : index
    %c0_68 = arith.constant 0 : index
    %60 = vector.load %arg10[%c64, %c0_68] : memref<128x320xf32, #tpu.memory_space<vmem>>, vector<4x320xf32>
    tpu.vector_store %arg10[%c64, %c0_68], %59 {strides = array<i32>} : memref<128x320xf32, #tpu.memory_space<vmem>>, vector<4x320xf32>,
    %c0_69 = arith.constant 0 : index
    %c0_70 = arith.constant 0 : index
    %c62 = arith.constant 62 : index
    %61 = vector.load %arg3[%c0_69, %c0_70, %c62] : memref<1x4x512xf32, #tpu.memory_space<vmem>>, vector<1x4x320xf32>
    %62 = vector.shape_cast %61 : vector<1x4x320xf32> to vector<4x320xf32>
    %c68 = arith.constant 68 : index
    %c0_71 = arith.constant 0 : index
    %63 = vector.load %arg10[%c68, %c0_71] : memref<128x320xf32, #tpu.memory_space<vmem>>, vector<4x320xf32>
    tpu.vector_store %arg10[%c68, %c0_71], %62 {strides = array<i32>} : memref<128x320xf32, #tpu.memory_space<vmem>>, vector<4x320xf32>,
    %c0_72 = arith.constant 0 : index
    %c0_73 = arith.constant 0 : index
    %c63 = arith.constant 63 : index
    %64 = vector.load %arg3[%c0_72, %c0_73, %c63] : memref<1x4x512xf32, #tpu.memory_space<vmem>>, vector<1x4x320xf32>
    %65 = vector.shape_cast %64 : vector<1x4x320xf32> to vector<4x320xf32>
    %c72 = arith.constant 72 : index
    %c0_74 = arith.constant 0 : index
    %66 = vector.load %arg10[%c72, %c0_74] : memref<128x320xf32, #tpu.memory_space<vmem>>, vector<4x320xf32>
    tpu.vector_store %arg10[%c72, %c0_74], %65 {strides = array<i32>} : memref<128x320xf32, #tpu.memory_space<vmem>>, vector<4x320xf32>,
    %c0_75 = arith.constant 0 : index
    %c0_76 = arith.constant 0 : index
    %c64_77 = arith.constant 64 : index
    %67 = vector.load %arg3[%c0_75, %c0_76, %c64_77] : memref<1x4x512xf32, #tpu.memory_space<vmem>>, vector<1x4x320xf32>
    %68 = vector.shape_cast %67 : vector<1x4x320xf32> to vector<4x320xf32>
    %c76 = arith.constant 76 : index
    %c0_78 = arith.constant 0 : index
    %69 = vector.load %arg10[%c76, %c0_78] : memref<128x320xf32, #tpu.memory_space<vmem>>, vector<4x320xf32>
    tpu.vector_store %arg10[%c76, %c0_78], %68 {strides = array<i32>} : memref<128x320xf32, #tpu.memory_space<vmem>>, vector<4x320xf32>,
    %c0_79 = arith.constant 0 : index
    %c0_80 = arith.constant 0 : index
    %c80 = arith.constant 80 : index
    %70 = vector.load %arg3[%c0_79, %c0_80, %c80] : memref<1x4x512xf32, #tpu.memory_space<vmem>>, vector<1x4x320xf32>
    %71 = vector.shape_cast %70 : vector<1x4x320xf32> to vector<4x320xf32>
    %c80_81 = arith.constant 80 : index
    %c0_82 = arith.constant 0 : index
    %72 = vector.load %arg10[%c80_81, %c0_82] : memref<128x320xf32, #tpu.memory_space<vmem>>, vector<4x320xf32>
    tpu.vector_store %arg10[%c80_81, %c0_82], %71 {strides = array<i32>} : memref<128x320xf32, #tpu.memory_space<vmem>>, vector<4x320xf32>,
    %c0_83 = arith.constant 0 : index
    %c0_84 = arith.constant 0 : index
    %c81 = arith.constant 81 : index
    %73 = vector.load %arg3[%c0_83, %c0_84, %c81] : memref<1x4x512xf32, #tpu.memory_space<vmem>>, vector<1x4x320xf32>
    %74 = vector.shape_cast %73 : vector<1x4x320xf32> to vector<4x320xf32>
    %c84 = arith.constant 84 : index
    %c0_85 = arith.constant 0 : index
    %75 = vector.load %arg10[%c84, %c0_85] : memref<128x320xf32, #tpu.memory_space<vmem>>, vector<4x320xf32>
    tpu.vector_store %arg10[%c84, %c0_85], %74 {strides = array<i32>} : memref<128x320xf32, #tpu.memory_space<vmem>>, vector<4x320xf32>,
    %c0_86 = arith.constant 0 : index
    %c0_87 = arith.constant 0 : index
    %c82 = arith.constant 82 : index
    %76 = vector.load %arg3[%c0_86, %c0_87, %c82] : memref<1x4x512xf32, #tpu.memory_space<vmem>>, vector<1x4x320xf32>
    %77 = vector.shape_cast %76 : vector<1x4x320xf32> to vector<4x320xf32>
    %c88 = arith.constant 88 : index
    %c0_88 = arith.constant 0 : index
    %78 = vector.load %arg10[%c88, %c0_88] : memref<128x320xf32, #tpu.memory_space<vmem>>, vector<4x320xf32>
    tpu.vector_store %arg10[%c88, %c0_88], %77 {strides = array<i32>} : memref<128x320xf32, #tpu.memory_space<vmem>>, vector<4x320xf32>,
    %c0_89 = arith.constant 0 : index
    %c0_90 = arith.constant 0 : index
    %c83 = arith.constant 83 : index
    %79 = vector.load %arg3[%c0_89, %c0_90, %c83] : memref<1x4x512xf32, #tpu.memory_space<vmem>>, vector<1x4x320xf32>
    %80 = vector.shape_cast %79 : vector<1x4x320xf32> to vector<4x320xf32>
    %c92 = arith.constant 92 : index
    %c0_91 = arith.constant 0 : index
    %81 = vector.load %arg10[%c92, %c0_91] : memref<128x320xf32, #tpu.memory_space<vmem>>, vector<4x320xf32>
    tpu.vector_store %arg10[%c92, %c0_91], %80 {strides = array<i32>} : memref<128x320xf32, #tpu.memory_space<vmem>>, vector<4x320xf32>,
    %c0_92 = arith.constant 0 : index
    %c0_93 = arith.constant 0 : index
    %c84_94 = arith.constant 84 : index
    %82 = vector.load %arg3[%c0_92, %c0_93, %c84_94] : memref<1x4x512xf32, #tpu.memory_space<vmem>>, vector<1x4x320xf32>
    %83 = vector.shape_cast %82 : vector<1x4x320xf32> to vector<4x320xf32>
    %c96 = arith.constant 96 : index
    %c0_95 = arith.constant 0 : index
    %84 = vector.load %arg10[%c96, %c0_95] : memref<128x320xf32, #tpu.memory_space<vmem>>, vector<4x320xf32>
    tpu.vector_store %arg10[%c96, %c0_95], %83 {strides = array<i32>} : memref<128x320xf32, #tpu.memory_space<vmem>>, vector<4x320xf32>,
    %c0_96 = arith.constant 0 : index
    %c0_97 = arith.constant 0 : index
    %85 = vector.load %arg4[%c0_96, %c0_97] : memref<4x128xf32, #tpu.memory_space<vmem>>, vector<4x128xf32>
    %c0_98 = arith.constant 0 : index
    %c0_99 = arith.constant 0 : index
    %86 = vector.load %arg10[%c0_98, %c0_99] : memref<128x320xf32, #tpu.memory_space<vmem>>, vector<128x320xf32>
    %cst_100 = arith.constant dense<0.000000e+00> : vector<4x320xf32>
    %87 = tpu.matmul %85, %86, %cst_100 {dimension_numbers = #tpu.dot_dimension_numbers<[1], [0], [0], [1], [0, 0, 1, 1], [], []>, precision = #tpu.contract_precision<fp32>} : vector<4x128xf32>, vector<128x320xf32>, vector<4x320xf32> -> vector<4x320xf32>
    %88 = vector.broadcast %3 : vector<1x320xf32> to vector<4x320xf32>
    %89 = arith.mulf %87, %88 : vector<4x320xf32>
    %cst_101 = arith.constant dense<0.000000e+00> : vector<4xf32>
    %90 = vector.multi_reduction <add>, %89, %cst_101 [1] : vector<4x320xf32> to vector<4xf32>
    %91 = vector.shape_cast %90 : vector<4xf32> to vector<4x1xf32>
    %cst_102 = arith.constant 3.906250e-03 : f32
    %92 = vector.broadcast %cst_102 : f32 to vector<4x1xf32>
    %93 = arith.mulf %91, %92 : vector<4x1xf32>
    %94 = vector.broadcast %93 : vector<4x1xf32> to vector<4x320xf32>
    %95 = arith.subf %87, %94 : vector<4x320xf32>
    %96 = vector.broadcast %3 : vector<1x320xf32> to vector<4x320xf32>
    %97 = arith.mulf %95, %96 : vector<4x320xf32>
    %98 = arith.mulf %97, %97 : vector<4x320xf32>
    %cst_103 = arith.constant dense<0.000000e+00> : vector<4xf32>
    %99 = vector.multi_reduction <add>, %98, %cst_103 [1] : vector<4x320xf32> to vector<4xf32>
    %100 = vector.shape_cast %99 : vector<4xf32> to vector<4x1xf32>
    %cst_104 = arith.constant 3.906250e-03 : f32
    %101 = vector.broadcast %cst_104 : f32 to vector<4x1xf32>
    %102 = arith.mulf %100, %101 : vector<4x1xf32>
    %103 = vector.broadcast %93 : vector<4x1xf32> to vector<4x320xf32>
    %104 = arith.subf %87, %103 : vector<4x320xf32>
    %cst_105 = arith.constant 9.99999974E-6 : f32
    %105 = vector.broadcast %cst_105 : f32 to vector<4x1xf32>
    %106 = arith.addf %102, %105 : vector<4x1xf32>
    %107 = math.rsqrt %106 : vector<4x1xf32>
    %108 = vector.broadcast %107 : vector<4x1xf32> to vector<4x320xf32>
    %109 = arith.mulf %104, %108 : vector<4x320xf32>
    %cst_106 = arith.constant 0.000000e+00 : f32
    %110 = vector.broadcast %cst_106 : f32 to vector<4x320xf32>
    %111 = arith.cmpf oge, %109, %110 : vector<4x320xf32>
    %112 = vector.broadcast %0 : f32 to vector<4x320xf32>
    %113 = arith.mulf %112, %109 : vector<4x320xf32>
    %114 = arith.select %111, %109, %113 : vector<4x320xi1>, vector<4x320xf32>
    %115 = vector.broadcast %3 : vector<1x320xf32> to vector<4x320xf32>
    %116 = arith.mulf %114, %115 : vector<4x320xf32>
    %c0_107 = arith.constant 0 : index
    %c42_108 = arith.constant 42 : index
    %117 = vector.load %arg9[%c0_107, %c42_108] : memref<4x512xf32, #tpu.memory_space<vmem>>, vector<4x320xf32>
    tpu.vector_store %arg9[%c0_107, %c42_108], %116 {strides = array<i32>} : memref<4x512xf32, #tpu.memory_space<vmem>>, vector<4x320xf32>,
    %c0_109 = arith.constant 0 : index
    %c0_110 = arith.constant 0 : index
    %118 = vector.load %arg9[%c0_109, %c0_110] : memref<4x512xf32, #tpu.memory_space<vmem>>, vector<4x320xf32>
    %c0_111 = arith.constant 0 : index
    %c0_112 = arith.constant 0 : index
    %119 = vector.load %arg10[%c0_111, %c0_112] : memref<128x320xf32, #tpu.memory_space<vmem>>, vector<4x320xf32>
    tpu.vector_store %arg10[%c0_111, %c0_112], %118 {strides = array<i32>} : memref<128x320xf32, #tpu.memory_space<vmem>>, vector<4x320xf32>,
    %c0_113 = arith.constant 0 : index
    %c1_114 = arith.constant 1 : index
    %120 = vector.load %arg9[%c0_113, %c1_114] : memref<4x512xf32, #tpu.memory_space<vmem>>, vector<4x320xf32>
    %c4_115 = arith.constant 4 : index
    %c0_116 = arith.constant 0 : index
    %121 = vector.load %arg10[%c4_115, %c0_116] : memref<128x320xf32, #tpu.memory_space<vmem>>, vector<4x320xf32>
    tpu.vector_store %arg10[%c4_115, %c0_116], %120 {strides = array<i32>} : memref<128x320xf32, #tpu.memory_space<vmem>>, vector<4x320xf32>,
    %c0_117 = arith.constant 0 : index
    %c2_118 = arith.constant 2 : index
    %122 = vector.load %arg9[%c0_117, %c2_118] : memref<4x512xf32, #tpu.memory_space<vmem>>, vector<4x320xf32>
    %c8_119 = arith.constant 8 : index
    %c0_120 = arith.constant 0 : index
    %123 = vector.load %arg10[%c8_119, %c0_120] : memref<128x320xf32, #tpu.memory_space<vmem>>, vector<4x320xf32>
    tpu.vector_store %arg10[%c8_119, %c0_120], %122 {strides = array<i32>} : memref<128x320xf32, #tpu.memory_space<vmem>>, vector<4x320xf32>,
    %c0_121 = arith.constant 0 : index
    %c3_122 = arith.constant 3 : index
    %124 = vector.load %arg9[%c0_121, %c3_122] : memref<4x512xf32, #tpu.memory_space<vmem>>, vector<4x320xf32>
    %c12_123 = arith.constant 12 : index
    %c0_124 = arith.constant 0 : index
    %125 = vector.load %arg10[%c12_123, %c0_124] : memref<128x320xf32, #tpu.memory_space<vmem>>, vector<4x320xf32>
    tpu.vector_store %arg10[%c12_123, %c0_124], %124 {strides = array<i32>} : memref<128x320xf32, #tpu.memory_space<vmem>>, vector<4x320xf32>,
    %c0_125 = arith.constant 0 : index
    %c4_126 = arith.constant 4 : index
    %126 = vector.load %arg9[%c0_125, %c4_126] : memref<4x512xf32, #tpu.memory_space<vmem>>, vector<4x320xf32>
    %c16_127 = arith.constant 16 : index
    %c0_128 = arith.constant 0 : index
    %127 = vector.load %arg10[%c16_127, %c0_128] : memref<128x320xf32, #tpu.memory_space<vmem>>, vector<4x320xf32>
    tpu.vector_store %arg10[%c16_127, %c0_128], %126 {strides = array<i32>} : memref<128x320xf32, #tpu.memory_space<vmem>>, vector<4x320xf32>,
    %c0_129 = arith.constant 0 : index
    %c20_130 = arith.constant 20 : index
    %128 = vector.load %arg9[%c0_129, %c20_130] : memref<4x512xf32, #tpu.memory_space<vmem>>, vector<4x320xf32>
    %c20_131 = arith.constant 20 : index
    %c0_132 = arith.constant 0 : index
    %129 = vector.load %arg10[%c20_131, %c0_132] : memref<128x320xf32, #tpu.memory_space<vmem>>, vector<4x320xf32>
    tpu.vector_store %arg10[%c20_131, %c0_132], %128 {strides = array<i32>} : memref<128x320xf32, #tpu.memory_space<vmem>>, vector<4x320xf32>,
    %c0_133 = arith.constant 0 : index
    %c21_134 = arith.constant 21 : index
    %130 = vector.load %arg9[%c0_133, %c21_134] : memref<4x512xf32, #tpu.memory_space<vmem>>, vector<4x320xf32>
    %c24_135 = arith.constant 24 : index
    %c0_136 = arith.constant 0 : index
    %131 = vector.load %arg10[%c24_135, %c0_136] : memref<128x320xf32, #tpu.memory_space<vmem>>, vector<4x320xf32>
    tpu.vector_store %arg10[%c24_135, %c0_136], %130 {strides = array<i32>} : memref<128x320xf32, #tpu.memory_space<vmem>>, vector<4x320xf32>,
    %c0_137 = arith.constant 0 : index
    %c22_138 = arith.constant 22 : index
    %132 = vector.load %arg9[%c0_137, %c22_138] : memref<4x512xf32, #tpu.memory_space<vmem>>, vector<4x320xf32>
    %c28_139 = arith.constant 28 : index
    %c0_140 = arith.constant 0 : index
    %133 = vector.load %arg10[%c28_139, %c0_140] : memref<128x320xf32, #tpu.memory_space<vmem>>, vector<4x320xf32>
    tpu.vector_store %arg10[%c28_139, %c0_140], %132 {strides = array<i32>} : memref<128x320xf32, #tpu.memory_space<vmem>>, vector<4x320xf32>,
    %c0_141 = arith.constant 0 : index
    %c23_142 = arith.constant 23 : index
    %134 = vector.load %arg9[%c0_141, %c23_142] : memref<4x512xf32, #tpu.memory_space<vmem>>, vector<4x320xf32>
    %c32_143 = arith.constant 32 : index
    %c0_144 = arith.constant 0 : index
    %135 = vector.load %arg10[%c32_143, %c0_144] : memref<128x320xf32, #tpu.memory_space<vmem>>, vector<4x320xf32>
    tpu.vector_store %arg10[%c32_143, %c0_144], %134 {strides = array<i32>} : memref<128x320xf32, #tpu.memory_space<vmem>>, vector<4x320xf32>,
    %c0_145 = arith.constant 0 : index
    %c24_146 = arith.constant 24 : index
    %136 = vector.load %arg9[%c0_145, %c24_146] : memref<4x512xf32, #tpu.memory_space<vmem>>, vector<4x320xf32>
    %c36_147 = arith.constant 36 : index
    %c0_148 = arith.constant 0 : index
    %137 = vector.load %arg10[%c36_147, %c0_148] : memref<128x320xf32, #tpu.memory_space<vmem>>, vector<4x320xf32>
    tpu.vector_store %arg10[%c36_147, %c0_148], %136 {strides = array<i32>} : memref<128x320xf32, #tpu.memory_space<vmem>>, vector<4x320xf32>,
    %c0_149 = arith.constant 0 : index
    %c40_150 = arith.constant 40 : index
    %138 = vector.load %arg9[%c0_149, %c40_150] : memref<4x512xf32, #tpu.memory_space<vmem>>, vector<4x320xf32>
    %c40_151 = arith.constant 40 : index
    %c0_152 = arith.constant 0 : index
    %139 = vector.load %arg10[%c40_151, %c0_152] : memref<128x320xf32, #tpu.memory_space<vmem>>, vector<4x320xf32>
    tpu.vector_store %arg10[%c40_151, %c0_152], %138 {strides = array<i32>} : memref<128x320xf32, #tpu.memory_space<vmem>>, vector<4x320xf32>,
    %c0_153 = arith.constant 0 : index
    %c41_154 = arith.constant 41 : index
    %140 = vector.load %arg9[%c0_153, %c41_154] : memref<4x512xf32, #tpu.memory_space<vmem>>, vector<4x320xf32>
    %c44_155 = arith.constant 44 : index
    %c0_156 = arith.constant 0 : index
    %141 = vector.load %arg10[%c44_155, %c0_156] : memref<128x320xf32, #tpu.memory_space<vmem>>, vector<4x320xf32>
    tpu.vector_store %arg10[%c44_155, %c0_156], %140 {strides = array<i32>} : memref<128x320xf32, #tpu.memory_space<vmem>>, vector<4x320xf32>,
    %c0_157 = arith.constant 0 : index
    %c42_158 = arith.constant 42 : index
    %142 = vector.load %arg9[%c0_157, %c42_158] : memref<4x512xf32, #tpu.memory_space<vmem>>, vector<4x320xf32>
    %c48_159 = arith.constant 48 : index
    %c0_160 = arith.constant 0 : index
    %143 = vector.load %arg10[%c48_159, %c0_160] : memref<128x320xf32, #tpu.memory_space<vmem>>, vector<4x320xf32>
    tpu.vector_store %arg10[%c48_159, %c0_160], %142 {strides = array<i32>} : memref<128x320xf32, #tpu.memory_space<vmem>>, vector<4x320xf32>,
    %c0_161 = arith.constant 0 : index
    %c43_162 = arith.constant 43 : index
    %144 = vector.load %arg9[%c0_161, %c43_162] : memref<4x512xf32, #tpu.memory_space<vmem>>, vector<4x320xf32>
    %c52_163 = arith.constant 52 : index
    %c0_164 = arith.constant 0 : index
    %145 = vector.load %arg10[%c52_163, %c0_164] : memref<128x320xf32, #tpu.memory_space<vmem>>, vector<4x320xf32>
    tpu.vector_store %arg10[%c52_163, %c0_164], %144 {strides = array<i32>} : memref<128x320xf32, #tpu.memory_space<vmem>>, vector<4x320xf32>,
    %c0_165 = arith.constant 0 : index
    %c44_166 = arith.constant 44 : index
    %146 = vector.load %arg9[%c0_165, %c44_166] : memref<4x512xf32, #tpu.memory_space<vmem>>, vector<4x320xf32>
    %c56_167 = arith.constant 56 : index
    %c0_168 = arith.constant 0 : index
    %147 = vector.load %arg10[%c56_167, %c0_168] : memref<128x320xf32, #tpu.memory_space<vmem>>, vector<4x320xf32>
    tpu.vector_store %arg10[%c56_167, %c0_168], %146 {strides = array<i32>} : memref<128x320xf32, #tpu.memory_space<vmem>>, vector<4x320xf32>,
    %c0_169 = arith.constant 0 : index
    %c60_170 = arith.constant 60 : index
    %148 = vector.load %arg9[%c0_169, %c60_170] : memref<4x512xf32, #tpu.memory_space<vmem>>, vector<4x320xf32>
    %c60_171 = arith.constant 60 : index
    %c0_172 = arith.constant 0 : index
    %149 = vector.load %arg10[%c60_171, %c0_172] : memref<128x320xf32, #tpu.memory_space<vmem>>, vector<4x320xf32>
    tpu.vector_store %arg10[%c60_171, %c0_172], %148 {strides = array<i32>} : memref<128x320xf32, #tpu.memory_space<vmem>>, vector<4x320xf32>,
    %c0_173 = arith.constant 0 : index
    %c61_174 = arith.constant 61 : index
    %150 = vector.load %arg9[%c0_173, %c61_174] : memref<4x512xf32, #tpu.memory_space<vmem>>, vector<4x320xf32>
    %c64_175 = arith.constant 64 : index
    %c0_176 = arith.constant 0 : index
    %151 = vector.load %arg10[%c64_175, %c0_176] : memref<128x320xf32, #tpu.memory_space<vmem>>, vector<4x320xf32>
    tpu.vector_store %arg10[%c64_175, %c0_176], %150 {strides = array<i32>} : memref<128x320xf32, #tpu.memory_space<vmem>>, vector<4x320xf32>,
    %c0_177 = arith.constant 0 : index
    %c62_178 = arith.constant 62 : index
    %152 = vector.load %arg9[%c0_177, %c62_178] : memref<4x512xf32, #tpu.memory_space<vmem>>, vector<4x320xf32>
    %c68_179 = arith.constant 68 : index
    %c0_180 = arith.constant 0 : index
    %153 = vector.load %arg10[%c68_179, %c0_180] : memref<128x320xf32, #tpu.memory_space<vmem>>, vector<4x320xf32>
    tpu.vector_store %arg10[%c68_179, %c0_180], %152 {strides = array<i32>} : memref<128x320xf32, #tpu.memory_space<vmem>>, vector<4x320xf32>,
    %c0_181 = arith.constant 0 : index
    %c63_182 = arith.constant 63 : index
    %154 = vector.load %arg9[%c0_181, %c63_182] : memref<4x512xf32, #tpu.memory_space<vmem>>, vector<4x320xf32>
    %c72_183 = arith.constant 72 : index
    %c0_184 = arith.constant 0 : index
    %155 = vector.load %arg10[%c72_183, %c0_184] : memref<128x320xf32, #tpu.memory_space<vmem>>, vector<4x320xf32>
    tpu.vector_store %arg10[%c72_183, %c0_184], %154 {strides = array<i32>} : memref<128x320xf32, #tpu.memory_space<vmem>>, vector<4x320xf32>,
    %c0_185 = arith.constant 0 : index
    %c64_186 = arith.constant 64 : index
    %156 = vector.load %arg9[%c0_185, %c64_186] : memref<4x512xf32, #tpu.memory_space<vmem>>, vector<4x320xf32>
    %c76_187 = arith.constant 76 : index
    %c0_188 = arith.constant 0 : index
    %157 = vector.load %arg10[%c76_187, %c0_188] : memref<128x320xf32, #tpu.memory_space<vmem>>, vector<4x320xf32>
    tpu.vector_store %arg10[%c76_187, %c0_188], %156 {strides = array<i32>} : memref<128x320xf32, #tpu.memory_space<vmem>>, vector<4x320xf32>,
    %c0_189 = arith.constant 0 : index
    %c80_190 = arith.constant 80 : index
    %158 = vector.load %arg9[%c0_189, %c80_190] : memref<4x512xf32, #tpu.memory_space<vmem>>, vector<4x320xf32>
    %c80_191 = arith.constant 80 : index
    %c0_192 = arith.constant 0 : index
    %159 = vector.load %arg10[%c80_191, %c0_192] : memref<128x320xf32, #tpu.memory_space<vmem>>, vector<4x320xf32>
    tpu.vector_store %arg10[%c80_191, %c0_192], %158 {strides = array<i32>} : memref<128x320xf32, #tpu.memory_space<vmem>>, vector<4x320xf32>,
    %c0_193 = arith.constant 0 : index
    %c81_194 = arith.constant 81 : index
    %160 = vector.load %arg9[%c0_193, %c81_194] : memref<4x512xf32, #tpu.memory_space<vmem>>, vector<4x320xf32>
    %c84_195 = arith.constant 84 : index
    %c0_196 = arith.constant 0 : index
    %161 = vector.load %arg10[%c84_195, %c0_196] : memref<128x320xf32, #tpu.memory_space<vmem>>, vector<4x320xf32>
    tpu.vector_store %arg10[%c84_195, %c0_196], %160 {strides = array<i32>} : memref<128x320xf32, #tpu.memory_space<vmem>>, vector<4x320xf32>,
    %c0_197 = arith.constant 0 : index
    %c82_198 = arith.constant 82 : index
    %162 = vector.load %arg9[%c0_197, %c82_198] : memref<4x512xf32, #tpu.memory_space<vmem>>, vector<4x320xf32>
    %c88_199 = arith.constant 88 : index
    %c0_200 = arith.constant 0 : index
    %163 = vector.load %arg10[%c88_199, %c0_200] : memref<128x320xf32, #tpu.memory_space<vmem>>, vector<4x320xf32>
    tpu.vector_store %arg10[%c88_199, %c0_200], %162 {strides = array<i32>} : memref<128x320xf32, #tpu.memory_space<vmem>>, vector<4x320xf32>,
    %c0_201 = arith.constant 0 : index
    %c83_202 = arith.constant 83 : index
    %164 = vector.load %arg9[%c0_201, %c83_202] : memref<4x512xf32, #tpu.memory_space<vmem>>, vector<4x320xf32>
    %c92_203 = arith.constant 92 : index
    %c0_204 = arith.constant 0 : index
    %165 = vector.load %arg10[%c92_203, %c0_204] : memref<128x320xf32, #tpu.memory_space<vmem>>, vector<4x320xf32>
    tpu.vector_store %arg10[%c92_203, %c0_204], %164 {strides = array<i32>} : memref<128x320xf32, #tpu.memory_space<vmem>>, vector<4x320xf32>,
    %c0_205 = arith.constant 0 : index
    %c84_206 = arith.constant 84 : index
    %166 = vector.load %arg9[%c0_205, %c84_206] : memref<4x512xf32, #tpu.memory_space<vmem>>, vector<4x320xf32>
    %c96_207 = arith.constant 96 : index
    %c0_208 = arith.constant 0 : index
    %167 = vector.load %arg10[%c96_207, %c0_208] : memref<128x320xf32, #tpu.memory_space<vmem>>, vector<4x320xf32>
    tpu.vector_store %arg10[%c96_207, %c0_208], %166 {strides = array<i32>} : memref<128x320xf32, #tpu.memory_space<vmem>>, vector<4x320xf32>,
    %c0_209 = arith.constant 0 : index
    %c0_210 = arith.constant 0 : index
    %168 = vector.load %arg5[%c0_209, %c0_210] : memref<4x128xf32, #tpu.memory_space<vmem>>, vector<4x128xf32>
    %c0_211 = arith.constant 0 : index
    %c0_212 = arith.constant 0 : index
    %169 = vector.load %arg10[%c0_211, %c0_212] : memref<128x320xf32, #tpu.memory_space<vmem>>, vector<128x320xf32>
    %cst_213 = arith.constant dense<0.000000e+00> : vector<4x320xf32>
    %170 = tpu.matmul %168, %169, %cst_213 {dimension_numbers = #tpu.dot_dimension_numbers<[1], [0], [0], [1], [0, 0, 1, 1], [], []>, precision = #tpu.contract_precision<fp32>} : vector<4x128xf32>, vector<128x320xf32>, vector<4x320xf32> -> vector<4x320xf32>
    %171 = vector.broadcast %3 : vector<1x320xf32> to vector<4x320xf32>
    %172 = arith.mulf %170, %171 : vector<4x320xf32>
    %cst_214 = arith.constant dense<0.000000e+00> : vector<4xf32>
    %173 = vector.multi_reduction <add>, %172, %cst_214 [1] : vector<4x320xf32> to vector<4xf32>
    %174 = vector.shape_cast %173 : vector<4xf32> to vector<4x1xf32>
    %cst_215 = arith.constant 3.906250e-03 : f32
    %175 = vector.broadcast %cst_215 : f32 to vector<4x1xf32>
    %176 = arith.mulf %174, %175 : vector<4x1xf32>
    %177 = vector.broadcast %176 : vector<4x1xf32> to vector<4x320xf32>
    %178 = arith.subf %170, %177 : vector<4x320xf32>
    %179 = vector.broadcast %3 : vector<1x320xf32> to vector<4x320xf32>
    %180 = arith.mulf %178, %179 : vector<4x320xf32>
    %181 = arith.mulf %180, %180 : vector<4x320xf32>
    %cst_216 = arith.constant dense<0.000000e+00> : vector<4xf32>
    %182 = vector.multi_reduction <add>, %181, %cst_216 [1] : vector<4x320xf32> to vector<4xf32>
    %183 = vector.shape_cast %182 : vector<4xf32> to vector<4x1xf32>
    %cst_217 = arith.constant 3.906250e-03 : f32
    %184 = vector.broadcast %cst_217 : f32 to vector<4x1xf32>
    %185 = arith.mulf %183, %184 : vector<4x1xf32>
    %186 = vector.broadcast %176 : vector<4x1xf32> to vector<4x320xf32>
    %187 = arith.subf %170, %186 : vector<4x320xf32>
    %cst_218 = arith.constant 9.99999974E-6 : f32
    %188 = vector.broadcast %cst_218 : f32 to vector<4x1xf32>
    %189 = arith.addf %185, %188 : vector<4x1xf32>
    %190 = math.rsqrt %189 : vector<4x1xf32>
    %191 = vector.broadcast %190 : vector<4x1xf32> to vector<4x320xf32>
    %192 = arith.mulf %187, %191 : vector<4x320xf32>
    %cst_219 = arith.constant 0.000000e+00 : f32
    %193 = vector.broadcast %cst_219 : f32 to vector<4x320xf32>
    %194 = arith.cmpf oge, %192, %193 : vector<4x320xf32>
    %195 = vector.broadcast %1 : f32 to vector<4x320xf32>
    %196 = arith.mulf %195, %192 : vector<4x320xf32>
    %197 = arith.select %194, %192, %196 : vector<4x320xi1>, vector<4x320xf32>
    %198 = vector.broadcast %3 : vector<1x320xf32> to vector<4x320xf32>
    %199 = arith.mulf %197, %198 : vector<4x320xf32>
    %c0_220 = arith.constant 0 : index
    %c42_221 = arith.constant 42 : index
    %200 = vector.load %arg9[%c0_220, %c42_221] : memref<4x512xf32, #tpu.memory_space<vmem>>, vector<4x320xf32>
    tpu.vector_store %arg9[%c0_220, %c42_221], %199 {strides = array<i32>} : memref<4x512xf32, #tpu.memory_space<vmem>>, vector<4x320xf32>,
    %c0_222 = arith.constant 0 : index
    %c0_223 = arith.constant 0 : index
    %201 = vector.load %arg9[%c0_222, %c0_223] : memref<4x512xf32, #tpu.memory_space<vmem>>, vector<4x320xf32>
    %c0_224 = arith.constant 0 : index
    %c0_225 = arith.constant 0 : index
    %202 = vector.load %arg10[%c0_224, %c0_225] : memref<128x320xf32, #tpu.memory_space<vmem>>, vector<4x320xf32>
    tpu.vector_store %arg10[%c0_224, %c0_225], %201 {strides = array<i32>} : memref<128x320xf32, #tpu.memory_space<vmem>>, vector<4x320xf32>,
    %c0_226 = arith.constant 0 : index
    %c1_227 = arith.constant 1 : index
    %203 = vector.load %arg9[%c0_226, %c1_227] : memref<4x512xf32, #tpu.memory_space<vmem>>, vector<4x320xf32>
    %c4_228 = arith.constant 4 : index
    %c0_229 = arith.constant 0 : index
    %204 = vector.load %arg10[%c4_228, %c0_229] : memref<128x320xf32, #tpu.memory_space<vmem>>, vector<4x320xf32>
    tpu.vector_store %arg10[%c4_228, %c0_229], %203 {strides = array<i32>} : memref<128x320xf32, #tpu.memory_space<vmem>>, vector<4x320xf32>,
    %c0_230 = arith.constant 0 : index
    %c2_231 = arith.constant 2 : index
    %205 = vector.load %arg9[%c0_230, %c2_231] : memref<4x512xf32, #tpu.memory_space<vmem>>, vector<4x320xf32>
    %c8_232 = arith.constant 8 : index
    %c0_233 = arith.constant 0 : index
    %206 = vector.load %arg10[%c8_232, %c0_233] : memref<128x320xf32, #tpu.memory_space<vmem>>, vector<4x320xf32>
    tpu.vector_store %arg10[%c8_232, %c0_233], %205 {strides = array<i32>} : memref<128x320xf32, #tpu.memory_space<vmem>>, vector<4x320xf32>,
    %c0_234 = arith.constant 0 : index
    %c3_235 = arith.constant 3 : index
    %207 = vector.load %arg9[%c0_234, %c3_235] : memref<4x512xf32, #tpu.memory_space<vmem>>, vector<4x320xf32>
    %c12_236 = arith.constant 12 : index
    %c0_237 = arith.constant 0 : index
    %208 = vector.load %arg10[%c12_236, %c0_237] : memref<128x320xf32, #tpu.memory_space<vmem>>, vector<4x320xf32>
    tpu.vector_store %arg10[%c12_236, %c0_237], %207 {strides = array<i32>} : memref<128x320xf32, #tpu.memory_space<vmem>>, vector<4x320xf32>,
    %c0_238 = arith.constant 0 : index
    %c4_239 = arith.constant 4 : index
    %209 = vector.load %arg9[%c0_238, %c4_239] : memref<4x512xf32, #tpu.memory_space<vmem>>, vector<4x320xf32>
    %c16_240 = arith.constant 16 : index
    %c0_241 = arith.constant 0 : index
    %210 = vector.load %arg10[%c16_240, %c0_241] : memref<128x320xf32, #tpu.memory_space<vmem>>, vector<4x320xf32>
    tpu.vector_store %arg10[%c16_240, %c0_241], %209 {strides = array<i32>} : memref<128x320xf32, #tpu.memory_space<vmem>>, vector<4x320xf32>,
    %c0_242 = arith.constant 0 : index
    %c20_243 = arith.constant 20 : index
    %211 = vector.load %arg9[%c0_242, %c20_243] : memref<4x512xf32, #tpu.memory_space<vmem>>, vector<4x320xf32>
    %c20_244 = arith.constant 20 : index
    %c0_245 = arith.constant 0 : index
    %212 = vector.load %arg10[%c20_244, %c0_245] : memref<128x320xf32, #tpu.memory_space<vmem>>, vector<4x320xf32>
    tpu.vector_store %arg10[%c20_244, %c0_245], %211 {strides = array<i32>} : memref<128x320xf32, #tpu.memory_space<vmem>>, vector<4x320xf32>,
    %c0_246 = arith.constant 0 : index
    %c21_247 = arith.constant 21 : index
    %213 = vector.load %arg9[%c0_246, %c21_247] : memref<4x512xf32, #tpu.memory_space<vmem>>, vector<4x320xf32>
    %c24_248 = arith.constant 24 : index
    %c0_249 = arith.constant 0 : index
    %214 = vector.load %arg10[%c24_248, %c0_249] : memref<128x320xf32, #tpu.memory_space<vmem>>, vector<4x320xf32>
    tpu.vector_store %arg10[%c24_248, %c0_249], %213 {strides = array<i32>} : memref<128x320xf32, #tpu.memory_space<vmem>>, vector<4x320xf32>,
    %c0_250 = arith.constant 0 : index
    %c22_251 = arith.constant 22 : index
    %215 = vector.load %arg9[%c0_250, %c22_251] : memref<4x512xf32, #tpu.memory_space<vmem>>, vector<4x320xf32>
    %c28_252 = arith.constant 28 : index
    %c0_253 = arith.constant 0 : index
    %216 = vector.load %arg10[%c28_252, %c0_253] : memref<128x320xf32, #tpu.memory_space<vmem>>, vector<4x320xf32>
    tpu.vector_store %arg10[%c28_252, %c0_253], %215 {strides = array<i32>} : memref<128x320xf32, #tpu.memory_space<vmem>>, vector<4x320xf32>,
    %c0_254 = arith.constant 0 : index
    %c23_255 = arith.constant 23 : index
    %217 = vector.load %arg9[%c0_254, %c23_255] : memref<4x512xf32, #tpu.memory_space<vmem>>, vector<4x320xf32>
    %c32_256 = arith.constant 32 : index
    %c0_257 = arith.constant 0 : index
    %218 = vector.load %arg10[%c32_256, %c0_257] : memref<128x320xf32, #tpu.memory_space<vmem>>, vector<4x320xf32>
    tpu.vector_store %arg10[%c32_256, %c0_257], %217 {strides = array<i32>} : memref<128x320xf32, #tpu.memory_space<vmem>>, vector<4x320xf32>,
    %c0_258 = arith.constant 0 : index
    %c24_259 = arith.constant 24 : index
    %219 = vector.load %arg9[%c0_258, %c24_259] : memref<4x512xf32, #tpu.memory_space<vmem>>, vector<4x320xf32>
    %c36_260 = arith.constant 36 : index
    %c0_261 = arith.constant 0 : index
    %220 = vector.load %arg10[%c36_260, %c0_261] : memref<128x320xf32, #tpu.memory_space<vmem>>, vector<4x320xf32>
    tpu.vector_store %arg10[%c36_260, %c0_261], %219 {strides = array<i32>} : memref<128x320xf32, #tpu.memory_space<vmem>>, vector<4x320xf32>,
    %c0_262 = arith.constant 0 : index
    %c40_263 = arith.constant 40 : index
    %221 = vector.load %arg9[%c0_262, %c40_263] : memref<4x512xf32, #tpu.memory_space<vmem>>, vector<4x320xf32>
    %c40_264 = arith.constant 40 : index
    %c0_265 = arith.constant 0 : index
    %222 = vector.load %arg10[%c40_264, %c0_265] : memref<128x320xf32, #tpu.memory_space<vmem>>, vector<4x320xf32>
    tpu.vector_store %arg10[%c40_264, %c0_265], %221 {strides = array<i32>} : memref<128x320xf32, #tpu.memory_space<vmem>>, vector<4x320xf32>,
    %c0_266 = arith.constant 0 : index
    %c41_267 = arith.constant 41 : index
    %223 = vector.load %arg9[%c0_266, %c41_267] : memref<4x512xf32, #tpu.memory_space<vmem>>, vector<4x320xf32>
    %c44_268 = arith.constant 44 : index
    %c0_269 = arith.constant 0 : index
    %224 = vector.load %arg10[%c44_268, %c0_269] : memref<128x320xf32, #tpu.memory_space<vmem>>, vector<4x320xf32>
    tpu.vector_store %arg10[%c44_268, %c0_269], %223 {strides = array<i32>} : memref<128x320xf32, #tpu.memory_space<vmem>>, vector<4x320xf32>,
    %c0_270 = arith.constant 0 : index
    %c42_271 = arith.constant 42 : index
    %225 = vector.load %arg9[%c0_270, %c42_271] : memref<4x512xf32, #tpu.memory_space<vmem>>, vector<4x320xf32>
    %c48_272 = arith.constant 48 : index
    %c0_273 = arith.constant 0 : index
    %226 = vector.load %arg10[%c48_272, %c0_273] : memref<128x320xf32, #tpu.memory_space<vmem>>, vector<4x320xf32>
    tpu.vector_store %arg10[%c48_272, %c0_273], %225 {strides = array<i32>} : memref<128x320xf32, #tpu.memory_space<vmem>>, vector<4x320xf32>,
    %c0_274 = arith.constant 0 : index
    %c43_275 = arith.constant 43 : index
    %227 = vector.load %arg9[%c0_274, %c43_275] : memref<4x512xf32, #tpu.memory_space<vmem>>, vector<4x320xf32>
    %c52_276 = arith.constant 52 : index
    %c0_277 = arith.constant 0 : index
    %228 = vector.load %arg10[%c52_276, %c0_277] : memref<128x320xf32, #tpu.memory_space<vmem>>, vector<4x320xf32>
    tpu.vector_store %arg10[%c52_276, %c0_277], %227 {strides = array<i32>} : memref<128x320xf32, #tpu.memory_space<vmem>>, vector<4x320xf32>,
    %c0_278 = arith.constant 0 : index
    %c44_279 = arith.constant 44 : index
    %229 = vector.load %arg9[%c0_278, %c44_279] : memref<4x512xf32, #tpu.memory_space<vmem>>, vector<4x320xf32>
    %c56_280 = arith.constant 56 : index
    %c0_281 = arith.constant 0 : index
    %230 = vector.load %arg10[%c56_280, %c0_281] : memref<128x320xf32, #tpu.memory_space<vmem>>, vector<4x320xf32>
    tpu.vector_store %arg10[%c56_280, %c0_281], %229 {strides = array<i32>} : memref<128x320xf32, #tpu.memory_space<vmem>>, vector<4x320xf32>,
    %c0_282 = arith.constant 0 : index
    %c60_283 = arith.constant 60 : index
    %231 = vector.load %arg9[%c0_282, %c60_283] : memref<4x512xf32, #tpu.memory_space<vmem>>, vector<4x320xf32>
    %c60_284 = arith.constant 60 : index
    %c0_285 = arith.constant 0 : index
    %232 = vector.load %arg10[%c60_284, %c0_285] : memref<128x320xf32, #tpu.memory_space<vmem>>, vector<4x320xf32>
    tpu.vector_store %arg10[%c60_284, %c0_285], %231 {strides = array<i32>} : memref<128x320xf32, #tpu.memory_space<vmem>>, vector<4x320xf32>,
    %c0_286 = arith.constant 0 : index
    %c61_287 = arith.constant 61 : index
    %233 = vector.load %arg9[%c0_286, %c61_287] : memref<4x512xf32, #tpu.memory_space<vmem>>, vector<4x320xf32>
    %c64_288 = arith.constant 64 : index
    %c0_289 = arith.constant 0 : index
    %234 = vector.load %arg10[%c64_288, %c0_289] : memref<128x320xf32, #tpu.memory_space<vmem>>, vector<4x320xf32>
    tpu.vector_store %arg10[%c64_288, %c0_289], %233 {strides = array<i32>} : memref<128x320xf32, #tpu.memory_space<vmem>>, vector<4x320xf32>,
    %c0_290 = arith.constant 0 : index
    %c62_291 = arith.constant 62 : index
    %235 = vector.load %arg9[%c0_290, %c62_291] : memref<4x512xf32, #tpu.memory_space<vmem>>, vector<4x320xf32>
    %c68_292 = arith.constant 68 : index
    %c0_293 = arith.constant 0 : index
    %236 = vector.load %arg10[%c68_292, %c0_293] : memref<128x320xf32, #tpu.memory_space<vmem>>, vector<4x320xf32>
    tpu.vector_store %arg10[%c68_292, %c0_293], %235 {strides = array<i32>} : memref<128x320xf32, #tpu.memory_space<vmem>>, vector<4x320xf32>,
    %c0_294 = arith.constant 0 : index
    %c63_295 = arith.constant 63 : index
    %237 = vector.load %arg9[%c0_294, %c63_295] : memref<4x512xf32, #tpu.memory_space<vmem>>, vector<4x320xf32>
    %c72_296 = arith.constant 72 : index
    %c0_297 = arith.constant 0 : index
    %238 = vector.load %arg10[%c72_296, %c0_297] : memref<128x320xf32, #tpu.memory_space<vmem>>, vector<4x320xf32>
    tpu.vector_store %arg10[%c72_296, %c0_297], %237 {strides = array<i32>} : memref<128x320xf32, #tpu.memory_space<vmem>>, vector<4x320xf32>,
    %c0_298 = arith.constant 0 : index
    %c64_299 = arith.constant 64 : index
    %239 = vector.load %arg9[%c0_298, %c64_299] : memref<4x512xf32, #tpu.memory_space<vmem>>, vector<4x320xf32>
    %c76_300 = arith.constant 76 : index
    %c0_301 = arith.constant 0 : index
    %240 = vector.load %arg10[%c76_300, %c0_301] : memref<128x320xf32, #tpu.memory_space<vmem>>, vector<4x320xf32>
    tpu.vector_store %arg10[%c76_300, %c0_301], %239 {strides = array<i32>} : memref<128x320xf32, #tpu.memory_space<vmem>>, vector<4x320xf32>,
    %c0_302 = arith.constant 0 : index
    %c80_303 = arith.constant 80 : index
    %241 = vector.load %arg9[%c0_302, %c80_303] : memref<4x512xf32, #tpu.memory_space<vmem>>, vector<4x320xf32>
    %c80_304 = arith.constant 80 : index
    %c0_305 = arith.constant 0 : index
    %242 = vector.load %arg10[%c80_304, %c0_305] : memref<128x320xf32, #tpu.memory_space<vmem>>, vector<4x320xf32>
    tpu.vector_store %arg10[%c80_304, %c0_305], %241 {strides = array<i32>} : memref<128x320xf32, #tpu.memory_space<vmem>>, vector<4x320xf32>,
    %c0_306 = arith.constant 0 : index
    %c81_307 = arith.constant 81 : index
    %243 = vector.load %arg9[%c0_306, %c81_307] : memref<4x512xf32, #tpu.memory_space<vmem>>, vector<4x320xf32>
    %c84_308 = arith.constant 84 : index
    %c0_309 = arith.constant 0 : index
    %244 = vector.load %arg10[%c84_308, %c0_309] : memref<128x320xf32, #tpu.memory_space<vmem>>, vector<4x320xf32>
    tpu.vector_store %arg10[%c84_308, %c0_309], %243 {strides = array<i32>} : memref<128x320xf32, #tpu.memory_space<vmem>>, vector<4x320xf32>,
    %c0_310 = arith.constant 0 : index
    %c82_311 = arith.constant 82 : index
    %245 = vector.load %arg9[%c0_310, %c82_311] : memref<4x512xf32, #tpu.memory_space<vmem>>, vector<4x320xf32>
    %c88_312 = arith.constant 88 : index
    %c0_313 = arith.constant 0 : index
    %246 = vector.load %arg10[%c88_312, %c0_313] : memref<128x320xf32, #tpu.memory_space<vmem>>, vector<4x320xf32>
    tpu.vector_store %arg10[%c88_312, %c0_313], %245 {strides = array<i32>} : memref<128x320xf32, #tpu.memory_space<vmem>>, vector<4x320xf32>,
    %c0_314 = arith.constant 0 : index
    %c83_315 = arith.constant 83 : index
    %247 = vector.load %arg9[%c0_314, %c83_315] : memref<4x512xf32, #tpu.memory_space<vmem>>, vector<4x320xf32>
    %c92_316 = arith.constant 92 : index
    %c0_317 = arith.constant 0 : index
    %248 = vector.load %arg10[%c92_316, %c0_317] : memref<128x320xf32, #tpu.memory_space<vmem>>, vector<4x320xf32>
    tpu.vector_store %arg10[%c92_316, %c0_317], %247 {strides = array<i32>} : memref<128x320xf32, #tpu.memory_space<vmem>>, vector<4x320xf32>,
    %c0_318 = arith.constant 0 : index
    %c84_319 = arith.constant 84 : index
    %249 = vector.load %arg9[%c0_318, %c84_319] : memref<4x512xf32, #tpu.memory_space<vmem>>, vector<4x320xf32>
    %c96_320 = arith.constant 96 : index
    %c0_321 = arith.constant 0 : index
    %250 = vector.load %arg10[%c96_320, %c0_321] : memref<128x320xf32, #tpu.memory_space<vmem>>, vector<4x320xf32>
    tpu.vector_store %arg10[%c96_320, %c0_321], %249 {strides = array<i32>} : memref<128x320xf32, #tpu.memory_space<vmem>>, vector<4x320xf32>,
    %c0_322 = arith.constant 0 : index
    %c0_323 = arith.constant 0 : index
    %251 = vector.load %arg6[%c0_322, %c0_323] : memref<8x128xf32, #tpu.memory_space<vmem>>, vector<8x128xf32>
    %c0_324 = arith.constant 0 : index
    %c0_325 = arith.constant 0 : index
    %252 = vector.load %arg10[%c0_324, %c0_325] : memref<128x320xf32, #tpu.memory_space<vmem>>, vector<128x320xf32>
    %cst_326 = arith.constant dense<0.000000e+00> : vector<8x320xf32>
    %253 = tpu.matmul %251, %252, %cst_326 {dimension_numbers = #tpu.dot_dimension_numbers<[1], [0], [0], [1], [0, 0, 1, 1], [], []>, precision = #tpu.contract_precision<fp32>} : vector<8x128xf32>, vector<128x320xf32>, vector<8x320xf32> -> vector<8x320xf32>
    %254 = vector.broadcast %3 : vector<1x320xf32> to vector<8x320xf32>
    %255 = arith.mulf %253, %254 : vector<8x320xf32>
    %cst_327 = arith.constant dense<0.000000e+00> : vector<8xf32>
    %256 = vector.multi_reduction <add>, %255, %cst_327 [1] : vector<8x320xf32> to vector<8xf32>
    %257 = vector.shape_cast %256 : vector<8xf32> to vector<8x1xf32>
    %cst_328 = arith.constant 3.906250e-03 : f32
    %258 = vector.broadcast %cst_328 : f32 to vector<8x1xf32>
    %259 = arith.mulf %257, %258 : vector<8x1xf32>
    %260 = vector.broadcast %259 : vector<8x1xf32> to vector<8x320xf32>
    %261 = arith.subf %253, %260 : vector<8x320xf32>
    %262 = vector.broadcast %3 : vector<1x320xf32> to vector<8x320xf32>
    %263 = arith.mulf %261, %262 : vector<8x320xf32>
    %264 = arith.mulf %263, %263 : vector<8x320xf32>
    %cst_329 = arith.constant dense<0.000000e+00> : vector<8xf32>
    %265 = vector.multi_reduction <add>, %264, %cst_329 [1] : vector<8x320xf32> to vector<8xf32>
    %266 = vector.shape_cast %265 : vector<8xf32> to vector<8x1xf32>
    %cst_330 = arith.constant 3.906250e-03 : f32
    %267 = vector.broadcast %cst_330 : f32 to vector<8x1xf32>
    %268 = arith.mulf %266, %267 : vector<8x1xf32>
    %269 = vector.broadcast %259 : vector<8x1xf32> to vector<8x320xf32>
    %270 = arith.subf %253, %269 : vector<8x320xf32>
    %cst_331 = arith.constant 9.99999974E-6 : f32
    %271 = vector.broadcast %cst_331 : f32 to vector<8x1xf32>
    %272 = arith.addf %268, %271 : vector<8x1xf32>
    %273 = math.rsqrt %272 : vector<8x1xf32>
    %274 = vector.broadcast %273 : vector<8x1xf32> to vector<8x320xf32>
    %275 = arith.mulf %270, %274 : vector<8x320xf32>
    %c0_332 = arith.constant 0 : index
    %c0_333 = arith.constant 0 : index
    %276 = vector.load %arg7[%c0_332, %c0_333] : memref<8x4xf32, #tpu.memory_space<vmem>>, vector<8x4xf32>
    %c0_334 = arith.constant 0 : index
    %c0_335 = arith.constant 0 : index
    %c42_336 = arith.constant 42 : index
    %277 = vector.load %arg3[%c0_334, %c0_335, %c42_336] : memref<1x4x512xf32, #tpu.memory_space<vmem>>, vector<1x4x320xf32>
    %278 = vector.shape_cast %277 : vector<1x4x320xf32> to vector<4x320xf32>
    %cst_337 = arith.constant dense<0.000000e+00> : vector<8x320xf32>
    %279 = tpu.matmul %276, %278, %cst_337 {dimension_numbers = #tpu.dot_dimension_numbers<[1], [0], [0], [1], [0, 0, 1, 1], [], []>, precision = #tpu.contract_precision<fp32>} : vector<8x4xf32>, vector<4x320xf32>, vector<8x320xf32> -> vector<8x320xf32>
    %280 = vector.broadcast %3 : vector<1x320xf32> to vector<8x320xf32>
    %281 = arith.mulf %279, %280 : vector<8x320xf32>
    %cst_338 = arith.constant dense<0.000000e+00> : vector<8xf32>
    %282 = vector.multi_reduction <add>, %281, %cst_338 [1] : vector<8x320xf32> to vector<8xf32>
    %283 = vector.shape_cast %282 : vector<8xf32> to vector<8x1xf32>
    %cst_339 = arith.constant 3.906250e-03 : f32
    %284 = vector.broadcast %cst_339 : f32 to vector<8x1xf32>
    %285 = arith.mulf %283, %284 : vector<8x1xf32>
    %286 = vector.broadcast %285 : vector<8x1xf32> to vector<8x320xf32>
    %287 = arith.subf %279, %286 : vector<8x320xf32>
    %288 = vector.broadcast %3 : vector<1x320xf32> to vector<8x320xf32>
    %289 = arith.mulf %287, %288 : vector<8x320xf32>
    %290 = arith.mulf %289, %289 : vector<8x320xf32>
    %cst_340 = arith.constant dense<0.000000e+00> : vector<8xf32>
    %291 = vector.multi_reduction <add>, %290, %cst_340 [1] : vector<8x320xf32> to vector<8xf32>
    %292 = vector.shape_cast %291 : vector<8xf32> to vector<8x1xf32>
    %cst_341 = arith.constant 3.906250e-03 : f32
    %293 = vector.broadcast %cst_341 : f32 to vector<8x1xf32>
    %294 = arith.mulf %292, %293 : vector<8x1xf32>
    %295 = vector.broadcast %285 : vector<8x1xf32> to vector<8x320xf32>
    %296 = arith.subf %279, %295 : vector<8x320xf32>
    %cst_342 = arith.constant 9.99999974E-6 : f32
    %297 = vector.broadcast %cst_342 : f32 to vector<8x1xf32>
    %298 = arith.addf %294, %297 : vector<8x1xf32>
    %299 = math.rsqrt %298 : vector<8x1xf32>
    %300 = vector.broadcast %299 : vector<8x1xf32> to vector<8x320xf32>
    %301 = arith.mulf %296, %300 : vector<8x320xf32>
    %302 = arith.addf %275, %301 : vector<8x320xf32>
    %cst_343 = arith.constant 0.000000e+00 : f32
    %303 = vector.broadcast %cst_343 : f32 to vector<8x320xf32>
    %304 = arith.cmpf oge, %302, %303 : vector<8x320xf32>
    %305 = vector.broadcast %2 : f32 to vector<8x320xf32>
    %306 = arith.mulf %305, %302 : vector<8x320xf32>
    %307 = arith.select %304, %302, %306 : vector<8x320xi1>, vector<8x320xf32>
    %c0_344 = arith.constant 0 : index
    %c0_345 = arith.constant 0 : index
    %c0_346 = arith.constant 0 : index
    %308 = vector.load %arg8[%c0_344, %c0_345, %c0_346] : memref<1x8x320xf32, #tpu.memory_space<vmem>>, vector<1x8x320xf32>
    %309 = vector.shape_cast %308 : vector<1x8x320xf32> to vector<8x320xf32>
    %310 = vector.shape_cast %307 : vector<8x320xf32> to vector<1x8x320xf32>
    tpu.vector_store %arg8[%c0_344, %c0_345, %c0_346], %310 {strides = array<i32>} : memref<1x8x320xf32, #tpu.memory_space<vmem>>, vector<1x8x320xf32>,
    return
  }
  func.func @transform_0(%arg0: i32) -> i32 {
    %c0_i32 = arith.constant 0 : i32
    %c0_i32_0 = arith.constant 0 : i32
    return %c0_i32 : i32
  }
  func.func @transform_1(%arg0: i32) -> (i32, i32) {
    %c0_i32 = arith.constant 0 : i32
    %c0_i32_0 = arith.constant 0 : i32
    %c0_i32_1 = arith.constant 0 : i32
    return %c0_i32, %c0_i32_0 : i32, i32
  }
  func.func @transform_2(%arg0: i32) -> (i32, i32, i32) {
    %c0_i32 = arith.constant 0 : i32
    %c0_i32_0 = arith.constant 0 : i32
    %c0_i32_1 = arith.constant 0 : i32
    return %arg0, %c0_i32, %c0_i32_0 : i32, i32, i32
  }
  func.func @transform_3(%arg0: i32) -> (i32, i32) {
    %c0_i32 = arith.constant 0 : i32
    %c0_i32_0 = arith.constant 0 : i32
    %c0_i32_1 = arith.constant 0 : i32
    return %c0_i32, %c0_i32_0 : i32, i32
  }
  func.func @transform_4(%arg0: i32) -> (i32, i32) {
    %c0_i32 = arith.constant 0 : i32
    %c0_i32_0 = arith.constant 0 : i32
    %c0_i32_1 = arith.constant 0 : i32
    return %c0_i32, %c0_i32_0 : i32, i32
  }
  func.func @transform_5(%arg0: i32) -> (i32, i32) {
    %c0_i32 = arith.constant 0 : i32
    %c0_i32_0 = arith.constant 0 : i32
    %c0_i32_1 = arith.constant 0 : i32
    return %c0_i32, %c0_i32_0 : i32, i32
  }
  func.func @transform_6(%arg0: i32) -> (i32, i32) {
    %c0_i32 = arith.constant 0 : i32
    %c0_i32_0 = arith.constant 0 : i32
    %c0_i32_1 = arith.constant 0 : i32
    return %c0_i32, %c0_i32_0 : i32, i32
  }
  func.func @transform_7(%arg0: i32) -> (i32, i32, i32) {
    %c0_i32 = arith.constant 0 : i32
    %c0_i32_0 = arith.constant 0 : i32
    %c0_i32_1 = arith.constant 0 : i32
    return %arg0, %c0_i32, %c0_i32_0 : i32, i32, i32
  }
}

</mosaic_0001>

<bundles_post_ra>
// kernel: tpu_custom_call.1
= control target key start
LH: loop header
LB: loop body
LE: loop exit
PB: predicated region body
PF: predicated region fallthrough
CT: control target
= control target key end

     0   :  { %s12884_s0 = inlined_call_operand.hbm [shape: f32[3], index: 0, kind: input, shape index: {}]   ;;  %s12885_s1 = inlined_call_operand.vmem [shape: f32[1,320], index: 1, kind: input, shape index: {}]   ;;  %s12886_s2 = inlined_call_operand.hbm [shape: f32[2,4,512], index: 2, kind: input, shape index: {}]   ;;  %s12887_s3 = inlined_call_operand.vmem [shape: f32[4,128], index: 3, kind: input, shape index: {}]   ;;  %s12888_s4 = inlined_call_operand.hbm [shape: f32[4,128], index: 4, kind: input, shape index: {}]   ;;  %s12889_s5 = inlined_call_operand.vmem [shape: f32[8,128], index: 5, kind: input, shape index: {}]   ;;  %s12890_s6 = inlined_call_operand.vmem [shape: f32[8,4], index: 6, kind: input, shape index: {}]   ;;  %s12891_s7 = inlined_call_operand.hbm [shape: f32[2,8,320], index: 7, kind: output, shape index: {}]  }
   0x1   :  { %13085 = sst [smem:[#allocation34_spill]] %s12884_s0 }
   0x2   :  { %13086 = sst [smem:[#allocation35_spill]] %s12885_s1 }
   0x3   :  { %13087 = sst [smem:[#allocation36_spill]] %s12886_s2 }
   0x4   :  { %13088 = sst [smem:[#allocation37_spill]] %s12887_s3 }
   0x5   :  { %13089 = sst [smem:[#allocation38_spill]] %s12888_s4 }
   0x6   :  { %13090 = sst [smem:[#allocation39_spill]] %s12891_s7 }
   0x7   :  { %12 = vsyncpa [#allocation7], 0 }
   0x8   :  { %13 = vsyncpa [#allocation5], 0 }
   0x9   :  { %15 = vsyncpa [#allocation5 + $0x1], 0 }
   0xa   :  { %16 = vsyncpa [#allocation10], 0 }
   0xb   :  { %17 = vsyncpa [#allocation6], 0 }
   0xc   :  { %19 = vsyncpa [#allocation6 + $0x1], 0  ;;  %s9103_s24 = smov 0   ;;  %s9105_s25 = smov 0  }
   0xd   :  { %s9107_s26 = smov 0   ;;  %s9109_s27 = smov 0  }
   0xe LB: > { %13091 = sst [smem:[#allocation16_spill]] %s9018_s24  ;;  %s9124_s28 = sadd.s32 4294967295, %s9030_s27   ;;  %s9030_s27 = sphi %s9109_s27, %s13364_s27   ;;  %s9026_s26 = sphi %s9107_s26, %s13367_s26   ;;  %s9022_s25 = sphi %s9105_s25, %s13366_s25   ;;  %s9018_s24 = sphi %s9103_s24, %s13365_s24  }
   0xf   : > { %13092 = sst [smem:[#allocation17_spill]] %s9022_s25  ;;  %s7744_s29 = sadd.s32 4294967294, %s9030_s27  }
  0x10   : > { %13093 = sst [smem:[#allocation18_spill]] %s9026_s26  ;;  %p87_p0 = scmp.ne.s32.totalorder %s9022_s25, %s9018_s24 }
  0x11   : > { %13094 = sst [smem:[#allocation19_spill]] %s9030_s27  ;;  %p12892_p1 = scmp.eq.s32.totalorder %s9124_s28, 0 }
  0x12   : > { %p195_p2 = scmp.eq.s32.totalorder %s9124_s28, 1  ;;  %p201_p3 = scmp.eq.s32.totalorder %s7744_s29, 1 }
  0x13   : > { %p9133_p4 = por %p12892_p1, %p87_p0  ;;  %p7745_p5 = scmp.ge.s32.totalorder %s9030_s27, 1 }
  0x14   : > { %p9138_p6 = por %p201_p3, %p87_p0  ;;  %p208_p7 = scmp.lt.s32.totalorder %s9030_s27, 3 }
  0x15   : > { %s13095_s30 = scalar_select %p9133_p4, 1, 0 }
  0x16   : > { %s13096_s8 = scalar_select %p9138_p6, 1, 0 }
  0x17   : > { %p9143_p8 = pnand %p7745_p5, %p208_p7  ;;  %s9032_s10 = smov [#allocation9]  }
  0x18   : > { %13097 = sst [smem:[#allocation20_spill]] %s13096_s8  ;;  %s236_s11 = sshll.u32 %s9032_s10, 4  ;;  %s237_s11 = int_to_ptr.vmem [resolvable:$true] %s236_s11 }
  0x19   : > { %s13098_s9 = scalar_select %p9143_p8, 1, 0 }
  0x1a   : > { %p8754_p10 = pneg %p9143_p8  ;;  %s9157_s13 = sadd.s32 1, %s9030_s27  }
  0x1b   : > { %13100 = sst [smem:[#allocation21_spill]] %s9157_s13  ;;  %s71_s14 = ssub.s32 %s9030_s27, %s9157_s13 }
  0x1c   : > { %p9152_p11 = pnand %p8754_p10, %p12892_p1  ;;  %s74_s15 = sadd.s32 1, %s9026_s26 }
  0x1d   : > { %p9162_p12 = scmp.eq.s32.totalorder %s71_s14, 0  ;;  %s9033_s17 = smov [#allocation4]  }
  0x1e   : > { %s13102_s0 = sld [smem:[#allocation34_spill]]  ;;  %p8906_p13 = pneg %p9152_p11 }
  0x1f   : > { %s8915_s20 = scalar_lea.vmem %s237_s11, 64  ;;  %p8923_p7 = scmp.lt.s32.totalorder %s237_s11, %s237_s11 }
  0x20   : > { %p8916_p0 = scmp.ne.s32.totalorder %s237_s11, %s8915_s20  ;;  %p8924_p10 = scmp.lt.s32.totalorder %s8915_s20, %s8915_s20 }
  0x22   : > { %p8918_p3 = pnand %p8916_p0, %p8906_p13  ;;  %p8925_p9 = por %p8924_p10, %p8923_p7 }
  0x24   : > { %8757 = dma.hbm_to_smem (!%p9152_p11), %s13102_s0, 16, %s9033_s17, [#allocation7]  }
  0x25   : > { %p8919_p5 = pneg %p8918_p3 }
  0x27   : > { %p8926_p1 = pnand %p8925_p9, %p8919_p5 }
  0x29   : > { %8929 = shalt.err (!%p8926_p1)
}
  0x2a   : > { %s13103_s4 = sld [smem:[#allocation38_spill]]  ;;  %p81_p9 = scmp.ne.s32.totalorder %s9026_s26, %s9022_s25 }
  0x2b   : > { %s9181_s23 = scalar_select %p9162_p12, %s9026_s26, %s74_s15  }
  0x2c   : > { %p82_p1 = scmp.eq.s32.totalorder %s9030_s27, 0  ;;  %p8771_p13 = scmp.lt.s32.totalorder %s9030_s27, 2 }
  0x2d   : > { %13104 = sst [smem:[#allocation22_spill]] %s9181_s23  ;;  %s253_s29 = sand.u32 1, %s9026_s26  }
  0x2e   : > { %p83_p0 = por %p82_p1, %p81_p9  ;;  %p9190_p3 = por %p195_p2, %p81_p9 }
  0x2f   : > { %s7749_s12 = sshll.u32 %s253_s29, 4  ;;  %s7761_s14 = sshll.u32 %s9030_s27, 8 }
  0x30   : > { %8760 = dma.hbm_to_vmem [thread:$0]  (!%p9152_p11), %s13103_s4, 64, %s237_s11, [#allocation10]  }
  0x31   : > { %s13105_s10 = scalar_select %p9190_p3, 1, 0 }
  0x32   : > { %s13106_s2 = sld [smem:[#allocation36_spill]]  ;;  %s257_s11 = scalar_lea.vmem [#allocation8], %s7749_s12 }
  0x33   : > { %s265_s15 = sshll.u32 %s257_s11, 4  ;;  %p9200_p11 = pnand %p8771_p13, %p83_p0  ;;  %s266_s15 = int_to_ptr.vmem [resolvable:$true] %s265_s15 }
  0x34   : > { %s254_s20 = scalar_lea.sflag [#allocation5], %s253_s29 }
  0x35   : > { %p8932_p12 = pneg %p9200_p11 }
  0x38   : > { %s9198_s19 = scalar_lea.hbm %s13106_s2, %s7761_s14  ;;  %s8935_s17 = scalar_lea.hbm %s13106_s2, 512 }
  0x39   : > { %s8930_s21 = scalar_lea.hbm %s9198_s19, 256  ;;  %p8936_p10 = scmp.lt.s32.totalorder %s9198_s19, %s13106_s2 }
  0x3a   : > { %p8931_p2 = scmp.ne.s32.totalorder %s9198_s19, %s8930_s21  ;;  %p8937_p9 = scmp.lt.s32.totalorder %s8935_s17, %s8930_s21 }
  0x3c   : > { %p8933_p5 = pnand %p8932_p12, %p8931_p2  ;;  %p8938_p1 = por %p8937_p9, %p8936_p10 }
  0x3e   : > { %p8934_p7 = pneg %p8933_p5 }
  0x40   : > { %p8939_p13 = pnand %p8938_p1, %p8934_p7 }
  0x42   : > { %8942 = shalt.err (!%p8939_p13)
}
  0x43   : > { %s8943_s11 = scalar_lea.vmem %s266_s15, 256  ;;  %s9034_s29 = smov [#allocation8]  }
  0x44   : > { %p8944_p0 = scmp.ne.s32.totalorder %s266_s15, %s8943_s11  ;;  %s8948_s0 = sshll.u32 %s9034_s29, 4  ;;  %s8949_s0 = int_to_ptr.vmem [resolvable:$false] %s8948_s0 }
  0x45   : > { %s8950_s4 = scalar_lea.vmem %s8949_s0, 512  ;;  %p8951_p2 = scmp.lt.s32.totalorder %s266_s15, %s8949_s0 }
  0x46   : > { %p8946_p6 = pnand %p8944_p0, %p8932_p12  ;;  %p8952_p5 = scmp.lt.s32.totalorder %s8950_s4, %s8943_s11 }
  0x48   : > { %p8947_p3 = pneg %p8946_p6  ;;  %p8953_p4 = por %p8952_p5, %p8951_p2 }
  0x4a   : > { %p8954_p8 = pnand %p8953_p4, %p8947_p3 }
  0x4c   : > { %8957 = shalt.err (!%p8954_p8)
}
  0x4d   : > { %8764 = dma.hbm_to_vmem [thread:$0]  (!%p9200_p11), %s9198_s19, 256, %s266_s15, %s254_s20  }
  0x4e   : > { %p13108_p7 = scmp.ne.s32.totalorder %s13098_s9, 0 }
  0x50   : > { %274 = sbr.rel (%p13108_p7) target bundleno = 3276 (0xccc), region = 48 }
  0x55   : > { %p13109_p10 = scmp.eq.s32.totalorder %s9124_s28, 0 }
  0x57   : > { %9001 = dma.done.wait (%p13109_p10), [#allocation7], 16   ;;  %p13110_p6 = pmov %p13109_p10 }
  0x58   : > { %s9225_s0 = sand.u32 1, %s9022_s25   ;;  %p13111_p4 = scmp.ne.s32.totalorder %s13095_s30, 0 }
  0x59   : > { %9003 = vsyncadd (%p13110_p6), [#allocation7], 4294967280  ;;  %s7754_s4 = sshll.u32 %s9225_s0, 4  ;;  %s281_s21 = scalar_lea.sflag [#allocation5], %s9225_s0 }
  0x5a   : > { %s9229_s16 = scalar_lea.vmem [#allocation8], %s7754_s4 }
  0x5b   : > { %9005 = dma.done.wait (%p13111_p4), %s281_s21, 256  }
  0x5c   : > { %9007 = vsyncadd (%p13111_p4), %s281_s21, 4294967040  ;;  %p13112_p8 = pmov %p13110_p6 }
  0x5d   : > { %p13113_p3 = pmov %p13110_p6 }
  0x5e   : > { %9009 = dma.done.wait (%p13112_p8), [#allocation10], 64  }
  0x5f   : > { %9011 = vsyncadd (%p13113_p3), [#allocation10], 4294967232 }
  0x60   : > { %293 = sfence }
  0x61   : > { %v9240_v0 = vld [vmem:[%s9229_s16] sm:$0xff]  ;;  %s12984_s9 = smov 44   ;;  %v9251_v2 = vld [vmem:[%s9229_s16 + $0x8] sm:$0xff]  ;;  %s12976_s30 = smov 46   ;;  %v12950_v4 = vmov 0.0   ;;  %vm332_vm0 = vcmask 523268  }
  0x62   : > { %844 = vrot.lane.b32.xlu1 %v9240_v0, %s12984_s9  ;;  %v9246_v1 = vcombine.high %v9240_v0, %v9240_v0  ;;  %s12986_s19 = smov 45   ;;  %v819_v3 = vcombine.low %v9251_v2, %v9251_v2  ;;  %342 = vst [vmem:[#allocation3 + $0x170] sm:$0xff] %v12950_v4  ;;  %330 = vst [vmem:[#allocation3 + $0x120] sm:$0xf0] %v12950_v4  ;;  %1007 = vmatprep.mubr.f32.mxu0 %v12950_v4  ;;  %s12974_s15 = smov 48   ;;  %vm336_vm1 = vcmask 523264  }
  0x63   : > { %331 = vst [vmem:[#allocation3 + $0x128] sm:$0xf0] %v12950_v4  ;;  %1243 = vmatprep.mubr.f32.mxu1 %v12950_v4  ;;  %v9272_v5 = vcombine.low %v9240_v0, %v9240_v0  ;;  %912 = vmatprep.subr.mxu0 %v12950_v4  ;;  %s12990_s20 = smov 47   ;;  %333 = vst.msk [vmem:[#allocation3 + $0x130] sm:$0xf0] %vm332_vm0, %v12950_v4  ;;  %s12978_s22 = smov 65   ;;  %v843_v62 = vcombine.high %v9251_v2, %v9251_v2 }
  0x64   : > { %846 = vrot.lane.b32.xlu0 %v9246_v1, %s12984_s9  ;;  %914 = vmatpush1.msra.mxu0 %v12950_v4  ;;  %337 = vst.msk [vmem:[#allocation3 + $0x148] sm:$0xff] %vm336_vm1, %v12950_v4  ;;  %340 = vst.msk [vmem:[#allocation3 + $0x160] sm:$0xff] %vm336_vm1, %v12950_v4  ;;  %v703_v6 = vld [vmem:[%s9229_s16 + $0x8] sm:$0xf]  ;;  %s12992_s14 = smov 64   ;;  %s12980_s17 = smov 67  }
  0x65   : > { %916 = vmatprep.subr.mxu0 %v12950_v4  ;;  %1024 = vmatprep.subr.mxu1 %v12950_v4  ;;  %343 = vst.msk [vmem:[#allocation3 + $0x178] sm:$0xff] %vm336_vm1, %v12950_v4  ;;  %v8840_v7 = vld [vmem:[%s9229_s16 + $0x8] ss:$0 sps:$4 sm:$0xff]   ;;  %s12898_s18 = smov 66   ;;  %s12982_s12 = smov 84   ;;  %vm852_vm2 = vcmask 359424  }
  0x66   : > { %798 = vrot.lane.b32.xlu1 %v9246_v1, %s12976_s30  ;;  %918 = vmatpush1.msra.mxu0 %v12950_v4  ;;  %v662_v8 = vld [vmem:[%s9229_s16 + $0x8] sm:$0xf]  ;;  %s12896_s11 = smov 68   ;;  %s12988_s29 = smov 86   ;;  %vm12971_vm3 = vcmask 375808   ;;  %vm828_vm4 = vcmask 367616  }
  0x67   : > { %920 = vmatprep.subr.mxu0 %v12950_v4  ;;  %1030 = vmatpush1.msra.mxu1 %v12950_v4  ;;  %v8841_v9 = vld [vmem:[%s9229_s16 + $0x8] ss:$0 sps:$4 sm:$0xff]   ;;  %s12900_s4 = smov 85   ;;  %s12902_s21 = smov 88   ;;  %v344_v38 = vld [vmem:[%s9229_s16] sm:$0xff]  ;;  %vm351_vm5 = vcmask 519168  }
  0x68   : > { %848 = vrot.lane.b32.xlu0 %v9251_v2, %s12984_s9  ;;  %922 = vmatpush1.msra.mxu0 %v12950_v4  ;;  %v621_v10 = vld [vmem:[%s9229_s16 + $0x8] sm:$0xf]  ;;  %v347_v41 = vcombine.high %v344_v38, %v344_v38  ;;  %349 = vst [vmem:[#allocation3] sm:$0xf] %v344_v38  ;;  %vm12968_vm6 = vcmask 392192   ;;  %vm780_vm7 = vcmask 384000  }
  0x69   : > { %1036 = vmatprep.subr.mxu1 %v12950_v4  ;;  %v8842_v11 = vld [vmem:[%s9229_s16 + $0x8] ss:$0 sps:$4 sm:$0xff]   ;;  %vm12967_vm8 = vcmask 531456   ;;  %vm12922_vm9 = vcmask 547840   ;;  %vm693_vm10 = vcmask 539648   ;;  %vm12918_vm11 = vcmask 687104  }
  0x6a   : > { %822 = vrot.lane.b32.xlu1 %v9240_v0, %s12986_s19  ;;  %1042 = vmatpush1.msra.mxu1 %v12950_v4  ;;  %v580_v12 = vld [vmem:[%s9229_s16 + $0x8] sm:$0xf]  ;;  %350 = vst [vmem:[#allocation3 + $0x8] sm:$0xf] %v347_v41  ;;  %vm652_vm12 = vcmask 556032   ;;  %vm12916_vm13 = vcmask 703488  }
  0x6b   : > { %1048 = vmatprep.subr.mxu1 %v12950_v4  ;;  %v8843_v13 = vld [vmem:[%s9229_s16 + $0x8] ss:$0 sps:$4 sm:$0xff]   ;;  %vm13004_vm14 = vcmask 695296   ;;  %vm12917_vm15 = vcmask 719872   ;;  %s13114_s3 = sld [smem:[#allocation37_spill]]  ;;  %s13169_s2 = smov 67  }
  0x6c   : > { %800 = vrot.lane.b32.xlu0 %v9251_v2, %s12976_s30  ;;  %1054 = vmatpush1.msra.mxu1 %v12950_v4  ;;  %v539_v14 = vld [vmem:[%s9229_s16 + $0x8] sm:$0xf]  ;;  %s13146_s1 = sld [smem:[#allocation35_spill]]  ;;  %s13171_s23 = smov 86  }
  0x6d   : > { %v8844_v15 = vld [vmem:[%s9229_s16 + $0x8] ss:$0 sps:$4 sm:$0xff]   ;;  %s13172_s26 = smov 107   ;;  %s13173_s25 = smov 126  }
  0x6e   : > { %796 = vrot.lane.b32.xlu1 %v9240_v0, %s12976_s30  ;;  %v498_v16 = vld [vmem:[%s9229_s16 + $0x8] sm:$0xf]  ;;  %s13174_s13 = smov 45   ;;  %s13175_s27 = smov 44  }
  0x6f   : > { %v8845_v17 = vld [vmem:[%s9229_s16 + $0x8] ss:$0 sps:$4 sm:$0xff]   ;;  %s13176_s8 = smov 47   ;;  %s7756_s24 = sld [smem:[#allocation4 + $0x1]] }
  0x70   : > { %824 = vrot.lane.b32.xlu0 %v819_v3, %s12986_s19  ;;  %v457_v18 = vld [vmem:[%s9229_s16 + $0x8] sm:$0xf]  ;;  %s13263_s7 = smov 42   ;;  %p13358_p12 = scmp.ne.s32.totalorder %s13105_s10, 0 }
  0x71   : > { %v8846_v19 = vld [vmem:[%s9229_s16 + $0x8] ss:$0 sps:$4 sm:$0xff]  }
  0x72   : > { %750 = vrot.lane.b32.xlu1 %v9246_v1, %s12974_s15  ;;  %v416_v21 = vld [vmem:[%s9229_s16 + $0x8] sm:$0xf] }
  0x73   : > { %v8847_v25 = vld [vmem:[%s9229_s16 + $0x8] ss:$0 sps:$4 sm:$0xff]  }
  0x74   : > { %820 = vrot.lane.b32.xlu0 %v9272_v5, %s12986_s19  ;;  %v375_v35 = vld [vmem:[%s9229_s16 + $0x8] sm:$0xf] }
  0x75   : > { %v8848_v44 = vld [vmem:[%s9229_s16 + $0x8] ss:$0 sps:$4 sm:$0xff]  }
  0x76   : > { %774 = vrot.lane.b32.xlu1 %v9240_v0, %s12990_s20  ;;  %v345_v48 = vld [vmem:[%s9229_s16 + $0x8] sm:$0xf] }
  0x77   : > { %352 = vst.msk [vmem:[#allocation3 + $0x10] sm:$0xf] %vm351_vm5, %v345_v48  ;;  %v8849_v60 = vld [vmem:[%s9229_s16 + $0x8] ss:$0 sps:$4 sm:$0xff]  }
  0x78   : > { %752 = vrot.lane.b32.xlu0 %v9251_v2, %s12974_s15 }
  0x7a   : > { %748 = vrot.lane.b32.xlu1 %v9240_v0, %s12974_s15 }
  0x7c   : > { %776 = vrot.lane.b32.xlu0 %v819_v3, %s12990_s20 }
  0x7e   : > { %709 = vrot.lane.b32.xlu1 %v9246_v1, %s12978_s22 }
  0x80   : > { %772 = vrot.lane.b32.xlu0 %v9272_v5, %s12990_s20 }
  0x82   : > { %730 = vrot.lane.b32.xlu1 %v9240_v0, %s12992_s14 }
  0x84   : > { %711 = vrot.lane.b32.xlu0 %v703_v6, %s12978_s22 }
  0x86   : > { %707 = vrot.lane.b32.xlu1 %v9240_v0, %s12978_s22 }
  0x88   : > { %732 = vrot.lane.b32.xlu0 %v8840_v7, %s12992_s14 }
  0x8a   : > { %668 = vrot.lane.b32.xlu1 %v9246_v1, %s12980_s17 }
  0x8c   : > { %728 = vrot.lane.b32.xlu0 %v9272_v5, %s12992_s14 }
  0x8e   : > { %689 = vrot.lane.b32.xlu1 %v9240_v0, %s12898_s18 }
  0x90   : > { %670 = vrot.lane.b32.xlu0 %v662_v8, %s12980_s17 }
  0x92   : > { %666 = vrot.lane.b32.xlu1 %v9240_v0, %s12980_s17 }
  0x94   : > { %691 = vrot.lane.b32.xlu0 %v8841_v9, %s12898_s18 }
  0x96   : > { %627 = vrot.lane.b32.xlu1 %v9246_v1, %s12982_s12 }
  0x98   : > { %687 = vrot.lane.b32.xlu0 %v9272_v5, %s12898_s18  ;;  %s12906_s18 = smov 105  }
  0x9a   : > { %648 = vrot.lane.b32.xlu1 %v9240_v0, %s12896_s11 }
  0x9c   : > { %629 = vrot.lane.b32.xlu0 %v621_v10, %s12982_s12 }
  0x9e   : > { %625 = vrot.lane.b32.xlu1 %v9240_v0, %s12982_s12 }
  0xa0   : > { %650 = vrot.lane.b32.xlu0 %v8842_v11, %s12896_s11 }
  0xa2   : > { %586 = vrot.lane.b32.xlu1 %v9246_v1, %s12988_s29 }
  0xa4   : > { %646 = vrot.lane.b32.xlu0 %v9272_v5, %s12896_s11  ;;  %s12904_s11 = smov 87  }
  0xa6   : > { %607 = vrot.lane.b32.xlu1 %v9240_v0, %s12900_s4 }
  0xa8   : > { %588 = vrot.lane.b32.xlu0 %v580_v12, %s12988_s29 }
  0xaa   : > { %584 = vrot.lane.b32.xlu1 %v9240_v0, %s12988_s29 }
  0xac   : > { %609 = vrot.lane.b32.xlu0 %v8843_v13, %s12900_s4 }
  0xae   : > { %545 = vrot.lane.b32.xlu1 %v9246_v1, %s12902_s21 }
  0xb0   : > { %605 = vrot.lane.b32.xlu0 %v9272_v5, %s12900_s4  ;;  %s12908_s4 = smov 104  }
  0xb2   : > { %566 = vrot.lane.b32.xlu1 %v9240_v0, %s12904_s11 }
  0xb4   : > { %547 = vrot.lane.b32.xlu0 %v539_v14, %s12902_s21 }
  0xb6   : > { %543 = vrot.lane.b32.xlu1 %v9240_v0, %s12902_s21  ;;  %s12994_s21 = smov 107  }
  0xb8   : > { %568 = vrot.lane.b32.xlu0 %v8844_v15, %s12904_s11 }
  0xba   : > { %504 = vrot.lane.b32.xlu1 %v9246_v1, %s12906_s18 }
  0xbc   : > { %564 = vrot.lane.b32.xlu0 %v9272_v5, %s12904_s11  ;;  %s12910_s11 = smov 106  }
  0xbe   : > { %525 = vrot.lane.b32.xlu1 %v9240_v0, %s12908_s4 }
  0xc0   : > { %506 = vrot.lane.b32.xlu0 %v498_v16, %s12906_s18 }
  0xc2   : > { %502 = vrot.lane.b32.xlu1 %v9240_v0, %s12906_s18  ;;  %s12912_s18 = smov 124  }
  0xc4   : > { %527 = vrot.lane.b32.xlu0 %v8845_v17, %s12908_s4 }
  0xc6   : > { %463 = vrot.lane.b32.xlu1 %v9246_v1, %s12994_s21 }
  0xc8   : > { %523 = vrot.lane.b32.xlu0 %v9272_v5, %s12908_s4  ;;  %s12914_s4 = smov 108  }
  0xca   : > { %484 = vrot.lane.b32.xlu1 %v9240_v0, %s12910_s11 }
  0xcc   : > { %465 = vrot.lane.b32.xlu0 %v457_v18, %s12994_s21 }
  0xce   : > { %461 = vrot.lane.b32.xlu1 %v9240_v0, %s12994_s21 }
  0xd0   : > { %486 = vrot.lane.b32.xlu0 %v8846_v19, %s12910_s11 }
  0xd2   : > { %422 = vrot.lane.b32.xlu1 %v9246_v1, %s12912_s18 }
  0xd4   : > { %v845_v20 = vpop.permute.xlu1 %844  ;;  %482 = vrot.lane.b32.xlu0 %v9272_v5, %s12910_s11  ;;  %s12996_s11 = smov 126  }
  0xd6   : > { %v847_v22 = vpop.permute.xlu0 %846  ;;  %443 = vrot.lane.b32.xlu1 %v9240_v0, %s12914_s4 }
  0xd7   : > { %v853_v23 = vsel %vm852_vm2, %v845_v20, %v847_v22 }
  0xd8   : > { %859 = vst [vmem:[#allocation3 + $0x120] sm:$0xf] %v853_v23  ;;  %v799_v24 = vpop.permute.xlu1 %798  ;;  %424 = vrot.lane.b32.xlu0 %v416_v21, %s12912_s18 }
  0xda   : > { %v9400_v26 = vpop.permute.xlu0 %848  ;;  %420 = vrot.lane.b32.xlu1 %v9240_v0, %s12912_s18  ;;  %s12941_s18 = smov 125  }
  0xdb   : > { %v854_v27 = vsel %vm852_vm2, %v847_v22, %v9400_v26 }
  0xdc   : > { %860 = vst [vmem:[#allocation3 + $0x128] sm:$0xf] %v854_v27  ;;  %v823_v28 = vpop.permute.xlu1 %822  ;;  %445 = vrot.lane.b32.xlu0 %v8847_v25, %s12914_s4 }
  0xde   : > { %v9407_v29 = vpop.permute.xlu0 %800  ;;  %381 = vrot.lane.b32.xlu1 %v9246_v1, %s12996_s11 }
  0xdf   : > { %v806_v30 = vsel %vm12971_vm3, %v799_v24, %v9407_v29  ;;  %v899_v31 = vld [vmem:[#allocation3 + $0x120] sm:$0xff] }
  0xe0   : > { %812 = vst [vmem:[#allocation3 + $0x110] sm:$0xf] %v806_v30  ;;  %v797_v32 = vpop.permute.xlu1 %796  ;;  %441 = vrot.lane.b32.xlu0 %v9272_v5, %s12914_s4  ;;  %v9415_v33 = vand.u32 4294901760, %v899_v31  ;;  %s12939_s4 = smov 127  }
  0xe1   : > { %v805_v34 = vsel %vm12971_vm3, %v797_v32, %v799_v24 }
  0xe2   : > { %811 = vst [vmem:[#allocation3 + $0x108] sm:$0xf] %v805_v34  ;;  %v9419_v36 = vpop.permute.xlu0 %824  ;;  %402 = vrot.lane.b32.xlu1 %v9240_v0, %s12941_s18  ;;  %v9424_v37 = vsub.f32 %v899_v31, %v9415_v33 }
  0xe3   : > { %v830_v39 = vsel %vm828_vm4, %v823_v28, %v9419_v36  ;;  %v900_v40 = vld [vmem:[#allocation3 + $0x128] sm:$0xff] }
  0xe4   : > { %836 = vst [vmem:[#allocation3 + $0x110] sm:$0xf0] %v830_v39  ;;  %v751_v42 = vpop.permute.xlu1 %750  ;;  %383 = vrot.lane.b32.xlu0 %v375_v35, %s12996_s11  ;;  %v9430_v43 = vand.u32 4294901760, %v900_v40  ;;  %v12948_v47 = vand.u32 4294901760, %v9424_v37 }
  0xe6   : > { %v821_v45 = vpop.permute.xlu0 %820  ;;  %379 = vrot.lane.b32.xlu1 %v9240_v0, %s12996_s11  ;;  %924 = vmatprep.subr.mxu0 %v9430_v43  ;;  %v9437_v46 = vsub.f32 %v900_v40, %v9430_v43  ;;  %v1064_v54 = vsub.f32 %v9424_v37, %v12948_v47 }
  0xe7   : > { %v829_v49 = vsel %vm828_vm4, %v821_v45, %v823_v28  ;;  %926 = vmatpush1.msra.mxu0 %v9415_v33 }
  0xe8   : > { %835 = vst [vmem:[#allocation3 + $0x108] sm:$0xf0] %v829_v49  ;;  %v775_v50 = vpop.permute.xlu1 %774  ;;  %404 = vrot.lane.b32.xlu0 %v8848_v44, %s12941_s18  ;;  %v12949_v51 = vand.u32 4294901760, %v9437_v46 }
  0xea   : > { %v9446_v52 = vpop.permute.xlu0 %752  ;;  %361 = vrot.lane.b32.xlu1 %v9240_v0, %s12939_s4  ;;  %v1058_v53 = vsub.f32 %v9437_v46, %v12949_v51  ;;  %v1065_v0 = vand.u32 4294901760, %v1064_v54 }
  0xeb   : > { %v758_v55 = vsel %vm12968_vm6, %v751_v42, %v9446_v52  ;;  %v897_v56 = vld [vmem:[#allocation3 + $0x110] sm:$0xff] }
  0xec   : > { %764 = vst [vmem:[#allocation3 + $0xf8] sm:$0xf] %v758_v55  ;;  %v749_v57 = vpop.permute.xlu1 %748  ;;  %400 = vrot.lane.b32.xlu0 %v9272_v5, %s12941_s18  ;;  %v9460_v58 = vand.u32 4294901760, %v897_v56  ;;  %v1059_v59 = vand.u32 4294901760, %v1058_v53  ;;  %s320_s18 = sld [smem:[#allocation4]] }
  0xed   : > { %v757_v61 = vsel %vm12968_vm6, %v749_v57, %v751_v42 }
  0xee   : > { %763 = vst [vmem:[#allocation3 + $0xf0] sm:$0xf] %v757_v61  ;;  %v9466_v63 = vpop.permute.xlu0 %776  ;;  %359 = vrot.lane.b32.xlu1 %v9272_v5, %s12939_s4  ;;  %928 = vmatprep.subr.mxu0 %v9460_v58  ;;  %v9472_v1 = vsub.f32 %v897_v56, %v9460_v58 }
  0xef   : > { %v782_v3 = vsel %vm780_vm7, %v775_v50, %v9466_v63  ;;  %1060 = vmatprep.subr.mxu1 %v1059_v59  ;;  %v896_v6 = vld [vmem:[#allocation3 + $0x108] sm:$0xff] }
  0xf0   : > { %788 = vst [vmem:[#allocation3 + $0xf8] sm:$0xf0] %v782_v3  ;;  %1066 = vmatpush1.msra.mxu1 %v1065_v0  ;;  %v710_v7 = vpop.permute.xlu1 %709  ;;  %363 = vrot.lane.b32.xlu0 %v8849_v60, %s12939_s4  ;;  %v9477_v8 = vand.u32 4294901760, %v896_v6  ;;  %v12947_v5 = vand.u32 4294901760, %v9472_v1  ;;  %s12972_s4 = smov 42  }
  0xf2   : > { %v773_v9 = vpop.permute.xlu0 %772  ;;  %802 = vrot.lane.b32.xlu1 %v843_v62, %s12976_s30  ;;  %930 = vmatpush1.msra.mxu0 %v9477_v8  ;;  %v1070_v10 = vsub.f32 %v9472_v1, %v12947_v5  ;;  %v9486_v11 = vsub.f32 %v896_v6, %v9477_v8 }
  0xf3   : > { %v781_v12 = vsel %vm780_vm7, %v773_v9, %v775_v50 }
  0xf4   : > { %787 = vst [vmem:[#allocation3 + $0xf0] sm:$0xf0] %v781_v12  ;;  %v731_v13 = vpop.permute.xlu1 %730  ;;  %850 = vrot.lane.b32.xlu0 %v843_v62, %s12984_s9  ;;  %v1071_v14 = vand.u32 4294901760, %v1070_v10  ;;  %v12945_v15 = vand.u32 4294901760, %v9486_v11 }
  0xf6   : > { %v712_v16 = vpop.permute.xlu0 %711  ;;  %754 = vrot.lane.b32.xlu1 %v843_v62, %s12974_s15  ;;  %1072 = vmatprep.subr.mxu1 %v1071_v14  ;;  %v1076_v17 = vsub.f32 %v9486_v11, %v12945_v15 }
  0xf7   : > { %v715_v18 = vsel %vm12967_vm8, %v710_v7, %v712_v16  ;;  %721 = vst.msk [vmem:[#allocation3 + $0xe8] sm:$0xf] %vm351_vm5, %v712_v16  ;;  %v894_v19 = vld [vmem:[#allocation3 + $0xf8] sm:$0xff] }
  0xf8   : > { %720 = vst [vmem:[#allocation3 + $0xe0] sm:$0xf] %v715_v18  ;;  %v708_v20 = vpop.permute.xlu1 %707  ;;  %826 = vrot.lane.b32.xlu0 %v9251_v2, %s12986_s19  ;;  %v9499_v21 = vand.u32 4294901760, %v894_v19  ;;  %v1077_v22 = vand.u32 4294901760, %v1076_v17 }
  0xf9   : > { %v714_v23 = vsel %vm12967_vm8, %v708_v20, %v710_v7  ;;  %vm327_vm8 = vcmask 1047556  }
  0xfa   : > { %719 = vst [vmem:[#allocation3 + $0xd8] sm:$0xf] %v714_v23  ;;  %v733_v24 = vpop.permute.xlu0 %732  ;;  %932 = vmatprep.subr.mxu0 %v9499_v21  ;;  %1078 = vmatpush1.msra.mxu1 %v1077_v22  ;;  %v9504_v25 = vsub.f32 %v894_v19, %v9499_v21 }
  0xfb   : > { %v735_v27 = vsel %vm336_vm1, %v731_v13, %v733_v24  ;;  %741 = vst.msk [vmem:[#allocation3 + $0xe8] sm:$0xf0] %vm332_vm0, %v733_v24  ;;  %v893_v28 = vld [vmem:[#allocation3 + $0xf0] sm:$0xff] }
  0xfc   : > { %740 = vst [vmem:[#allocation3 + $0xe0] sm:$0xf0] %v735_v27  ;;  %v669_v30 = vpop.permute.xlu1 %668  ;;  %778 = vrot.lane.b32.xlu0 %v9251_v2, %s12990_s20  ;;  %v9510_v31 = vand.u32 4294901760, %v893_v28  ;;  %v12944_v32 = vand.u32 4294901760, %v9504_v25 }
  0xfe   : > { %v729_v34 = vpop.permute.xlu0 %728  ;;  %934 = vmatpush1.msra.mxu0 %v9510_v31  ;;  %v1082_v35 = vsub.f32 %v9504_v25, %v12944_v32  ;;  %v9518_v38 = vsub.f32 %v893_v28, %v9510_v31 }
  0xff   : > { %v734_v39 = vsel %vm336_vm1, %v729_v34, %v731_v13 }
 0x100   : > { %739 = vst [vmem:[#allocation3 + $0xd8] sm:$0xf0] %v734_v39  ;;  %v690_v40 = vpop.permute.xlu1 %689  ;;  %v1083_v2 = vand.u32 4294901760, %v1082_v35  ;;  %v12936_v41 = vand.u32 4294901760, %v9518_v38 }
 0x102   : > { %v671_v42 = vpop.permute.xlu0 %670  ;;  %1084 = vmatprep.subr.mxu1 %v1083_v2  ;;  %v1088_v44 = vsub.f32 %v9518_v38, %v12936_v41 }
 0x103   : > { %v674_v45 = vsel %vm12922_vm9, %v669_v30, %v671_v42  ;;  %680 = vst.msk [vmem:[#allocation3 + $0xd0] sm:$0xf] %vm351_vm5, %v671_v42  ;;  %v891_v48 = vld [vmem:[#allocation3 + $0xe0] sm:$0xff] }
 0x104   : > { %679 = vst [vmem:[#allocation3 + $0xc8] sm:$0xf] %v674_v45  ;;  %v667_v49 = vpop.permute.xlu1 %666  ;;  %v9527_v50 = vand.u32 4294901760, %v891_v48  ;;  %v1089_v53 = vand.u32 4294901760, %v1088_v44 }
 0x105   : > { %v673_v54 = vsel %vm12922_vm9, %v667_v49, %v669_v30  ;;  %vm12930_vm9 = vcmask 867328  }
 0x106   : > { %678 = vst [vmem:[#allocation3 + $0xc0] sm:$0xf] %v673_v54  ;;  %v692_v55 = vpop.permute.xlu0 %691  ;;  %936 = vmatprep.subr.mxu0 %v9527_v50  ;;  %1090 = vmatpush1.msra.mxu1 %v1089_v53  ;;  %v9532_v56 = vsub.f32 %v891_v48, %v9527_v50 }
 0x107   : > { %v695_v57 = vsel %vm693_vm10, %v690_v40, %v692_v55  ;;  %701 = vst.msk [vmem:[#allocation3 + $0xd0] sm:$0xf0] %vm332_vm0, %v692_v55  ;;  %v890_v59 = vld [vmem:[#allocation3 + $0xd8] sm:$0xff] }
 0x108   : > { %700 = vst [vmem:[#allocation3 + $0xc8] sm:$0xf0] %v695_v57  ;;  %v628_v60 = vpop.permute.xlu1 %627  ;;  %v9536_v61 = vand.u32 4294901760, %v890_v59  ;;  %v12935_v62 = vand.u32 4294901760, %v9532_v56 }
 0x10a   : > { %v688_v0 = vpop.permute.xlu0 %687  ;;  %938 = vmatpush1.msra.mxu0 %v9536_v61  ;;  %v1094_v3 = vsub.f32 %v9532_v56, %v12935_v62  ;;  %v9544_v6 = vsub.f32 %v890_v59, %v9536_v61 }
 0x10b   : > { %v694_v7 = vsel %vm693_vm10, %v688_v0, %v690_v40 }
 0x10c   : > { %699 = vst [vmem:[#allocation3 + $0xc0] sm:$0xf0] %v694_v7  ;;  %v649_v9 = vpop.permute.xlu1 %648  ;;  %v1095_v10 = vand.u32 4294901760, %v1094_v3  ;;  %v12934_v12 = vand.u32 4294901760, %v9544_v6 }
 0x10e   : > { %v630_v13 = vpop.permute.xlu0 %629  ;;  %1096 = vmatprep.subr.mxu1 %v1095_v10  ;;  %v1100_v14 = vsub.f32 %v9544_v6, %v12934_v12 }
 0x10f   : > { %v633_v16 = vsel %vm12918_vm11, %v628_v60, %v630_v13  ;;  %639 = vst.msk [vmem:[#allocation3 + $0xb8] sm:$0xf] %vm351_vm5, %v630_v13  ;;  %v888_v17 = vld [vmem:[#allocation3 + $0xc8] sm:$0xff] }
 0x110   : > { %638 = vst [vmem:[#allocation3 + $0xb0] sm:$0xf] %v633_v16  ;;  %v626_v18 = vpop.permute.xlu1 %625  ;;  %v9553_v19 = vand.u32 4294901760, %v888_v17  ;;  %v1101_v20 = vand.u32 4294901760, %v1100_v14 }
 0x111   : > { %v632_v22 = vsel %vm12918_vm11, %v626_v18, %v628_v60  ;;  %vm12966_vm11 = vcmask 850944  }
 0x112   : > { %637 = vst [vmem:[#allocation3 + $0xa8] sm:$0xf] %v632_v22  ;;  %v651_v23 = vpop.permute.xlu0 %650  ;;  %940 = vmatprep.subr.mxu0 %v9553_v19  ;;  %1102 = vmatpush1.msra.mxu1 %v1101_v20  ;;  %v9558_v24 = vsub.f32 %v888_v17, %v9553_v19 }
 0x113   : > { %v654_v27 = vsel %vm652_vm12, %v649_v9, %v651_v23  ;;  %660 = vst.msk [vmem:[#allocation3 + $0xb8] sm:$0xf0] %vm332_vm0, %v651_v23  ;;  %v887_v28 = vld [vmem:[#allocation3 + $0xc0] sm:$0xff] }
 0x114   : > { %659 = vst [vmem:[#allocation3 + $0xb0] sm:$0xf0] %v654_v27  ;;  %v587_v30 = vpop.permute.xlu1 %586  ;;  %v9562_v34 = vand.u32 4294901760, %v887_v28  ;;  %v12932_v35 = vand.u32 4294901760, %v9558_v24 }
 0x116   : > { %v647_v39 = vpop.permute.xlu0 %646  ;;  %942 = vmatpush1.msra.mxu0 %v9562_v34  ;;  %v1106_v40 = vsub.f32 %v9558_v24, %v12932_v35  ;;  %v9570_v2 = vsub.f32 %v887_v28, %v9562_v34 }
 0x117   : > { %v653_v42 = vsel %vm652_vm12, %v647_v39, %v649_v9 }
 0x118   : > { %658 = vst [vmem:[#allocation3 + $0xa8] sm:$0xf0] %v653_v42  ;;  %v608_v44 = vpop.permute.xlu1 %607  ;;  %v1107_v45 = vand.u32 4294901760, %v1106_v40  ;;  %v12928_v48 = vand.u32 4294901760, %v9570_v2 }
 0x11a   : > { %v589_v49 = vpop.permute.xlu0 %588  ;;  %1108 = vmatprep.subr.mxu1 %v1107_v45  ;;  %v1112_v53 = vsub.f32 %v9570_v2, %v12928_v48 }
 0x11b   : > { %v592_v54 = vsel %vm12916_vm13, %v587_v30, %v589_v49  ;;  %598 = vst.msk [vmem:[#allocation3 + $0xa0] sm:$0xf] %vm351_vm5, %v589_v49  ;;  %v885_v55 = vld [vmem:[#allocation3 + $0xb0] sm:$0xff] }
 0x11c   : > { %597 = vst [vmem:[#allocation3 + $0x98] sm:$0xf] %v592_v54  ;;  %v585_v57 = vpop.permute.xlu1 %584  ;;  %v9579_v59 = vand.u32 4294901760, %v885_v55  ;;  %v1113_v60 = vand.u32 4294901760, %v1112_v53 }
 0x11d   : > { %v591_v0 = vsel %vm12916_vm13, %v585_v57, %v587_v30  ;;  %vm12970_vm13 = vcmask 711680  }
 0x11e   : > { %596 = vst [vmem:[#allocation3 + $0x90] sm:$0xf] %v591_v0  ;;  %v610_v3 = vpop.permute.xlu0 %609  ;;  %944 = vmatprep.subr.mxu0 %v9579_v59  ;;  %1114 = vmatpush1.msra.mxu1 %v1113_v60  ;;  %v9584_v7 = vsub.f32 %v885_v55, %v9579_v59 }
 0x11f   : > { %v613_v9 = vsel %vm13004_vm14, %v608_v44, %v610_v3  ;;  %619 = vst.msk [vmem:[#allocation3 + $0xa0] sm:$0xf0] %vm332_vm0, %v610_v3  ;;  %v884_v10 = vld [vmem:[#allocation3 + $0xa8] sm:$0xff] }
 0x120   : > { %618 = vst [vmem:[#allocation3 + $0x98] sm:$0xf0] %v613_v9  ;;  %v546_v13 = vpop.permute.xlu1 %545  ;;  %v9588_v14 = vand.u32 4294901760, %v884_v10  ;;  %v12927_v16 = vand.u32 4294901760, %v9584_v7 }
 0x122   : > { %v606_v17 = vpop.permute.xlu0 %605  ;;  %946 = vmatpush1.msra.mxu0 %v9588_v14  ;;  %v1118_v18 = vsub.f32 %v9584_v7, %v12927_v16  ;;  %v9596_v20 = vsub.f32 %v884_v10, %v9588_v14 }
 0x123   : > { %v612_v22 = vsel %vm13004_vm14, %v606_v17, %v608_v44 }
 0x124   : > { %617 = vst [vmem:[#allocation3 + $0x90] sm:$0xf0] %v612_v22  ;;  %v567_v23 = vpop.permute.xlu1 %566  ;;  %v1119_v27 = vand.u32 4294901760, %v1118_v18  ;;  %v12926_v28 = vand.u32 4294901760, %v9596_v20 }
 0x126   : > { %v548_v30 = vpop.permute.xlu0 %547  ;;  %1120 = vmatprep.subr.mxu1 %v1119_v27  ;;  %v1124_v39 = vsub.f32 %v9596_v20, %v12926_v28 }
 0x127   : > { %v551_v40 = vsel %vm12917_vm15, %v546_v13, %v548_v30  ;;  %557 = vst.msk [vmem:[#allocation3 + $0x88] sm:$0xf] %vm351_vm5, %v548_v30  ;;  %v882_v42 = vld [vmem:[#allocation3 + $0x98] sm:$0xff] }
 0x128   : > { %556 = vst [vmem:[#allocation3 + $0x80] sm:$0xf] %v551_v40  ;;  %v544_v45 = vpop.permute.xlu1 %543  ;;  %v9605_v44 = vand.u32 4294901760, %v882_v42  ;;  %v1125_v49 = vand.u32 4294901760, %v1124_v39 }
 0x129   : > { %v550_v53 = vsel %vm12917_vm15, %v544_v45, %v546_v13  ;;  %vm12919_vm15 = vcmask 859136  }
 0x12a   : > { %555 = vst [vmem:[#allocation3 + $0x78] sm:$0xf] %v550_v53  ;;  %v569_v54 = vpop.permute.xlu0 %568  ;;  %948 = vmatprep.subr.mxu0 %v9605_v44  ;;  %1126 = vmatpush1.msra.mxu1 %v1125_v49  ;;  %v9610_v55 = vsub.f32 %v882_v42, %v9605_v44 }
 0x12b   : > { %v572_v57 = vsel %vm12970_vm13, %v567_v23, %v569_v54  ;;  %578 = vst.msk [vmem:[#allocation3 + $0x88] sm:$0xf0] %vm332_vm0, %v569_v54  ;;  %v881_v60 = vld [vmem:[#allocation3 + $0x90] sm:$0xff] }
 0x12c   : > { %577 = vst [vmem:[#allocation3 + $0x80] sm:$0xf0] %v572_v57  ;;  %v505_v0 = vpop.permute.xlu1 %504  ;;  %v9614_v3 = vand.u32 4294901760, %v881_v60  ;;  %v12924_v9 = vand.u32 4294901760, %v9610_v55 }
 0x12e   : > { %v565_v10 = vpop.permute.xlu0 %564  ;;  %950 = vmatpush1.msra.mxu0 %v9614_v3  ;;  %v1130_v13 = vsub.f32 %v9610_v55, %v12924_v9  ;;  %v9622_v17 = vsub.f32 %v881_v60, %v9614_v3 }
 0x12f   : > { %v571_v18 = vsel %vm12970_vm13, %v565_v10, %v567_v23 }
 0x130   : > { %576 = vst [vmem:[#allocation3 + $0x78] sm:$0xf0] %v571_v18  ;;  %v526_v22 = vpop.permute.xlu1 %525  ;;  %v1131_v27 = vand.u32 4294901760, %v1130_v13  ;;  %v12920_v30 = vand.u32 4294901760, %v9622_v17 }
 0x132   : > { %v507_v39 = vpop.permute.xlu0 %506  ;;  %1132 = vmatprep.subr.mxu1 %v1131_v27  ;;  %v1136_v40 = vsub.f32 %v9622_v17, %v12920_v30 }
 0x133   : > { %v510_v42 = vsel %vm12919_vm15, %v505_v0, %v507_v39  ;;  %516 = vst.msk [vmem:[#allocation3 + $0x70] sm:$0xf] %vm351_vm5, %v507_v39  ;;  %v879_v45 = vld [vmem:[#allocation3 + $0x80] sm:$0xff] }
 0x134   : > { %515 = vst [vmem:[#allocation3 + $0x68] sm:$0xf] %v510_v42  ;;  %v503_v49 = vpop.permute.xlu1 %502  ;;  %v9631_v23 = vand.u32 4294901760, %v879_v45  ;;  %v1137_v53 = vand.u32 4294901760, %v1136_v40 }
 0x135   : > { %v509_v54 = vsel %vm12919_vm15, %v503_v49, %v505_v0  ;;  %vm12925_vm15 = vcmask 875520  }
 0x136   : > { %514 = vst [vmem:[#allocation3 + $0x60] sm:$0xf] %v509_v54  ;;  %v528_v57 = vpop.permute.xlu0 %527  ;;  %952 = vmatprep.subr.mxu0 %v9631_v23  ;;  %1138 = vmatpush1.msra.mxu1 %v1137_v53  ;;  %v9636_v60 = vsub.f32 %v879_v45, %v9631_v23 }
 0x137   : > { %v531_v10 = vsel %vm12966_vm11, %v526_v22, %v528_v57  ;;  %537 = vst.msk [vmem:[#allocation3 + $0x70] sm:$0xf0] %vm332_vm0, %v528_v57  ;;  %v878_v13 = vld [vmem:[#allocation3 + $0x78] sm:$0xff] }
 0x138   : > { %536 = vst [vmem:[#allocation3 + $0x68] sm:$0xf0] %v531_v10  ;;  %v464_v18 = vpop.permute.xlu1 %463  ;;  %v9640_v27 = vand.u32 4294901760, %v878_v13  ;;  %v12921_v39 = vand.u32 4294901760, %v9636_v60 }
 0x13a   : > { %v524_v0 = vpop.permute.xlu0 %523  ;;  %954 = vmatpush1.msra.mxu0 %v9640_v27  ;;  %v1142_v40 = vsub.f32 %v9636_v60, %v12921_v39  ;;  %v9648_v42 = vsub.f32 %v878_v13, %v9640_v27 }
 0x13b   : > { %v530_v45 = vsel %vm12966_vm11, %v524_v0, %v526_v22  ;;  %vm326_vm11 = vcmask 1044304  }
 0x13c   : > { %535 = vst [vmem:[#allocation3 + $0x60] sm:$0xf0] %v530_v45  ;;  %v485_v49 = vpop.permute.xlu1 %484  ;;  %v1143_v53 = vand.u32 4294901760, %v1142_v40  ;;  %v12923_v54 = vand.u32 4294901760, %v9648_v42 }
 0x13e   : > { %v466_v57 = vpop.permute.xlu0 %465  ;;  %1144 = vmatprep.subr.mxu1 %v1143_v53  ;;  %v1148_v10 = vsub.f32 %v9648_v42, %v12923_v54 }
 0x13f   : > { %v469_v30 = vsel %vm12925_vm15, %v464_v18, %v466_v57  ;;  %475 = vst.msk [vmem:[#allocation3 + $0x58] sm:$0xf] %vm351_vm5, %v466_v57  ;;  %v876_v13 = vld [vmem:[#allocation3 + $0x68] sm:$0xff] }
 0x140   : > { %474 = vst [vmem:[#allocation3 + $0x50] sm:$0xf] %v469_v30  ;;  %v462_v39 = vpop.permute.xlu1 %461  ;;  %v9657_v22 = vand.u32 4294901760, %v876_v13  ;;  %v1149_v0 = vand.u32 4294901760, %v1148_v10 }
 0x141   : > { %v468_v40 = vsel %vm12925_vm15, %v462_v39, %v464_v18  ;;  %vm12933_vm15 = vcmask 1014784  }
 0x142   : > { %473 = vst [vmem:[#allocation3 + $0x48] sm:$0xf] %v468_v40  ;;  %v487_v45 = vpop.permute.xlu0 %486  ;;  %956 = vmatprep.subr.mxu0 %v9657_v22  ;;  %1150 = vmatpush1.msra.mxu1 %v1149_v0  ;;  %v9662_v53 = vsub.f32 %v876_v13, %v9657_v22 }
 0x143   : > { %v490_v54 = vsel %vm12930_vm9, %v485_v49, %v487_v45  ;;  %496 = vst.msk [vmem:[#allocation3 + $0x58] sm:$0xf0] %vm332_vm0, %v487_v45  ;;  %v875_v30 = vld [vmem:[#allocation3 + $0x60] sm:$0xff] }
 0x144   : > { %495 = vst [vmem:[#allocation3 + $0x50] sm:$0xf0] %v490_v54  ;;  %v423_v57 = vpop.permute.xlu1 %422  ;;  %v9666_v9 = vand.u32 4294901760, %v875_v30  ;;  %v12929_v10 = vand.u32 4294901760, %v9662_v53 }
 0x146   : > { %v483_v18 = vpop.permute.xlu0 %482  ;;  %958 = vmatpush1.msra.mxu0 %v9666_v9  ;;  %v1154_v39 = vsub.f32 %v9662_v53, %v12929_v10  ;;  %v9674_v13 = vsub.f32 %v875_v30, %v9666_v9 }
 0x147   : > { %v489_v0 = vsel %vm12930_vm9, %v483_v18, %v485_v49  ;;  %vm12938_vm9 = vcmask 883712  }
 0x148   : > { %494 = vst [vmem:[#allocation3 + $0x48] sm:$0xf0] %v489_v0  ;;  %v444_v40 = vpop.permute.xlu1 %443  ;;  %v1155_v54 = vand.u32 4294901760, %v1154_v39  ;;  %v12931_v45 = vand.u32 4294901760, %v9674_v13 }
 0x14a   : > { %v425_v28 = vpop.permute.xlu0 %424  ;;  %1156 = vmatprep.subr.mxu1 %v1155_v54  ;;  %v1160_v16 = vsub.f32 %v9674_v13, %v12931_v45 }
 0x14b   : > { %v428_v48 = vsel %vm12933_vm15, %v423_v57, %v425_v28  ;;  %434 = vst.msk [vmem:[#allocation3 + $0x40] sm:$0xf] %vm351_vm5, %v425_v28  ;;  %v873_v30 = vld [vmem:[#allocation3 + $0x50] sm:$0xff] }
 0x14c   : > { %433 = vst [vmem:[#allocation3 + $0x38] sm:$0xf] %v428_v48  ;;  %v421_v10 = vpop.permute.xlu1 %420  ;;  %v9683_v49 = vand.u32 4294901760, %v873_v30  ;;  %v1161_v18 = vand.u32 4294901760, %v1160_v16 }
 0x14d   : > { %v427_v39 = vsel %vm12933_vm15, %v421_v10, %v423_v57  ;;  %vm12946_vm15 = vcmask 1031168  }
 0x14e   : > { %432 = vst [vmem:[#allocation3 + $0x30] sm:$0xf] %v427_v39  ;;  %v446_v0 = vpop.permute.xlu0 %445  ;;  %960 = vmatprep.subr.mxu0 %v9683_v49  ;;  %1162 = vmatpush1.msra.mxu1 %v1161_v18  ;;  %v9688_v54 = vsub.f32 %v873_v30, %v9683_v49 }
 0x14f   : > { %v449_v45 = vsel %vm12938_vm9, %v444_v40, %v446_v0  ;;  %455 = vst.msk [vmem:[#allocation3 + $0x40] sm:$0xf0] %vm332_vm0, %v446_v0  ;;  %v872_v48 = vld [vmem:[#allocation3 + $0x48] sm:$0xff] }
 0x150   : > { %454 = vst [vmem:[#allocation3 + $0x38] sm:$0xf0] %v449_v45  ;;  %v382_v28 = vpop.permute.xlu1 %381  ;;  %v9692_v35 = vand.u32 4294901760, %v872_v48  ;;  %v12937_v16 = vand.u32 4294901760, %v9688_v54 }
 0x152   : > { %v442_v57 = vpop.permute.xlu0 %441  ;;  %962 = vmatpush1.msra.mxu0 %v9692_v35  ;;  %v1166_v10 = vsub.f32 %v9688_v54, %v12937_v16  ;;  %v9700_v30 = vsub.f32 %v872_v48, %v9692_v35 }
 0x153   : > { %v448_v18 = vsel %vm12938_vm9, %v442_v57, %v444_v40  ;;  %vm12965_vm9 = vcmask 1022976  }
 0x154   : > { %453 = vst [vmem:[#allocation3 + $0x30] sm:$0xf0] %v448_v18  ;;  %v403_v39 = vpop.permute.xlu1 %402  ;;  %v1167_v45 = vand.u32 4294901760, %v1166_v10  ;;  %v12943_v0 = vand.u32 4294901760, %v9700_v30  ;;  %v862_v10 = vld [vmem:[%s13114_s3] sm:$0xf] }
 0x155   : > { %s13170_s3 = smov 84  }
 0x156   : > { %v384_v12 = vpop.permute.xlu0 %383  ;;  %1168 = vmatprep.subr.mxu1 %v1167_v45  ;;  %v1172_v62 = vsub.f32 %v9700_v30, %v12943_v0 }
 0x157   : > { %v387_v41 = vsel %vm12946_vm15, %v382_v28, %v384_v12  ;;  %393 = vst.msk [vmem:[#allocation3 + $0x28] sm:$0xf] %vm351_vm5, %v384_v12  ;;  %v870_v48 = vld [vmem:[#allocation3 + $0x38] sm:$0xff] }
 0x158   : > { %392 = vst [vmem:[#allocation3 + $0x20] sm:$0xf] %v387_v41  ;;  %v380_v16 = vpop.permute.xlu1 %379  ;;  %v9709_v40 = vand.u32 4294901760, %v870_v48  ;;  %v1173_v57 = vand.u32 4294901760, %v1172_v62  ;;  %v9721_v62 = vand.u32 4294901760, %v862_v10 }
 0x159   : > { %v386_v18 = vsel %vm12946_vm15, %v380_v16, %v382_v28  ;;  %vm12962_vm15 = vcmask 1039360  }
 0x15a   : > { %391 = vst [vmem:[#allocation3 + $0x18] sm:$0xf] %v386_v18  ;;  %v405_v45 = vpop.permute.xlu0 %404  ;;  %964 = vmatprep.subr.mxu0 %v9709_v40  ;;  %1174 = vmatpush1.msra.mxu1 %v1173_v57  ;;  %v9717_v12 = vsub.f32 %v870_v48, %v9709_v40 }
 0x15b   : > { %v408_v41 = vsel %vm12965_vm9, %v403_v39, %v405_v45  ;;  %414 = vst.msk [vmem:[#allocation3 + $0x28] sm:$0xf0] %vm332_vm0, %v405_v45  ;;  %v869_v0 = vld [vmem:[#allocation3 + $0x30] sm:$0xff]  ;;  %v9735_v45 = vsub.f32 %v862_v10, %v9721_v62 }
 0x15c   : > { %413 = vst [vmem:[#allocation3 + $0x20] sm:$0xf0] %v408_v41  ;;  %v362_v32 = vpop.permute.xlu1 %361  ;;  %v9723_v15 = vand.u32 4294901760, %v869_v0  ;;  %v12952_v28 = vand.u32 4294901760, %v9717_v12 }
 0x15d   : > { %v9745_v10 = vand.u32 4294901760, %v9735_v45 }
 0x15e   : > { %13115 = vst [vmem:[#allocation23_spill] sm:$0xff] %v9723_v15  ;;  %v401_v16 = vpop.permute.xlu0 %400  ;;  %966 = vmatpush1.msra.mxu0 %v9723_v15  ;;  %v1178_v48 = vsub.f32 %v9717_v12, %v12952_v28  ;;  %v9731_v57 = vsub.f32 %v869_v0, %v9723_v15 }
 0x15f   : > { %v407_v18 = vsel %vm12965_vm9, %v401_v16, %v403_v39  ;;  %13116 = vst [vmem:[#allocation24_spill] sm:$0xff] %v9745_v10  ;;  %vm324_vm9 = vcmask 338944  }
 0x160   : > { %412 = vst [vmem:[#allocation3 + $0x18] sm:$0xf0] %v407_v18  ;;  %v360_v41 = vpop.permute.xlu1 %359  ;;  %v1179_v5 = vand.u32 4294901760, %v1178_v48  ;;  %v12953_v47 = vand.u32 4294901760, %v9731_v57 }
 0x161   : > { %v366_v51 = vsel %vm12962_vm15, %v360_v41, %v362_v32  ;;  %v1011_v41 = vsub.f32 %v9735_v45, %v9745_v10 }
 0x162   : > { %371 = vst [vmem:[#allocation3] sm:$0xf0] %v366_v51  ;;  %v364_v4 = vpop.permute.xlu0 %363  ;;  %1180 = vmatprep.subr.mxu1 %v1179_v5  ;;  %v1184_v0 = vsub.f32 %v9731_v57, %v12953_v47 }
 0x163   : > { %v367_v28 = vsel %vm12962_vm15, %v362_v32, %v364_v4  ;;  %373 = vst.msk [vmem:[#allocation3 + $0x10] sm:$0xf0] %vm332_vm0, %v364_v4  ;;  %v867_v39 = vld [vmem:[#allocation3 + $0x20] sm:$0xff]  ;;  %vm12963_vm15 = vmmov 0  }
 0x164   : > { %372 = vst [vmem:[#allocation3 + $0x8] sm:$0xf0] %v367_v28  ;;  %v803_v16 = vpop.permute.xlu1 %802  ;;  %v9747_v48 = vand.u32 4294901760, %v867_v39  ;;  %v1185_v18 = vand.u32 4294901760, %v1184_v0 }
 0x165   : > { %v807_v51 = vsel %vm12971_vm3, %v9407_v29, %v803_v16 }
 0x166   : > { %13117 = vst [vmem:[#allocation25_spill] sm:$0xff] %v9747_v48  ;;  %813 = vst.msk [vmem:[#allocation3 + $0x118] sm:$0xf] %vm351_vm5, %v807_v51  ;;  %v851_v5 = vpop.permute.xlu0 %850  ;;  %968 = vmatprep.subr.mxu0 %v9747_v48  ;;  %1186 = vmatpush1.msra.mxu1 %v1185_v18  ;;  %v9754_v4 = vsub.f32 %v867_v39, %v9747_v48 }
 0x167   : > { %v855_v32 = vsel %vm852_vm2, %v9400_v26, %v851_v5  ;;  %v866_v28 = vld [vmem:[#allocation3 + $0x18] sm:$0xff] }
 0x168   : > { %861 = vst.msk [vmem:[#allocation3 + $0x130] sm:$0xf] %vm351_vm5, %v855_v32  ;;  %v755_v0 = vpop.permute.xlu1 %754  ;;  %v9761_v29 = vand.u32 4294901760, %v866_v28  ;;  %v12958_v16 = vand.u32 4294901760, %v9754_v4 }
 0x169   : > { %v759_v18 = vsel %vm12968_vm6, %v9446_v52, %v755_v0  ;;  %v863_v51 = vld [vmem:[#allocation3] sm:$0xff]  ;;  %v9778_v52 = vand.u32 4294901760, %v1011_v41  ;;  %vm328_vm6 = vmor %vm327_vm8, %vm326_vm11 }
 0x16a   : > { %765 = vst.msk [vmem:[#allocation3 + $0x100] sm:$0xf] %vm351_vm5, %v759_v18  ;;  %v827_v39 = vpop.permute.xlu0 %826  ;;  %970 = vmatpush1.msra.mxu0 %v9761_v29  ;;  %v1190_v26 = vsub.f32 %v9754_v4, %v12958_v16  ;;  %v9771_v5 = vand.u32 4294901760, %v863_v51  ;;  %v9774_v32 = vsub.f32 %v866_v28, %v9761_v29 }
 0x16b   : > { %v831_v47 = vsel %vm828_vm4, %v9419_v36, %v827_v39  ;;  %v864_v10 = vld [vmem:[#allocation3 + $0x8] sm:$0xff] }
 0x16c   : > { %837 = vst.msk [vmem:[#allocation3 + $0x118] sm:$0xf0] %vm332_vm0, %v831_v47  ;;  %v9781_v0 = vand.u32 4294901760, %v864_v10  ;;  %v1191_v18 = vand.u32 4294901760, %v1190_v26  ;;  %v1195_v48 = vand.u32 4294901760, %v9774_v32  ;;  %v9785_v16 = vsub.f32 %v863_v51, %v9771_v5 }
 0x16d   : > { %v13118_v51 = vmov 0.0  }
 0x16e   : > { %v779_v15 = vpop.permute.xlu0 %778  ;;  %972 = vmatprep.subr.mxu0 %v9781_v0  ;;  %1192 = vmatprep.subr.mxu1 %v1191_v18  ;;  %v1196_v36 = vsub.f32 %v9774_v32, %v1195_v48  ;;  %v9792_v28 = vsub.f32 %v864_v10, %v9781_v0  ;;  %v12961_v47 = vand.u32 4294901760, %v9785_v16  ;;  %v9806_v18 = vld [vmem:[#allocation3 + $0x170] sm:$0xff] }
 0x16f   : > { %v783_v41 = vsel %vm780_vm7, %v9466_v63, %v779_v15  ;;  %974 = vmatpush1.msra.mxu0 %v9771_v5 }
 0x170   : > { %789 = vst.msk [vmem:[#allocation3 + $0x100] sm:$0xf0] %vm332_vm0, %v783_v41  ;;  %1253 = vmatprep.subr.mxu0 %v13118_v51  ;;  %1013 = vmatmul.mubr.f32.vlgmr.msra.gmra.mxu0 %v9778_v52  ;;  %v1197_v39 = vand.u32 4294901760, %v1196_v36  ;;  %v1201_v26 = vand.u32 4294901760, %v9792_v28  ;;  %v1208_v10 = vsub.f32 %v9785_v16, %v12961_v47  ;;  %v13119_v41 = vld [vmem:[#allocation23_spill] sm:$0xff]  ;;  %v13125_v47 = vand.u32 4294901760, %v9486_v11 }
 0x171   : > { %1256 = vmatpush1.msra.mxu0 %v13118_v51  ;;  %1379 = vmatprep.mubr.f32.mxu0 %v9806_v18 }
 0x172   : > { %1198 = vmatpush1.msra.mxu1 %v1197_v39  ;;  %1259 = vmatprep.subr.mxu0 %v13118_v51  ;;  %v1202_v63 = vsub.f32 %v9792_v28, %v1201_v26  ;;  %v1209_v36 = vand.u32 4294901760, %v1208_v10  ;;  %v13120_v39 = vld [vmem:[#allocation25_spill] sm:$0xff]  ;;  %v13121_v10 = vand.u32 4294901760, %v9437_v46 }
 0x173   : > { %1262 = vmatpush1.msra.mxu0 %v13118_v51 }
 0x174   : > { %1265 = vmatprep.subr.mxu0 %v13118_v51  ;;  %v1203_v15 = vand.u32 4294901760, %v1202_v63  ;;  %v13122_v63 = vand.u32 4294901760, %v9424_v37 }
 0x175   : > { %1268 = vmatpush1.msra.mxu0 %v13118_v51 }
 0x176   : > { %1204 = vmatprep.subr.mxu1 %v1203_v15  ;;  %1271 = vmatprep.subr.mxu0 %v9437_v46  ;;  %v13123_v15 = vld [vmem:[#allocation24_spill] sm:$0xff]  ;;  %v13126_v46 = vand.u32 4294901760, %v9504_v25 }
 0x177   : > { %1210 = vmatpush1.msra.mxu1 %v1209_v36  ;;  %1274 = vmatpush1.msra.mxu0 %v9424_v37  ;;  %v13124_v36 = vand.u32 4294901760, %v9472_v1  ;;  %v13127_v37 = vand.u32 4294901760, %v9518_v38 }
 0x178   : > { %1245 = vmatmul.mubr.f32.vlgmr.msra.gmra.mxu1 %v9721_v62  ;;  %1277 = vmatprep.subr.mxu0 %v9472_v1  ;;  %v13128_v1 = vand.u32 4294901760, %v9532_v56 }
 0x179   : > { %1389 = vmatprep.subr.mxu1 %v13118_v51  ;;  %1280 = vmatpush1.msra.mxu0 %v9486_v11  ;;  %v13129_v11 = vand.u32 4294901760, %v9544_v6 }
 0x17a   : > { %1391 = vmatpush1.msra.mxu1 %v13118_v51  ;;  %1283 = vmatprep.subr.mxu0 %v9504_v25  ;;  %v13130_v25 = vand.u32 4294901760, %v9558_v24 }
 0x17b   : > { %1393 = vmatprep.subr.mxu1 %v13118_v51  ;;  %1286 = vmatpush1.msra.mxu0 %v9518_v38  ;;  %v13131_v38 = vand.u32 4294901760, %v9570_v2 }
 0x17c   : > { %1395 = vmatpush1.msra.mxu1 %v13118_v51  ;;  %1289 = vmatprep.subr.mxu0 %v9532_v56  ;;  %v13132_v56 = vand.u32 4294901760, %v9584_v7 }
 0x17d   : > { %1397 = vmatprep.subr.mxu1 %v13118_v51  ;;  %1292 = vmatpush1.msra.mxu0 %v9544_v6  ;;  %v13133_v6 = vand.u32 4294901760, %v9596_v20 }
 0x17e   : > { %1399 = vmatpush1.msra.mxu1 %v13118_v51  ;;  %1295 = vmatprep.subr.mxu0 %v9558_v24  ;;  %v13134_v24 = vand.u32 4294901760, %v9610_v55 }
 0x17f   : > { %1401 = vmatprep.subr.mxu1 %v9430_v43  ;;  %1298 = vmatpush1.msra.mxu0 %v9570_v2  ;;  %v13137_v2 = vand.u32 4294901760, %v9648_v42 }
 0x180   : > { %1403 = vmatpush1.msra.mxu1 %v9415_v33  ;;  %1301 = vmatprep.subr.mxu0 %v9584_v7  ;;  %v13139_v7 = vand.u32 4294901760, %v9674_v13 }
 0x181   : > { %1405 = vmatprep.subr.mxu1 %v9460_v58  ;;  %1304 = vmatpush1.msra.mxu0 %v9596_v20  ;;  %v904_v20 = vld [vmem:[#allocation3 + $0x148] sm:$0xff] }
 0x182   : > { %1407 = vmatpush1.msra.mxu1 %v9477_v8  ;;  %1307 = vmatprep.subr.mxu0 %v9610_v55  ;;  %v13142_v55 = vand.u32 4294901760, %v9717_v12 }
 0x183   : > { %1409 = vmatprep.subr.mxu1 %v9499_v21  ;;  %1310 = vmatpush1.msra.mxu0 %v9622_v17 }
 0x184   : > { %1411 = vmatpush1.msra.mxu1 %v9510_v31  ;;  %1313 = vmatprep.subr.mxu0 %v9636_v60 }
 0x185   : > { %1413 = vmatprep.subr.mxu1 %v9527_v50  ;;  %1316 = vmatpush1.msra.mxu0 %v9648_v42  ;;  %v13145_v42 = vand.u32 4294901760, %v9785_v16 }
 0x186   : > { %1415 = vmatpush1.msra.mxu1 %v9536_v61  ;;  %1319 = vmatprep.subr.mxu0 %v9662_v53 }
 0x187   : > { %1417 = vmatprep.subr.mxu1 %v9553_v19  ;;  %1322 = vmatpush1.msra.mxu0 %v9674_v13  ;;  %v895_v13 = vld [vmem:[#allocation3 + $0x100] sm:$0xff] }
 0x188   : > { %1419 = vmatpush1.msra.mxu1 %v9562_v34  ;;  %1325 = vmatprep.subr.mxu0 %v9688_v54 }
 0x189   : > { %1421 = vmatprep.subr.mxu1 %v9579_v59  ;;  %1328 = vmatpush1.msra.mxu0 %v9700_v30 }
 0x18a   : > { %1423 = vmatpush1.msra.mxu1 %v9588_v14  ;;  %1331 = vmatprep.subr.mxu0 %v9717_v12 }
 0x18b   : > { %1425 = vmatprep.subr.mxu1 %v9605_v44  ;;  %1334 = vmatpush1.msra.mxu0 %v9731_v57 }
 0x18c   : > { %1427 = vmatpush1.msra.mxu1 %v9614_v3  ;;  %1337 = vmatprep.subr.mxu0 %v9754_v4 }
 0x18d   : > { %1429 = vmatprep.subr.mxu1 %v9631_v23  ;;  %1340 = vmatpush1.msra.mxu0 %v9774_v32  ;;  %v886_v32 = vld [vmem:[#allocation3 + $0xb8] sm:$0xff] }
 0x18e   : > { %1431 = vmatpush1.msra.mxu1 %v9640_v27  ;;  %1343 = vmatprep.subr.mxu0 %v9792_v28 }
 0x18f   : > { %1433 = vmatprep.subr.mxu1 %v9657_v22  ;;  %1346 = vmatpush1.msra.mxu0 %v9785_v16 }
 0x190   : > { %1435 = vmatpush1.msra.mxu1 %v9666_v9  ;;  %1382 = vmatmul.mubr.f32.vlgmr.msra.gmra.mxu0 %v9735_v45 }
 0x191   : > { %1437 = vmatprep.subr.mxu1 %v9683_v49  ;;  %1497 = vmatprep.subr.mxu0 %v13118_v51 }
 0x192   : > { %1439 = vmatpush1.msra.mxu1 %v9692_v35  ;;  %1501 = vmatpush1.msra.mxu0 %v13118_v51 }
 0x193   : > { %1441 = vmatprep.subr.mxu1 %v9709_v40  ;;  %1505 = vmatprep.subr.mxu0 %v13118_v51 }
 0x194   : > { %1443 = vmatpush1.msra.mxu1 %v13119_v41  ;;  %1509 = vmatpush1.msra.mxu0 %v13118_v51 }
 0x195   : > { %1445 = vmatprep.subr.mxu1 %v13120_v39  ;;  %1513 = vmatprep.subr.mxu0 %v13118_v51 }
 0x196   : > { %1447 = vmatpush1.msra.mxu1 %v9761_v29  ;;  %1517 = vmatpush1.msra.mxu0 %v13118_v51 }
 0x197   : > { %1449 = vmatprep.subr.mxu1 %v9781_v0  ;;  %1521 = vmatprep.subr.mxu0 %v13121_v10 }
 0x198   : > { %1451 = vmatpush1.msra.mxu1 %v9771_v5  ;;  %1484 = vmatprep.mubr.f32.mxu1 %v9806_v18 }
 0x199   : > { %1525 = vmatpush1.msra.mxu0 %v13122_v63  ;;  %1488 = vmatmul.mubr.f32.vlgmr.msra.gmra.mxu1 %v13123_v15 }
 0x19a   : > { %1529 = vmatprep.subr.mxu0 %v13124_v36  ;;  %1663 = vmatprep.subr.mxu1 %v13118_v51 }
 0x19b   : > { %1533 = vmatpush1.msra.mxu0 %v13125_v47  ;;  %1665 = vmatpush1.msra.mxu1 %v13118_v51 }
 0x19c   : > { %1537 = vmatprep.subr.mxu0 %v13126_v46  ;;  %1667 = vmatprep.subr.mxu1 %v13118_v51 }
 0x19d   : > { %1541 = vmatpush1.msra.mxu0 %v13127_v37  ;;  %1669 = vmatpush1.msra.mxu1 %v13118_v51 }
 0x19e   : > { %1545 = vmatprep.subr.mxu0 %v13128_v1  ;;  %1671 = vmatprep.subr.mxu1 %v13118_v51 }
 0x19f   : > { %1549 = vmatpush1.msra.mxu0 %v13129_v11  ;;  %1673 = vmatpush1.msra.mxu1 %v13118_v51  ;;  %v877_v11 = vld [vmem:[#allocation3 + $0x70] sm:$0xff] }
 0x1a0   : > { %1553 = vmatprep.subr.mxu0 %v13130_v25  ;;  %1675 = vmatprep.subr.mxu1 %v9430_v43  ;;  %v13135_v43 = vand.u32 4294901760, %v9622_v17  ;;  %v9955_v17 = vand.u32 4294901760, %v904_v20 }
 0x1a1   : > { %1557 = vmatpush1.msra.mxu0 %v13131_v38  ;;  %1677 = vmatpush1.msra.mxu1 %v9415_v33  ;;  %v13136_v33 = vand.u32 4294901760, %v9636_v60  ;;  %v13144_v60 = vand.u32 4294901760, %v9754_v4 }
 0x1a2   : > { %1561 = vmatprep.subr.mxu0 %v13132_v56  ;;  %1679 = vmatprep.subr.mxu1 %v9460_v58  ;;  %v910_v58 = vld [vmem:[#allocation3 + $0x178] sm:$0xff] }
 0x1a3   : > { %1565 = vmatpush1.msra.mxu0 %v13133_v6  ;;  %1681 = vmatpush1.msra.mxu1 %v9477_v8  ;;  %v13138_v8 = vand.u32 4294901760, %v9662_v53 }
 0x1a4   : > { %1569 = vmatprep.subr.mxu0 %v13134_v24  ;;  %1683 = vmatprep.subr.mxu1 %v9499_v21  ;;  %v907_v21 = vld [vmem:[#allocation3 + $0x160] sm:$0xff] }
 0x1a5   : > { %1573 = vmatpush1.msra.mxu0 %v13135_v43  ;;  %1685 = vmatpush1.msra.mxu1 %v9510_v31  ;;  %v9936_v31 = vand.u32 4294901760, %v910_v58 }
 0x1a6   : > { %1577 = vmatprep.subr.mxu0 %v13136_v33  ;;  %1687 = vmatprep.subr.mxu1 %v9527_v50  ;;  %v13140_v50 = vand.u32 4294901760, %v9688_v54 }
 0x1a7   : > { %1581 = vmatpush1.msra.mxu0 %v13137_v2  ;;  %1689 = vmatpush1.msra.mxu1 %v9536_v61  ;;  %v13141_v61 = vand.u32 4294901760, %v9700_v30  ;;  %v892_v30 = vld [vmem:[#allocation3 + $0xe8] sm:$0xff]  ;;  %v874_v2 = vld [vmem:[#allocation3 + $0x58] sm:$0xff] }
 0x1a8   : > { %1585 = vmatprep.subr.mxu0 %v13138_v8  ;;  %1691 = vmatprep.subr.mxu1 %v9553_v19  ;;  %v9944_v19 = vand.u32 4294901760, %v907_v21 }
 0x1a9   : > { %1589 = vmatpush1.msra.mxu0 %v13139_v7  ;;  %1693 = vmatpush1.msra.mxu1 %v9562_v34  ;;  %v13143_v34 = vand.u32 4294901760, %v9731_v57  ;;  %v889_v57 = vld [vmem:[#allocation3 + $0xd0] sm:$0xff] }
 0x1aa   : > { %1593 = vmatprep.subr.mxu0 %v13140_v50  ;;  %1695 = vmatprep.subr.mxu1 %v9579_v59  ;;  %v9953_v59 = vsub.f32 %v910_v58, %v9936_v31  ;;  %v10012_v16 = vand.u32 4294901760, %v889_v57  ;;  %v10064_v58 = vand.u32 4294901760, %v877_v11 }
 0x1ab   : > { %1597 = vmatpush1.msra.mxu0 %v13141_v61  ;;  %1697 = vmatpush1.msra.mxu1 %v9588_v14  ;;  %v901_v14 = vld [vmem:[#allocation3 + $0x130] sm:$0xff] }
 0x1ac   : > { %1601 = vmatprep.subr.mxu0 %v13142_v55  ;;  %1699 = vmatprep.subr.mxu1 %v9605_v44  ;;  %v9964_v44 = vsub.f32 %v907_v21, %v9944_v19  ;;  %v9975_v53 = vand.u32 4294901760, %v901_v14  ;;  %v10036_v63 = vsub.f32 %v889_v57, %v10012_v16  ;;  %v10081_v55 = vand.u32 4294901760, %v874_v2 }
 0x1ad   : > { %1605 = vmatpush1.msra.mxu0 %v13143_v34  ;;  %1701 = vmatpush1.msra.mxu1 %v9614_v3  ;;  %v898_v3 = vld [vmem:[#allocation3 + $0x118] sm:$0xff] }
 0x1ae   : > { %1609 = vmatprep.subr.mxu0 %v13144_v60  ;;  %1703 = vmatprep.subr.mxu1 %v9631_v23  ;;  %v9973_v23 = vsub.f32 %v904_v20, %v9955_v17  ;;  %v1867_v54 = vand.u32 4294901760, %v9964_v44  ;;  %v1909_v24 = vand.u32 4294901760, %v10036_v63  ;;  %v871_v20 = vld [vmem:[#allocation3 + $0x40] sm:$0xff] }
 0x1af   : > { %1613 = vmatpush1.msra.mxu0 %v1195_v48  ;;  %1705 = vmatpush1.msra.mxu1 %v9640_v27  ;;  %v1860_v27 = vand.u32 4294901760, %v9953_v59  ;;  %v9996_v48 = vsub.f32 %v901_v14, %v9975_v53 }
 0x1b0   : > { %1617 = vmatprep.subr.mxu0 %v1201_v26  ;;  %1707 = vmatprep.subr.mxu1 %v9657_v22  ;;  %v9982_v22 = vand.u32 4294901760, %v898_v3  ;;  %v1874_v12 = vand.u32 4294901760, %v9973_v23  ;;  %v1910_v60 = vsub.f32 %v10036_v63, %v1909_v24 }
 0x1b1   : > { %1621 = vmatpush1.msra.mxu0 %v13145_v42  ;;  %1654 = vmatprep.mubr.f32.mxu0 %v9806_v18  ;;  %v1881_v51 = vand.u32 4294901760, %v9996_v48  ;;  %v10089_v42 = vsub.f32 %v877_v11, %v10064_v58 }
 0x1b2   : > { %1709 = vmatpush1.msra.mxu1 %v9666_v9  ;;  %1656 = vmatmul.mubr.f32.vlgmr.msra.gmra.mxu0 %v9721_v62  ;;  %v1861_v9 = vsub.f32 %v9953_v59, %v1860_v27  ;;  %v10008_v4 = vsub.f32 %v898_v3, %v9982_v22  ;;  %v1875_v47 = vsub.f32 %v9973_v23, %v1874_v12  ;;  %v868_v3 = vld [vmem:[#allocation3 + $0x28] sm:$0xff] }
 0x1b3   : > { %1711 = vmatprep.subr.mxu1 %v9683_v49  ;;  %8080 = vmatprep.subr.mxu0 %v9806_v18  ;;  %v9992_v49 = vand.u32 4294901760, %v895_v13  ;;  %v1882_v46 = vsub.f32 %v9996_v48, %v1881_v51 }
 0x1b4   : > { %1713 = vmatpush1.msra.mxu1 %v9692_v35  ;;  %8081 = vmatpush3.msra.mxu0 %v9936_v31  ;;  %v1868_v35 = vsub.f32 %v9964_v44, %v1867_v54  ;;  %v1862_v28 = vand.u32 4294901760, %v1861_v9  ;;  %v1876_v36 = vand.u32 4294901760, %v1875_v47  ;;  %v1911_v47 = vand.u32 4294901760, %v1910_v60 }
 0x1b5   : > { %1715 = vmatprep.subr.mxu1 %v9709_v40  ;;  %8082 = vmatprep.subr.mxu0 %v9806_v18  ;;  %v10005_v40 = vand.u32 4294901760, %v892_v30  ;;  %v10021_v26 = vsub.f32 %v895_v13, %v9992_v49  ;;  %v1883_v43 = vand.u32 4294901760, %v1882_v46  ;;  %v10093_v13 = vand.u32 4294901760, %v871_v20 }
 0x1b6   : > { %1717 = vmatpush1.msra.mxu1 %v13119_v41  ;;  %8083 = vmatpush3.msra.mxu0 %v9944_v19  ;;  %v10027_v41 = vand.u32 4294901760, %v886_v32 }
 0x1b7   : > { %1719 = vmatprep.subr.mxu1 %v13120_v39  ;;  %8084 = vmatprep.subr.mxu0 %v9806_v18  ;;  %v1888_v39 = vand.u32 4294901760, %v10008_v4  ;;  %v10031_v10 = vsub.f32 %v892_v30, %v10005_v40  ;;  %v1895_v1 = vand.u32 4294901760, %v10021_v26 }
 0x1b8   : > { %1721 = vmatpush1.msra.mxu1 %v9761_v29  ;;  %8085 = vmatpush3.msra.mxu0 %v9955_v17  ;;  %v883_v29 = vld [vmem:[#allocation3 + $0xa0] sm:$0xff]  ;;  %v10055_v6 = vsub.f32 %v886_v32, %v10027_v41  ;;  %v10102_v32 = vand.u32 4294901760, %v868_v3 }
 0x1b9   : > { %1723 = vmatprep.subr.mxu1 %v9781_v0  ;;  %8086 = vmatprep.subr.mxu0 %v9806_v18  ;;  %v1869_v0 = vand.u32 4294901760, %v1868_v35  ;;  %v10042_v37 = vand.u32 4294901760, %v883_v29  ;;  %v1889_v25 = vsub.f32 %v10008_v4, %v1888_v39  ;;  %v1902_v56 = vand.u32 4294901760, %v10031_v10  ;;  %v865_v35 = vld [vmem:[#allocation3 + $0x10] sm:$0xff] }
 0x1ba   : > { %1725 = vmatpush1.msra.mxu1 %v9771_v5  ;;  %1758 = vmatprep.mubr.f32.mxu1 %v9806_v18  ;;  %v880_v5 = vld [vmem:[#allocation3 + $0x88] sm:$0xff]  ;;  %v1896_v33 = vsub.f32 %v10021_v26, %v1895_v1  ;;  %v1916_v50 = vand.u32 4294901760, %v10055_v6 }
 0x1bb   : > { %8087 = vmatpush3.msra.mxu0 %v9975_v53  ;;  %1760 = vmatmul.mubr.f32.vlgmr.msra.gmra.mxu1 %v9721_v62  ;;  %v10051_v38 = vand.u32 4294901760, %v880_v5  ;;  %v10067_v8 = vsub.f32 %v883_v29, %v10042_v37  ;;  %v1890_v21 = vand.u32 4294901760, %v1889_v25  ;;  %v1903_v7 = vsub.f32 %v10031_v10, %v1902_v56 }
 0x1bc   : > { %8088 = vmatprep.subr.mxu0 %v9806_v18  ;;  %8115 = vmatprep.subr.mxu1 %v9806_v18  ;;  %v1897_v34 = vand.u32 4294901760, %v1896_v33  ;;  %v1917_v9 = vsub.f32 %v10055_v6, %v1916_v50 }
 0x1bd   : > { %8089 = vmatpush3.msra.mxu0 %v9982_v22  ;;  %8116 = vmatpush3.msra.mxu1 %v1862_v28  ;;  %v10077_v61 = vsub.f32 %v880_v5, %v10051_v38  ;;  %v1923_v14 = vand.u32 4294901760, %v10067_v8  ;;  %v1904_v30 = vand.u32 4294901760, %v1903_v7  ;;  %v10105_v28 = vsub.f32 %v874_v2, %v10081_v55 }
 0x1be   : > { %8090 = vmatprep.subr.mxu0 %v9806_v18  ;;  %8117 = vmatprep.subr.mxu1 %v9806_v18  ;;  %v10114_v5 = vand.u32 4294901760, %v865_v35  ;;  %v1918_v46 = vand.u32 4294901760, %v1917_v9 }
 0x1bf   : > { %8091 = vmatpush3.msra.mxu0 %v9992_v49  ;;  %8118 = vmatpush3.msra.mxu1 %v1869_v0  ;;  %v1930_v57 = vand.u32 4294901760, %v10077_v61  ;;  %v1924_v29 = vsub.f32 %v10067_v8, %v1923_v14  ;;  %v1937_v0 = vand.u32 4294901760, %v10089_v42  ;;  %v1944_v25 = vand.u32 4294901760, %v10105_v28 }
 0x1c0   : > { %8092 = vmatprep.subr.mxu0 %v9806_v18  ;;  %8119 = vmatprep.subr.mxu1 %v9806_v18  ;;  %v10137_v7 = vsub.f32 %v865_v35, %v10114_v5 }
 0x1c1   : > { %8093 = vmatpush3.msra.mxu0 %v10005_v40  ;;  %8120 = vmatpush3.msra.mxu1 %v1876_v36  ;;  %v10117_v36 = vsub.f32 %v871_v20, %v10093_v13  ;;  %v1931_v11 = vsub.f32 %v10077_v61, %v1930_v57  ;;  %v1925_v33 = vand.u32 4294901760, %v1924_v29  ;;  %v1938_v2 = vsub.f32 %v10089_v42, %v1937_v0 }
 0x1c2   : > { %8094 = vmatprep.subr.mxu0 %v9806_v18  ;;  %8121 = vmatprep.subr.mxu1 %v9806_v18  ;;  %v1965_v9 = vand.u32 4294901760, %v10137_v7 }
 0x1c3   : > { %8095 = vmatpush3.msra.mxu0 %v10012_v16  ;;  %8122 = vmatpush3.msra.mxu1 %v1883_v43  ;;  %v10127_v43 = vsub.f32 %v868_v3, %v10102_v32  ;;  %v1932_v20 = vand.u32 4294901760, %v1931_v11  ;;  %v1939_v3 = vand.u32 4294901760, %v1938_v2 }
 0x1c4   : > { %8096 = vmatprep.subr.mxu0 %v9806_v18  ;;  %8123 = vmatprep.subr.mxu1 %v9806_v18 }
 0x1c5   : > { %8097 = vmatpush3.msra.mxu0 %v10027_v41  ;;  %8124 = vmatpush3.msra.mxu1 %v1890_v21  ;;  %v1951_v21 = vand.u32 4294901760, %v10117_v36  ;;  %v1958_v60 = vand.u32 4294901760, %v10127_v43 }
 0x1c6   : > { %8098 = vmatprep.subr.mxu0 %v9806_v18  ;;  %8125 = vmatprep.subr.mxu1 %v9806_v18 }
 0x1c7   : > { %8099 = vmatpush3.msra.mxu0 %v10042_v37  ;;  %8126 = vmatpush3.msra.mxu1 %v1897_v34  ;;  %v1945_v34 = vsub.f32 %v10105_v28, %v1944_v25 }
 0x1c8   : > { %8100 = vmatprep.subr.mxu0 %v9806_v18  ;;  %8127 = vmatprep.subr.mxu1 %v9806_v18 }
 0x1c9   : > { %8101 = vmatpush3.msra.mxu0 %v10051_v38  ;;  %8128 = vmatpush3.msra.mxu1 %v1904_v30  ;;  %v1952_v30 = vsub.f32 %v10117_v36, %v1951_v21  ;;  %v1946_v35 = vand.u32 4294901760, %v1945_v34 }
 0x1ca   : > { %8102 = vmatprep.subr.mxu0 %v9806_v18  ;;  %8129 = vmatprep.subr.mxu1 %v9806_v18 }
 0x1cb   : > { %8103 = vmatpush3.msra.mxu0 %v10064_v58  ;;  %8130 = vmatpush3.msra.mxu1 %v1911_v47  ;;  %v1959_v47 = vsub.f32 %v10127_v43, %v1958_v60  ;;  %v1953_v29 = vand.u32 4294901760, %v1952_v30 }
 0x1cc   : > { %8104 = vmatprep.subr.mxu0 %v9806_v18  ;;  %8131 = vmatprep.subr.mxu1 %v9806_v18 }
 0x1cd   : > { %8105 = vmatpush3.msra.mxu0 %v10081_v55  ;;  %8132 = vmatpush3.msra.mxu1 %v1918_v46  ;;  %v1966_v46 = vsub.f32 %v10137_v7, %v1965_v9  ;;  %v1960_v11 = vand.u32 4294901760, %v1959_v47 }
 0x1ce   : > { %8106 = vmatprep.subr.mxu0 %v9806_v18  ;;  %8133 = vmatprep.subr.mxu1 %v9806_v18 }
 0x1cf   : > { %8107 = vmatpush3.msra.mxu0 %v10093_v13  ;;  %8134 = vmatpush3.msra.mxu1 %v1925_v33 }
 0x1d0   : > { %8108 = vmatprep.subr.mxu0 %v9806_v18  ;;  %8135 = vmatprep.subr.mxu1 %v9806_v18 }
 0x1d1   : > { %8109 = vmatpush3.msra.mxu0 %v10102_v32  ;;  %8136 = vmatpush3.msra.mxu1 %v1932_v20 }
 0x1d2   : > { %8110 = vmatprep.subr.mxu0 %v9806_v18  ;;  %8137 = vmatprep.subr.mxu1 %v9806_v18 }
 0x1d3   : > { %8111 = vmatpush3.msra.mxu0 %v10114_v5  ;;  %8138 = vmatpush3.msra.mxu1 %v1939_v3 }
 0x1d4   : > { %8112 = vmatprep.mubr.msk.f32.mxu0 %vm12963_vm15, %v9806_v18  ;;  %8139 = vmatprep.subr.mxu1 %v9806_v18 }
 0x1d5   : > { %8150 = vmatprep.subr.mxu0 %v9806_v18  ;;  %8113 = vmatmul.mubr.f32.vlgmr.msra.gmra.mxu0 %v9778_v52  ;;  %v1967_v52 = vand.u32 4294901760, %v1966_v46 }
 0x1d6   : > { %8140 = vmatpush3.msra.mxu1 %v1946_v35  ;;  %8151 = vmatpush3.msra.mxu0 %v9953_v59 }
 0x1d7   : > { %8141 = vmatprep.subr.mxu1 %v9806_v18  ;;  %8152 = vmatprep.subr.mxu0 %v9806_v18 }
 0x1d8   : > { %8142 = vmatpush3.msra.mxu1 %v1953_v29  ;;  %8153 = vmatpush3.msra.mxu0 %v9964_v44 }
 0x1d9   : > { %8143 = vmatprep.subr.mxu1 %v9806_v18  ;;  %8154 = vmatprep.subr.mxu0 %v9806_v18 }
 0x1da   : > { %8144 = vmatpush3.msra.mxu1 %v1960_v11  ;;  %8155 = vmatpush3.msra.mxu0 %v9973_v23 }
 0x1db   : > { %8145 = vmatprep.subr.mxu1 %v9806_v18  ;;  %8156 = vmatprep.subr.mxu0 %v9806_v18 }
 0x1dc   : > { %8146 = vmatpush3.msra.mxu1 %v1967_v52  ;;  %8147 = vmatprep.mubr.msk.f32.mxu1 %vm12963_vm15, %v9806_v18 }
 0x1dd   : > { %8157 = vmatpush3.msra.mxu0 %v9996_v48  ;;  %8148 = vmatmul.mubr.f32.vlgmr.msra.gmra.mxu1 %v9721_v62 }
 0x1de   : > { %8158 = vmatprep.subr.mxu0 %v9806_v18  ;;  %8185 = vmatprep.subr.mxu1 %v9806_v18 }
 0x1df   : > { %8159 = vmatpush3.msra.mxu0 %v10008_v4  ;;  %8186 = vmatpush3.msra.mxu1 %v9936_v31 }
 0x1e0   : > { %8160 = vmatprep.subr.mxu0 %v9806_v18  ;;  %8187 = vmatprep.subr.mxu1 %v9806_v18 }
 0x1e1   : > { %8161 = vmatpush3.msra.mxu0 %v10021_v26  ;;  %8188 = vmatpush3.msra.mxu1 %v9944_v19 }
 0x1e2   : > { %8162 = vmatprep.subr.mxu0 %v9806_v18  ;;  %8189 = vmatprep.subr.mxu1 %v9806_v18 }
 0x1e3   : > { %8163 = vmatpush3.msra.mxu0 %v10031_v10  ;;  %8190 = vmatpush3.msra.mxu1 %v9955_v17 }
 0x1e4   : > { %8164 = vmatprep.subr.mxu0 %v9806_v18  ;;  %8191 = vmatprep.subr.mxu1 %v9806_v18 }
 0x1e5   : > { %8165 = vmatpush3.msra.mxu0 %v10036_v63  ;;  %8192 = vmatpush3.msra.mxu1 %v9975_v53 }
 0x1e6   : > { %8166 = vmatprep.subr.mxu0 %v9806_v18  ;;  %8193 = vmatprep.subr.mxu1 %v9806_v18 }
 0x1e7   : > { %8167 = vmatpush3.msra.mxu0 %v10055_v6  ;;  %8194 = vmatpush3.msra.mxu1 %v9982_v22  ;;  %v2408_v6 = vlaneseq }
 0x1e8   : > { %8168 = vmatprep.subr.mxu0 %v9806_v18  ;;  %8195 = vmatprep.subr.mxu1 %v9806_v18 }
 0x1e9   : > { %8169 = vmatpush3.msra.mxu0 %v10067_v8  ;;  %8196 = vmatpush3.msra.mxu1 %v9992_v49 }
 0x1ea   : > { %8170 = vmatprep.subr.mxu0 %v9806_v18  ;;  %8197 = vmatprep.subr.mxu1 %v9806_v18 }
 0x1eb   : > { %8171 = vmatpush3.msra.mxu0 %v10077_v61  ;;  %8198 = vmatpush3.msra.mxu1 %v10005_v40  ;;  %v323_v61 = vld [vmem:[%s13146_s1] sm:$0x7]  ;;  %s13167_s1 = smov 48  }
 0x1ec   : > { %8172 = vmatprep.subr.mxu0 %v9806_v18  ;;  %8199 = vmatprep.subr.mxu1 %v9806_v18 }
 0x1ed   : > { %8173 = vmatpush3.msra.mxu0 %v10089_v42  ;;  %8200 = vmatpush3.msra.mxu1 %v10012_v16 }
 0x1ee   : > { %8174 = vmatprep.subr.mxu0 %v9806_v18  ;;  %8201 = vmatprep.subr.mxu1 %v9806_v18 }
 0x1ef   : > { %8175 = vmatpush3.msra.mxu0 %v10105_v28  ;;  %8202 = vmatpush3.msra.mxu1 %v10027_v41 }
 0x1f0   : > { %8176 = vmatprep.subr.mxu0 %v9806_v18  ;;  %8203 = vmatprep.subr.mxu1 %v9806_v18 }
 0x1f1   : > { %8177 = vmatpush3.msra.mxu0 %v10117_v36  ;;  %8204 = vmatpush3.msra.mxu1 %v10042_v37 }
 0x1f2   : > { %8178 = vmatprep.subr.mxu0 %v9806_v18  ;;  %8205 = vmatprep.subr.mxu1 %v9806_v18 }
 0x1f3   : > { %8179 = vmatpush3.msra.mxu0 %v10127_v43  ;;  %8206 = vmatpush3.msra.mxu1 %v10051_v38 }
 0x1f4   : > { %8180 = vmatprep.subr.mxu0 %v9806_v18  ;;  %8207 = vmatprep.subr.mxu1 %v9806_v18 }
 0x1f5   : > { %8181 = vmatpush3.msra.mxu0 %v10137_v7  ;;  %8182 = vmatprep.mubr.msk.f32.mxu0 %vm12963_vm15, %v9806_v18 }
 0x1f6   : > { %8208 = vmatpush3.msra.mxu1 %v10064_v58  ;;  %8183 = vmatmul.mubr.f32.vlgmr.msra.gmra.mxu0 %v9735_v45 }
 0x1f7   : > { %8209 = vmatprep.subr.mxu1 %v9806_v18  ;;  %8220 = vmatprep.subr.mxu0 %v9806_v18 }
 0x1f8   : > { %8210 = vmatpush3.msra.mxu1 %v10081_v55  ;;  %8221 = vmatpush3.msra.mxu0 %v1860_v27 }
 0x1f9   : > { %8211 = vmatprep.subr.mxu1 %v9806_v18  ;;  %8222 = vmatprep.subr.mxu0 %v9806_v18 }
 0x1fa   : > { %8212 = vmatpush3.msra.mxu1 %v10093_v13  ;;  %8223 = vmatpush3.msra.mxu0 %v1867_v54 }
 0x1fb   : > { %8213 = vmatprep.subr.mxu1 %v9806_v18  ;;  %8224 = vmatprep.subr.mxu0 %v9806_v18 }
 0x1fc   : > { %8214 = vmatpush3.msra.mxu1 %v10102_v32  ;;  %8225 = vmatpush3.msra.mxu0 %v1874_v12 }
 0x1fd   : > { %8215 = vmatprep.subr.mxu1 %v9806_v18  ;;  %8226 = vmatprep.subr.mxu0 %v9806_v18 }
 0x1fe   : > { %8216 = vmatpush3.msra.mxu1 %v10114_v5  ;;  %8217 = vmatprep.mubr.msk.f32.mxu1 %vm12963_vm15, %v9806_v18 }
 0x1ff   : > { %8227 = vmatpush3.msra.mxu0 %v1881_v51  ;;  %8218 = vmatmul.mubr.f32.vlgmr.msra.gmra.mxu1 %v13123_v15 }
 0x200   : > { %8228 = vmatprep.subr.mxu0 %v9806_v18  ;;  %8255 = vmatprep.subr.mxu1 %v9806_v18 }
 0x201   : > { %8229 = vmatpush3.msra.mxu0 %v1888_v39  ;;  %8256 = vmatpush3.msra.mxu1 %v9936_v31 }
 0x202   : > { %8230 = vmatprep.subr.mxu0 %v9806_v18  ;;  %8257 = vmatprep.subr.mxu1 %v9806_v18 }
 0x203   : > { %8231 = vmatpush3.msra.mxu0 %v1895_v1  ;;  %8258 = vmatpush3.msra.mxu1 %v9944_v19 }
 0x204   : > { %8232 = vmatprep.subr.mxu0 %v9806_v18  ;;  %8259 = vmatprep.subr.mxu1 %v9806_v18 }
 0x205   : > { %8233 = vmatpush3.msra.mxu0 %v1902_v56  ;;  %8260 = vmatpush3.msra.mxu1 %v9955_v17 }
 0x206   : > { %8234 = vmatprep.subr.mxu0 %v9806_v18  ;;  %8261 = vmatprep.subr.mxu1 %v9806_v18 }
 0x207   : > { %8235 = vmatpush3.msra.mxu0 %v1909_v24  ;;  %8262 = vmatpush3.msra.mxu1 %v9975_v53  ;;  %v2409_v24 = vshrl.u32 %v2408_v6, 7 }
 0x208   : > { %8236 = vmatprep.subr.mxu0 %v9806_v18  ;;  %8263 = vmatprep.subr.mxu1 %v9806_v18 }
 0x209   : > { %8237 = vmatpush3.msra.mxu0 %v1916_v50  ;;  %8264 = vmatpush3.msra.mxu1 %v9982_v22  ;;  %v2410_v8 = vsub.s32 0, %v2409_v24 }
 0x20a   : > { %8238 = vmatprep.subr.mxu0 %v9806_v18  ;;  %8265 = vmatprep.subr.mxu1 %v9806_v18 }
 0x20b   : > { %8239 = vmatpush3.msra.mxu0 %v1923_v14  ;;  %8266 = vmatpush3.msra.mxu1 %v9992_v49 }
 0x20c   : > { %8240 = vmatprep.subr.mxu0 %v9806_v18  ;;  %8267 = vmatprep.subr.mxu1 %v9806_v18 }
 0x20d   : > { %8241 = vmatpush3.msra.mxu0 %v1930_v57  ;;  %8268 = vmatpush3.msra.mxu1 %v10005_v40 }
 0x20e   : > { %8242 = vmatprep.subr.mxu0 %v9806_v18  ;;  %8269 = vmatprep.subr.mxu1 %v9806_v18 }
 0x20f   : > { %8243 = vmatpush3.msra.mxu0 %v1937_v0  ;;  %8270 = vmatpush3.msra.mxu1 %v10012_v16 }
 0x210   : > { %8244 = vmatprep.subr.mxu0 %v9806_v18  ;;  %8271 = vmatprep.subr.mxu1 %v9806_v18 }
 0x211   : > { %8245 = vmatpush3.msra.mxu0 %v1944_v25  ;;  %8272 = vmatpush3.msra.mxu1 %v10027_v41 }
 0x212   : > { %8246 = vmatprep.subr.mxu0 %v9806_v18  ;;  %8273 = vmatprep.subr.mxu1 %v9806_v18 }
 0x213   : > { %8247 = vmatpush3.msra.mxu0 %v1951_v21  ;;  %8274 = vmatpush3.msra.mxu1 %v10042_v37 }
 0x214   : > { %8248 = vmatprep.subr.mxu0 %v9806_v18  ;;  %8275 = vmatprep.subr.mxu1 %v9806_v18 }
 0x215   : > { %8249 = vmatpush3.msra.mxu0 %v1958_v60  ;;  %8276 = vmatpush3.msra.mxu1 %v10051_v38 }
 0x216   : > { %8250 = vmatprep.subr.mxu0 %v9806_v18  ;;  %8277 = vmatprep.subr.mxu1 %v9806_v18 }
 0x217   : > { %8251 = vmatpush3.msra.mxu0 %v1965_v9  ;;  %8252 = vmatprep.mubr.msk.f32.mxu0 %vm12963_vm15, %v9806_v18 }
 0x218   : > { %8278 = vmatpush3.msra.mxu1 %v10064_v58  ;;  %8253 = vmatmul.mubr.f32.vlgmr.msra.gmra.mxu0 %v9721_v62  ;;  %v2414_v58 = vsub.s32 1, %v2409_v24 }
 0x219   : > { %8279 = vmatprep.subr.mxu1 %v9806_v18  ;;  %8287 = vmatprep.mubr.msk.f32.mxu1 %vm12963_vm15, %v9806_v18  ;;  %vm12969_vm15 = vcmask 1043456  }
 0x21a   : > { %8280 = vmatpush3.msra.mxu1 %v10081_v55  ;;  %3128 = vmatprep.mubr.f32.mxu0 %v9806_v18  ;;  %v10331_v55 = vrot.slane %v323_v61, %v2414_v58 }
 0x21b   : > { %8281 = vmatprep.subr.mxu1 %v9806_v18 }
 0x21c   : > { %8282 = vmatpush3.msra.mxu1 %v10093_v13  ;;  %13147 = vst [vmem:[#allocation23_spill] sm:$0xff] %v10331_v55  ;;  %v10333_v13 = vrot.slane %v323_v61, %v2410_v8 }
 0x21d   : > { %8283 = vmatprep.subr.mxu1 %v9806_v18 }
 0x21e   : > { %8284 = vmatpush3.msra.mxu1 %v10102_v32  ;;  %13148 = vst [vmem:[#allocation25_spill] sm:$0xff] %v10333_v13  ;;  %v2418_v32 = vsub.s32 2, %v2409_v24 }
 0x21f   : > { %8285 = vmatprep.subr.mxu1 %v9806_v18 }
 0x220   : > { %8286 = vmatpush3.msra.mxu1 %v10114_v5  ;;  %v10337_v25 = vrot.slane %v323_v61, %v2418_v32 }
 0x221   : > { %8288 = vmatmul.mubr.f32.vlgmr.msra.gmra.mxu1 %v9721_v62 }
 0x222   : > { %3364 = vmatprep.mubr.f32.mxu1 %v9806_v18  ;;  %13149 = vst [vmem:[#allocation24_spill] sm:$0xff] %v10337_v25 }
 0x230   : > { %v1014_v45 = vpop.f32.mrf.mxu0 }
 0x232   : > { %v1016_v19 = vpop.f32.mrf.mxu0 }
 0x238   : > { %v1246_v15 = vpop.f32.mrf.mxu1 }
 0x239   : > { %v1247_v31 = vadd.f32 %v1246_v15, %v1014_v45 }
 0x23a   : > { %v1248_v59 = vpop.f32.mrf.mxu1 }
 0x23b   : > { %v1249_v17 = vadd.f32 %v1248_v59, %v1016_v19 }
 0x250   : > { %v1383_v44 = vpop.f32.mrf.mxu0 }
 0x251   : > { %v1384_v23 = vadd.f32 %v1383_v44, %v1247_v31 }
 0x252   : > { %v1385_v53 = vpop.f32.mrf.mxu0 }
 0x253   : > { %v1386_v27 = vadd.f32 %v1385_v53, %v1249_v17 }
 0x259   : > { %v1489_v22 = vpop.f32.mrf.mxu1 }
 0x25a   : > { %v1490_v54 = vadd.f32 %v1489_v22, %v1384_v23 }
 0x25b   : > { %v1491_v49 = vpop.f32.mrf.mxu1 }
 0x25c   : > { %v1492_v12 = vadd.f32 %v1491_v49, %v1386_v27 }
 0x272   : > { %v1657_v48 = vpop.f32.mrf.mxu0 }
 0x273   : > { %v1658_v40 = vadd.f32 %v1657_v48, %v1490_v54  ;;  %v10349_v54 = vld [vmem:[#allocation3 + $0x170] sm:$0xff] }
 0x274   : > { %v1659_v4 = vpop.f32.mrf.mxu0  ;;  %325 = vst.msk [vmem:[#allocation2] sm:$0xf] %vm324_vm9, %v10349_v54  ;;  %vm2479_vm9 = vcmask 343040  }
 0x275   : > { %v1660_v62 = vadd.f32 %v1659_v4, %v1492_v12  ;;  %329 = vst.msk [vmem:[#allocation2 + $0x8] sm:$0xff] %vm328_vm6, %v10349_v54  ;;  %v2460_v12 = vstv %s320_s18  ;;  %vm2484_vm6 = vcmask 1043792   ;;  %s13153_s18 = smov 88  }
 0x276   : > { %vm10360_vm11 = vmor %vm327_vm8, %vm2484_vm6  ;;  %vm13180_vm6 = vcmask 392192  }
 0x27b   : > { %v1761_v16 = vpop.f32.mrf.mxu1 }
 0x27c   : > { %v1762_v18 = vadd.f32 %v1761_v16, %v1658_v40 }
 0x27d   : > { %v1763_v51 = vpop.f32.mrf.mxu1 }
 0x27e   : > { %v1764_v26 = vadd.f32 %v1763_v51, %v1660_v62  ;;  %v2423_v5 = vmul.f32 %v10333_v13, %v1762_v18 }
 0x280   : > { %v2424_v28 = vmul.f32 %v10331_v55, %v1764_v26  ;;  %v2427_v20 = vsel %vm12969_vm15, %v2423_v5, 0.0 }
 0x282   : > { %v2428_v2 = vsel %vm12969_vm15, %v2424_v28, 0.0 }
 0x283   : > { %v2429_v34 = vadd.f32 %v2428_v2, %v2427_v20 }
 0x295   : > { %v1853_v41 = vpop.f32.mrf.mxu0 }
 0x297   : > { %v8114_v39 = vpop.f32.mrf.mxu0 }
 0x29d   : > { %v2004_v10 = vpop.f32.mrf.mxu1 }
 0x29e   : > { %v2005_v14 = vadd.f32 %v2004_v10, %v1853_v41 }
 0x29f   : > { %v8149_v63 = vpop.f32.mrf.mxu1 }
 0x2b6   : > { %v2108_v37 = vpop.f32.mrf.mxu0 }
 0x2b7   : > { %v2109_v57 = vadd.f32 %v2108_v37, %v2005_v14 }
 0x2b8   : > { %v8184_v1 = vpop.f32.mrf.mxu0 }
 0x2bf   : > { %v2197_v38 = vpop.f32.mrf.mxu1 }
 0x2c0   : > { %v2198_v0 = vadd.f32 %v2197_v38, %v2109_v57  ;;  %v13150_v38 = vmov 0 }
 0x2c1   : > { %v8219_v56 = vpop.f32.mrf.mxu1  ;;  %v13151_v38 = vsel %vm10360_vm11, 4294967295, %v13150_v38 }
 0x2c2   : > { %13152 = vst [vmem:[#allocation26_spill] sm:$0xff] %v13151_v38 }
 0x2d8   : > { %v2316_v50 = vpop.f32.mrf.mxu0 }
 0x2d9   : > { %v2317_v36 = vadd.f32 %v2316_v50, %v2198_v0 }
 0x2da   : > { %v8254_v42 = vpop.f32.mrf.mxu0 }
 0x2e1   : > { %v2403_v43 = vpop.f32.mrf.mxu1 }
 0x2e2   : > { %v2404_v33 = vadd.f32 %v2403_v43, %v2317_v36 }
 0x2e3   : > { %v8289_v21 = vpop.f32.mrf.mxu1 }
 0x2e4   : > { %v2425_v7 = vmul.f32 %v10337_v25, %v2404_v33 }
 0x2e6   : > { %v2430_v60 = vsel %vm351_vm5, %v2425_v7, 0.0 }
 0x2e7   : > { %v2431_v3 = vadd.f32 %v2430_v60, %v2429_v34 }
 0x2e9   : > { %2432 = vadd.xlane.f32.xlu1 %v2431_v3 }
 0x372   : > { %v2433_v30 = vpop.xlane.xlu1 %2432 }
 0x373   : > { %v2434_v9 = vmul.f32 0.00390625, %v2433_v30 }
 0x375   : > { %v2435_v35 = vsub.f32 %v1762_v18, %v2434_v9  ;;  %v2436_v47 = vsub.f32 %v1764_v26, %v2434_v9  ;;  %v2437_v29 = vsub.f32 %v2404_v33, %v2434_v9  ;;  %v10417_v33 = vand.u32 4294901760, %v10349_v54 }
 0x377   : > { %v2438_v46 = vmul.f32 %v2435_v35, %v10333_v13  ;;  %v2439_v11 = vmul.f32 %v2436_v47, %v10331_v55  ;;  %v2440_v52 = vmul.f32 %v2437_v29, %v10337_v25  ;;  %3033 = vmatprep.subr.mxu0 %v10417_v33  ;;  %v10426_v21 = vsub.f32 %v10349_v54, %v10417_v33 }
 0x378   : > { %3035 = vmatpush1.msra.mxu0 %v10417_v33 }
 0x379   : > { %v2441_v45 = vmul.f32 %v2438_v46, %v2438_v46  ;;  %v2442_v15 = vmul.f32 %v2439_v11, %v2439_v11  ;;  %v2443_v31 = vmul.f32 %v2440_v52, %v2440_v52  ;;  %3037 = vmatprep.subr.mxu0 %v10417_v33  ;;  %v10436_v7 = vand.u32 4294901760, %v10426_v21 }
 0x37a   : > { %3039 = vmatpush1.msra.mxu0 %v10417_v33 }
 0x37b   : > { %v2444_v19 = vsel %vm12969_vm15, %v2441_v45, 0.0  ;;  %v2445_v59 = vsel %vm12969_vm15, %v2442_v15, 0.0  ;;  %v2447_v44 = vsel %vm351_vm5, %v2443_v31, 0.0  ;;  %3041 = vmatprep.subr.mxu0 %v10417_v33  ;;  %13159 = vst [vmem:[#allocation27_spill] sm:$0xff] %v10436_v7  ;;  %v3143_v34 = vsub.f32 %v10426_v21, %v10436_v7 }
 0x37c   : > { %v2446_v17 = vadd.f32 %v2445_v59, %v2444_v19  ;;  %3043 = vmatpush1.msra.mxu0 %v10417_v33 }
 0x37d   : > { %v3144_v60 = vand.u32 4294901760, %v3143_v34 }
 0x37e   : > { %v2448_v23 = vadd.f32 %v2447_v44, %v2446_v17 }
 0x37f   : > { %3145 = vmatprep.subr.mxu1 %v3144_v60 }
 0x380   : > { %2449 = vadd.xlane.f32.xlu0 %v2448_v23  ;;  %3151 = vmatpush1.msra.mxu1 %v3144_v60 }
 0x381   : > { %3157 = vmatprep.subr.mxu1 %v3144_v60 }
 0x382   : > { %3163 = vmatpush1.msra.mxu1 %v3144_v60 }
 0x383   : > { %3169 = vmatprep.subr.mxu1 %v3144_v60 }
 0x384   : > { %3175 = vmatpush1.msra.mxu1 %v3144_v60 }
 0x409   : > { %v2450_v53 = vpop.xlane.xlu0 %2449 }
 0x40a   : > { %v2451_v27 = vmul.f32 0.00390625, %v2450_v53 }
 0x40c   : > { %v2452_v22 = vadd.f32 1e-05, %v2451_v27 }
 0x40e   : > { %8880 = vrsqrt.f32 %v2452_v22 }
 0x41b   : > { %v8881_v49 = vpop.eup %8880 }
 0x41c   : > { %v2456_v48 = vmul.f32 %v8881_v49, %v2437_v29  ;;  %v2454_v40 = vmul.f32 %v8881_v49, %v2435_v35  ;;  %v2455_v4 = vmul.f32 %v8881_v49, %v2436_v47 }
 0x41e   : > { %vm2459_vm15 = vcmp.ge.f32.partialorder %v2456_v48, 0.0  ;;  %v2463_v62 = vmul.f32 %v2460_v12, %v2456_v48  ;;  %vm2457_vm13 = vcmp.ge.f32.partialorder %v2454_v40, 0.0  ;;  %vm2458_vm3 = vcmp.ge.f32.partialorder %v2455_v4, 0.0 }
 0x41f   : > { %v2461_v16 = vmul.f32 %v2460_v12, %v2454_v40  ;;  %v2462_v18 = vmul.f32 %v2460_v12, %v2455_v4 }
 0x420   : > { %v2466_v51 = vsel %vm2459_vm15, %v2456_v48, %v2463_v62  ;;  %vm13179_vm15 = vcmask 711680  }
 0x421   : > { %v2469_v26 = vmul.f32 %v2466_v51, %v10337_v25  ;;  %v2464_v41 = vsel %vm2457_vm13, %v2454_v40, %v2461_v16  ;;  %v2465_v39 = vsel %vm2458_vm3, %v2455_v4, %v2462_v18  ;;  %vm2487_vm13 = vcmask 863232  }
 0x422   : > { %v2467_v10 = vmul.f32 %v2464_v41, %v10333_v13  ;;  %v2468_v63 = vmul.f32 %v2465_v39, %v10331_v55  ;;  %vm13177_vm3 = vcmask 375808  }
 0x423   : > { %2476 = vrot.lane.b32.xlu1 %v2469_v26, %s12972_s4  ;;  %vm13178_vm8 = vmmov %vm13177_vm3 }
 0x424   : > { %v2473_v37 = vcombine.low %v2467_v10, %v2468_v63 }
 0x426   : > { %2474 = vrot.lane.b32.xlu0 %v2473_v37, %s12972_s4  ;;  %s13154_s4 = smov 66  }
 0x495   : > { %v2477_v6 = vpop.permute.xlu1 %2476 }
 0x498   : > { %v2475_v1 = vpop.permute.xlu0 %2474 }
 0x499   : > { %v2478_v56 = vrot.slane %v2475_v1, 4 }
 0x49b   : > { %v2480_v24 = vsel %vm2479_vm9, %v2478_v56, %v2475_v1  ;;  %v2481_v58 = vsel %vm2479_vm9, %v2478_v56, %v2477_v6 }
 0x49c   : > { %2486 = vst.msk [vmem:[#allocation2] sm:$0xff] %vm10360_vm11, %v2480_v24 }
 0x49d   : > { %2488 = vst.msk [vmem:[#allocation2 + $0x8] sm:$0xf] %vm2487_vm13, %v2481_v58 }
 0x4a3   : > { %v10369_v8 = vld [vmem:[#allocation2] sm:$0xff] }
 0x4a4   : > { %v2490_v50 = vld [vmem:[#allocation2 + $0x8] sm:$0xf]  ;;  %v10375_v14 = vcombine.high %v10369_v8, %v10369_v8  ;;  %2494 = vst [vmem:[#allocation3] sm:$0xf] %v10369_v8  ;;  %2966 = vrot.lane.b32.xlu1 %v10369_v8, %s12984_s9  ;;  %v10448_v3 = vcombine.low %v10369_v8, %v10369_v8 }
 0x4a5   : > { %v10371_v61 = vld [vmem:[#allocation2 + $0x8] sm:$0xff]  ;;  %2496 = vst.msk [vmem:[#allocation3 + $0x10] sm:$0xf] %vm351_vm5, %v2490_v50 }
 0x4a6   : > { %2970 = vrot.lane.b32.xlu0 %v10371_v61, %s12984_s9  ;;  %2495 = vst [vmem:[#allocation3 + $0x8] sm:$0xf] %v10375_v14  ;;  %v2830_v42 = vld [vmem:[#allocation2 + $0x8] sm:$0xf]  ;;  %v2942_v20 = vcombine.low %v10371_v61, %v10371_v61  ;;  %v2965_v4 = vcombine.high %v10371_v61, %v10371_v61 }
 0x4a7   : > { %v2791_v57 = vld [vmem:[#allocation2 + $0x8] sm:$0xf] }
 0x4a8   : > { %2924 = vrot.lane.b32.xlu1 %v10371_v61, %s12976_s30  ;;  %v2752_v32 = vld [vmem:[#allocation2 + $0x8] sm:$0xf] }
 0x4a9   : > { %v2713_v28 = vld [vmem:[#allocation2 + $0x8] sm:$0xf] }
 0x4aa   : > { %2945 = vrot.lane.b32.xlu0 %v10369_v8, %s12986_s19  ;;  %v2674_v0 = vld [vmem:[#allocation2 + $0x8] sm:$0xf] }
 0x4ab   : > { %v2635_v5 = vld [vmem:[#allocation2 + $0x8] sm:$0xf] }
 0x4ac   : > { %2878 = vrot.lane.b32.xlu1 %v10371_v61, %s12974_s15  ;;  %v2596_v36 = vld [vmem:[#allocation2 + $0x8] sm:$0xf] }
 0x4ad   : > { %v2557_v43 = vld [vmem:[#allocation2 + $0x8] sm:$0xf] }
 0x4ae   : > { %2920 = vrot.lane.b32.xlu0 %v10369_v8, %s12976_s30  ;;  %s13156_s30 = smov 68   ;;  %v2518_v2 = vld [vmem:[#allocation2 + $0x8] sm:$0xf] }
 0x4af   : > { %v8854_v30 = vld [vmem:[#allocation2 + $0x8] ss:$0 sps:$4 sm:$0xff]  }
 0x4b0   : > { %2838 = vrot.lane.b32.xlu1 %v2830_v42, %s12978_s22  ;;  %v8855_v9 = vld [vmem:[#allocation2 + $0x8] ss:$0 sps:$4 sm:$0xff]  }
 0x4b1   : > { %v8856_v35 = vld [vmem:[#allocation2 + $0x8] ss:$0 sps:$4 sm:$0xff]  }
 0x4b2   : > { %2899 = vrot.lane.b32.xlu0 %v10369_v8, %s12990_s20  ;;  %v8857_v47 = vld [vmem:[#allocation2 + $0x8] ss:$0 sps:$4 sm:$0xff]  }
 0x4b3   : > { %v8858_v29 = vld [vmem:[#allocation2 + $0x8] ss:$0 sps:$4 sm:$0xff]  }
 0x4b4   : > { %2799 = vrot.lane.b32.xlu1 %v2791_v57, %s12980_s17  ;;  %v8859_v46 = vld [vmem:[#allocation2 + $0x8] ss:$0 sps:$4 sm:$0xff]  }
 0x4b5   : > { %v8860_v45 = vld [vmem:[#allocation2 + $0x8] ss:$0 sps:$4 sm:$0xff]  }
 0x4b6   : > { %2874 = vrot.lane.b32.xlu0 %v10369_v8, %s12974_s15  ;;  %s13155_s15 = smov 105   ;;  %v8861_v17 = vld [vmem:[#allocation2 + $0x8] ss:$0 sps:$4 sm:$0xff]  }
 0x4b7   : > { %v8862_v22 = vld [vmem:[#allocation2 + $0x8] ss:$0 sps:$4 sm:$0xff]  }
 0x4b8   : > { %2760 = vrot.lane.b32.xlu1 %v2752_v32, %s12982_s12  ;;  %v8863_v40 = vld [vmem:[#allocation2 + $0x8] ss:$0 sps:$4 sm:$0xff]  }
 0x4ba   : > { %2856 = vrot.lane.b32.xlu0 %v10369_v8, %s12992_s14 }
 0x4bc   : > { %2721 = vrot.lane.b32.xlu1 %v2713_v28, %s12988_s29 }
 0x4be   : > { %2834 = vrot.lane.b32.xlu0 %v10369_v8, %s12978_s22  ;;  %s13157_s22 = smov 124  }
 0x4c0   : > { %2682 = vrot.lane.b32.xlu1 %v2674_v0, %s13153_s18 }
 0x4c2   : > { %2817 = vrot.lane.b32.xlu0 %v10369_v8, %s13154_s4 }
 0x4c4   : > { %2643 = vrot.lane.b32.xlu1 %v2635_v5, %s13155_s15 }
 0x4c6   : > { %2795 = vrot.lane.b32.xlu0 %v10369_v8, %s12980_s17  ;;  %s13158_s17 = smov 85  }
 0x4c8   : > { %2604 = vrot.lane.b32.xlu1 %v2596_v36, %s12994_s21 }
 0x4ca   : > { %2778 = vrot.lane.b32.xlu0 %v10369_v8, %s13156_s30 }
 0x4cc   : > { %2565 = vrot.lane.b32.xlu1 %v2557_v43, %s13157_s22 }
 0x4ce   : > { %2756 = vrot.lane.b32.xlu0 %v10369_v8, %s12982_s12  ;;  %s13160_s12 = smov 87  }
 0x4d0   : > { %2526 = vrot.lane.b32.xlu1 %v2518_v2, %s12996_s11 }
 0x4d2   : > { %2739 = vrot.lane.b32.xlu0 %v10369_v8, %s13158_s17 }
 0x4d4   : > { %2968 = vrot.lane.b32.xlu1 %v10375_v14, %s12984_s9  ;;  %s13161_s9 = smov 104  }
 0x4d6   : > { %2717 = vrot.lane.b32.xlu0 %v10369_v8, %s12988_s29  ;;  %s13163_s29 = smov 108  }
 0x4d8   : > { %2947 = vrot.lane.b32.xlu1 %v2942_v20, %s12986_s19 }
 0x4da   : > { %2700 = vrot.lane.b32.xlu0 %v10369_v8, %s13160_s12 }
 0x4dc   : > { %2943 = vrot.lane.b32.xlu1 %v10448_v3, %s12986_s19  ;;  %s13162_s19 = smov 106  }
 0x4de   : > { %2678 = vrot.lane.b32.xlu0 %v10369_v8, %s13153_s18 }
 0x4e0   : > { %2901 = vrot.lane.b32.xlu1 %v2942_v20, %s12990_s20 }
 0x4e2   : > { %2661 = vrot.lane.b32.xlu0 %v10369_v8, %s13161_s9 }
 0x4e4   : > { %2897 = vrot.lane.b32.xlu1 %v10448_v3, %s12990_s20  ;;  %s13164_s20 = smov 125  }
 0x4e6   : > { %2639 = vrot.lane.b32.xlu0 %v10369_v8, %s13155_s15 }
 0x4e8   : > { %2858 = vrot.lane.b32.xlu1 %v8854_v30, %s12992_s14 }
 0x4ea   : > { %2622 = vrot.lane.b32.xlu0 %v10369_v8, %s13162_s19 }
 0x4ec   : > { %2854 = vrot.lane.b32.xlu1 %v10448_v3, %s12992_s14  ;;  %s13165_s14 = smov 127  }
 0x4ee   : > { %2600 = vrot.lane.b32.xlu0 %v10369_v8, %s12994_s21  ;;  %s13166_s21 = smov 46  }
 0x4f0   : > { %2819 = vrot.lane.b32.xlu1 %v8855_v9, %s13154_s4 }
 0x4f2   : > { %2583 = vrot.lane.b32.xlu0 %v10369_v8, %s13163_s29 }
 0x4f4   : > { %2815 = vrot.lane.b32.xlu1 %v10448_v3, %s13154_s4 }
 0x4f6   : > { %2561 = vrot.lane.b32.xlu0 %v10369_v8, %s13157_s22 }
 0x4f8   : > { %2780 = vrot.lane.b32.xlu1 %v8856_v35, %s13156_s30 }
 0x4fa   : > { %2544 = vrot.lane.b32.xlu0 %v10369_v8, %s13164_s20 }
 0x4fc   : > { %2776 = vrot.lane.b32.xlu1 %v10448_v3, %s13156_s30 }
 0x4fe   : > { %2522 = vrot.lane.b32.xlu0 %v10369_v8, %s12996_s11  ;;  %s13168_s11 = smov 65  }
 0x500   : > { %2741 = vrot.lane.b32.xlu1 %v8857_v47, %s13158_s17 }
 0x502   : > { %2505 = vrot.lane.b32.xlu0 %v10369_v8, %s13165_s14 }
 0x504   : > { %2737 = vrot.lane.b32.xlu1 %v10448_v3, %s13158_s17 }
 0x506   : > { %2922 = vrot.lane.b32.xlu0 %v10375_v14, %s13166_s21 }
 0x508   : > { %2702 = vrot.lane.b32.xlu1 %v8858_v29, %s13160_s12 }
 0x50a   : > { %2876 = vrot.lane.b32.xlu0 %v10375_v14, %s13167_s1 }
 0x50c   : > { %2698 = vrot.lane.b32.xlu1 %v10448_v3, %s13160_s12 }
 0x50e   : > { %2836 = vrot.lane.b32.xlu0 %v10375_v14, %s13168_s11 }
 0x510   : > { %2663 = vrot.lane.b32.xlu1 %v8859_v46, %s13161_s9 }
 0x512   : > { %2797 = vrot.lane.b32.xlu0 %v10375_v14, %s13169_s2 }
 0x514   : > { %2659 = vrot.lane.b32.xlu1 %v10448_v3, %s13161_s9 }
 0x516   : > { %2758 = vrot.lane.b32.xlu0 %v10375_v14, %s13170_s3  ;;  %v2967_v52 = vpop.permute.xlu1 %2966 }
 0x518   : > { %v10503_v11 = vpop.permute.xlu0 %2970  ;;  %2624 = vrot.lane.b32.xlu1 %v8860_v45, %s13162_s19 }
 0x51a   : > { %2719 = vrot.lane.b32.xlu0 %v10375_v14, %s13171_s23  ;;  %v10508_v15 = vpop.permute.xlu1 %2924 }
 0x51c   : > { %v10510_v31 = vpop.permute.xlu0 %2945  ;;  %2620 = vrot.lane.b32.xlu1 %v10448_v3, %s13162_s19 }
 0x51e   : > { %2680 = vrot.lane.b32.xlu0 %v10375_v14, %s13153_s18  ;;  %v10516_v19 = vpop.permute.xlu1 %2878 }
 0x520   : > { %v10518_v59 = vpop.permute.xlu0 %2920  ;;  %2585 = vrot.lane.b32.xlu1 %v8861_v17, %s13163_s29 }
 0x522   : > { %2641 = vrot.lane.b32.xlu0 %v10375_v14, %s13155_s15  ;;  %v10523_v44 = vpop.permute.xlu1 %2838 }
 0x523   : > { %2847 = vst.msk [vmem:[#allocation3 + $0xe8] sm:$0xf] %vm351_vm5, %v10523_v44 }
 0x524   : > { %v10525_v23 = vpop.permute.xlu0 %2899  ;;  %2581 = vrot.lane.b32.xlu1 %v10448_v3, %s13163_s29 }
 0x526   : > { %2602 = vrot.lane.b32.xlu0 %v10375_v14, %s13172_s26  ;;  %v10533_v53 = vpop.permute.xlu1 %2799 }
 0x527   : > { %2808 = vst.msk [vmem:[#allocation3 + $0xd0] sm:$0xf] %vm351_vm5, %v10533_v53 }
 0x528   : > { %v10535_v27 = vpop.permute.xlu0 %2874  ;;  %2546 = vrot.lane.b32.xlu1 %v8862_v22, %s13164_s20 }
 0x52a   : > { %2563 = vrot.lane.b32.xlu0 %v10375_v14, %s13157_s22  ;;  %v10542_v54 = vpop.permute.xlu1 %2760 }
 0x52b   : > { %2769 = vst.msk [vmem:[#allocation3 + $0xb8] sm:$0xf] %vm351_vm5, %v10542_v54 }
 0x52c   : > { %v10544_v49 = vpop.permute.xlu0 %2856  ;;  %2542 = vrot.lane.b32.xlu1 %v10448_v3, %s13164_s20 }
 0x52e   : > { %2524 = vrot.lane.b32.xlu0 %v10375_v14, %s13173_s25  ;;  %v10552_v12 = vpop.permute.xlu1 %2721 }
 0x52f   : > { %2730 = vst.msk [vmem:[#allocation3 + $0xa0] sm:$0xf] %vm351_vm5, %v10552_v12 }
 0x530   : > { %v10554_v48 = vpop.permute.xlu0 %2834  ;;  %2507 = vrot.lane.b32.xlu1 %v8863_v40, %s13165_s14 }
 0x532   : > { %2503 = vrot.lane.b32.xlu0 %v10448_v3, %s13165_s14  ;;  %v10563_v62 = vpop.permute.xlu1 %2682 }
 0x533   : > { %2691 = vst.msk [vmem:[#allocation3 + $0x88] sm:$0xf] %vm351_vm5, %v10563_v62 }
 0x534   : > { %v10565_v16 = vpop.permute.xlu0 %2817  ;;  %2949 = vrot.lane.b32.xlu1 %v10371_v61, %s13174_s13 }
 0x536   : > { %2926 = vrot.lane.b32.xlu0 %v2965_v4, %s13166_s21  ;;  %v10572_v18 = vpop.permute.xlu1 %2643 }
 0x537   : > { %2652 = vst.msk [vmem:[#allocation3 + $0x70] sm:$0xf] %vm351_vm5, %v10572_v18 }
 0x538   : > { %v10574_v51 = vpop.permute.xlu0 %2795  ;;  %2972 = vrot.lane.b32.xlu1 %v2965_v4, %s13175_s27 }
 0x53a   : > { %2880 = vrot.lane.b32.xlu0 %v2965_v4, %s13167_s1  ;;  %v10580_v26 = vpop.permute.xlu1 %2604 }
 0x53b   : > { %2613 = vst.msk [vmem:[#allocation3 + $0x58] sm:$0xf] %vm351_vm5, %v10580_v26 }
 0x53c   : > { %v10582_v41 = vpop.permute.xlu0 %2778  ;;  %2903 = vrot.lane.b32.xlu1 %v10371_v61, %s13176_s8 }
 0x53e   : > { %v10588_v39 = vpop.permute.xlu1 %2565 }
 0x53f   : > { %2574 = vst.msk [vmem:[#allocation3 + $0x40] sm:$0xf] %vm351_vm5, %v10588_v39 }
 0x540   : > { %v10590_v10 = vpop.permute.xlu0 %2756 }
 0x542   : > { %v10594_v63 = vpop.permute.xlu1 %2526 }
 0x543   : > { %2535 = vst.msk [vmem:[#allocation3 + $0x28] sm:$0xf] %vm351_vm5, %v10594_v63 }
 0x544   : > { %v10596_v37 = vpop.permute.xlu0 %2739 }
 0x546   : > { %v2969_v1 = vpop.permute.xlu1 %2968 }
 0x547   : > { %v2974_v6 = vsel %vm852_vm2, %v2967_v52, %v2969_v1  ;;  %v2975_v24 = vsel %vm852_vm2, %v2969_v1, %v10503_v11 }
 0x548   : > { %v10600_v56 = vpop.permute.xlu0 %2717  ;;  %2980 = vst [vmem:[#allocation3 + $0x120] sm:$0xf] %v2974_v6  ;;  %2981 = vst [vmem:[#allocation3 + $0x128] sm:$0xf] %v2975_v24 }
 0x54a   : > { %v10605_v58 = vpop.permute.xlu1 %2947 }
 0x54b   : > { %v2952_v50 = vsel %vm828_vm4, %v10510_v31, %v10605_v58 }
 0x54c   : > { %v10607_v8 = vpop.permute.xlu0 %2700  ;;  %2958 = vst [vmem:[#allocation3 + $0x110] sm:$0xf0] %v2952_v50 }
 0x54e   : > { %v2944_v61 = vpop.permute.xlu1 %2943 }
 0x54f   : > { %v2951_v42 = vsel %vm828_vm4, %v2944_v61, %v10510_v31  ;;  %v3021_v57 = vld [vmem:[#allocation3 + $0x128] sm:$0xff]  ;;  %v3020_v32 = vld [vmem:[#allocation3 + $0x120] sm:$0xff] }
 0x550   : > { %v10612_v14 = vpop.permute.xlu0 %2678  ;;  %2957 = vst [vmem:[#allocation3 + $0x108] sm:$0xf0] %v2951_v42  ;;  %v10616_v28 = vand.u32 4294901760, %v3021_v57  ;;  %v10618_v0 = vand.u32 4294901760, %v3020_v32 }
 0x552   : > { %3045 = vmatprep.subr.mxu0 %v10616_v28  ;;  %v10621_v5 = vpop.permute.xlu1 %2901  ;;  %v10626_v43 = vsub.f32 %v3020_v32, %v10618_v0  ;;  %v10629_v2 = vsub.f32 %v3021_v57, %v10616_v28 }
 0x553   : > { %v2906_v20 = vsel %vm780_vm7, %v10525_v23, %v10621_v5  ;;  %3047 = vmatpush1.msra.mxu0 %v10618_v0 }
 0x554   : > { %v10623_v36 = vpop.permute.xlu0 %2661  ;;  %2912 = vst [vmem:[#allocation3 + $0xf8] sm:$0xf0] %v2906_v20  ;;  %v13016_v34 = vand.u32 4294901760, %v10629_v2  ;;  %v13013_v60 = vand.u32 4294901760, %v10626_v43 }
 0x556   : > { %v2898_v3 = vpop.permute.xlu1 %2897  ;;  %v3179_v9 = vsub.f32 %v10629_v2, %v13016_v34  ;;  %v3185_v35 = vsub.f32 %v10626_v43, %v13013_v60 }
 0x557   : > { %v2905_v47 = vsel %vm780_vm7, %v2898_v3, %v10525_v23 }
 0x558   : > { %v10637_v30 = vpop.permute.xlu0 %2639  ;;  %2911 = vst [vmem:[#allocation3 + $0xf0] sm:$0xf0] %v2905_v47  ;;  %v3180_v29 = vand.u32 4294901760, %v3179_v9  ;;  %v3186_v46 = vand.u32 4294901760, %v3185_v35 }
 0x55a   : > { %3181 = vmatprep.subr.mxu1 %v3180_v29  ;;  %v2859_v52 = vpop.permute.xlu1 %2858 }
 0x55b   : > { %v2861_v31 = vsel %vm336_vm1, %v10544_v49, %v2859_v52  ;;  %2867 = vst.msk [vmem:[#allocation3 + $0xe8] sm:$0xf0] %vm332_vm0, %v2859_v52  ;;  %3187 = vmatpush1.msra.mxu1 %v3186_v46 }
 0x55c   : > { %v10647_v45 = vpop.permute.xlu0 %2622  ;;  %2866 = vst [vmem:[#allocation3 + $0xe0] sm:$0xf0] %v2861_v31 }
 0x55e   : > { %v2855_v17 = vpop.permute.xlu1 %2854 }
 0x55f   : > { %v2860_v23 = vsel %vm336_vm1, %v2855_v17, %v10544_v49 }
 0x560   : > { %v10652_v22 = vpop.permute.xlu0 %2600  ;;  %2865 = vst [vmem:[#allocation3 + $0xd8] sm:$0xf0] %v2860_v23 }
 0x562   : > { %v2820_v40 = vpop.permute.xlu1 %2819 }
 0x563   : > { %v2822_v1 = vsel %vm693_vm10, %v10565_v16, %v2820_v40  ;;  %2828 = vst.msk [vmem:[#allocation3 + $0xd0] sm:$0xf0] %vm332_vm0, %v2820_v40 }
 0x564   : > { %v10656_v4 = vpop.permute.xlu0 %2583  ;;  %2827 = vst [vmem:[#allocation3 + $0xc8] sm:$0xf0] %v2822_v1 }
 0x566   : > { %v2816_v6 = vpop.permute.xlu1 %2815 }
 0x567   : > { %v2821_v50 = vsel %vm693_vm10, %v2816_v6, %v10565_v16 }
 0x568   : > { %v10661_v24 = vpop.permute.xlu0 %2561  ;;  %2826 = vst [vmem:[#allocation3 + $0xc0] sm:$0xf0] %v2821_v50 }
 0x56a   : > { %v2781_v61 = vpop.permute.xlu1 %2780 }
 0x56b   : > { %v2783_v49 = vsel %vm652_vm12, %v10582_v41, %v2781_v61  ;;  %2789 = vst.msk [vmem:[#allocation3 + $0xb8] sm:$0xf0] %vm332_vm0, %v2781_v61 }
 0x56c   : > { %v10665_v42 = vpop.permute.xlu0 %2544  ;;  %2788 = vst [vmem:[#allocation3 + $0xb0] sm:$0xf0] %v2783_v49 }
 0x56e   : > { %v2777_v57 = vpop.permute.xlu1 %2776 }
 0x56f   : > { %v2782_v20 = vsel %vm652_vm12, %v2777_v57, %v10582_v41 }
 0x570   : > { %v10670_v32 = vpop.permute.xlu0 %2522  ;;  %2787 = vst [vmem:[#allocation3 + $0xa8] sm:$0xf0] %v2782_v20 }
 0x572   : > { %v2742_v3 = vpop.permute.xlu1 %2741 }
 0x573   : > { %v2744_v16 = vsel %vm13004_vm14, %v10596_v37, %v2742_v3  ;;  %2750 = vst.msk [vmem:[#allocation3 + $0xa0] sm:$0xf0] %vm332_vm0, %v2742_v3 }
 0x574   : > { %v10674_v9 = vpop.permute.xlu0 %2505  ;;  %2749 = vst [vmem:[#allocation3 + $0x98] sm:$0xf0] %v2744_v16 }
 0x576   : > { %v2738_v35 = vpop.permute.xlu1 %2737 }
 0x577   : > { %v2743_v29 = vsel %vm13004_vm14, %v2738_v35, %v10596_v37  ;;  %vm13181_vm14 = vmmov %vm13180_vm6 }
 0x578   : > { %v2923_v47 = vpop.permute.xlu0 %2922  ;;  %2748 = vst [vmem:[#allocation3 + $0x90] sm:$0xf0] %v2743_v29 }
 0x579   : > { %v2928_v46 = vsel %vm13177_vm3, %v10518_v59, %v2923_v47  ;;  %v2929_v41 = vsel %vm13178_vm8, %v2923_v47, %v10508_v15  ;;  %vm13182_vm3 = vmmov %vm13179_vm15  ;;  %vm13183_vm8 = vcmask 531456  }
 0x57a   : > { %2934 = vst [vmem:[#allocation3 + $0x108] sm:$0xf] %v2928_v46  ;;  %2935 = vst [vmem:[#allocation3 + $0x110] sm:$0xf] %v2929_v41  ;;  %v2703_v52 = vpop.permute.xlu1 %2702 }
 0x57b   : > { %v2705_v17 = vsel %vm13179_vm15, %v10607_v8, %v2703_v52  ;;  %2711 = vst.msk [vmem:[#allocation3 + $0x88] sm:$0xf0] %vm332_vm0, %v2703_v52  ;;  %vm13184_vm15 = vmmov %vm13183_vm8 }
 0x57c   : > { %v2877_v31 = vpop.permute.xlu0 %2876  ;;  %2710 = vst [vmem:[#allocation3 + $0x80] sm:$0xf0] %v2705_v17 }
 0x57d   : > { %v2882_v23 = vsel %vm13180_vm6, %v10535_v27, %v2877_v31  ;;  %v2883_v37 = vsel %vm13181_vm14, %v2877_v31, %v10516_v19  ;;  %vm13185_vm14 = vcmask 850944   ;;  %vm13186_vm6 = vcmask 547840  }
 0x57e   : > { %2888 = vst [vmem:[#allocation3 + $0xf0] sm:$0xf] %v2882_v23  ;;  %2889 = vst [vmem:[#allocation3 + $0xf8] sm:$0xf] %v2883_v37  ;;  %v2699_v59 = vpop.permute.xlu1 %2698 }
 0x57f   : > { %v2704_v1 = vsel %vm13182_vm3, %v2699_v59, %v10607_v8  ;;  %vm13187_vm3 = vmmov %vm13186_vm6 }
 0x580   : > { %v2837_v40 = vpop.permute.xlu0 %2836  ;;  %2709 = vst [vmem:[#allocation3 + $0x78] sm:$0xf0] %v2704_v1 }
 0x581   : > { %v2840_v6 = vsel %vm13183_vm8, %v10554_v48, %v2837_v40  ;;  %v2841_v50 = vsel %vm13184_vm15, %v2837_v40, %v10523_v44  ;;  %v3018_v61 = vld [vmem:[#allocation3 + $0x110] sm:$0xff]  ;;  %v3017_v49 = vld [vmem:[#allocation3 + $0x108] sm:$0xff]  ;;  %vm13188_vm8 = vmmov %vm13185_vm14  ;;  %vm13189_vm15 = vcmask 687104  }
 0x582   : > { %2845 = vst [vmem:[#allocation3 + $0xd8] sm:$0xf] %v2840_v6  ;;  %2846 = vst [vmem:[#allocation3 + $0xe0] sm:$0xf] %v2841_v50  ;;  %v10698_v27 = vand.u32 4294901760, %v3018_v61  ;;  %v10700_v57 = vand.u32 4294901760, %v3017_v49  ;;  %v2664_v20 = vpop.permute.xlu1 %2663 }
 0x583   : > { %v2666_v44 = vsel %vm13185_vm14, %v10623_v36, %v2664_v20  ;;  %2672 = vst.msk [vmem:[#allocation3 + $0x70] sm:$0xf0] %vm332_vm0, %v2664_v20  ;;  %vm13190_vm14 = vmmov %vm13189_vm15 }
 0x584   : > { %3049 = vmatprep.subr.mxu0 %v10698_v27  ;;  %v2798_v3 = vpop.permute.xlu0 %2797  ;;  %v10704_v8 = vsub.f32 %v3018_v61, %v10698_v27  ;;  %v10707_v48 = vsub.f32 %v3017_v49, %v10700_v57  ;;  %2671 = vst [vmem:[#allocation3 + $0x68] sm:$0xf0] %v2666_v44 }
 0x585   : > { %v2801_v16 = vsel %vm13186_vm6, %v10574_v51, %v2798_v3  ;;  %v2802_v35 = vsel %vm13187_vm3, %v2798_v3, %v10533_v53  ;;  %3051 = vmatpush1.msra.mxu0 %v10700_v57  ;;  %v3015_v47 = vld [vmem:[#allocation3 + $0xf8] sm:$0xff]  ;;  %v3014_v29 = vld [vmem:[#allocation3 + $0xf0] sm:$0xff]  ;;  %vm13191_vm6 = vcmask 867328   ;;  %vm13192_vm3 = vcmask 703488  }
 0x586   : > { %2806 = vst [vmem:[#allocation3 + $0xc0] sm:$0xf] %v2801_v16  ;;  %2807 = vst [vmem:[#allocation3 + $0xc8] sm:$0xf] %v2802_v35  ;;  %v10717_v46 = vand.u32 4294901760, %v3015_v47  ;;  %v10719_v41 = vand.u32 4294901760, %v3014_v29  ;;  %v2660_v17 = vpop.permute.xlu1 %2659 }
 0x587   : > { %v13012_v52 = vand.u32 4294901760, %v10704_v8  ;;  %v13010_v31 = vand.u32 4294901760, %v10707_v48  ;;  %v2665_v40 = vsel %vm13188_vm8, %v2660_v17, %v10623_v36  ;;  %vm13193_vm8 = vmmov %vm13192_vm3 }
 0x588   : > { %3053 = vmatprep.subr.mxu0 %v10717_v46  ;;  %v2759_v51 = vpop.permute.xlu0 %2758  ;;  %v10731_v37 = vsub.f32 %v3015_v47, %v10717_v46  ;;  %v10734_v59 = vsub.f32 %v3014_v29, %v10719_v41  ;;  %2670 = vst [vmem:[#allocation3 + $0x60] sm:$0xf0] %v2665_v40 }
 0x589   : > { %v3191_v53 = vsub.f32 %v10704_v8, %v13012_v52  ;;  %v3197_v23 = vsub.f32 %v10707_v48, %v13010_v31  ;;  %v2762_v1 = vsel %vm13189_vm15, %v10590_v10, %v2759_v51  ;;  %v2763_v6 = vsel %vm13190_vm14, %v2759_v51, %v10542_v54  ;;  %3055 = vmatpush1.msra.mxu0 %v10719_v41  ;;  %v3012_v50 = vld [vmem:[#allocation3 + $0xe0] sm:$0xff]  ;;  %v3011_v61 = vld [vmem:[#allocation3 + $0xd8] sm:$0xff]  ;;  %vm13194_vm15 = vmmov %vm13191_vm6 }
 0x58a   : > { %2767 = vst [vmem:[#allocation3 + $0xa8] sm:$0xf] %v2762_v1  ;;  %2768 = vst [vmem:[#allocation3 + $0xb0] sm:$0xf] %v2763_v6  ;;  %v10743_v49 = vand.u32 4294901760, %v3012_v50  ;;  %v10745_v3 = vand.u32 4294901760, %v3011_v61  ;;  %v2625_v16 = vpop.permute.xlu1 %2624 }
 0x58b   : > { %v3192_v20 = vand.u32 4294901760, %v3191_v53  ;;  %v3198_v44 = vand.u32 4294901760, %v3197_v23  ;;  %v13009_v36 = vand.u32 4294901760, %v10731_v37  ;;  %v13005_v10 = vand.u32 4294901760, %v10734_v59  ;;  %2633 = vst.msk [vmem:[#allocation3 + $0x58] sm:$0xf0] %vm332_vm0, %v2625_v16 }
 0x58c   : > { %3057 = vmatprep.subr.mxu0 %v10743_v49  ;;  %v2720_v54 = vpop.permute.xlu0 %2719  ;;  %v10751_v35 = vsub.f32 %v3012_v50, %v10743_v49  ;;  %v10754_v47 = vsub.f32 %v3011_v61, %v10745_v3  ;;  %v2627_v29 = vsel %vm13191_vm6, %v10647_v45, %v2625_v16  ;;  %vm13195_vm14 = vcmask 719872  }
 0x58d   : > { %3193 = vmatprep.subr.mxu1 %v3192_v20  ;;  %v2723_v17 = vsel %vm13192_vm3, %v10600_v56, %v2720_v54  ;;  %v2724_v51 = vsel %vm13193_vm8, %v2720_v54, %v10552_v12  ;;  %3059 = vmatpush1.msra.mxu0 %v10745_v3  ;;  %v3009_v53 = vld [vmem:[#allocation3 + $0xc8] sm:$0xff]  ;;  %v3008_v23 = vld [vmem:[#allocation3 + $0xc0] sm:$0xff]  ;;  %2632 = vst [vmem:[#allocation3 + $0x50] sm:$0xf0] %v2627_v29  ;;  %vm13196_vm6 = vmmov %vm13195_vm14  ;;  %vm13197_vm3 = vcmask 883712   ;;  %vm13198_vm8 = vcmask 859136  }
 0x58e   : > { %3199 = vmatpush1.msra.mxu1 %v3198_v44  ;;  %2728 = vst [vmem:[#allocation3 + $0x90] sm:$0xf] %v2723_v17  ;;  %2729 = vst [vmem:[#allocation3 + $0x98] sm:$0xf] %v2724_v51  ;;  %v10764_v40 = vand.u32 4294901760, %v3009_v53  ;;  %v3203_v1 = vsub.f32 %v10731_v37, %v13009_v36  ;;  %v10769_v6 = vand.u32 4294901760, %v3008_v23  ;;  %v3209_v12 = vsub.f32 %v10734_v59, %v13005_v10  ;;  %v2621_v61 = vpop.permute.xlu1 %2620 }
 0x58f   : > { %v13006_v56 = vand.u32 4294901760, %v10751_v35  ;;  %v13007_v50 = vand.u32 4294901760, %v10754_v47  ;;  %v2626_v17 = vsel %vm13194_vm15, %v2621_v61, %v10647_v45  ;;  %vm13199_vm15 = vmmov %vm13198_vm8 }
 0x590   : > { %3061 = vmatprep.subr.mxu0 %v10764_v40  ;;  %v3204_v20 = vand.u32 4294901760, %v3203_v1  ;;  %v2681_v44 = vpop.permute.xlu0 %2680  ;;  %v3210_v16 = vand.u32 4294901760, %v3209_v12  ;;  %v10778_v54 = vsub.f32 %v3009_v53, %v10764_v40  ;;  %v10781_v29 = vsub.f32 %v3008_v23, %v10769_v6  ;;  %2631 = vst [vmem:[#allocation3 + $0x48] sm:$0xf0] %v2626_v17 }
 0x591   : > { %v2684_v51 = vsel %vm13195_vm14, %v10612_v14, %v2681_v44  ;;  %v2685_v10 = vsel %vm13196_vm6, %v2681_v44, %v10563_v62  ;;  %3063 = vmatpush1.msra.mxu0 %v10769_v6  ;;  %v3006_v1 = vld [vmem:[#allocation3 + $0xb0] sm:$0xff]  ;;  %v3215_v53 = vsub.f32 %v10751_v35, %v13006_v56  ;;  %v3005_v12 = vld [vmem:[#allocation3 + $0xa8] sm:$0xff]  ;;  %v3221_v62 = vsub.f32 %v10754_v47, %v13007_v50  ;;  %vm13200_vm14 = vmmov %vm13197_vm3 }
 0x592   : > { %3205 = vmatprep.subr.mxu1 %v3204_v20  ;;  %2689 = vst [vmem:[#allocation3 + $0x78] sm:$0xf] %v2684_v51  ;;  %2690 = vst [vmem:[#allocation3 + $0x80] sm:$0xf] %v2685_v10  ;;  %v10793_v23 = vand.u32 4294901760, %v3006_v1  ;;  %v10795_v45 = vand.u32 4294901760, %v3005_v12  ;;  %v2586_v56 = vpop.permute.xlu1 %2585 }
 0x593   : > { %v13008_v14 = vand.u32 4294901760, %v10778_v54  ;;  %3211 = vmatpush1.msra.mxu1 %v3210_v16  ;;  %v3216_v61 = vand.u32 4294901760, %v3215_v53  ;;  %v13011_v44 = vand.u32 4294901760, %v10781_v29  ;;  %v3222_v17 = vand.u32 4294901760, %v3221_v62  ;;  %2594 = vst.msk [vmem:[#allocation3 + $0x40] sm:$0xf0] %vm332_vm0, %v2586_v56 }
 0x594   : > { %3065 = vmatprep.subr.mxu0 %v10793_v23  ;;  %v2642_v20 = vpop.permute.xlu0 %2641  ;;  %v10807_v51 = vsub.f32 %v3006_v1, %v10793_v23  ;;  %v10810_v50 = vsub.f32 %v3005_v12, %v10795_v45  ;;  %v2588_v16 = vsel %vm13197_vm3, %v10656_v4, %v2586_v56  ;;  %vm13201_vm6 = vcmask 875520  }
 0x595   : > { %v3227_v10 = vsub.f32 %v10778_v54, %v13008_v14  ;;  %3217 = vmatprep.subr.mxu1 %v3216_v61  ;;  %v2645_v53 = vsel %vm13198_vm8, %v10637_v30, %v2642_v20  ;;  %v2646_v62 = vsel %vm13199_vm15, %v2642_v20, %v10572_v18  ;;  %3067 = vmatpush1.msra.mxu0 %v10795_v45  ;;  %v3003_v14 = vld [vmem:[#allocation3 + $0x98] sm:$0xff]  ;;  %v3002_v1 = vld [vmem:[#allocation3 + $0x90] sm:$0xff]  ;;  %vm13202_vm3 = vmmov %vm13201_vm6  ;;  %vm13203_vm8 = vcmask 1022976  }
 0x596   : > { %2593 = vst [vmem:[#allocation3 + $0x38] sm:$0xf0] %v2588_v16  ;;  %2650 = vst [vmem:[#allocation3 + $0x60] sm:$0xf] %v2645_v53  ;;  %3223 = vmatpush1.msra.mxu1 %v3222_v17  ;;  %v10820_v12 = vand.u32 4294901760, %v3003_v14  ;;  %v10822_v31 = vand.u32 4294901760, %v3002_v1  ;;  %v3233_v30 = vsub.f32 %v10781_v29, %v13011_v44  ;;  %v2582_v61 = vpop.permute.xlu1 %2581 }
 0x597   : > { %2651 = vst [vmem:[#allocation3 + $0x68] sm:$0xf] %v2646_v62  ;;  %v3228_v36 = vand.u32 4294901760, %v3227_v10  ;;  %v13014_v56 = vand.u32 4294901760, %v10807_v51  ;;  %v13015_v18 = vand.u32 4294901760, %v10810_v50  ;;  %v2587_v62 = vsel %vm13200_vm14, %v2582_v61, %v10656_v4 }
 0x598   : > { %3069 = vmatprep.subr.mxu0 %v10820_v12  ;;  %v2603_v20 = vpop.permute.xlu0 %2602  ;;  %v3234_v16 = vand.u32 4294901760, %v3233_v30  ;;  %v10831_v17 = vsub.f32 %v3003_v14, %v10820_v12  ;;  %v10834_v10 = vsub.f32 %v3002_v1, %v10822_v31  ;;  %v2983_v53 = vld [vmem:[#allocation9] sm:$0xf]  ;;  %2592 = vst [vmem:[#allocation3 + $0x30] sm:$0xf0] %v2587_v62  ;;  %vm13204_vm15 = vcmask 1014784  }
 0x599   : > { %3229 = vmatprep.subr.mxu1 %v3228_v36  ;;  %v2606_v44 = vsel %vm13201_vm6, %v10652_v22, %v2603_v20  ;;  %v2607_v52 = vsel %vm13202_vm3, %v2603_v20, %v10580_v26  ;;  %3071 = vmatpush1.msra.mxu0 %v10822_v31  ;;  %v3000_v36 = vld [vmem:[#allocation3 + $0x80] sm:$0xff]  ;;  %v3239_v14 = vsub.f32 %v10807_v51, %v13014_v56  ;;  %v2999_v30 = vld [vmem:[#allocation3 + $0x78] sm:$0xff]  ;;  %v10855_v60 = vand.u32 4294901760, %v2983_v53  ;;  %vm13205_vm14 = vmmov %vm13204_vm15 }
 0x59a   : > { %2611 = vst [vmem:[#allocation3 + $0x48] sm:$0xf] %v2606_v44  ;;  %2612 = vst [vmem:[#allocation3 + $0x50] sm:$0xf] %v2607_v52  ;;  %3235 = vmatpush1.msra.mxu1 %v3234_v16  ;;  %v10846_v1 = vand.u32 4294901760, %v3000_v36  ;;  %v10848_v4 = vand.u32 4294901760, %v2999_v30  ;;  %v3245_v26 = vsub.f32 %v10810_v50, %v13015_v18  ;;  %v2547_v56 = vpop.permute.xlu1 %2546 }
 0x59b   : > { %v13017_v22 = vand.u32 4294901760, %v10831_v17  ;;  %v3240_v61 = vand.u32 4294901760, %v3239_v14  ;;  %v2549_v14 = vsel %vm13203_vm8, %v10665_v42, %v2547_v56  ;;  %2555 = vst.msk [vmem:[#allocation3 + $0x28] sm:$0xf0] %vm332_vm0, %v2547_v56  ;;  %v13206_v56 = vand.u32 4294901760, %v10834_v10  ;;  %vm13207_vm6 = vmmov %vm13203_vm8 }
 0x59c   : > { %3073 = vmatprep.subr.mxu0 %v10846_v1  ;;  %v2564_v52 = vpop.permute.xlu0 %2563  ;;  %v3246_v44 = vand.u32 4294901760, %v3245_v26  ;;  %v10862_v62 = vsub.f32 %v3000_v36, %v10846_v1  ;;  %v10865_v18 = vsub.f32 %v2999_v30, %v10848_v4  ;;  %2554 = vst [vmem:[#allocation3 + $0x20] sm:$0xf0] %v2549_v14  ;;  %vm13208_vm3 = vcmask 1031168  }
 0x59d   : > { %v3251_v16 = vsub.f32 %v10831_v17, %v13017_v22  ;;  %3241 = vmatprep.subr.mxu1 %v3240_v61  ;;  %v2567_v34 = vsel %vm13204_vm15, %v10661_v24, %v2564_v52  ;;  %v2568_v26 = vsel %vm13205_vm14, %v2564_v52, %v10588_v39  ;;  %3075 = vmatpush1.msra.mxu0 %v10848_v4  ;;  %v2996_v36 = vld [vmem:[#allocation3 + $0x60] sm:$0xff]  ;;  %vm13209_vm8 = vmmov %vm13208_vm3  ;;  %vm13214_vm15 = vcmask 1039360  }
 0x59e   : > { %v2997_v22 = vld [vmem:[#allocation3 + $0x68] sm:$0xff]  ;;  %2572 = vst [vmem:[#allocation3 + $0x30] sm:$0xf] %v2567_v34  ;;  %2573 = vst [vmem:[#allocation3 + $0x38] sm:$0xf] %v2568_v26  ;;  %3247 = vmatpush1.msra.mxu1 %v3246_v44  ;;  %v10877_v38 = vand.u32 4294901760, %v2996_v36  ;;  %v3257_v24 = vsub.f32 %v10834_v10, %v13206_v56  ;;  %v10885_v52 = vsub.f32 %v2983_v53, %v10855_v60  ;;  %v2543_v14 = vpop.permute.xlu1 %2542 }
 0x59f   : > { %v10875_v30 = vand.u32 4294901760, %v2997_v22  ;;  %v3252_v20 = vand.u32 4294901760, %v3251_v16  ;;  %v13021_v61 = vand.u32 4294901760, %v10862_v62  ;;  %v2548_v56 = vsel %vm13207_vm6, %v2543_v14, %v10665_v42  ;;  %vm13215_vm14 = vmmov %vm13214_vm15 }
 0x5a0   : > { %v2525_v34 = vpop.permute.xlu0 %2524  ;;  %v3258_v44 = vand.u32 4294901760, %v3257_v24  ;;  %v10892_v26 = vsub.f32 %v2996_v36, %v10877_v38  ;;  %2553 = vst [vmem:[#allocation3 + $0x18] sm:$0xf0] %v2548_v56  ;;  %vm13219_vm6 = vcmask 375808  }
 0x5a1   : > { %3077 = vmatprep.subr.mxu0 %v10875_v30  ;;  %3253 = vmatprep.subr.mxu1 %v3252_v20  ;;  %v10889_v16 = vsub.f32 %v2997_v22, %v10875_v30  ;;  %v2528_v39 = vsel %vm13208_vm3, %v10670_v32, %v2525_v34  ;;  %v2529_v53 = vsel %vm13209_vm8, %v2525_v34, %v10594_v63  ;;  %v2994_v20 = vld [vmem:[#allocation3 + $0x50] sm:$0xff]  ;;  %v2993_v24 = vld [vmem:[#allocation3 + $0x48] sm:$0xff]  ;;  %v13212_v32 = vand.u32 4294901760, %v10865_v18 }
 0x5a2   : > { %3079 = vmatpush1.msra.mxu0 %v10877_v38  ;;  %v3263_v22 = vsub.f32 %v10862_v62, %v13021_v61  ;;  %2533 = vst [vmem:[#allocation3 + $0x18] sm:$0xf] %v2528_v39  ;;  %2534 = vst [vmem:[#allocation3 + $0x20] sm:$0xf] %v2529_v53  ;;  %3259 = vmatpush1.msra.mxu1 %v3258_v44  ;;  %v10904_v36 = vand.u32 4294901760, %v2994_v20  ;;  %v10906_v42 = vand.u32 4294901760, %v2993_v24  ;;  %v2508_v56 = vpop.permute.xlu1 %2507 }
 0x5a3   : > { %v3269_v63 = vsub.f32 %v10865_v18, %v13212_v32  ;;  %v13026_v14 = vand.u32 4294901760, %v10889_v16  ;;  %v10914_v61 = vand.u32 4294901760, %v10885_v52  ;;  %2516 = vst.msk [vmem:[#allocation3 + $0x10] sm:$0xf0] %vm332_vm0, %v2508_v56  ;;  %vm13222_vm3 = vcmask 392192  }
 0x5a4   : > { %13210 = vst [vmem:[#allocation28_spill] sm:$0xff] %v10904_v36  ;;  %13211 = vst [vmem:[#allocation29_spill] sm:$0xff] %v10906_v42  ;;  %v3264_v34 = vand.u32 4294901760, %v3263_v22  ;;  %3081 = vmatprep.subr.mxu0 %v10904_v36  ;;  %v2504_v39 = vpop.permute.xlu0 %2503  ;;  %v10921_v13 = vsub.f32 %v2994_v20, %v10904_v36  ;;  %v10924_v32 = vsub.f32 %v2993_v24, %v10906_v42  ;;  %vm13255_vm8 = vmmov 0  }
 0x5a5   : > { %13213 = vst [vmem:[#allocation30_spill] sm:$0xff] %v10914_v61  ;;  %v3270_v44 = vand.u32 4294901760, %v3269_v63  ;;  %v3275_v53 = vsub.f32 %v10889_v16, %v13026_v14  ;;  %v2510_v22 = vsel %vm13214_vm15, %v10674_v9, %v2508_v56  ;;  %v2509_v25 = vsel %vm13215_vm14, %v2504_v39, %v10674_v9  ;;  %3083 = vmatpush1.msra.mxu0 %v10906_v42  ;;  %v2991_v63 = vld [vmem:[#allocation3 + $0x38] sm:$0xff]  ;;  %v2990_v55 = vld [vmem:[#allocation3 + $0x30] sm:$0xff] }
 0x5a6   : > { %3265 = vmatprep.subr.mxu1 %v3264_v34  ;;  %v13216_v14 = vand.u32 4294901760, %v10892_v26  ;;  %2515 = vst [vmem:[#allocation3 + $0x8] sm:$0xf0] %v2510_v22  ;;  %2514 = vst [vmem:[#allocation3] sm:$0xf0] %v2509_v25  ;;  %v10935_v24 = vand.u32 4294901760, %v2991_v63  ;;  %v3132_v39 = vsub.f32 %v10885_v52, %v10914_v61  ;;  %v2950_v42 = vpop.permute.xlu1 %2949 }
 0x5a7   : > { %3271 = vmatpush1.msra.mxu1 %v3270_v44  ;;  %v3276_v7 = vand.u32 4294901760, %v3275_v53  ;;  %v10937_v36 = vand.u32 4294901760, %v2990_v55  ;;  %v13035_v34 = vand.u32 4294901760, %v10921_v13  ;;  %v2953_v22 = vsel %vm828_vm4, %v10605_v58, %v2950_v42 }
 0x5a8   : > { %v3281_v20 = vsub.f32 %v10892_v26, %v13216_v14  ;;  %13217 = vst [vmem:[#allocation31_spill] sm:$0xff] %v10935_v24  ;;  %3085 = vmatprep.subr.mxu0 %v10935_v24  ;;  %v2927_v14 = vpop.permute.xlu0 %2926  ;;  %v10948_v44 = vsub.f32 %v2991_v63, %v10935_v24  ;;  %v13220_v61 = vand.u32 4294901760, %v10924_v32  ;;  %2959 = vst.msk [vmem:[#allocation3 + $0x118] sm:$0xf0] %vm332_vm0, %v2953_v22  ;;  %vm13258_vm15 = vcmask 1043456  }
 0x5a9   : > { %13218 = vst [vmem:[#allocation32_spill] sm:$0xff] %v10937_v36  ;;  %3277 = vmatprep.subr.mxu1 %v3276_v7  ;;  %v3287_v25 = vsub.f32 %v10921_v13, %v13035_v34  ;;  %v10951_v53 = vsub.f32 %v2990_v55, %v10937_v36  ;;  %3087 = vmatpush1.msra.mxu0 %v10937_v36  ;;  %v2988_v7 = vld [vmem:[#allocation3 + $0x20] sm:$0xff]  ;;  %v2987_v9 = vld [vmem:[#allocation3 + $0x18] sm:$0xff]  ;;  %vm13259_vm14 = vmmov %vm13258_vm15 }
 0x5aa   : > { %v3282_v56 = vand.u32 4294901760, %v3281_v20  ;;  %v2930_v20 = vsel %vm13219_vm6, %v10508_v15, %v2927_v14  ;;  %v3293_v34 = vsub.f32 %v10924_v32, %v13220_v61  ;;  %v10963_v55 = vand.u32 4294901760, %v2988_v7  ;;  %v2973_v14 = vpop.permute.xlu1 %2972  ;;  %vm13261_vm6 = vmmov %vm13259_vm14 }
 0x5ab   : > { %2936 = vst.msk [vmem:[#allocation3 + $0x118] sm:$0xf] %vm351_vm5, %v2930_v20  ;;  %v3288_v63 = vand.u32 4294901760, %v3287_v25  ;;  %v10965_v58 = vand.u32 4294901760, %v2987_v9  ;;  %v13040_v15 = vand.u32 4294901760, %v10948_v44  ;;  %v13223_v24 = vand.u32 4294901760, %v10951_v53 }
 0x5ac   : > { %3283 = vmatpush1.msra.mxu1 %v3282_v56  ;;  %v3294_v42 = vand.u32 4294901760, %v3293_v34  ;;  %3089 = vmatprep.subr.mxu0 %v10963_v55  ;;  %v2881_v36 = vpop.permute.xlu0 %2880  ;;  %v10974_v22 = vsub.f32 %v2988_v7, %v10963_v55  ;;  %v2976_v34 = vsel %vm852_vm2, %v10503_v11, %v2973_v14  ;;  %v10987_v7 = vand.u32 4294901760, %v3132_v39 }
 0x5ad   : > { %13221 = vst [vmem:[#allocation33_spill] sm:$0xff] %v10965_v58  ;;  %3289 = vmatprep.subr.mxu1 %v3288_v63  ;;  %v3299_v61 = vsub.f32 %v10948_v44, %v13040_v15  ;;  %v10977_v25 = vsub.f32 %v2987_v9, %v10965_v58  ;;  %v2884_v20 = vsel %vm13222_vm3, %v10516_v19, %v2881_v36  ;;  %v2985_v63 = vld [vmem:[#allocation3 + $0x8] sm:$0xff]  ;;  %v2984_v56 = vld [vmem:[#allocation3] sm:$0xff]  ;;  %2982 = vst.msk [vmem:[#allocation3 + $0x130] sm:$0xf] %vm351_vm5, %v2976_v34 }
 0x5ae   : > { %3091 = vmatpush1.msra.mxu0 %v10965_v58  ;;  %3295 = vmatpush1.msra.mxu1 %v3294_v42  ;;  %v3305_v15 = vsub.f32 %v10951_v53, %v13223_v24  ;;  %2890 = vst.msk [vmem:[#allocation3 + $0x100] sm:$0xf] %vm351_vm5, %v2884_v20  ;;  %v10991_v9 = vand.u32 4294901760, %v2985_v63  ;;  %v10993_v14 = vand.u32 4294901760, %v2984_v56  ;;  %v3310_v19 = vand.u32 4294901760, %v10974_v22  ;;  %v2904_v58 = vpop.permute.xlu1 %2903  ;;  %vm13262_vm3 = vmmov %vm13261_vm6 }
 0x5af   : > { %v3300_v11 = vand.u32 4294901760, %v3299_v61  ;;  %v3316_v42 = vand.u32 4294901760, %v10977_v25  ;;  %v2907_v34 = vsel %vm780_vm7, %v10621_v5, %v2904_v58  ;;  %v11019_v58 = vld [vmem:[#allocation3 + $0x170] sm:$0xff] }
 0x5b0   : > { %v3306_v36 = vand.u32 4294901760, %v3305_v15  ;;  %3093 = vmatprep.subr.mxu0 %v10991_v9  ;;  %v3311_v24 = vsub.f32 %v10974_v22, %v3310_v19  ;;  %v11002_v39 = vsub.f32 %v2985_v63, %v10991_v9  ;;  %v11005_v61 = vsub.f32 %v2984_v56, %v10993_v14  ;;  %2913 = vst.msk [vmem:[#allocation3 + $0x100] sm:$0xf0] %vm332_vm0, %v2907_v34 }
 0x5b1   : > { %3301 = vmatprep.subr.mxu1 %v3300_v11  ;;  %3095 = vmatpush1.msra.mxu0 %v10993_v14  ;;  %v3317_v15 = vsub.f32 %v10977_v25, %v3316_v42 }
 0x5b2   : > { %3307 = vmatpush1.msra.mxu1 %v3306_v36  ;;  %3374 = vmatprep.subr.mxu0 %v10426_v21  ;;  %v3312_v20 = vand.u32 4294901760, %v3311_v24  ;;  %v13044_v56 = vand.u32 4294901760, %v11002_v39  ;;  %v13043_v63 = vand.u32 4294901760, %v11005_v61 }
 0x5b3   : > { %3134 = vmatmul.mubr.f32.vlgmr.msra.gmra.mxu0 %v10987_v7  ;;  %v3318_v5 = vand.u32 4294901760, %v3317_v15  ;;  %v13225_v15 = vld [vmem:[#allocation27_spill] sm:$0xff] }
 0x5b4   : > { %3377 = vmatpush1.msra.mxu0 %v10426_v21  ;;  %3500 = vmatprep.mubr.f32.mxu0 %v11019_v58  ;;  %v3323_v11 = vsub.f32 %v11002_v39, %v13044_v56  ;;  %v3329_v36 = vsub.f32 %v11005_v61, %v13043_v63  ;;  %v13232_v63 = vld [vmem:[#allocation30_spill] sm:$0xff]  ;;  %v13233_v56 = vand.u32 4294901760, %v10704_v8 }
 0x5b5   : > { %3313 = vmatprep.subr.mxu1 %v3312_v20  ;;  %3380 = vmatprep.subr.mxu0 %v10426_v21  ;;  %v13226_v20 = vld [vmem:[#allocation29_spill] sm:$0xff] }
 0x5b6   : > { %3319 = vmatpush1.msra.mxu1 %v3318_v5  ;;  %3383 = vmatpush1.msra.mxu0 %v10426_v21  ;;  %v3324_v24 = vand.u32 4294901760, %v3323_v11  ;;  %v3330_v34 = vand.u32 4294901760, %v3329_v36  ;;  %v13227_v5 = vld [vmem:[#allocation31_spill] sm:$0xff]  ;;  %v13228_v11 = vld [vmem:[#allocation32_spill] sm:$0xff]  ;;  %v13229_v36 = vld [vmem:[#allocation33_spill] sm:$0xff] }
 0x5b7   : > { %3386 = vmatprep.subr.mxu0 %v10426_v21 }
 0x5b8   : > { %3389 = vmatpush1.msra.mxu0 %v10426_v21  ;;  %3325 = vmatprep.subr.mxu1 %v3324_v24  ;;  %v13224_v21 = vld [vmem:[#allocation28_spill] sm:$0xff]  ;;  %v13230_v24 = vand.u32 4294901760, %v10629_v2 }
 0x5b9   : > { %3392 = vmatprep.subr.mxu0 %v10629_v2  ;;  %3331 = vmatpush1.msra.mxu1 %v3330_v34  ;;  %v13231_v34 = vand.u32 4294901760, %v10626_v43  ;;  %v13235_v2 = vand.u32 4294901760, %v10731_v37 }
 0x5ba   : > { %3395 = vmatpush1.msra.mxu0 %v10626_v43  ;;  %3366 = vmatmul.mubr.f32.vlgmr.msra.gmra.mxu1 %v10855_v60  ;;  %v13236_v43 = vand.u32 4294901760, %v10734_v59 }
 0x5bb   : > { %3398 = vmatprep.subr.mxu0 %v10704_v8  ;;  %3510 = vmatprep.subr.mxu1 %v10417_v33  ;;  %v13237_v8 = vand.u32 4294901760, %v10751_v35 }
 0x5bc   : > { %3401 = vmatpush1.msra.mxu0 %v10707_v48  ;;  %3512 = vmatpush1.msra.mxu1 %v10417_v33 }
 0x5bd   : > { %3404 = vmatprep.subr.mxu0 %v10731_v37  ;;  %3514 = vmatprep.subr.mxu1 %v10417_v33  ;;  %v13239_v37 = vand.u32 4294901760, %v10778_v54 }
 0x5be   : > { %3407 = vmatpush1.msra.mxu0 %v10734_v59  ;;  %3516 = vmatpush1.msra.mxu1 %v10417_v33  ;;  %v13240_v59 = vand.u32 4294901760, %v10781_v29 }
 0x5bf   : > { %3410 = vmatprep.subr.mxu0 %v10751_v35  ;;  %3518 = vmatprep.subr.mxu1 %v10417_v33  ;;  %v13241_v35 = vand.u32 4294901760, %v10807_v51 }
 0x5c0   : > { %3413 = vmatpush1.msra.mxu0 %v10754_v47  ;;  %3520 = vmatpush1.msra.mxu1 %v10417_v33 }
 0x5c1   : > { %3416 = vmatprep.subr.mxu0 %v10778_v54  ;;  %3522 = vmatprep.subr.mxu1 %v10616_v28  ;;  %v13248_v54 = vand.u32 4294901760, %v10892_v26 }
 0x5c2   : > { %3419 = vmatpush1.msra.mxu0 %v10781_v29  ;;  %3524 = vmatpush1.msra.mxu1 %v10618_v0  ;;  %v3025_v29 = vld [vmem:[#allocation3 + $0x148] sm:$0xff] }
 0x5c3   : > { %3422 = vmatprep.subr.mxu0 %v10807_v51  ;;  %3526 = vmatprep.subr.mxu1 %v10698_v27  ;;  %v13251_v51 = vand.u32 4294901760, %v10948_v44 }
 0x5c4   : > { %3425 = vmatpush1.msra.mxu0 %v10810_v50  ;;  %3528 = vmatpush1.msra.mxu1 %v10700_v57 }
 0x5c5   : > { %3428 = vmatprep.subr.mxu0 %v10831_v17  ;;  %3530 = vmatprep.subr.mxu1 %v10717_v46 }
 0x5c6   : > { %3431 = vmatpush1.msra.mxu0 %v10834_v10  ;;  %3532 = vmatpush1.msra.mxu1 %v10719_v41 }
 0x5c7   : > { %3434 = vmatprep.subr.mxu0 %v10862_v62  ;;  %3534 = vmatprep.subr.mxu1 %v10743_v49 }
 0x5c8   : > { %3437 = vmatpush1.msra.mxu0 %v10865_v18  ;;  %3536 = vmatpush1.msra.mxu1 %v10745_v3 }
 0x5c9   : > { %3440 = vmatprep.subr.mxu0 %v10889_v16  ;;  %3538 = vmatprep.subr.mxu1 %v10764_v40 }
 0x5ca   : > { %3443 = vmatpush1.msra.mxu0 %v10892_v26  ;;  %3540 = vmatpush1.msra.mxu1 %v10769_v6  ;;  %v3013_v26 = vld [vmem:[#allocation3 + $0xe8] sm:$0xff] }
 0x5cb   : > { %3446 = vmatprep.subr.mxu0 %v10921_v13  ;;  %3542 = vmatprep.subr.mxu1 %v10793_v23 }
 0x5cc   : > { %3449 = vmatpush1.msra.mxu0 %v10924_v32  ;;  %3544 = vmatpush1.msra.mxu1 %v10795_v45 }
 0x5cd   : > { %3452 = vmatprep.subr.mxu0 %v10948_v44  ;;  %3546 = vmatprep.subr.mxu1 %v10820_v12 }
 0x5ce   : > { %3455 = vmatpush1.msra.mxu0 %v10951_v53  ;;  %3548 = vmatpush1.msra.mxu1 %v10822_v31 }
 0x5cf   : > { %3458 = vmatprep.subr.mxu0 %v10974_v22  ;;  %3550 = vmatprep.subr.mxu1 %v10846_v1  ;;  %v3010_v22 = vld [vmem:[#allocation3 + $0xd0] sm:$0xff] }
 0x5d0   : > { %3461 = vmatpush1.msra.mxu0 %v10977_v25  ;;  %3552 = vmatpush1.msra.mxu1 %v10848_v4 }
 0x5d1   : > { %3464 = vmatprep.subr.mxu0 %v11002_v39  ;;  %3554 = vmatprep.subr.mxu1 %v10875_v30 }
 0x5d2   : > { %3467 = vmatpush1.msra.mxu0 %v11005_v61  ;;  %3556 = vmatpush1.msra.mxu1 %v10877_v38 }
 0x5d3   : > { %3503 = vmatmul.mubr.f32.vlgmr.msra.gmra.mxu0 %v10885_v52  ;;  %3558 = vmatprep.subr.mxu1 %v13224_v21 }
 0x5d4   : > { %3618 = vmatprep.subr.mxu0 %v13225_v15  ;;  %3560 = vmatpush1.msra.mxu1 %v13226_v20 }
 0x5d5   : > { %3622 = vmatpush1.msra.mxu0 %v13225_v15  ;;  %3562 = vmatprep.subr.mxu1 %v13227_v5 }
 0x5d6   : > { %3626 = vmatprep.subr.mxu0 %v13225_v15  ;;  %3564 = vmatpush1.msra.mxu1 %v13228_v11 }
 0x5d7   : > { %3630 = vmatpush1.msra.mxu0 %v13225_v15  ;;  %3566 = vmatprep.subr.mxu1 %v10963_v55 }
 0x5d8   : > { %3634 = vmatprep.subr.mxu0 %v13225_v15  ;;  %3568 = vmatpush1.msra.mxu1 %v13229_v36 }
 0x5d9   : > { %3638 = vmatpush1.msra.mxu0 %v13225_v15  ;;  %3570 = vmatprep.subr.mxu1 %v10991_v9  ;;  %v13234_v15 = vand.u32 4294901760, %v10707_v48  ;;  %v13238_v48 = vand.u32 4294901760, %v10754_v47  ;;  %v13242_v47 = vand.u32 4294901760, %v10810_v50  ;;  %v13246_v50 = vand.u32 4294901760, %v10865_v18  ;;  %v3019_v18 = vld [vmem:[#allocation3 + $0x118] sm:$0xff] }
 0x5da   : > { %3642 = vmatprep.subr.mxu0 %v13230_v24  ;;  %3572 = vmatpush1.msra.mxu1 %v10993_v14 }
 0x5db   : > { %3605 = vmatprep.mubr.f32.mxu1 %v11019_v58  ;;  %3646 = vmatpush1.msra.mxu0 %v13231_v34 }
 0x5dc   : > { %3609 = vmatmul.mubr.f32.vlgmr.msra.gmra.mxu1 %v13232_v63  ;;  %3650 = vmatprep.subr.mxu0 %v13233_v56 }
 0x5dd   : > { %3784 = vmatprep.subr.mxu1 %v10417_v33  ;;  %3654 = vmatpush1.msra.mxu0 %v13234_v15 }
 0x5de   : > { %3786 = vmatpush1.msra.mxu1 %v10417_v33  ;;  %3658 = vmatprep.subr.mxu0 %v13235_v2 }
 0x5df   : > { %3788 = vmatprep.subr.mxu1 %v10417_v33  ;;  %3662 = vmatpush1.msra.mxu0 %v13236_v43 }
 0x5e0   : > { %3790 = vmatpush1.msra.mxu1 %v10417_v33  ;;  %3666 = vmatprep.subr.mxu0 %v13237_v8 }
 0x5e1   : > { %3792 = vmatprep.subr.mxu1 %v10417_v33  ;;  %3670 = vmatpush1.msra.mxu0 %v13238_v48  ;;  %v2998_v48 = vld [vmem:[#allocation3 + $0x70] sm:$0xff] }
 0x5e2   : > { %3794 = vmatpush1.msra.mxu1 %v10417_v33  ;;  %3674 = vmatprep.subr.mxu0 %v13239_v37  ;;  %v13243_v33 = vand.u32 4294901760, %v10831_v17  ;;  %v13254_v17 = vand.u32 4294901760, %v11005_v61  ;;  %v3007_v61 = vld [vmem:[#allocation3 + $0xb8] sm:$0xff] }
 0x5e3   : > { %3796 = vmatprep.subr.mxu1 %v10616_v28  ;;  %3678 = vmatpush1.msra.mxu0 %v13240_v59  ;;  %v13244_v28 = vand.u32 4294901760, %v10834_v10 }
 0x5e4   : > { %3798 = vmatpush1.msra.mxu1 %v10618_v0  ;;  %3682 = vmatprep.subr.mxu0 %v13241_v35  ;;  %v13245_v0 = vand.u32 4294901760, %v10862_v62  ;;  %v3016_v62 = vld [vmem:[#allocation3 + $0x100] sm:$0xff] }
 0x5e5   : > { %3800 = vmatprep.subr.mxu1 %v10698_v27  ;;  %3686 = vmatpush1.msra.mxu0 %v13242_v47  ;;  %v3031_v27 = vld [vmem:[#allocation3 + $0x178] sm:$0xff]  ;;  %v11211_v44 = vand.u32 4294901760, %v3016_v62 }
 0x5e6   : > { %3802 = vmatpush1.msra.mxu1 %v10700_v57  ;;  %3690 = vmatprep.subr.mxu0 %v13243_v33  ;;  %v13247_v57 = vand.u32 4294901760, %v10889_v16 }
 0x5e7   : > { %3804 = vmatprep.subr.mxu1 %v10717_v46  ;;  %3694 = vmatpush1.msra.mxu0 %v13244_v28  ;;  %v3028_v46 = vld [vmem:[#allocation3 + $0x160] sm:$0xff] }
 0x5e8   : > { %3806 = vmatpush1.msra.mxu1 %v10719_v41  ;;  %3698 = vmatprep.subr.mxu0 %v13245_v0  ;;  %v11152_v41 = vand.u32 4294901760, %v3031_v27 }
 0x5e9   : > { %3808 = vmatprep.subr.mxu1 %v10743_v49  ;;  %3702 = vmatpush1.msra.mxu0 %v13246_v50  ;;  %v13249_v49 = vand.u32 4294901760, %v10921_v13  ;;  %v2995_v50 = vld [vmem:[#allocation3 + $0x58] sm:$0xff] }
 0x5ea   : > { %3810 = vmatpush1.msra.mxu1 %v10745_v3  ;;  %3706 = vmatprep.subr.mxu0 %v13247_v57  ;;  %v13250_v3 = vand.u32 4294901760, %v10924_v32  ;;  %v11169_v13 = vsub.f32 %v3031_v27, %v11152_v41  ;;  %v11280_v27 = vand.u32 4294901760, %v2998_v48 }
 0x5eb   : > { %3812 = vmatprep.subr.mxu1 %v10764_v40  ;;  %3710 = vmatpush1.msra.mxu0 %v13248_v54  ;;  %v11160_v40 = vand.u32 4294901760, %v3028_v46 }
 0x5ec   : > { %3814 = vmatpush1.msra.mxu1 %v10769_v6  ;;  %3714 = vmatprep.subr.mxu0 %v13249_v49  ;;  %v13252_v6 = vand.u32 4294901760, %v10951_v53 }
 0x5ed   : > { %3816 = vmatprep.subr.mxu1 %v10793_v23  ;;  %3718 = vmatpush1.msra.mxu0 %v13250_v3  ;;  %v11171_v23 = vand.u32 4294901760, %v3025_v29 }
 0x5ee   : > { %3818 = vmatpush1.msra.mxu1 %v10795_v45  ;;  %3722 = vmatprep.subr.mxu0 %v13251_v51  ;;  %v3022_v45 = vld [vmem:[#allocation3 + $0x130] sm:$0xff]  ;;  %v11297_v51 = vand.u32 4294901760, %v2995_v50 }
 0x5ef   : > { %3820 = vmatprep.subr.mxu1 %v10820_v12  ;;  %3726 = vmatpush1.msra.mxu0 %v13252_v6  ;;  %v11180_v12 = vsub.f32 %v3028_v46, %v11160_v40  ;;  %v11189_v10 = vsub.f32 %v3025_v29, %v11171_v23  ;;  %v2992_v29 = vld [vmem:[#allocation3 + $0x40] sm:$0xff] }
 0x5f0   : > { %3822 = vmatpush1.msra.mxu1 %v10822_v31  ;;  %3730 = vmatprep.subr.mxu0 %v3310_v19  ;;  %v13253_v31 = vand.u32 4294901760, %v11002_v39  ;;  %v11221_v19 = vand.u32 4294901760, %v3013_v26  ;;  %v11228_v39 = vand.u32 4294901760, %v3010_v22 }
 0x5f1   : > { %3824 = vmatprep.subr.mxu1 %v10846_v1  ;;  %3734 = vmatpush1.msra.mxu0 %v3316_v42  ;;  %v11191_v1 = vand.u32 4294901760, %v3022_v45  ;;  %v3988_v16 = vand.u32 4294901760, %v11180_v12  ;;  %v3995_v53 = vand.u32 4294901760, %v11189_v10 }
 0x5f2   : > { %3826 = vmatpush1.msra.mxu1 %v10848_v4  ;;  %3738 = vmatprep.subr.mxu0 %v13253_v31  ;;  %v3981_v4 = vand.u32 4294901760, %v11169_v13  ;;  %v11247_v24 = vsub.f32 %v3013_v26, %v11221_v19  ;;  %v11252_v34 = vsub.f32 %v3010_v22, %v11228_v39 }
 0x5f3   : > { %3828 = vmatprep.subr.mxu1 %v10875_v30  ;;  %3742 = vmatpush1.msra.mxu0 %v13254_v17  ;;  %v11198_v30 = vand.u32 4294901760, %v3019_v18  ;;  %v3989_v25 = vsub.f32 %v11180_v12, %v3988_v16  ;;  %v3996_v56 = vsub.f32 %v11189_v10, %v3995_v53  ;;  %v11305_v17 = vsub.f32 %v2998_v48, %v11280_v27 }
 0x5f4   : > { %3775 = vmatprep.mubr.f32.mxu0 %v11019_v58  ;;  %3830 = vmatpush1.msra.mxu1 %v10877_v38  ;;  %v11206_v38 = vsub.f32 %v3022_v45, %v11191_v1  ;;  %v3982_v32 = vsub.f32 %v11169_v13, %v3981_v4  ;;  %v4023_v35 = vand.u32 4294901760, %v11247_v24  ;;  %v4030_v33 = vand.u32 4294901760, %v11252_v34 }
 0x5f5   : > { %3777 = vmatmul.mubr.f32.vlgmr.msra.gmra.mxu0 %v10855_v60  ;;  %3832 = vmatprep.subr.mxu1 %v13224_v21  ;;  %v11224_v42 = vsub.f32 %v3019_v18, %v11198_v30  ;;  %v3997_v15 = vand.u32 4294901760, %v3996_v56  ;;  %v2989_v18 = vld [vmem:[#allocation3 + $0x28] sm:$0xff] }
 0x5f6   : > { %8290 = vmatprep.subr.mxu0 %v11019_v58  ;;  %3834 = vmatpush1.msra.mxu1 %v13226_v20  ;;  %v4002_v21 = vand.u32 4294901760, %v11206_v38  ;;  %v11237_v20 = vsub.f32 %v3016_v62, %v11211_v44  ;;  %v4024_v54 = vsub.f32 %v11247_v24, %v4023_v35  ;;  %v4031_v45 = vsub.f32 %v11252_v34, %v4030_v33 }
 0x5f7   : > { %8291 = vmatpush3.msra.mxu0 %v11152_v41  ;;  %3836 = vmatprep.subr.mxu1 %v13227_v5  ;;  %v3004_v5 = vld [vmem:[#allocation3 + $0xa0] sm:$0xff]  ;;  %v11309_v62 = vand.u32 4294901760, %v2992_v29 }
 0x5f8   : > { %8292 = vmatprep.subr.mxu0 %v11019_v58  ;;  %3838 = vmatpush1.msra.mxu1 %v13228_v11  ;;  %v11243_v11 = vand.u32 4294901760, %v3007_v61  ;;  %v4003_v2 = vsub.f32 %v11206_v38, %v4002_v21  ;;  %v11258_v43 = vand.u32 4294901760, %v3004_v5  ;;  %v4016_v8 = vand.u32 4294901760, %v11237_v20 }
 0x5f9   : > { %8293 = vmatpush3.msra.mxu0 %v11160_v40  ;;  %3840 = vmatprep.subr.mxu1 %v10963_v55  ;;  %v3983_v55 = vand.u32 4294901760, %v3982_v32  ;;  %v4025_v26 = vand.u32 4294901760, %v4024_v54  ;;  %v4032_v56 = vand.u32 4294901760, %v4031_v45 }
 0x5fa   : > { %8294 = vmatprep.subr.mxu0 %v11019_v58  ;;  %3842 = vmatpush1.msra.mxu1 %v13229_v36  ;;  %v4009_v36 = vand.u32 4294901760, %v11224_v42  ;;  %v11271_v47 = vsub.f32 %v3007_v61, %v11243_v11  ;;  %v4004_v28 = vand.u32 4294901760, %v4003_v2  ;;  %v4017_v0 = vsub.f32 %v11237_v20, %v4016_v8 }
 0x5fb   : > { %8295 = vmatpush3.msra.mxu0 %v11171_v23  ;;  %3844 = vmatprep.subr.mxu1 %v10991_v9  ;;  %v3990_v9 = vand.u32 4294901760, %v3989_v25  ;;  %v11283_v57 = vsub.f32 %v3004_v5, %v11258_v43  ;;  %v2986_v25 = vld [vmem:[#allocation3 + $0x10] sm:$0xff]  ;;  %v11318_v61 = vand.u32 4294901760, %v2989_v18 }
 0x5fc   : > { %8296 = vmatprep.subr.mxu0 %v11019_v58  ;;  %3846 = vmatpush1.msra.mxu1 %v10993_v14  ;;  %v3001_v14 = vld [vmem:[#allocation3 + $0x88] sm:$0xff]  ;;  %v4010_v37 = vsub.f32 %v11224_v42, %v4009_v36  ;;  %v4037_v49 = vand.u32 4294901760, %v11271_v47  ;;  %v4018_v6 = vand.u32 4294901760, %v4017_v0 }
 0x5fd   : > { %3879 = vmatprep.mubr.f32.mxu1 %v11019_v58  ;;  %8297 = vmatpush3.msra.mxu0 %v11191_v1  ;;  %v11267_v59 = vand.u32 4294901760, %v3001_v14  ;;  %v4044_v31 = vand.u32 4294901760, %v11283_v57 }
 0x5fe   : > { %3881 = vmatmul.mubr.f32.vlgmr.msra.gmra.mxu1 %v10855_v60  ;;  %8298 = vmatprep.subr.mxu0 %v11019_v58  ;;  %v4011_v46 = vand.u32 4294901760, %v4010_v37  ;;  %v4038_v32 = vsub.f32 %v11271_v47, %v4037_v49 }
 0x5ff   : > { %8325 = vmatprep.subr.mxu1 %v11019_v58  ;;  %8299 = vmatpush3.msra.mxu0 %v11198_v30  ;;  %v11293_v3 = vsub.f32 %v3001_v14, %v11267_v59  ;;  %v4045_v5 = vsub.f32 %v11283_v57, %v4044_v31  ;;  %v11330_v14 = vand.u32 4294901760, %v2986_v25 }
 0x600   : > { %8326 = vmatpush3.msra.mxu1 %v3983_v55  ;;  %8300 = vmatprep.subr.mxu0 %v11019_v58  ;;  %v11321_v55 = vsub.f32 %v2995_v50, %v11297_v51  ;;  %v4039_v2 = vand.u32 4294901760, %v4038_v32 }
 0x601   : > { %8327 = vmatprep.subr.mxu1 %v11019_v58  ;;  %8301 = vmatpush3.msra.mxu0 %v11211_v44  ;;  %v4051_v22 = vand.u32 4294901760, %v11293_v3  ;;  %v4046_v0 = vand.u32 4294901760, %v4045_v5  ;;  %v11353_v54 = vsub.f32 %v2986_v25, %v11330_v14 }
 0x602   : > { %8328 = vmatpush3.msra.mxu1 %v3990_v9  ;;  %8302 = vmatprep.subr.mxu0 %v11019_v58  ;;  %v4058_v9 = vand.u32 4294901760, %v11305_v17  ;;  %v4065_v37 = vand.u32 4294901760, %v11321_v55 }
 0x603   : > { %8329 = vmatprep.subr.mxu1 %v11019_v58  ;;  %8303 = vmatpush3.msra.mxu0 %v11221_v19  ;;  %v4052_v48 = vsub.f32 %v11293_v3, %v4051_v22  ;;  %v4086_v32 = vand.u32 4294901760, %v11353_v54 }
 0x604   : > { %8330 = vmatpush3.msra.mxu1 %v3997_v15  ;;  %8304 = vmatprep.subr.mxu0 %v11019_v58  ;;  %v11333_v15 = vsub.f32 %v2992_v29, %v11309_v62  ;;  %v4059_v50 = vsub.f32 %v11305_v17, %v4058_v9 }
 0x605   : > { %8331 = vmatprep.subr.mxu1 %v11019_v58  ;;  %8305 = vmatpush3.msra.mxu0 %v11228_v39  ;;  %v4053_v29 = vand.u32 4294901760, %v4052_v48 }
 0x606   : > { %8332 = vmatpush3.msra.mxu1 %v4004_v28  ;;  %8306 = vmatprep.subr.mxu0 %v11019_v58  ;;  %v11343_v28 = vsub.f32 %v2989_v18, %v11318_v61  ;;  %v4060_v18 = vand.u32 4294901760, %v4059_v50 }
 0x607   : > { %8333 = vmatprep.subr.mxu1 %v11019_v58  ;;  %8307 = vmatpush3.msra.mxu0 %v11243_v11 }
 0x608   : > { %8334 = vmatpush3.msra.mxu1 %v4011_v46  ;;  %8308 = vmatprep.subr.mxu0 %v11019_v58  ;;  %v4072_v46 = vand.u32 4294901760, %v11333_v15  ;;  %v4079_v45 = vand.u32 4294901760, %v11343_v28 }
 0x609   : > { %8335 = vmatprep.subr.mxu1 %v11019_v58  ;;  %8309 = vmatpush3.msra.mxu0 %v11258_v43 }
 0x60a   : > { %8336 = vmatpush3.msra.mxu1 %v4018_v6  ;;  %8310 = vmatprep.subr.mxu0 %v11019_v58  ;;  %v4066_v6 = vsub.f32 %v11321_v55, %v4065_v37 }
 0x60b   : > { %8337 = vmatprep.subr.mxu1 %v11019_v58  ;;  %8311 = vmatpush3.msra.mxu0 %v11267_v59 }
 0x60c   : > { %8338 = vmatpush3.msra.mxu1 %v4025_v26  ;;  %8312 = vmatprep.subr.mxu0 %v11019_v58  ;;  %v4073_v26 = vsub.f32 %v11333_v15, %v4072_v46  ;;  %v4067_v25 = vand.u32 4294901760, %v4066_v6 }
 0x60d   : > { %8339 = vmatprep.subr.mxu1 %v11019_v58  ;;  %8313 = vmatpush3.msra.mxu0 %v11280_v27 }
 0x60e   : > { %8340 = vmatpush3.msra.mxu1 %v4032_v56  ;;  %8314 = vmatprep.subr.mxu0 %v11019_v58  ;;  %v4080_v56 = vsub.f32 %v11343_v28, %v4079_v45  ;;  %v4074_v5 = vand.u32 4294901760, %v4073_v26 }
 0x60f   : > { %8341 = vmatprep.subr.mxu1 %v11019_v58  ;;  %8315 = vmatpush3.msra.mxu0 %v11297_v51 }
 0x610   : > { %8342 = vmatpush3.msra.mxu1 %v4039_v2  ;;  %8316 = vmatprep.subr.mxu0 %v11019_v58  ;;  %v4087_v2 = vsub.f32 %v11353_v54, %v4086_v32  ;;  %v4081_v48 = vand.u32 4294901760, %v4080_v56 }
 0x611   : > { %8343 = vmatprep.subr.mxu1 %v11019_v58  ;;  %8317 = vmatpush3.msra.mxu0 %v11309_v62 }
 0x612   : > { %8344 = vmatpush3.msra.mxu1 %v4046_v0  ;;  %8318 = vmatprep.subr.mxu0 %v11019_v58 }
 0x613   : > { %8345 = vmatprep.subr.mxu1 %v11019_v58  ;;  %8319 = vmatpush3.msra.mxu0 %v11318_v61 }
 0x614   : > { %8346 = vmatpush3.msra.mxu1 %v4053_v29  ;;  %8320 = vmatprep.subr.mxu0 %v11019_v58 }
 0x615   : > { %8347 = vmatprep.subr.mxu1 %v11019_v58  ;;  %8321 = vmatpush3.msra.mxu0 %v11330_v14 }
 0x616   : > { %8348 = vmatpush3.msra.mxu1 %v4060_v18  ;;  %8322 = vmatprep.mubr.msk.f32.mxu0 %vm13255_vm8, %v11019_v58 }
 0x617   : > { %8349 = vmatprep.subr.mxu1 %v11019_v58  ;;  %8360 = vmatprep.subr.mxu0 %v11019_v58 }
 0x618   : > { %8323 = vmatmul.mubr.f32.vlgmr.msra.gmra.mxu0 %v10987_v7  ;;  %8350 = vmatpush3.msra.mxu1 %v4067_v25  ;;  %v4088_v7 = vand.u32 4294901760, %v4087_v2 }
 0x619   : > { %8361 = vmatpush3.msra.mxu0 %v11169_v13  ;;  %8351 = vmatprep.subr.mxu1 %v11019_v58 }
 0x61a   : > { %8362 = vmatprep.subr.mxu0 %v11019_v58  ;;  %8352 = vmatpush3.msra.mxu1 %v4074_v5 }
 0x61b   : > { %8363 = vmatpush3.msra.mxu0 %v11180_v12  ;;  %8353 = vmatprep.subr.mxu1 %v11019_v58 }
 0x61c   : > { %8364 = vmatprep.subr.mxu0 %v11019_v58  ;;  %8354 = vmatpush3.msra.mxu1 %v4081_v48 }
 0x61d   : > { %8365 = vmatpush3.msra.mxu0 %v11189_v10  ;;  %8355 = vmatprep.subr.mxu1 %v11019_v58 }
 0x61e   : > { %8366 = vmatprep.subr.mxu0 %v11019_v58  ;;  %8356 = vmatpush3.msra.mxu1 %v4088_v7 }
 0x61f   : > { %8357 = vmatprep.mubr.msk.f32.mxu1 %vm13255_vm8, %v11019_v58  ;;  %8367 = vmatpush3.msra.mxu0 %v11206_v38 }
 0x620   : > { %8358 = vmatmul.mubr.f32.vlgmr.msra.gmra.mxu1 %v10855_v60  ;;  %8368 = vmatprep.subr.mxu0 %v11019_v58 }
 0x621   : > { %8395 = vmatprep.subr.mxu1 %v11019_v58  ;;  %8369 = vmatpush3.msra.mxu0 %v11224_v42 }
 0x622   : > { %8396 = vmatpush3.msra.mxu1 %v11152_v41  ;;  %8370 = vmatprep.subr.mxu0 %v11019_v58 }
 0x623   : > { %8397 = vmatprep.subr.mxu1 %v11019_v58  ;;  %8371 = vmatpush3.msra.mxu0 %v11237_v20 }
 0x624   : > { %8398 = vmatpush3.msra.mxu1 %v11160_v40  ;;  %8372 = vmatprep.subr.mxu0 %v11019_v58 }
 0x625   : > { %8399 = vmatprep.subr.mxu1 %v11019_v58  ;;  %8373 = vmatpush3.msra.mxu0 %v11247_v24 }
 0x626   : > { %8400 = vmatpush3.msra.mxu1 %v11171_v23  ;;  %8374 = vmatprep.subr.mxu0 %v11019_v58 }
 0x627   : > { %8401 = vmatprep.subr.mxu1 %v11019_v58  ;;  %8375 = vmatpush3.msra.mxu0 %v11252_v34 }
 0x628   : > { %8402 = vmatpush3.msra.mxu1 %v11191_v1  ;;  %8376 = vmatprep.subr.mxu0 %v11019_v58 }
 0x629   : > { %8403 = vmatprep.subr.mxu1 %v11019_v58  ;;  %8377 = vmatpush3.msra.mxu0 %v11271_v47 }
 0x62a   : > { %8404 = vmatpush3.msra.mxu1 %v11198_v30  ;;  %8378 = vmatprep.subr.mxu0 %v11019_v58 }
 0x62b   : > { %8405 = vmatprep.subr.mxu1 %v11019_v58  ;;  %8379 = vmatpush3.msra.mxu0 %v11283_v57 }
 0x62c   : > { %8406 = vmatpush3.msra.mxu1 %v11211_v44  ;;  %8380 = vmatprep.subr.mxu0 %v11019_v58 }
 0x62d   : > { %8407 = vmatprep.subr.mxu1 %v11019_v58  ;;  %8381 = vmatpush3.msra.mxu0 %v11293_v3 }
 0x62e   : > { %8408 = vmatpush3.msra.mxu1 %v11221_v19  ;;  %8382 = vmatprep.subr.mxu0 %v11019_v58 }
 0x62f   : > { %8409 = vmatprep.subr.mxu1 %v11019_v58  ;;  %8383 = vmatpush3.msra.mxu0 %v11305_v17 }
 0x630   : > { %8410 = vmatpush3.msra.mxu1 %v11228_v39  ;;  %8384 = vmatprep.subr.mxu0 %v11019_v58 }
 0x631   : > { %8411 = vmatprep.subr.mxu1 %v11019_v58  ;;  %8385 = vmatpush3.msra.mxu0 %v11321_v55 }
 0x632   : > { %8412 = vmatpush3.msra.mxu1 %v11243_v11  ;;  %8386 = vmatprep.subr.mxu0 %v11019_v58 }
 0x633   : > { %8413 = vmatprep.subr.mxu1 %v11019_v58  ;;  %8387 = vmatpush3.msra.mxu0 %v11333_v15  ;;  %v13260_v15 = vld [vmem:[#allocation24_spill] sm:$0xff] }
 0x634   : > { %8414 = vmatpush3.msra.mxu1 %v11258_v43  ;;  %8388 = vmatprep.subr.mxu0 %v11019_v58 }
 0x635   : > { %8415 = vmatprep.subr.mxu1 %v11019_v58  ;;  %8389 = vmatpush3.msra.mxu0 %v11343_v28 }
 0x636   : > { %8416 = vmatpush3.msra.mxu1 %v11267_v59  ;;  %8390 = vmatprep.subr.mxu0 %v11019_v58 }
 0x637   : > { %8417 = vmatprep.subr.mxu1 %v11019_v58  ;;  %8391 = vmatpush3.msra.mxu0 %v11353_v54 }
 0x638   : > { %8392 = vmatprep.mubr.msk.f32.mxu0 %vm13255_vm8, %v11019_v58  ;;  %8418 = vmatpush3.msra.mxu1 %v11280_v27 }
 0x639   : > { %8393 = vmatmul.mubr.f32.vlgmr.msra.gmra.mxu0 %v10885_v52  ;;  %8419 = vmatprep.subr.mxu1 %v11019_v58 }
 0x63a   : > { %8430 = vmatprep.subr.mxu0 %v11019_v58  ;;  %8420 = vmatpush3.msra.mxu1 %v11297_v51 }
 0x63b   : > { %8431 = vmatpush3.msra.mxu0 %v3981_v4  ;;  %8421 = vmatprep.subr.mxu1 %v11019_v58 }
 0x63c   : > { %8432 = vmatprep.subr.mxu0 %v11019_v58  ;;  %8422 = vmatpush3.msra.mxu1 %v11309_v62 }
 0x63d   : > { %8433 = vmatpush3.msra.mxu0 %v3988_v16  ;;  %8423 = vmatprep.subr.mxu1 %v11019_v58 }
 0x63e   : > { %8434 = vmatprep.subr.mxu0 %v11019_v58  ;;  %8424 = vmatpush3.msra.mxu1 %v11318_v61 }
 0x63f   : > { %8435 = vmatpush3.msra.mxu0 %v3995_v53  ;;  %8425 = vmatprep.subr.mxu1 %v11019_v58 }
 0x640   : > { %8436 = vmatprep.subr.mxu0 %v11019_v58  ;;  %8426 = vmatpush3.msra.mxu1 %v11330_v14 }
 0x641   : > { %8427 = vmatprep.mubr.msk.f32.mxu1 %vm13255_vm8, %v11019_v58  ;;  %8437 = vmatpush3.msra.mxu0 %v4002_v21 }
 0x642   : > { %8428 = vmatmul.mubr.f32.vlgmr.msra.gmra.mxu1 %v13232_v63  ;;  %8438 = vmatprep.subr.mxu0 %v11019_v58 }
 0x643   : > { %8465 = vmatprep.subr.mxu1 %v11019_v58  ;;  %8439 = vmatpush3.msra.mxu0 %v4009_v36 }
 0x644   : > { %8466 = vmatpush3.msra.mxu1 %v11152_v41  ;;  %8440 = vmatprep.subr.mxu0 %v11019_v58 }
 0x645   : > { %8467 = vmatprep.subr.mxu1 %v11019_v58  ;;  %8441 = vmatpush3.msra.mxu0 %v4016_v8 }
 0x646   : > { %8468 = vmatpush3.msra.mxu1 %v11160_v40  ;;  %8442 = vmatprep.subr.mxu0 %v11019_v58 }
 0x647   : > { %8469 = vmatprep.subr.mxu1 %v11019_v58  ;;  %8443 = vmatpush3.msra.mxu0 %v4023_v35 }
 0x648   : > { %8470 = vmatpush3.msra.mxu1 %v11171_v23  ;;  %8444 = vmatprep.subr.mxu0 %v11019_v58 }
 0x649   : > { %8471 = vmatprep.subr.mxu1 %v11019_v58  ;;  %8445 = vmatpush3.msra.mxu0 %v4030_v33 }
 0x64a   : > { %8472 = vmatpush3.msra.mxu1 %v11191_v1  ;;  %8446 = vmatprep.subr.mxu0 %v11019_v58 }
 0x64b   : > { %8473 = vmatprep.subr.mxu1 %v11019_v58  ;;  %8447 = vmatpush3.msra.mxu0 %v4037_v49  ;;  %v13256_v49 = vld [vmem:[#allocation23_spill] sm:$0xff] }
 0x64c   : > { %8474 = vmatpush3.msra.mxu1 %v11198_v30  ;;  %8448 = vmatprep.subr.mxu0 %v11019_v58 }
 0x64d   : > { %8475 = vmatprep.subr.mxu1 %v11019_v58  ;;  %8449 = vmatpush3.msra.mxu0 %v4044_v31  ;;  %v13257_v31 = vld [vmem:[#allocation25_spill] sm:$0xff] }
 0x64e   : > { %8476 = vmatpush3.msra.mxu1 %v11211_v44  ;;  %8450 = vmatprep.subr.mxu0 %v11019_v58 }
 0x64f   : > { %8477 = vmatprep.subr.mxu1 %v11019_v58  ;;  %8451 = vmatpush3.msra.mxu0 %v4051_v22 }
 0x650   : > { %8478 = vmatpush3.msra.mxu1 %v11221_v19  ;;  %8452 = vmatprep.subr.mxu0 %v11019_v58 }
 0x651   : > { %8479 = vmatprep.subr.mxu1 %v11019_v58  ;;  %8453 = vmatpush3.msra.mxu0 %v4058_v9 }
 0x652   : > { %8480 = vmatpush3.msra.mxu1 %v11228_v39  ;;  %8454 = vmatprep.subr.mxu0 %v11019_v58 }
 0x653   : > { %8481 = vmatprep.subr.mxu1 %v11019_v58  ;;  %8455 = vmatpush3.msra.mxu0 %v4065_v37 }
 0x654   : > { %8482 = vmatpush3.msra.mxu1 %v11243_v11  ;;  %8456 = vmatprep.subr.mxu0 %v11019_v58 }
 0x655   : > { %8483 = vmatprep.subr.mxu1 %v11019_v58  ;;  %8457 = vmatpush3.msra.mxu0 %v4072_v46 }
 0x656   : > { %8484 = vmatpush3.msra.mxu1 %v11258_v43  ;;  %8458 = vmatprep.subr.mxu0 %v11019_v58 }
 0x657   : > { %8485 = vmatprep.subr.mxu1 %v11019_v58  ;;  %8459 = vmatpush3.msra.mxu0 %v4079_v45 }
 0x658   : > { %8486 = vmatpush3.msra.mxu1 %v11267_v59  ;;  %8460 = vmatprep.subr.mxu0 %v11019_v58 }
 0x659   : > { %8487 = vmatprep.subr.mxu1 %v11019_v58  ;;  %8461 = vmatpush3.msra.mxu0 %v4086_v32 }
 0x65a   : > { %8462 = vmatprep.mubr.msk.f32.mxu0 %vm13255_vm8, %v11019_v58  ;;  %8488 = vmatpush3.msra.mxu1 %v11280_v27 }
 0x65b   : > { %8463 = vmatmul.mubr.f32.vlgmr.msra.gmra.mxu0 %v10855_v60  ;;  %8489 = vmatprep.subr.mxu1 %v11019_v58 }
 0x65c   : > { %8497 = vmatprep.mubr.msk.f32.mxu1 %vm13255_vm8, %v11019_v58  ;;  %8490 = vmatpush3.msra.mxu1 %v11297_v51 }
 0x65d   : > { %5228 = vmatprep.mubr.f32.mxu0 %v11019_v58  ;;  %8491 = vmatprep.subr.mxu1 %v11019_v58 }
 0x65e   : > { %8492 = vmatpush3.msra.mxu1 %v11309_v62 }
 0x65f   : > { %8493 = vmatprep.subr.mxu1 %v11019_v58 }
 0x660   : > { %8494 = vmatpush3.msra.mxu1 %v11318_v61 }
 0x661   : > { %8495 = vmatprep.subr.mxu1 %v11019_v58 }
 0x662   : > { %8496 = vmatpush3.msra.mxu1 %v11330_v14 }
 0x663   : > { %8498 = vmatmul.mubr.f32.vlgmr.msra.gmra.mxu1 %v10855_v60 }
 0x664   : > { %5464 = vmatprep.mubr.f32.mxu1 %v11019_v58 }
 0x673   : > { %v3135_v52 = vpop.f32.mrf.mxu0 }
 0x675   : > { %v3137_v40 = vpop.f32.mrf.mxu0 }
 0x67a   : > { %v3367_v63 = vpop.f32.mrf.mxu1 }
 0x67b   : > { %v3368_v41 = vadd.f32 %v3367_v63, %v3135_v52 }
 0x67c   : > { %v3369_v13 = vpop.f32.mrf.mxu1 }
 0x67d   : > { %v3370_v23 = vadd.f32 %v3369_v13, %v3137_v40 }
 0x693   : > { %v3504_v12 = vpop.f32.mrf.mxu0 }
 0x694   : > { %v3505_v10 = vadd.f32 %v3504_v12, %v3368_v41  ;;  %v4564_v12 = vstv %s7756_s24 }
 0x695   : > { %v3506_v1 = vpop.f32.mrf.mxu0 }
 0x696   : > { %v3507_v4 = vadd.f32 %v3506_v1, %v3370_v23 }
 0x69c   : > { %v3610_v30 = vpop.f32.mrf.mxu1 }
 0x69d   : > { %v3611_v16 = vadd.f32 %v3610_v30, %v3505_v10 }
 0x69e   : > { %v3612_v38 = vpop.f32.mrf.mxu1 }
 0x69f   : > { %v3613_v44 = vadd.f32 %v3612_v38, %v3507_v4 }
 0x6b5   : > { %v3778_v53 = vpop.f32.mrf.mxu0 }
 0x6b6   : > { %v3779_v19 = vadd.f32 %v3778_v53, %v3611_v16 }
 0x6b7   : > { %v3780_v42 = vpop.f32.mrf.mxu0 }
 0x6b8   : > { %v3781_v60 = vadd.f32 %v3780_v42, %v3613_v44 }
 0x6be   : > { %v3882_v39 = vpop.f32.mrf.mxu1 }
 0x6bf   : > { %v3883_v58 = vadd.f32 %v3882_v39, %v3779_v19 }
 0x6c0   : > { %v3884_v21 = vpop.f32.mrf.mxu1 }
 0x6c1   : > { %v3885_v20 = vadd.f32 %v3884_v21, %v3781_v60  ;;  %v4528_v17 = vmul.f32 %v3883_v58, %v13257_v31 }
 0x6c3   : > { %v4529_v3 = vmul.f32 %v3885_v20, %v13256_v49  ;;  %v4531_v14 = vsel %vm13259_vm14, %v4528_v17, 0.0 }
 0x6c5   : > { %v4532_v61 = vsel %vm13258_vm15, %v4529_v3, 0.0 }
 0x6c6   : > { %v4533_v28 = vadd.f32 %v4532_v61, %v4531_v14  ;;  %v11607_v61 = vld [vmem:[#allocation3 + $0x170] sm:$0xff] }
 0x6d8   : > { %v3974_v11 = vpop.f32.mrf.mxu0 }
 0x6da   : > { %v8324_v36 = vpop.f32.mrf.mxu0 }
 0x6e0   : > { %v4125_v24 = vpop.f32.mrf.mxu1 }
 0x6e1   : > { %v4126_v33 = vadd.f32 %v4125_v24, %v3974_v11 }
 0x6e2   : > { %v8359_v34 = vpop.f32.mrf.mxu1 }
 0x6f9   : > { %v4229_v43 = vpop.f32.mrf.mxu0 }
 0x6fa   : > { %v4230_v57 = vadd.f32 %v4229_v43, %v4126_v33 }
 0x6fb   : > { %v8394_v8 = vpop.f32.mrf.mxu0 }
 0x702   : > { %v4318_v59 = vpop.f32.mrf.mxu1 }
 0x703   : > { %v4319_v51 = vadd.f32 %v4318_v59, %v4230_v57 }
 0x704   : > { %v8429_v35 = vpop.f32.mrf.mxu1 }
 0x71b   : > { %v4437_v47 = vpop.f32.mrf.mxu0 }
 0x71c   : > { %v4438_v62 = vadd.f32 %v4437_v47, %v4319_v51 }
 0x71d   : > { %v8464_v27 = vpop.f32.mrf.mxu0 }
 0x723   : > { %v4524_v22 = vpop.f32.mrf.mxu1 }
 0x724   : > { %v4525_v55 = vadd.f32 %v4524_v22, %v4438_v62 }
 0x725   : > { %v8499_v9 = vpop.f32.mrf.mxu1 }
 0x726   : > { %v4530_v37 = vmul.f32 %v4525_v55, %v13260_v15 }
 0x728   : > { %v4534_v0 = vsel %vm351_vm5, %v4530_v37, 0.0 }
 0x729   : > { %v4535_v50 = vadd.f32 %v4534_v0, %v4533_v28 }
 0x72b   : > { %4536 = vadd.xlane.f32.xlu0 %v4535_v50 }
 0x7b4   : > { %v4537_v46 = vpop.xlane.xlu0 %4536 }
 0x7b5   : > { %v4538_v54 = vmul.f32 0.00390625, %v4537_v46 }
 0x7b7   : > { %v4539_v29 = vsub.f32 %v3883_v58, %v4538_v54  ;;  %v4540_v6 = vsub.f32 %v3885_v20, %v4538_v54  ;;  %v4541_v45 = vsub.f32 %v4525_v55, %v4538_v54  ;;  %v11610_v55 = vand.u32 4294901760, %v11607_v61 }
 0x7b9   : > { %v4542_v18 = vmul.f32 %v4539_v29, %v13257_v31  ;;  %v4543_v26 = vmul.f32 %v4540_v6, %v13256_v49  ;;  %v4544_v32 = vmul.f32 %v4541_v45, %v13260_v15  ;;  %5133 = vmatprep.subr.mxu0 %v11610_v55  ;;  %v11619_v14 = vsub.f32 %v11607_v61, %v11610_v55 }
 0x7ba   : > { %5135 = vmatpush1.msra.mxu0 %v11610_v55 }
 0x7bb   : > { %v4545_v25 = vmul.f32 %v4542_v18, %v4542_v18  ;;  %v4546_v56 = vmul.f32 %v4543_v26, %v4543_v26  ;;  %v4547_v5 = vmul.f32 %v4544_v32, %v4544_v32  ;;  %5137 = vmatprep.subr.mxu0 %v11610_v55  ;;  %v11633_v28 = vand.u32 4294901760, %v11619_v14 }
 0x7bc   : > { %5139 = vmatpush1.msra.mxu0 %v11610_v55 }
 0x7bd   : > { %v4548_v2 = vsel %vm13261_vm6, %v4545_v25, 0.0  ;;  %v4549_v48 = vsel %vm13262_vm3, %v4546_v56, 0.0  ;;  %v4551_v52 = vsel %vm351_vm5, %v4547_v5, 0.0  ;;  %5141 = vmatprep.subr.mxu0 %v11610_v55  ;;  %13266 = vst [vmem:[#allocation28_spill] sm:$0xff] %v11633_v28  ;;  %v5243_v50 = vsub.f32 %v11619_v14, %v11633_v28 }
 0x7be   : > { %v4550_v7 = vadd.f32 %v4549_v48, %v4548_v2  ;;  %5143 = vmatpush1.msra.mxu0 %v11610_v55  ;;  %vm13272_vm3 = vcmask 392192  }
 0x7bf   : > { %v5244_v46 = vand.u32 4294901760, %v5243_v50 }
 0x7c0   : > { %v4552_v63 = vadd.f32 %v4551_v52, %v4550_v7 }
 0x7c1   : > { %5245 = vmatprep.subr.mxu1 %v5244_v46 }
 0x7c2   : > { %4553 = vadd.xlane.f32.xlu1 %v4552_v63  ;;  %5251 = vmatpush1.msra.mxu1 %v5244_v46 }
 0x7c3   : > { %5257 = vmatprep.subr.mxu1 %v5244_v46 }
 0x7c4   : > { %5263 = vmatpush1.msra.mxu1 %v5244_v46 }
 0x7c5   : > { %5269 = vmatprep.subr.mxu1 %v5244_v46 }
 0x7c6   : > { %5275 = vmatpush1.msra.mxu1 %v5244_v46  ;;  %v6659_v46 = vld [vmem:[%s9229_s16 + $0x8] sm:$0xf] }
 0x84b   : > { %v4554_v41 = vpop.xlane.xlu1 %4553 }
 0x84c   : > { %v4555_v40 = vmul.f32 0.00390625, %v4554_v41 }
 0x84e   : > { %v4556_v13 = vadd.f32 1e-05, %v4555_v40 }
 0x850   : > { %8882 = vrsqrt.f32 %v4556_v13 }
 0x85d   : > { %v8883_v23 = vpop.eup %8882 }
 0x85e   : > { %v4560_v10 = vmul.f32 %v8883_v23, %v4541_v45  ;;  %v4558_v1 = vmul.f32 %v8883_v23, %v4539_v29  ;;  %v4559_v4 = vmul.f32 %v8883_v23, %v4540_v6 }
 0x860   : > { %vm4563_vm15 = vcmp.ge.f32.partialorder %v4560_v10, 0.0  ;;  %v4567_v30 = vmul.f32 %v4564_v12, %v4560_v10  ;;  %vm4561_vm14 = vcmp.ge.f32.partialorder %v4558_v1, 0.0  ;;  %vm4562_vm6 = vcmp.ge.f32.partialorder %v4559_v4, 0.0 }
 0x861   : > { %v4565_v16 = vmul.f32 %v4564_v12, %v4558_v1  ;;  %v4566_v38 = vmul.f32 %v4564_v12, %v4559_v4 }
 0x862   : > { %v4570_v44 = vsel %vm4563_vm15, %v4560_v10, %v4567_v30  ;;  %vm13273_vm15 = vmmov %vm13272_vm3 }
 0x863   : > { %v4573_v53 = vmul.f32 %v4570_v44, %v13260_v15  ;;  %v4568_v19 = vsel %vm4561_vm14, %v4558_v1, %v4565_v16  ;;  %v4569_v42 = vsel %vm4562_vm6, %v4559_v4, %v4566_v38  ;;  %vm13275_vm6 = vcmask 531456  }
 0x864   : > { %v4571_v60 = vmul.f32 %v4568_v19, %v13257_v31  ;;  %v4572_v39 = vmul.f32 %v4569_v42, %v13256_v49 }
 0x865   : > { %4580 = vrot.lane.b32.xlu1 %v4573_v53, %s13263_s7 }
 0x866   : > { %v4577_v58 = vcombine.low %v4571_v60, %v4572_v39 }
 0x868   : > { %4578 = vrot.lane.b32.xlu0 %v4577_v58, %s13263_s7  ;;  %s13265_s7 = smov 64  }
 0x8d7   : > { %v4581_v11 = vpop.permute.xlu1 %4580 }
 0x8da   : > { %v4579_v21 = vpop.permute.xlu0 %4578 }
 0x8db   : > { %v4582_v20 = vrot.slane %v4579_v21, 4 }
 0x8dd   : > { %v4583_v36 = vsel %vm2479_vm9, %v4582_v20, %v4579_v21  ;;  %v4584_v24 = vsel %vm2479_vm9, %v4582_v20, %v4581_v11 }
 0x8de   : > { %4587 = vst.msk [vmem:[#allocation2] sm:$0xff] %vm10360_vm11, %v4583_v36  ;;  %vm13269_vm11 = vcmask 375808  }
 0x8df   : > { %4588 = vst.msk [vmem:[#allocation2 + $0x8] sm:$0xf] %vm2487_vm13, %v4584_v24  ;;  %vm13271_vm13 = vcmask 711680  }
 0x8e0   : > { %vm13274_vm14 = vmmov %vm13271_vm13 }
 0x8e5   : > { %v11568_v8 = vld [vmem:[#allocation2] sm:$0xff] }
 0x8e6   : > { %v11566_v43 = vld [vmem:[#allocation2 + $0x8] sm:$0xff]  ;;  %5066 = vrot.lane.b32.xlu0 %v11568_v8, %s13175_s27  ;;  %v4589_v59 = vld [vmem:[#allocation2] sm:$0xff]  ;;  %v11624_v37 = vcombine.high %v11568_v8, %v11568_v8  ;;  %v11645_v54 = vcombine.low %v11568_v8, %v11568_v8 }
 0x8e7   : > { %5070 = vrot.lane.b32.xlu1 %v11566_v43, %s13175_s27  ;;  %v4590_v35 = vld [vmem:[#allocation2 + $0x8] sm:$0xf]  ;;  %v4592_v47 = vcombine.high %v4589_v59, %v4589_v59  ;;  %4594 = vst [vmem:[#allocation3] sm:$0xf] %v4589_v59  ;;  %v5042_v0 = vcombine.low %v11566_v43, %v11566_v43  ;;  %v5065_v38 = vcombine.high %v11566_v43, %v11566_v43 }
 0x8e8   : > { %4596 = vst.msk [vmem:[#allocation3 + $0x10] sm:$0xf] %vm351_vm5, %v4590_v35  ;;  %v4930_v33 = vld [vmem:[#allocation2 + $0x8] sm:$0xf] }
 0x8e9   : > { %4595 = vst [vmem:[#allocation3 + $0x8] sm:$0xf] %v4592_v47  ;;  %v4891_v27 = vld [vmem:[#allocation2 + $0x8] sm:$0xf] }
 0x8ea   : > { %5024 = vrot.lane.b32.xlu0 %v11566_v43, %s13166_s21  ;;  %v4852_v57 = vld [vmem:[#allocation2 + $0x8] sm:$0xf] }
 0x8eb   : > { %5045 = vrot.lane.b32.xlu1 %v11568_v8, %s13174_s13  ;;  %v4813_v3 = vld [vmem:[#allocation2 + $0x8] sm:$0xf] }
 0x8ec   : > { %v4774_v51 = vld [vmem:[#allocation2 + $0x8] sm:$0xf] }
 0x8ed   : > { %v4735_v17 = vld [vmem:[#allocation2 + $0x8] sm:$0xf] }
 0x8ee   : > { %4978 = vrot.lane.b32.xlu0 %v11566_v43, %s13167_s1  ;;  %v4696_v62 = vld [vmem:[#allocation2 + $0x8] sm:$0xf] }
 0x8ef   : > { %5020 = vrot.lane.b32.xlu1 %v11568_v8, %s13166_s21  ;;  %v4657_v22 = vld [vmem:[#allocation2 + $0x8] sm:$0xf] }
 0x8f0   : > { %v4618_v9 = vld [vmem:[#allocation2 + $0x8] sm:$0xf] }
 0x8f1   : > { %v8868_v29 = vld [vmem:[#allocation2 + $0x8] ss:$0 sps:$4 sm:$0xff]  }
 0x8f2   : > { %4938 = vrot.lane.b32.xlu0 %v4930_v33, %s13168_s11  ;;  %v8869_v6 = vld [vmem:[#allocation2 + $0x8] ss:$0 sps:$4 sm:$0xff]  }
 0x8f3   : > { %4999 = vrot.lane.b32.xlu1 %v11568_v8, %s13176_s8  ;;  %v8870_v45 = vld [vmem:[#allocation2 + $0x8] ss:$0 sps:$4 sm:$0xff]  }
 0x8f4   : > { %v8871_v18 = vld [vmem:[#allocation2 + $0x8] ss:$0 sps:$4 sm:$0xff]  }
 0x8f5   : > { %v8872_v26 = vld [vmem:[#allocation2 + $0x8] ss:$0 sps:$4 sm:$0xff]  }
 0x8f6   : > { %4899 = vrot.lane.b32.xlu0 %v4891_v27, %s13169_s2  ;;  %v8873_v32 = vld [vmem:[#allocation2 + $0x8] ss:$0 sps:$4 sm:$0xff]   ;;  %v6658_v27 = vld [vmem:[%s9229_s16] sm:$0xff] }
 0x8f7   : > { %4974 = vrot.lane.b32.xlu1 %v11568_v8, %s13167_s1  ;;  %v8874_v5 = vld [vmem:[#allocation2 + $0x8] ss:$0 sps:$4 sm:$0xff]  }
 0x8f8   : > { %v8875_v63 = vld [vmem:[#allocation2 + $0x8] ss:$0 sps:$4 sm:$0xff]  }
 0x8f9   : > { %v8876_v12 = vld [vmem:[#allocation2 + $0x8] ss:$0 sps:$4 sm:$0xff]  }
 0x8fa   : > { %4860 = vrot.lane.b32.xlu0 %v4852_v57, %s13170_s3  ;;  %v8877_v16 = vld [vmem:[#allocation2 + $0x8] ss:$0 sps:$4 sm:$0xff]  }
 0x8fb   : > { %4956 = vrot.lane.b32.xlu1 %v11568_v8, %s13265_s7 }
 0x8fe   : > { %4821 = vrot.lane.b32.xlu0 %v4813_v3, %s13171_s23 }
 0x8ff   : > { %4934 = vrot.lane.b32.xlu1 %v11568_v8, %s13168_s11 }
 0x902   : > { %4782 = vrot.lane.b32.xlu0 %v4774_v51, %s13153_s18 }
 0x903   : > { %4917 = vrot.lane.b32.xlu1 %v11568_v8, %s13154_s4 }
 0x906   : > { %4743 = vrot.lane.b32.xlu0 %v4735_v17, %s13155_s15  ;;  %v6662_v17 = vcombine.high %v6658_v27, %v6658_v27 }
 0x907   : > { %4895 = vrot.lane.b32.xlu1 %v11568_v8, %s13169_s2 }
 0x90a   : > { %4704 = vrot.lane.b32.xlu0 %v4696_v62, %s13172_s26 }
 0x90b   : > { %4878 = vrot.lane.b32.xlu1 %v11568_v8, %s13156_s30 }
 0x90e   : > { %4665 = vrot.lane.b32.xlu0 %v4657_v22, %s13157_s22 }
 0x90f   : > { %4856 = vrot.lane.b32.xlu1 %v11568_v8, %s13170_s3 }
 0x912   : > { %4626 = vrot.lane.b32.xlu0 %v4618_v9, %s13173_s25 }
 0x913   : > { %4839 = vrot.lane.b32.xlu1 %v11568_v8, %s13158_s17 }
 0x916   : > { %5068 = vrot.lane.b32.xlu0 %v11624_v37, %s13175_s27 }
 0x917   : > { %4817 = vrot.lane.b32.xlu1 %v11568_v8, %s13171_s23 }
 0x91a   : > { %5047 = vrot.lane.b32.xlu0 %v5042_v0, %s13174_s13 }
 0x91b   : > { %4800 = vrot.lane.b32.xlu1 %v11568_v8, %s13160_s12 }
 0x91e   : > { %5043 = vrot.lane.b32.xlu0 %v11645_v54, %s13174_s13 }
 0x91f   : > { %4778 = vrot.lane.b32.xlu1 %v11568_v8, %s13153_s18 }
 0x922   : > { %5001 = vrot.lane.b32.xlu0 %v5042_v0, %s13176_s8 }
 0x923   : > { %4761 = vrot.lane.b32.xlu1 %v11568_v8, %s13161_s9 }
 0x926   : > { %4997 = vrot.lane.b32.xlu0 %v11645_v54, %s13176_s8 }
 0x927   : > { %4739 = vrot.lane.b32.xlu1 %v11568_v8, %s13155_s15 }
 0x92a   : > { %4958 = vrot.lane.b32.xlu0 %v8868_v29, %s13265_s7 }
 0x92b   : > { %4722 = vrot.lane.b32.xlu1 %v11568_v8, %s13162_s19 }
 0x92e   : > { %4954 = vrot.lane.b32.xlu0 %v11645_v54, %s13265_s7 }
 0x92f   : > { %4700 = vrot.lane.b32.xlu1 %v11568_v8, %s13172_s26 }
 0x932   : > { %4919 = vrot.lane.b32.xlu0 %v8869_v6, %s13154_s4 }
 0x933   : > { %4683 = vrot.lane.b32.xlu1 %v11568_v8, %s13163_s29 }
 0x936   : > { %4915 = vrot.lane.b32.xlu0 %v11645_v54, %s13154_s4 }
 0x937   : > { %4661 = vrot.lane.b32.xlu1 %v11568_v8, %s13157_s22 }
 0x93a   : > { %4880 = vrot.lane.b32.xlu0 %v8870_v45, %s13156_s30 }
 0x93b   : > { %4644 = vrot.lane.b32.xlu1 %v11568_v8, %s13164_s20 }
 0x93e   : > { %4876 = vrot.lane.b32.xlu0 %v11645_v54, %s13156_s30 }
 0x93f   : > { %4622 = vrot.lane.b32.xlu1 %v11568_v8, %s13173_s25 }
 0x942   : > { %4841 = vrot.lane.b32.xlu0 %v8871_v18, %s13158_s17 }
 0x943   : > { %4605 = vrot.lane.b32.xlu1 %v11568_v8, %s13165_s14 }
 0x946   : > { %4837 = vrot.lane.b32.xlu0 %v11645_v54, %s13158_s17 }
 0x947   : > { %5022 = vrot.lane.b32.xlu1 %v11624_v37, %s13166_s21 }
 0x94a   : > { %4802 = vrot.lane.b32.xlu0 %v8872_v26, %s13160_s12 }
 0x94b   : > { %4976 = vrot.lane.b32.xlu1 %v11624_v37, %s13167_s1 }
 0x94e   : > { %4798 = vrot.lane.b32.xlu0 %v11645_v54, %s13160_s12 }
 0x94f   : > { %4936 = vrot.lane.b32.xlu1 %v11624_v37, %s13168_s11 }
 0x952   : > { %4763 = vrot.lane.b32.xlu0 %v8873_v32, %s13161_s9 }
 0x953   : > { %4897 = vrot.lane.b32.xlu1 %v11624_v37, %s13169_s2 }
 0x956   : > { %4759 = vrot.lane.b32.xlu0 %v11645_v54, %s13161_s9  ;;  %s13357_s9 = sld [smem:[#allocation39_spill]] }
 0x957   : > { %4858 = vrot.lane.b32.xlu1 %v11624_v37, %s13170_s3 }
 0x958   : > { %v5067_v56 = vpop.permute.xlu0 %5066 }
 0x959   : > { %v11700_v25 = vpop.permute.xlu1 %5070 }
 0x95a   : > { %4724 = vrot.lane.b32.xlu0 %v8874_v5, %s13162_s19 }
 0x95b   : > { %4819 = vrot.lane.b32.xlu1 %v11624_v37, %s13171_s23 }
 0x95c   : > { %v11705_v2 = vpop.permute.xlu0 %5024 }
 0x95d   : > { %v11707_v48 = vpop.permute.xlu1 %5045 }
 0x95e   : > { %4720 = vrot.lane.b32.xlu0 %v11645_v54, %s13162_s19 }
 0x95f   : > { %4780 = vrot.lane.b32.xlu1 %v11624_v37, %s13153_s18 }
 0x960   : > { %v11713_v7 = vpop.permute.xlu0 %4978 }
 0x961   : > { %v11715_v52 = vpop.permute.xlu1 %5020 }
 0x962   : > { %4685 = vrot.lane.b32.xlu0 %v8875_v63, %s13163_s29 }
 0x963   : > { %4741 = vrot.lane.b32.xlu1 %v11624_v37, %s13155_s15  ;;  %s9062_s15 = smov [#allocation11]  }
 0x964   : > { %v11720_v41 = vpop.permute.xlu0 %4938 }
 0x965   : > { %v11722_v40 = vpop.permute.xlu1 %4999  ;;  %4947 = vst.msk [vmem:[#allocation3 + $0xe8] sm:$0xf] %vm351_vm5, %v11720_v41 }
 0x966   : > { %4681 = vrot.lane.b32.xlu0 %v11645_v54, %s13163_s29 }
 0x967   : > { %4702 = vrot.lane.b32.xlu1 %v11624_v37, %s13172_s26  ;;  %s8740_s26 = smul.u32 24, %s9225_s0 }
 0x968   : > { %v11730_v13 = vpop.permute.xlu0 %4899 }
 0x969   : > { %v11732_v23 = vpop.permute.xlu1 %4974  ;;  %4908 = vst.msk [vmem:[#allocation3 + $0xd0] sm:$0xf] %vm351_vm5, %v11730_v13 }
 0x96a   : > { %4646 = vrot.lane.b32.xlu0 %v8876_v12, %s13164_s20 }
 0x96b   : > { %4663 = vrot.lane.b32.xlu1 %v11624_v37, %s13157_s22 }
 0x96c   : > { %v11739_v10 = vpop.permute.xlu0 %4860 }
 0x96d   : > { %v11741_v1 = vpop.permute.xlu1 %4956  ;;  %4869 = vst.msk [vmem:[#allocation3 + $0xb8] sm:$0xf] %vm351_vm5, %v11739_v10 }
 0x96e   : > { %4642 = vrot.lane.b32.xlu0 %v11645_v54, %s13164_s20  ;;  %s8962_s20 = sshll.u32 %s9062_s15, 4  ;;  %s8963_s20 = int_to_ptr.vmem [resolvable:$false] %s8962_s20 }
 0x96f   : > { %4624 = vrot.lane.b32.xlu1 %v11624_v37, %s13173_s25  ;;  %s7757_s25 = sld [smem:[#allocation4 + $0x2]]  ;;  %s8964_s22 = scalar_lea.vmem %s8963_s20, 768 }
 0x970   : > { %v11749_v4 = vpop.permute.xlu0 %4821 }
 0x971   : > { %v11751_v30 = vpop.permute.xlu1 %4934  ;;  %4830 = vst.msk [vmem:[#allocation3 + $0xa0] sm:$0xf] %vm351_vm5, %v11749_v4 }
 0x972   : > { %4607 = vrot.lane.b32.xlu0 %v8877_v16, %s13165_s14 }
 0x973   : > { %4603 = vrot.lane.b32.xlu1 %v11645_v54, %s13165_s14 }
 0x974   : > { %v11760_v44 = vpop.permute.xlu0 %4782 }
 0x975   : > { %v11762_v53 = vpop.permute.xlu1 %4917  ;;  %4791 = vst.msk [vmem:[#allocation3 + $0x88] sm:$0xf] %vm351_vm5, %v11760_v44 }
 0x976   : > { %5049 = vrot.lane.b32.xlu0 %v11566_v43, %s13174_s13 }
 0x977   : > { %5026 = vrot.lane.b32.xlu1 %v5065_v38, %s13166_s21 }
 0x978   : > { %v11769_v19 = vpop.permute.xlu0 %4743 }
 0x979   : > { %v11771_v42 = vpop.permute.xlu1 %4895  ;;  %4752 = vst.msk [vmem:[#allocation3 + $0x70] sm:$0xf] %vm351_vm5, %v11769_v19 }
 0x97a   : > { %5072 = vrot.lane.b32.xlu0 %v5065_v38, %s13175_s27  ;;  %s8741_s27 = smul.u32 384, %s9124_s28  ;;  %s7638_s28 = scalar_lea.sflag [#allocation6], %s9225_s0 }
 0x97b   : > { %4980 = vrot.lane.b32.xlu1 %v5065_v38, %s13167_s1 }
 0x97c   : > { %v11777_v60 = vpop.permute.xlu0 %4704  ;;  %s12840_s30 = scalar_lea.hbm %s13357_s9, %s8741_s27 }
 0x97d   : > { %v11779_v39 = vpop.permute.xlu1 %4878  ;;  %4713 = vst.msk [vmem:[#allocation3 + $0x58] sm:$0xf] %vm351_vm5, %v11777_v60 }
 0x97e   : > { %5003 = vrot.lane.b32.xlu0 %v11566_v43, %s13176_s8  ;;  %s319_s8 = scalar_lea.vmem [#allocation11], %s8740_s26 }
 0x97f   : > { %6665 = vrot.lane.b32.xlu1 %v6662_v17, %s13171_s23  ;;  %s7652_s13 = sshll.u32 %s319_s8, 4  ;;  %s12842_s13 = int_to_ptr.vmem [resolvable:$true] %s7652_s13 }
 0x980   : > { %v11785_v58 = vpop.permute.xlu0 %4665  ;;  %s8958_s19 = scalar_lea.vmem %s12842_s13, 384  ;;  %p8965_p13 = scmp.lt.s32.totalorder %s12842_s13, %s8963_s20 }
 0x981   : > { %v11787_v21 = vpop.permute.xlu1 %4856  ;;  %4674 = vst.msk [vmem:[#allocation3 + $0x40] sm:$0xf] %vm351_vm5, %v11785_v58  ;;  %p8959_p11 = scmp.ne.s32.totalorder %s12842_s13, %s8958_s19  ;;  %p8966_p0 = scmp.lt.s32.totalorder %s8964_s22, %s8958_s19 }
 0x982   : > { %6667 = vrot.lane.b32.xlu0 %v6659_v46, %s13171_s23 }
 0x983   : > { %6663 = vrot.lane.b32.xlu1 %v6658_v27, %s13171_s23  ;;  %p8960_p9 = pnand %p8959_p11, %p13358_p12  ;;  %p8967_p2 = por %p8966_p0, %p8965_p13 }
 0x984   : > { %v11791_v20 = vpop.permute.xlu0 %4626 }
 0x985   : > { %v11793_v11 = vpop.permute.xlu1 %4839  ;;  %4635 = vst.msk [vmem:[#allocation3 + $0x28] sm:$0xf] %vm351_vm5, %v11791_v20  ;;  %p8961_p1 = pneg %p8960_p9 }
 0x987   : > { %p8968_p5 = pnand %p8967_p2, %p8961_p1 }
 0x988   : > { %v5069_v36 = vpop.permute.xlu0 %5068 }
 0x989   : > { %v11797_v24 = vpop.permute.xlu1 %4817  ;;  %v5074_v34 = vsel %vm852_vm2, %v5067_v56, %v5069_v36  ;;  %v5075_v43 = vsel %vm852_vm2, %v5069_v36, %v11700_v25 }
 0x98a   : > { %5080 = vst [vmem:[#allocation3 + $0x120] sm:$0xf] %v5074_v34  ;;  %5081 = vst [vmem:[#allocation3 + $0x128] sm:$0xf] %v5075_v43 }
 0x98c   : > { %v11802_v8 = vpop.permute.xlu0 %5047 }
 0x98d   : > { %v11804_v59 = vpop.permute.xlu1 %4800  ;;  %v5052_v35 = vsel %vm828_vm4, %v11707_v48, %v11802_v8 }
 0x98e   : > { %5058 = vst [vmem:[#allocation3 + $0x110] sm:$0xf0] %v5052_v35 }
 0x990   : > { %v5044_v47 = vpop.permute.xlu0 %5043 }
 0x991   : > { %v11809_v33 = vpop.permute.xlu1 %4778  ;;  %v5051_v57 = vsel %vm828_vm4, %v5044_v47, %v11707_v48  ;;  %v5121_v3 = vld [vmem:[#allocation3 + $0x128] sm:$0xff]  ;;  %v5120_v51 = vld [vmem:[#allocation3 + $0x120] sm:$0xff] }
 0x992   : > { %5057 = vst [vmem:[#allocation3 + $0x108] sm:$0xf0] %v5051_v57  ;;  %v11814_v62 = vand.u32 4294901760, %v5121_v3  ;;  %v11816_v22 = vand.u32 4294901760, %v5120_v51 }
 0x994   : > { %5145 = vmatprep.subr.mxu0 %v11814_v62  ;;  %v11820_v9 = vpop.permute.xlu0 %5001  ;;  %v11825_v0 = vsub.f32 %v5120_v51, %v11816_v22  ;;  %v11828_v50 = vsub.f32 %v5121_v3, %v11814_v62 }
 0x995   : > { %v11822_v37 = vpop.permute.xlu1 %4761  ;;  %v5006_v54 = vsel %vm780_vm7, %v11722_v40, %v11820_v9  ;;  %5147 = vmatpush1.msra.mxu0 %v11816_v22 }
 0x996   : > { %5012 = vst [vmem:[#allocation3 + $0xf8] sm:$0xf0] %v5006_v54  ;;  %v13058_v29 = vand.u32 4294901760, %v11828_v50  ;;  %v13055_v6 = vand.u32 4294901760, %v11825_v0 }
 0x998   : > { %v4998_v45 = vpop.permute.xlu0 %4997  ;;  %v5279_v26 = vsub.f32 %v11828_v50, %v13058_v29  ;;  %v5285_v32 = vsub.f32 %v11825_v0, %v13055_v6 }
 0x999   : > { %v11839_v18 = vpop.permute.xlu1 %4739  ;;  %v5005_v56 = vsel %vm780_vm7, %v4998_v45, %v11722_v40 }
 0x99a   : > { %5011 = vst [vmem:[#allocation3 + $0xf0] sm:$0xf0] %v5005_v56  ;;  %v5280_v5 = vand.u32 4294901760, %v5279_v26  ;;  %v5286_v48 = vand.u32 4294901760, %v5285_v32 }
 0x99c   : > { %5281 = vmatprep.subr.mxu1 %v5280_v5  ;;  %v4959_v63 = vpop.permute.xlu0 %4958 }
 0x99d   : > { %v11849_v12 = vpop.permute.xlu1 %4722  ;;  %v4961_v16 = vsel %vm336_vm1, %v11741_v1, %v4959_v63  ;;  %4967 = vst.msk [vmem:[#allocation3 + $0xe8] sm:$0xf0] %vm332_vm0, %v4959_v63  ;;  %5287 = vmatpush1.msra.mxu1 %v5286_v48 }
 0x99e   : > { %4966 = vst [vmem:[#allocation3 + $0xe0] sm:$0xf0] %v4961_v16 }
 0x9a0   : > { %v4955_v38 = vpop.permute.xlu0 %4954 }
 0x9a1   : > { %v11854_v36 = vpop.permute.xlu1 %4700  ;;  %v4960_v40 = vsel %vm336_vm1, %v4955_v38, %v11741_v1 }
 0x9a2   : > { %4965 = vst [vmem:[#allocation3 + $0xd8] sm:$0xf0] %v4960_v40 }
 0x9a4   : > { %v4920_v34 = vpop.permute.xlu0 %4919 }
 0x9a5   : > { %v11858_v43 = vpop.permute.xlu1 %4683  ;;  %v4922_v35 = vsel %vm693_vm10, %v11762_v53, %v4920_v34  ;;  %4928 = vst.msk [vmem:[#allocation3 + $0xd0] sm:$0xf0] %vm332_vm0, %v4920_v34 }
 0x9a6   : > { %4927 = vst [vmem:[#allocation3 + $0xc8] sm:$0xf0] %v4922_v35 }
 0x9a8   : > { %v4916_v47 = vpop.permute.xlu0 %4915 }
 0x9a9   : > { %v11863_v27 = vpop.permute.xlu1 %4661  ;;  %v4921_v57 = vsel %vm693_vm10, %v4916_v47, %v11762_v53  ;;  %vm13267_vm10 = vcmask 695296  }
 0x9aa   : > { %4926 = vst [vmem:[#allocation3 + $0xc0] sm:$0xf0] %v4921_v57  ;;  %vm13268_vm9 = vmmov %vm13267_vm10 }
 0x9ac   : > { %v4881_v3 = vpop.permute.xlu0 %4880 }
 0x9ad   : > { %v11867_v51 = vpop.permute.xlu1 %4644  ;;  %v4883_v1 = vsel %vm652_vm12, %v11779_v39, %v4881_v3  ;;  %4889 = vst.msk [vmem:[#allocation3 + $0xb8] sm:$0xf0] %vm332_vm0, %v4881_v3 }
 0x9ae   : > { %4888 = vst [vmem:[#allocation3 + $0xb0] sm:$0xf0] %v4883_v1 }
 0x9b0   : > { %v4877_v17 = vpop.permute.xlu0 %4876 }
 0x9b1   : > { %v11872_v46 = vpop.permute.xlu1 %4622  ;;  %v4882_v54 = vsel %vm652_vm12, %v4877_v17, %v11779_v39  ;;  %vm13270_vm12 = vmmov %vm13269_vm11 }
 0x9b2   : > { %4887 = vst [vmem:[#allocation3 + $0xa8] sm:$0xf0] %v4882_v54 }
 0x9b4   : > { %v4842_v45 = vpop.permute.xlu0 %4841 }
 0x9b5   : > { %v11876_v26 = vpop.permute.xlu1 %4605  ;;  %v4844_v53 = vsel %vm13267_vm10, %v11793_v11, %v4842_v45  ;;  %4850 = vst.msk [vmem:[#allocation3 + $0xa0] sm:$0xf0] %vm332_vm0, %v4842_v45  ;;  %vm13276_vm10 = vmmov %vm13275_vm6 }
 0x9b6   : > { %4849 = vst [vmem:[#allocation3 + $0x98] sm:$0xf0] %v4844_v53 }
 0x9b8   : > { %v4838_v32 = vpop.permute.xlu0 %4837 }
 0x9b9   : > { %v5023_v56 = vpop.permute.xlu1 %5022  ;;  %v4843_v5 = vsel %vm13268_vm9, %v4838_v32, %v11793_v11  ;;  %vm13277_vm9 = vcmask 850944  }
 0x9ba   : > { %v5028_v48 = vsel %vm13269_vm11, %v11715_v52, %v5023_v56  ;;  %v5029_v39 = vsel %vm13270_vm12, %v5023_v56, %v11705_v2  ;;  %4848 = vst [vmem:[#allocation3 + $0x90] sm:$0xf0] %v4843_v5  ;;  %vm13278_vm11 = vcmask 547840  }
 0x9bb   : > { %5034 = vst [vmem:[#allocation3 + $0x108] sm:$0xf] %v5028_v48  ;;  %5035 = vst [vmem:[#allocation3 + $0x110] sm:$0xf] %v5029_v39 }
 0x9bc   : > { %v4803_v63 = vpop.permute.xlu0 %4802  ;;  %vm13279_vm12 = vmmov %vm13278_vm11 }
 0x9bd   : > { %v4977_v16 = vpop.permute.xlu1 %4976  ;;  %v4805_v38 = vsel %vm13271_vm13, %v11804_v59, %v4803_v63  ;;  %4811 = vst.msk [vmem:[#allocation3 + $0x88] sm:$0xf0] %vm332_vm0, %v4803_v63  ;;  %vm13280_vm13 = vmmov %vm13277_vm9 }
 0x9be   : > { %v4982_v40 = vsel %vm13272_vm3, %v11732_v23, %v4977_v16  ;;  %v4983_v11 = vsel %vm13273_vm15, %v4977_v16, %v11713_v7  ;;  %4810 = vst [vmem:[#allocation3 + $0x80] sm:$0xf0] %v4805_v38  ;;  %vm13281_vm3 = vcmask 687104  }
 0x9bf   : > { %4988 = vst [vmem:[#allocation3 + $0xf0] sm:$0xf] %v4982_v40  ;;  %4989 = vst [vmem:[#allocation3 + $0xf8] sm:$0xf] %v4983_v11 }
 0x9c0   : > { %v4799_v52 = vpop.permute.xlu0 %4798  ;;  %vm13282_vm15 = vmmov %vm13281_vm3 }
 0x9c1   : > { %v4937_v34 = vpop.permute.xlu1 %4936  ;;  %v4804_v35 = vsel %vm13274_vm14, %v4799_v52, %v11804_v59  ;;  %vm13283_vm14 = vcmask 867328  }
 0x9c2   : > { %v4940_v47 = vsel %vm13275_vm6, %v11751_v30, %v4937_v34  ;;  %v4941_v57 = vsel %vm13276_vm10, %v4937_v34, %v11720_v41  ;;  %v5118_v3 = vld [vmem:[#allocation3 + $0x110] sm:$0xff]  ;;  %v5117_v1 = vld [vmem:[#allocation3 + $0x108] sm:$0xff]  ;;  %4809 = vst [vmem:[#allocation3 + $0x78] sm:$0xf0] %v4804_v35  ;;  %vm13284_vm6 = vcmask 703488  }
 0x9c3   : > { %4945 = vst [vmem:[#allocation3 + $0xd8] sm:$0xf] %v4940_v47  ;;  %4946 = vst [vmem:[#allocation3 + $0xe0] sm:$0xf] %v4941_v57  ;;  %v11900_v23 = vand.u32 4294901760, %v5118_v3  ;;  %v11902_v17 = vand.u32 4294901760, %v5117_v1 }
 0x9c4   : > { %v4764_v54 = vpop.permute.xlu0 %4763  ;;  %vm13285_vm10 = vmmov %vm13284_vm6 }
 0x9c5   : > { %5149 = vmatprep.subr.mxu0 %v11900_v23  ;;  %v4898_v45 = vpop.permute.xlu1 %4897  ;;  %v11906_v59 = vsub.f32 %v5117_v1, %v11902_v17  ;;  %v11909_v30 = vsub.f32 %v5118_v3, %v11900_v23  ;;  %v4766_v41 = vsel %vm13277_vm9, %v11822_v37, %v4764_v54  ;;  %4772 = vst.msk [vmem:[#allocation3 + $0x70] sm:$0xf0] %vm332_vm0, %v4764_v54  ;;  %vm13286_vm9 = vmmov %vm13283_vm14 }
 0x9c6   : > { %v4901_v53 = vsel %vm13278_vm11, %v11771_v42, %v4898_v45  ;;  %v4902_v32 = vsel %vm13279_vm12, %v4898_v45, %v11730_v13  ;;  %5151 = vmatpush1.msra.mxu0 %v11902_v17  ;;  %v5115_v56 = vld [vmem:[#allocation3 + $0xf8] sm:$0xff]  ;;  %v5114_v5 = vld [vmem:[#allocation3 + $0xf0] sm:$0xff]  ;;  %4771 = vst [vmem:[#allocation3 + $0x68] sm:$0xf0] %v4766_v41  ;;  %vm13287_vm11 = vcmask 719872  }
 0x9c7   : > { %4906 = vst [vmem:[#allocation3 + $0xc0] sm:$0xf] %v4901_v53  ;;  %4907 = vst [vmem:[#allocation3 + $0xc8] sm:$0xf] %v4902_v32  ;;  %v11919_v48 = vand.u32 4294901760, %v5115_v56  ;;  %v11921_v39 = vand.u32 4294901760, %v5114_v5 }
 0x9c8   : > { %v13054_v63 = vand.u32 4294901760, %v11909_v30  ;;  %v13052_v16 = vand.u32 4294901760, %v11906_v59  ;;  %v4760_v38 = vpop.permute.xlu0 %4759  ;;  %vm13288_vm12 = vmmov %vm13287_vm11 }
 0x9c9   : > { %5153 = vmatprep.subr.mxu0 %v11919_v48  ;;  %v4859_v42 = vpop.permute.xlu1 %4858  ;;  %v11927_v13 = vsub.f32 %v5114_v5, %v11921_v39  ;;  %v11936_v52 = vsub.f32 %v5115_v56, %v11919_v48  ;;  %v4765_v34 = vsel %vm13280_vm13, %v4760_v38, %v11822_v37  ;;  %vm13289_vm13 = vcmask 883712  }
 0x9ca   : > { %v5291_v40 = vsub.f32 %v11909_v30, %v13054_v63  ;;  %v5297_v11 = vsub.f32 %v11906_v59, %v13052_v16  ;;  %v4862_v35 = vsel %vm13281_vm3, %v11787_v21, %v4859_v42  ;;  %v4863_v47 = vsel %vm13282_vm15, %v4859_v42, %v11739_v10  ;;  %5155 = vmatpush1.msra.mxu0 %v11921_v39  ;;  %v5112_v57 = vld [vmem:[#allocation3 + $0xe0] sm:$0xff]  ;;  %v5111_v3 = vld [vmem:[#allocation3 + $0xd8] sm:$0xff] }
 0x9cb   : > { %4770 = vst [vmem:[#allocation3 + $0x60] sm:$0xf0] %v4765_v34  ;;  %4867 = vst [vmem:[#allocation3 + $0xa8] sm:$0xf] %v4862_v35  ;;  %v11945_v1 = vand.u32 4294901760, %v5112_v57  ;;  %v11947_v45 = vand.u32 4294901760, %v5111_v3 }
 0x9cc   : > { %4868 = vst [vmem:[#allocation3 + $0xb0] sm:$0xf] %v4863_v47  ;;  %v5292_v54 = vand.u32 4294901760, %v5291_v40  ;;  %v5298_v41 = vand.u32 4294901760, %v5297_v11  ;;  %v13050_v37 = vand.u32 4294901760, %v11936_v52  ;;  %v13047_v21 = vand.u32 4294901760, %v11927_v13  ;;  %v4725_v53 = vpop.permute.xlu0 %4724 }
 0x9cd   : > { %5157 = vmatprep.subr.mxu0 %v11945_v1  ;;  %v4820_v10 = vpop.permute.xlu1 %4819  ;;  %v11953_v32 = vsub.f32 %v5111_v3, %v11947_v45  ;;  %v11956_v56 = vsub.f32 %v5112_v57, %v11945_v1  ;;  %v4727_v5 = vsel %vm13283_vm14, %v11849_v12, %v4725_v53  ;;  %4733 = vst.msk [vmem:[#allocation3 + $0x58] sm:$0xf0] %vm332_vm0, %v4725_v53  ;;  %vm13290_vm3 = vcmask 859136   ;;  %vm13292_vm14 = vmmov %vm13289_vm13 }
 0x9ce   : > { %5293 = vmatprep.subr.mxu1 %v5292_v54  ;;  %v4823_v38 = vsel %vm13284_vm6, %v11797_v24, %v4820_v10  ;;  %v4824_v42 = vsel %vm13285_vm10, %v4820_v10, %v11749_v4  ;;  %5159 = vmatpush1.msra.mxu0 %v11947_v45  ;;  %v5109_v40 = vld [vmem:[#allocation3 + $0xc8] sm:$0xff]  ;;  %v5108_v11 = vld [vmem:[#allocation3 + $0xc0] sm:$0xff]  ;;  %4732 = vst [vmem:[#allocation3 + $0x50] sm:$0xf0] %v4727_v5  ;;  %vm13291_vm15 = vmmov %vm13290_vm3  ;;  %vm13293_vm6 = vcmask 875520  }
 0x9cf   : > { %5299 = vmatpush1.msra.mxu1 %v5298_v41  ;;  %4828 = vst [vmem:[#allocation3 + $0x90] sm:$0xf] %v4823_v38  ;;  %4829 = vst [vmem:[#allocation3 + $0x98] sm:$0xf] %v4824_v42  ;;  %v11966_v34 = vand.u32 4294901760, %v5109_v40  ;;  %v5303_v35 = vsub.f32 %v11936_v52, %v13050_v37  ;;  %v11971_v47 = vand.u32 4294901760, %v5108_v11  ;;  %v5309_v4 = vsub.f32 %v11927_v13, %v13047_v21 }
 0x9d0   : > { %v13048_v24 = vand.u32 4294901760, %v11956_v56  ;;  %v13049_v57 = vand.u32 4294901760, %v11953_v32  ;;  %v4721_v3 = vpop.permute.xlu0 %4720  ;;  %vm13294_vm10 = vmmov %vm13293_vm6 }
 0x9d1   : > { %5161 = vmatprep.subr.mxu0 %v11966_v34  ;;  %v5304_v54 = vand.u32 4294901760, %v5303_v35  ;;  %v4781_v41 = vpop.permute.xlu1 %4780  ;;  %v11980_v53 = vsub.f32 %v5108_v11, %v11971_v47  ;;  %v5310_v10 = vand.u32 4294901760, %v5309_v4  ;;  %v11983_v5 = vsub.f32 %v5109_v40, %v11966_v34 }
 0x9d2   : > { %v4726_v38 = vsel %vm13286_vm9, %v4721_v3, %v11849_v12  ;;  %v4784_v42 = vsel %vm13287_vm11, %v11809_v33, %v4781_v41  ;;  %v4785_v21 = vsel %vm13288_vm12, %v4781_v41, %v11760_v44  ;;  %5163 = vmatpush1.msra.mxu0 %v11971_v47  ;;  %v5315_v11 = vsub.f32 %v11956_v56, %v13048_v24  ;;  %v5105_v4 = vld [vmem:[#allocation3 + $0xa8] sm:$0xff] }
 0x9d3   : > { %v5106_v35 = vld [vmem:[#allocation3 + $0xb0] sm:$0xff]  ;;  %4731 = vst [vmem:[#allocation3 + $0x48] sm:$0xf0] %v4726_v38  ;;  %5305 = vmatprep.subr.mxu1 %v5304_v54  ;;  %4789 = vst [vmem:[#allocation3 + $0x78] sm:$0xf] %v4784_v42  ;;  %v11997_v12 = vand.u32 4294901760, %v5105_v4  ;;  %v5321_v44 = vsub.f32 %v11953_v32, %v13049_v57 }
 0x9d4   : > { %4790 = vst [vmem:[#allocation3 + $0x80] sm:$0xf] %v4785_v21  ;;  %v11995_v40 = vand.u32 4294901760, %v5106_v35  ;;  %v13051_v33 = vand.u32 4294901760, %v11983_v5  ;;  %5311 = vmatpush1.msra.mxu1 %v5310_v10  ;;  %v5316_v3 = vand.u32 4294901760, %v5315_v11  ;;  %v13053_v41 = vand.u32 4294901760, %v11980_v53  ;;  %v4686_v24 = vpop.permute.xlu0 %4685 }
 0x9d5   : > { %v4742_v54 = vpop.permute.xlu1 %4741  ;;  %v12006_v21 = vsub.f32 %v5105_v4, %v11997_v12  ;;  %v5322_v38 = vand.u32 4294901760, %v5321_v44  ;;  %v4688_v10 = vsel %vm13289_vm13, %v11858_v43, %v4686_v24  ;;  %4694 = vst.msk [vmem:[#allocation3 + $0x40] sm:$0xf0] %vm332_vm0, %v4686_v24  ;;  %vm13295_vm9 = vcmask 1022976  }
 0x9d6   : > { %5165 = vmatprep.subr.mxu0 %v11995_v40  ;;  %v5327_v42 = vsub.f32 %v11983_v5, %v13051_v33  ;;  %v12012_v57 = vsub.f32 %v5106_v35, %v11995_v40  ;;  %5317 = vmatprep.subr.mxu1 %v5316_v3  ;;  %v4745_v11 = vsel %vm13290_vm3, %v11839_v18, %v4742_v54  ;;  %v5103_v44 = vld [vmem:[#allocation3 + $0x98] sm:$0xff]  ;;  %v5102_v37 = vld [vmem:[#allocation3 + $0x90] sm:$0xff]  ;;  %vm13296_vm11 = vcmask 1014784   ;;  %vm13301_vm13 = vmmov %vm13295_vm9 }
 0x9d7   : > { %v4746_v4 = vsel %vm13291_vm15, %v4742_v54, %v11769_v19  ;;  %5167 = vmatpush1.msra.mxu0 %v11997_v12  ;;  %4693 = vst [vmem:[#allocation3 + $0x38] sm:$0xf0] %v4688_v10  ;;  %4750 = vst [vmem:[#allocation3 + $0x60] sm:$0xf] %v4745_v11  ;;  %5323 = vmatpush1.msra.mxu1 %v5322_v38  ;;  %v12022_v35 = vand.u32 4294901760, %v5103_v44  ;;  %v12024_v16 = vand.u32 4294901760, %v5102_v37 }
 0x9d8   : > { %4751 = vst [vmem:[#allocation3 + $0x68] sm:$0xf] %v4746_v4  ;;  %v5328_v33 = vand.u32 4294901760, %v5327_v42  ;;  %v5333_v18 = vsub.f32 %v11980_v53, %v13053_v41  ;;  %v13056_v24 = vand.u32 4294901760, %v12012_v57  ;;  %v13057_v19 = vand.u32 4294901760, %v12006_v21  ;;  %v4682_v3 = vpop.permute.xlu0 %4681  ;;  %v5083_v11 = vld [vmem:[%s12889_s5] sm:$0xff]  ;;  %vm13297_vm12 = vmmov %vm13296_vm11 }
 0x9d9   : > { %5169 = vmatprep.subr.mxu0 %v12022_v35  ;;  %v4703_v54 = vpop.permute.xlu1 %4702  ;;  %v12033_v38 = vsub.f32 %v5102_v37, %v12024_v16  ;;  %v12036_v42 = vsub.f32 %v5103_v44, %v12022_v35  ;;  %v4687_v4 = vsel %vm13292_vm14, %v4682_v3, %v11858_v43  ;;  %v12060_v6 = vand.u32 4294901760, %v5083_v11 }
 0x9da   : > { %5329 = vmatprep.subr.mxu1 %v5328_v33  ;;  %v5334_v10 = vand.u32 4294901760, %v5333_v18  ;;  %v4706_v41 = vsel %vm13293_vm6, %v11854_v36, %v4703_v54  ;;  %v4707_v33 = vsel %vm13294_vm10, %v4703_v54, %v11777_v60  ;;  %5171 = vmatpush1.msra.mxu0 %v12024_v16  ;;  %v5339_v44 = vsub.f32 %v12012_v57, %v13056_v24  ;;  %v5099_v18 = vld [vmem:[#allocation3 + $0x78] sm:$0xff] }
 0x9db   : > { %v5100_v37 = vld [vmem:[#allocation3 + $0x80] sm:$0xff]  ;;  %4692 = vst [vmem:[#allocation3 + $0x30] sm:$0xf0] %v4687_v4  ;;  %4711 = vst [vmem:[#allocation3 + $0x48] sm:$0xf] %v4706_v41  ;;  %v12053_v43 = vand.u32 4294901760, %v5099_v18  ;;  %v5345_v60 = vsub.f32 %v12006_v21, %v13057_v19 }
 0x9dc   : > { %4712 = vst [vmem:[#allocation3 + $0x50] sm:$0xf] %v4707_v33  ;;  %5335 = vmatpush1.msra.mxu1 %v5334_v10  ;;  %v12051_v63 = vand.u32 4294901760, %v5100_v37  ;;  %v13059_v36 = vand.u32 4294901760, %v12036_v42  ;;  %v5340_v3 = vand.u32 4294901760, %v5339_v44  ;;  %v4647_v24 = vpop.permute.xlu0 %4646  ;;  %vm13302_vm3 = vcmask 1031168  }
 0x9dd   : > { %v4664_v41 = vpop.permute.xlu1 %4663  ;;  %v12064_v10 = vsub.f32 %v5099_v18, %v12053_v43  ;;  %v5346_v4 = vand.u32 4294901760, %v5345_v60  ;;  %v4649_v44 = vsel %vm13295_vm9, %v11867_v51, %v4647_v24  ;;  %4655 = vst.msk [vmem:[#allocation3 + $0x28] sm:$0xf0] %vm332_vm0, %v4647_v24  ;;  %v13299_v24 = vand.u32 4294901760, %v12033_v38  ;;  %vm13303_vm15 = vmmov %vm13302_vm3 }
 0x9de   : > { %5173 = vmatprep.subr.mxu0 %v12051_v63  ;;  %v5351_v33 = vsub.f32 %v12036_v42, %v13059_v36  ;;  %v12070_v19 = vsub.f32 %v5100_v37, %v12051_v63  ;;  %5341 = vmatprep.subr.mxu1 %v5340_v3  ;;  %v4667_v29 = vsel %vm13296_vm11, %v11863_v27, %v4664_v41  ;;  %v5096_v54 = vld [vmem:[#allocation3 + $0x60] sm:$0xff]  ;;  %vm13308_vm14 = vcmask 1039360  }
 0x9df   : > { %v4668_v18 = vsel %vm13297_vm12, %v4664_v41, %v11785_v58  ;;  %5175 = vmatpush1.msra.mxu0 %v12053_v43  ;;  %v5097_v60 = vld [vmem:[#allocation3 + $0x68] sm:$0xff]  ;;  %4654 = vst [vmem:[#allocation3 + $0x20] sm:$0xf0] %v4649_v44  ;;  %4672 = vst [vmem:[#allocation3 + $0x30] sm:$0xf] %v4667_v29  ;;  %5347 = vmatpush1.msra.mxu1 %v5346_v4  ;;  %v12082_v15 = vand.u32 4294901760, %v5096_v54  ;;  %v5357_v27 = vsub.f32 %v12033_v38, %v13299_v24 }
 0x9e0   : > { %4673 = vst [vmem:[#allocation3 + $0x38] sm:$0xf] %v4668_v18  ;;  %v12080_v37 = vand.u32 4294901760, %v5097_v60  ;;  %v5352_v36 = vand.u32 4294901760, %v5351_v33  ;;  %v13062_v3 = vand.u32 4294901760, %v12070_v19  ;;  %v12090_v41 = vsub.f32 %v5083_v11, %v12060_v6  ;;  %v4643_v44 = vpop.permute.xlu0 %4642  ;;  %vm13309_vm6 = vmmov %vm13308_vm14 }
 0x9e1   : > { %13298 = vst [vmem:[#allocation27_spill] sm:$0xff] %v12082_v15  ;;  %v4625_v29 = vpop.permute.xlu1 %4624  ;;  %v12094_v4 = vsub.f32 %v5096_v54, %v12082_v15  ;;  %v5358_v33 = vand.u32 4294901760, %v5357_v27  ;;  %v4648_v24 = vsel %vm13301_vm13, %v4643_v44, %v11867_v51  ;;  %vm13313_vm10 = vcmask 375808  }
 0x9e2   : > { %13300 = vst [vmem:[#allocation29_spill] sm:$0xff] %v12090_v41  ;;  %5177 = vmatprep.subr.mxu0 %v12080_v37  ;;  %5353 = vmatprep.subr.mxu1 %v5352_v36  ;;  %v12097_v18 = vsub.f32 %v5097_v60, %v12080_v37  ;;  %v4628_v58 = vsel %vm13302_vm3, %v11872_v46, %v4625_v29  ;;  %v5093_v27 = vld [vmem:[#allocation3 + $0x48] sm:$0xff]  ;;  %4653 = vst [vmem:[#allocation3 + $0x18] sm:$0xf0] %v4648_v24  ;;  %v13306_v46 = vand.u32 4294901760, %v12064_v10 }
 0x9e3   : > { %v4629_v11 = vsel %vm13303_vm15, %v4625_v29, %v11791_v20  ;;  %5179 = vmatpush1.msra.mxu0 %v12082_v15  ;;  %v5094_v36 = vld [vmem:[#allocation3 + $0x50] sm:$0xff]  ;;  %v5363_v54 = vsub.f32 %v12070_v19, %v13062_v3  ;;  %4633 = vst [vmem:[#allocation3 + $0x18] sm:$0xf] %v4628_v58  ;;  %5359 = vmatpush1.msra.mxu1 %v5358_v33  ;;  %v12111_v51 = vand.u32 4294901760, %v5093_v27  ;;  %v12119_v3 = vand.u32 4294901760, %v12090_v41 }
 0x9e4   : > { %4634 = vst [vmem:[#allocation3 + $0x20] sm:$0xf] %v4629_v11  ;;  %v12109_v60 = vand.u32 4294901760, %v5094_v36  ;;  %v5369_v20 = vsub.f32 %v12064_v10, %v13306_v46  ;;  %v13066_v44 = vand.u32 4294901760, %v12097_v18  ;;  %v4608_v24 = vpop.permute.xlu0 %4607  ;;  %v13310_v28 = vand.u32 4294901760, %v12094_v4 }
 0x9e5   : > { %13305 = vst [vmem:[#allocation32_spill] sm:$0xff] %v12111_v51  ;;  %v5364_v29 = vand.u32 4294901760, %v5363_v54  ;;  %13307 = vst [vmem:[#allocation33_spill] sm:$0xff] %v12119_v3  ;;  %v4604_v58 = vpop.permute.xlu1 %4603  ;;  %v12123_v33 = vsub.f32 %v5093_v27, %v12111_v51  ;;  %v4610_v54 = vsel %vm13308_vm14, %v11876_v26, %v4608_v24 }
 0x9e6   : > { %13304 = vst [vmem:[#allocation31_spill] sm:$0xff] %v12109_v60  ;;  %5181 = vmatprep.subr.mxu0 %v12109_v60  ;;  %v5370_v11 = vand.u32 4294901760, %v5369_v20  ;;  %v5375_v46 = vsub.f32 %v12097_v18, %v13066_v44  ;;  %v12129_v49 = vsub.f32 %v5094_v36, %v12109_v60  ;;  %4616 = vst.msk [vmem:[#allocation3 + $0x10] sm:$0xf0] %vm332_vm0, %v4608_v24  ;;  %v5090_v20 = vld [vmem:[#allocation3 + $0x30] sm:$0xff] }
 0x9e7   : > { %5365 = vmatprep.subr.mxu1 %v5364_v29  ;;  %v4609_v31 = vsel %vm13309_vm6, %v4604_v58, %v11876_v26  ;;  %5183 = vmatpush1.msra.mxu0 %v12111_v51  ;;  %v5091_v27 = vld [vmem:[#allocation3 + $0x38] sm:$0xff]  ;;  %v5381_v44 = vsub.f32 %v12094_v4, %v13310_v28  ;;  %4615 = vst [vmem:[#allocation3 + $0x8] sm:$0xf0] %v4610_v54  ;;  %v12142_v15 = vand.u32 4294901760, %v5090_v20 }
 0x9e8   : > { %4614 = vst [vmem:[#allocation3] sm:$0xf0] %v4609_v31  ;;  %5371 = vmatpush1.msra.mxu1 %v5370_v11  ;;  %v12140_v36 = vand.u32 4294901760, %v5091_v27  ;;  %v5376_v60 = vand.u32 4294901760, %v5375_v46  ;;  %v13075_v29 = vand.u32 4294901760, %v12129_v49  ;;  %v5232_v58 = vsub.f32 %v12090_v41, %v12119_v3  ;;  %v5050_v51 = vpop.permute.xlu0 %5049 }
 0x9e9   : > { %13312 = vst [vmem:[#allocation26_spill] sm:$0xff] %v12142_v15  ;;  %v5382_v24 = vand.u32 4294901760, %v5381_v44  ;;  %v5027_v28 = vpop.permute.xlu1 %5026  ;;  %v12150_v31 = vsub.f32 %v5090_v20, %v12142_v15  ;;  %v5053_v44 = vsel %vm828_vm4, %v11802_v8, %v5050_v51  ;;  %v13314_v20 = vand.u32 4294901760, %v12123_v33 }
 0x9ea   : > { %13311 = vst [vmem:[#allocation30_spill] sm:$0xff] %v12140_v36  ;;  %5185 = vmatprep.subr.mxu0 %v12140_v36  ;;  %5377 = vmatprep.subr.mxu1 %v5376_v60  ;;  %v5387_v11 = vsub.f32 %v12129_v49, %v13075_v29  ;;  %v12156_v46 = vsub.f32 %v5091_v27, %v12140_v36  ;;  %v5087_v26 = vld [vmem:[#allocation3 + $0x18] sm:$0xff]  ;;  %5059 = vst.msk [vmem:[#allocation3 + $0x118] sm:$0xf0] %vm332_vm0, %v5053_v44  ;;  %vm13315_vm4 = vcmask 392192   ;;  %v12192_v41 = vand.u32 4294901760, %v5232_v58 }
 0x9eb   : > { %v5030_v54 = vsel %vm13313_vm10, %v11705_v2, %v5027_v28  ;;  %5187 = vmatpush1.msra.mxu0 %v12142_v15  ;;  %5383 = vmatpush1.msra.mxu1 %v5382_v24  ;;  %v5088_v60 = vld [vmem:[#allocation3 + $0x20] sm:$0xff]  ;;  %v5393_v3 = vsub.f32 %v12123_v33, %v13314_v20  ;;  %v12170_v8 = vand.u32 4294901760, %v5087_v26 }
 0x9ec   : > { %5036 = vst.msk [vmem:[#allocation3 + $0x118] sm:$0xf] %vm351_vm5, %v5030_v54  ;;  %v12168_v27 = vand.u32 4294901760, %v5088_v60  ;;  %v5388_v29 = vand.u32 4294901760, %v5387_v11  ;;  %v13082_v2 = vand.u32 4294901760, %v12156_v46  ;;  %v5073_v28 = vpop.permute.xlu0 %5072 }
 0x9ed   : > { %v5394_v51 = vand.u32 4294901760, %v5393_v3  ;;  %v4981_v15 = vpop.permute.xlu1 %4980  ;;  %v12176_v20 = vsub.f32 %v5087_v26, %v12170_v8  ;;  %v5076_v3 = vsel %vm852_vm2, %v11700_v25, %v5073_v28  ;;  %v13316_v26 = vand.u32 4294901760, %v12150_v31 }
 0x9ee   : > { %5189 = vmatprep.subr.mxu0 %v12168_v27  ;;  %5389 = vmatprep.subr.mxu1 %v5388_v29  ;;  %v5399_v44 = vsub.f32 %v12156_v46, %v13082_v2  ;;  %v12182_v11 = vsub.f32 %v5088_v60, %v12168_v27  ;;  %v4984_v54 = vsel %vm13315_vm4, %v11713_v7, %v4981_v15  ;;  %v5085_v29 = vld [vmem:[#allocation3 + $0x8] sm:$0xff]  ;;  %vm13349_vm2 = vcmask 703488  }
 0x9ef   : > { %5191 = vmatpush1.msra.mxu0 %v12170_v8  ;;  %5395 = vmatpush1.msra.mxu1 %v5394_v51  ;;  %v5084_v24 = vld [vmem:[#allocation3] sm:$0xff]  ;;  %v5405_v36 = vsub.f32 %v12150_v31, %v13316_v26  ;;  %5082 = vst.msk [vmem:[#allocation3 + $0x130] sm:$0xf] %vm351_vm5, %v5076_v3  ;;  %4990 = vst.msk [vmem:[#allocation3 + $0x100] sm:$0xf] %vm351_vm5, %v4984_v54  ;;  %v12196_v60 = vand.u32 4294901760, %v5085_v29 }
 0x9f0   : > { %v5400_v25 = vand.u32 4294901760, %v5399_v44  ;;  %v12198_v28 = vand.u32 4294901760, %v5084_v24  ;;  %v5410_v15 = vand.u32 4294901760, %v12182_v11  ;;  %v5416_v51 = vand.u32 4294901760, %v12176_v20  ;;  %v5004_v2 = vpop.permute.xlu0 %5003  ;;  %vm13350_vm5 = vmmov %vm13349_vm2 }
 0x9f1   : > { %v5406_v7 = vand.u32 4294901760, %v5405_v36  ;;  %5193 = vmatprep.subr.mxu0 %v12196_v60  ;;  %v12210_v44 = vsub.f32 %v5085_v29, %v12196_v60  ;;  %v5007_v54 = vsel %vm780_vm7, %v11820_v9, %v5004_v2  ;;  %vm13351_vm7 = vcmask 1043456  }
 0x9f2   : > { %5401 = vmatprep.subr.mxu1 %v5400_v25  ;;  %v12204_v58 = vsub.f32 %v5084_v24, %v12198_v28  ;;  %v5411_v3 = vsub.f32 %v12182_v11, %v5410_v15  ;;  %5195 = vmatpush1.msra.mxu0 %v12198_v28  ;;  %v5417_v36 = vsub.f32 %v12176_v20, %v5416_v51  ;;  %vm13352_vm9 = vmmov %vm13351_vm7 }
 0x9f3   : > { %5407 = vmatpush1.msra.mxu1 %v5406_v7  ;;  %5013 = vst.msk [vmem:[#allocation3 + $0x100] sm:$0xf0] %vm332_vm0, %v5007_v54  ;;  %5474 = vmatprep.subr.mxu0 %v11619_v14  ;;  %v13084_v29 = vand.u32 4294901760, %v12210_v44  ;;  %v13319_v54 = vld [vmem:[#allocation31_spill] sm:$0xff]  ;;  %vm6671_vm0 = vcmask 31744   ;;  %vm13353_vm11 = vmmov %vm13351_vm7 }
 0x9f4   : > { %5234 = vmatmul.mubr.f32.vlgmr.msra.gmra.mxu0 %v12192_v41  ;;  %v5412_v24 = vand.u32 4294901760, %v5411_v3  ;;  %v13083_v26 = vand.u32 4294901760, %v12204_v58  ;;  %v5418_v9 = vand.u32 4294901760, %v5417_v36  ;;  %v13320_v36 = vld [vmem:[#allocation28_spill] sm:$0xff] }
 0x9f5   : > { %5477 = vmatpush1.msra.mxu0 %v11619_v14  ;;  %5600 = vmatprep.mubr.f32.mxu0 %v11607_v61  ;;  %v5423_v2 = vsub.f32 %v12210_v44, %v13084_v29  ;;  %v13317_v61 = vld [vmem:[#allocation27_spill] sm:$0xff]  ;;  %v13327_v29 = vand.u32 4294901760, %v11909_v30 }
 0x9f6   : > { %5413 = vmatprep.subr.mxu1 %v5412_v24  ;;  %5480 = vmatprep.subr.mxu0 %v11619_v14  ;;  %v5429_v25 = vsub.f32 %v12204_v58, %v13083_v26  ;;  %v13321_v24 = vld [vmem:[#allocation32_spill] sm:$0xff]  ;;  %v13326_v26 = vld [vmem:[#allocation33_spill] sm:$0xff] }
 0x9f7   : > { %5419 = vmatpush1.msra.mxu1 %v5418_v9  ;;  %5483 = vmatpush1.msra.mxu0 %v11619_v14  ;;  %v5424_v7 = vand.u32 4294901760, %v5423_v2  ;;  %v13322_v9 = vld [vmem:[#allocation30_spill] sm:$0xff] }
 0x9f8   : > { %5486 = vmatprep.subr.mxu0 %v11619_v14  ;;  %v5430_v3 = vand.u32 4294901760, %v5429_v25  ;;  %v13323_v2 = vld [vmem:[#allocation26_spill] sm:$0xff]  ;;  %v13324_v25 = vand.u32 4294901760, %v11828_v50 }
 0x9f9   : > { %5489 = vmatpush1.msra.mxu0 %v11619_v14  ;;  %5425 = vmatprep.subr.mxu1 %v5424_v7  ;;  %v13318_v14 = vld [vmem:[#allocation29_spill] sm:$0xff]  ;;  %v12303_v7 = vld [vmem:[#allocation3 + $0x170] sm:$0xff] }
 0x9fa   : > { %5492 = vmatprep.subr.mxu0 %v11828_v50  ;;  %5431 = vmatpush1.msra.mxu1 %v5430_v3  ;;  %v13325_v3 = vand.u32 4294901760, %v11825_v0  ;;  %v13329_v50 = vand.u32 4294901760, %v11936_v52 }
 0x9fb   : > { %5495 = vmatpush1.msra.mxu0 %v11825_v0  ;;  %5466 = vmatmul.mubr.f32.vlgmr.msra.gmra.mxu1 %v12060_v6  ;;  %v13330_v0 = vand.u32 4294901760, %v11927_v13 }
 0x9fc   : > { %5498 = vmatprep.subr.mxu0 %v11909_v30  ;;  %5610 = vmatprep.subr.mxu1 %v11610_v55  ;;  %v13331_v30 = vand.u32 4294901760, %v11956_v56 }
 0x9fd   : > { %5501 = vmatpush1.msra.mxu0 %v11906_v59  ;;  %5612 = vmatpush1.msra.mxu1 %v11610_v55 }
 0x9fe   : > { %5504 = vmatprep.subr.mxu0 %v11936_v52  ;;  %5614 = vmatprep.subr.mxu1 %v11610_v55  ;;  %v13333_v52 = vand.u32 4294901760, %v11983_v5 }
 0x9ff   : > { %5507 = vmatpush1.msra.mxu0 %v11927_v13  ;;  %5616 = vmatpush1.msra.mxu1 %v11610_v55  ;;  %v13334_v13 = vand.u32 4294901760, %v11980_v53 }
 0xa00   : > { %5510 = vmatprep.subr.mxu0 %v11956_v56  ;;  %5618 = vmatprep.subr.mxu1 %v11610_v55  ;;  %v13335_v56 = vand.u32 4294901760, %v12012_v57 }
 0xa01   : > { %5513 = vmatpush1.msra.mxu0 %v11953_v32  ;;  %5620 = vmatpush1.msra.mxu1 %v11610_v55 }
 0xa02   : > { %5516 = vmatprep.subr.mxu0 %v11983_v5  ;;  %5622 = vmatprep.subr.mxu1 %v11814_v62  ;;  %v5125_v5 = vld [vmem:[#allocation3 + $0x148] sm:$0xff] }
 0xa03   : > { %5519 = vmatpush1.msra.mxu0 %v11980_v53  ;;  %5624 = vmatpush1.msra.mxu1 %v11816_v22  ;;  %v13342_v53 = vand.u32 4294901760, %v12094_v4 }
 0xa04   : > { %5522 = vmatprep.subr.mxu0 %v12012_v57  ;;  %5626 = vmatprep.subr.mxu1 %v11900_v23  ;;  %v13340_v57 = vand.u32 4294901760, %v12064_v10 }
 0xa05   : > { %5525 = vmatpush1.msra.mxu0 %v12006_v21  ;;  %5628 = vmatpush1.msra.mxu1 %v11902_v17 }
 0xa06   : > { %5528 = vmatprep.subr.mxu0 %v12036_v42  ;;  %5630 = vmatprep.subr.mxu1 %v11919_v48 }
 0xa07   : > { %5531 = vmatpush1.msra.mxu0 %v12033_v38  ;;  %5632 = vmatpush1.msra.mxu1 %v11921_v39 }
 0xa08   : > { %5534 = vmatprep.subr.mxu0 %v12070_v19  ;;  %5634 = vmatprep.subr.mxu1 %v11945_v1 }
 0xa09   : > { %5537 = vmatpush1.msra.mxu0 %v12064_v10  ;;  %5636 = vmatpush1.msra.mxu1 %v11947_v45  ;;  %v5116_v10 = vld [vmem:[#allocation3 + $0x100] sm:$0xff] }
 0xa0a   : > { %5540 = vmatprep.subr.mxu0 %v12097_v18  ;;  %5638 = vmatprep.subr.mxu1 %v11966_v34 }
 0xa0b   : > { %5543 = vmatpush1.msra.mxu0 %v12094_v4  ;;  %5640 = vmatpush1.msra.mxu1 %v11971_v47 }
 0xa0c   : > { %5546 = vmatprep.subr.mxu0 %v12129_v49  ;;  %5642 = vmatprep.subr.mxu1 %v11995_v40 }
 0xa0d   : > { %5549 = vmatpush1.msra.mxu0 %v12123_v33  ;;  %5644 = vmatpush1.msra.mxu1 %v11997_v12 }
 0xa0e   : > { %5552 = vmatprep.subr.mxu0 %v12156_v46  ;;  %5646 = vmatprep.subr.mxu1 %v12022_v35 }
 0xa0f   : > { %5555 = vmatpush1.msra.mxu0 %v12150_v31  ;;  %5648 = vmatpush1.msra.mxu1 %v12024_v16 }
 0xa10   : > { %5558 = vmatprep.subr.mxu0 %v12182_v11  ;;  %5650 = vmatprep.subr.mxu1 %v12051_v63  ;;  %v5110_v11 = vld [vmem:[#allocation3 + $0xd0] sm:$0xff] }
 0xa11   : > { %5561 = vmatpush1.msra.mxu0 %v12176_v20  ;;  %5652 = vmatpush1.msra.mxu1 %v12053_v43 }
 0xa12   : > { %5564 = vmatprep.subr.mxu0 %v12210_v44  ;;  %5654 = vmatprep.subr.mxu1 %v12080_v37 }
 0xa13   : > { %5567 = vmatpush1.msra.mxu0 %v12204_v58  ;;  %5656 = vmatpush1.msra.mxu1 %v13317_v61 }
 0xa14   : > { %5603 = vmatmul.mubr.f32.vlgmr.msra.gmra.mxu0 %v13318_v14  ;;  %5658 = vmatprep.subr.mxu1 %v13319_v54 }
 0xa15   : > { %5718 = vmatprep.subr.mxu0 %v13320_v36  ;;  %5660 = vmatpush1.msra.mxu1 %v13321_v24 }
 0xa16   : > { %5722 = vmatpush1.msra.mxu0 %v13320_v36  ;;  %5662 = vmatprep.subr.mxu1 %v13322_v9 }
 0xa17   : > { %5726 = vmatprep.subr.mxu0 %v13320_v36  ;;  %5664 = vmatpush1.msra.mxu1 %v13323_v2 }
 0xa18   : > { %5730 = vmatpush1.msra.mxu0 %v13320_v36  ;;  %5666 = vmatprep.subr.mxu1 %v12168_v27 }
 0xa19   : > { %5734 = vmatprep.subr.mxu0 %v13320_v36  ;;  %5668 = vmatpush1.msra.mxu1 %v12170_v8 }
 0xa1a   : > { %5738 = vmatpush1.msra.mxu0 %v13320_v36  ;;  %5670 = vmatprep.subr.mxu1 %v12196_v60  ;;  %v13328_v36 = vand.u32 4294901760, %v11906_v59  ;;  %v13332_v59 = vand.u32 4294901760, %v11953_v32  ;;  %v13336_v32 = vand.u32 4294901760, %v12006_v21  ;;  %v13345_v21 = vand.u32 4294901760, %v12156_v46 }
 0xa1b   : > { %5742 = vmatprep.subr.mxu0 %v13324_v25  ;;  %5672 = vmatpush1.msra.mxu1 %v12198_v28  ;;  %v12416_v46 = vand.u32 4294901760, %v5116_v10 }
 0xa1c   : > { %5705 = vmatprep.mubr.f32.mxu1 %v12303_v7  ;;  %5746 = vmatpush1.msra.mxu0 %v13325_v3  ;;  %v5101_v3 = vld [vmem:[#allocation3 + $0x88] sm:$0xff] }
 0xa1d   : > { %5709 = vmatmul.mubr.f32.vlgmr.msra.gmra.mxu1 %v13326_v26  ;;  %5750 = vmatprep.subr.mxu0 %v13327_v29  ;;  %v5107_v29 = vld [vmem:[#allocation3 + $0xb8] sm:$0xff] }
 0xa1e   : > { %5884 = vmatprep.subr.mxu1 %v11610_v55  ;;  %5754 = vmatpush1.msra.mxu0 %v13328_v36 }
 0xa1f   : > { %5886 = vmatpush1.msra.mxu1 %v11610_v55  ;;  %5758 = vmatprep.subr.mxu0 %v13329_v50 }
 0xa20   : > { %5888 = vmatprep.subr.mxu1 %v11610_v55  ;;  %5762 = vmatpush1.msra.mxu0 %v13330_v0 }
 0xa21   : > { %5890 = vmatpush1.msra.mxu1 %v11610_v55  ;;  %5766 = vmatprep.subr.mxu0 %v13331_v30 }
 0xa22   : > { %5892 = vmatprep.subr.mxu1 %v11610_v55  ;;  %5770 = vmatpush1.msra.mxu0 %v13332_v59  ;;  %v5098_v59 = vld [vmem:[#allocation3 + $0x70] sm:$0xff] }
 0xa23   : > { %5894 = vmatpush1.msra.mxu1 %v11610_v55  ;;  %5774 = vmatprep.subr.mxu0 %v13333_v52  ;;  %v13337_v55 = vand.u32 4294901760, %v12036_v42 }
 0xa24   : > { %5896 = vmatprep.subr.mxu1 %v11814_v62  ;;  %5778 = vmatpush1.msra.mxu0 %v13334_v13  ;;  %v13338_v62 = vand.u32 4294901760, %v12033_v38  ;;  %v13348_v38 = vand.u32 4294901760, %v12204_v58 }
 0xa25   : > { %5898 = vmatpush1.msra.mxu1 %v11816_v22  ;;  %5782 = vmatprep.subr.mxu0 %v13335_v56  ;;  %v13339_v22 = vand.u32 4294901760, %v12070_v19  ;;  %v5119_v19 = vld [vmem:[#allocation3 + $0x118] sm:$0xff]  ;;  %v12475_v56 = vand.u32 4294901760, %v5101_v3 }
 0xa26   : > { %5900 = vmatprep.subr.mxu1 %v11900_v23  ;;  %5786 = vmatpush1.msra.mxu0 %v13336_v32  ;;  %v5131_v23 = vld [vmem:[#allocation3 + $0x178] sm:$0xff] }
 0xa27   : > { %5902 = vmatpush1.msra.mxu1 %v11902_v17  ;;  %5790 = vmatprep.subr.mxu0 %v13337_v55  ;;  %v13341_v17 = vand.u32 4294901760, %v12097_v18  ;;  %v5113_v18 = vld [vmem:[#allocation3 + $0xe8] sm:$0xff] }
 0xa28   : > { %5904 = vmatprep.subr.mxu1 %v11919_v48  ;;  %5794 = vmatpush1.msra.mxu0 %v13338_v62  ;;  %v5128_v48 = vld [vmem:[#allocation3 + $0x160] sm:$0xff]  ;;  %v12429_v58 = vand.u32 4294901760, %v5113_v18 }
 0xa29   : > { %5906 = vmatpush1.msra.mxu1 %v11921_v39  ;;  %5798 = vmatprep.subr.mxu0 %v13339_v22  ;;  %v12357_v39 = vand.u32 4294901760, %v5131_v23 }
 0xa2a   : > { %5908 = vmatprep.subr.mxu1 %v11945_v1  ;;  %5802 = vmatpush1.msra.mxu0 %v13340_v57  ;;  %v13343_v1 = vand.u32 4294901760, %v12129_v49  ;;  %v12488_v57 = vand.u32 4294901760, %v5098_v59 }
 0xa2b   : > { %5910 = vmatpush1.msra.mxu1 %v11947_v45  ;;  %5806 = vmatprep.subr.mxu0 %v13341_v17  ;;  %v13344_v45 = vand.u32 4294901760, %v12123_v33  ;;  %v12374_v49 = vsub.f32 %v5131_v23, %v12357_v39  ;;  %v5095_v17 = vld [vmem:[#allocation3 + $0x58] sm:$0xff] }
 0xa2c   : > { %5912 = vmatprep.subr.mxu1 %v11966_v34  ;;  %5810 = vmatpush1.msra.mxu0 %v13342_v53  ;;  %v12365_v34 = vand.u32 4294901760, %v5128_v48  ;;  %v12494_v53 = vsub.f32 %v5101_v3, %v12475_v56 }
 0xa2d   : > { %5914 = vmatpush1.msra.mxu1 %v11971_v47  ;;  %5814 = vmatprep.subr.mxu0 %v13343_v1  ;;  %v13346_v47 = vand.u32 4294901760, %v12150_v31 }
 0xa2e   : > { %5916 = vmatprep.subr.mxu1 %v11995_v40  ;;  %5818 = vmatpush1.msra.mxu0 %v13344_v45  ;;  %v12376_v40 = vand.u32 4294901760, %v5125_v5  ;;  %v5092_v45 = vld [vmem:[#allocation3 + $0x40] sm:$0xff] }
 0xa2f   : > { %5918 = vmatpush1.msra.mxu1 %v11997_v12  ;;  %5822 = vmatprep.subr.mxu0 %v13345_v21  ;;  %v5122_v12 = vld [vmem:[#allocation3 + $0x130] sm:$0xff]  ;;  %v12502_v21 = vand.u32 4294901760, %v5095_v17 }
 0xa30   : > { %5920 = vmatprep.subr.mxu1 %v12022_v35  ;;  %5826 = vmatpush1.msra.mxu0 %v13346_v47  ;;  %v12385_v35 = vsub.f32 %v5128_v48, %v12365_v34  ;;  %v12396_v42 = vand.u32 4294901760, %v5122_v12 }
 0xa31   : > { %5922 = vmatpush1.msra.mxu1 %v12024_v16  ;;  %5830 = vmatprep.subr.mxu0 %v5410_v15  ;;  %v13347_v16 = vand.u32 4294901760, %v12210_v44  ;;  %v12433_v44 = vand.u32 4294901760, %v5110_v11 }
 0xa32   : > { %5924 = vmatprep.subr.mxu1 %v12051_v63  ;;  %5834 = vmatpush1.msra.mxu0 %v5416_v51  ;;  %v12394_v63 = vsub.f32 %v5125_v5, %v12376_v40  ;;  %v6088_v4 = vand.u32 4294901760, %v12385_v35  ;;  %v12411_v33 = vsub.f32 %v5122_v12, %v12396_v42  ;;  %v12506_v12 = vsub.f32 %v5098_v59, %v12488_v57 }
 0xa33   : > { %5926 = vmatpush1.msra.mxu1 %v12053_v43  ;;  %5838 = vmatprep.subr.mxu0 %v13347_v16  ;;  %v6081_v43 = vand.u32 4294901760, %v12374_v49 }
 0xa34   : > { %5928 = vmatprep.subr.mxu1 %v12080_v37  ;;  %5842 = vmatpush1.msra.mxu0 %v13348_v38  ;;  %v12403_v37 = vand.u32 4294901760, %v5119_v19  ;;  %v6095_v20 = vand.u32 4294901760, %v12394_v63  ;;  %v6089_v51 = vsub.f32 %v12385_v35, %v6088_v4  ;;  %v5089_v38 = vld [vmem:[#allocation3 + $0x28] sm:$0xff] }
 0xa35   : > { %5875 = vmatprep.mubr.f32.mxu0 %v12303_v7  ;;  %5930 = vmatpush1.msra.mxu1 %v13317_v61  ;;  %v6082_v31 = vsub.f32 %v12374_v49, %v6081_v43  ;;  %v12438_v61 = vsub.f32 %v5116_v10, %v12416_v46  ;;  %v12514_v10 = vand.u32 4294901760, %v5092_v45 }
 0xa36   : > { %5877 = vmatmul.mubr.f32.vlgmr.msra.gmra.mxu0 %v12060_v6  ;;  %5932 = vmatprep.subr.mxu1 %v13319_v54  ;;  %v12424_v15 = vsub.f32 %v5119_v19, %v12403_v37  ;;  %v6096_v54 = vsub.f32 %v12394_v63, %v6095_v20 }
 0xa37   : > { %8500 = vmatprep.subr.mxu0 %v12303_v7  ;;  %5934 = vmatpush1.msra.mxu1 %v13321_v24  ;;  %v6102_v24 = vand.u32 4294901760, %v12411_v33  ;;  %v6116_v30 = vand.u32 4294901760, %v12438_v61  ;;  %v12536_v3 = vsub.f32 %v5092_v45, %v12514_v10 }
 0xa38   : > { %8501 = vmatpush3.msra.mxu0 %v12357_v39  ;;  %5936 = vmatprep.subr.mxu1 %v13322_v9  ;;  %v12449_v9 = vsub.f32 %v5113_v18, %v12429_v58  ;;  %v6109_v25 = vand.u32 4294901760, %v12424_v15  ;;  %v6097_v36 = vand.u32 4294901760, %v6096_v54 }
 0xa39   : > { %8502 = vmatprep.subr.mxu0 %v12303_v7  ;;  %5938 = vmatpush1.msra.mxu1 %v13323_v2  ;;  %v12451_v2 = vand.u32 4294901760, %v5107_v29  ;;  %v6103_v50 = vsub.f32 %v12411_v33, %v6102_v24  ;;  %v6117_v23 = vsub.f32 %v12438_v61, %v6116_v30 }
 0xa3a   : > { %8503 = vmatpush3.msra.mxu0 %v12365_v34  ;;  %5940 = vmatprep.subr.mxu1 %v12168_v27  ;;  %v6083_v27 = vand.u32 4294901760, %v6082_v31  ;;  %v6110_v13 = vsub.f32 %v12424_v15, %v6109_v25  ;;  %v6123_v32 = vand.u32 4294901760, %v12449_v9 }
 0xa3b   : > { %8504 = vmatprep.subr.mxu0 %v12303_v7  ;;  %5942 = vmatpush1.msra.mxu1 %v12170_v8  ;;  %v5104_v8 = vld [vmem:[#allocation3 + $0xa0] sm:$0xff]  ;;  %v12470_v52 = vsub.f32 %v5107_v29, %v12451_v2  ;;  %v6104_v62 = vand.u32 4294901760, %v6103_v50  ;;  %v6118_v47 = vand.u32 4294901760, %v6117_v23  ;;  %v12524_v29 = vsub.f32 %v5095_v17, %v12502_v21 }
 0xa3c   : > { %8505 = vmatpush3.msra.mxu0 %v12376_v40  ;;  %5944 = vmatprep.subr.mxu1 %v12196_v60  ;;  %v6090_v60 = vand.u32 4294901760, %v6089_v51  ;;  %v12463_v0 = vand.u32 4294901760, %v5104_v8  ;;  %v6111_v48 = vand.u32 4294901760, %v6110_v13  ;;  %v6124_v1 = vsub.f32 %v12449_v9, %v6123_v32  ;;  %v5086_v51 = vld [vmem:[#allocation3 + $0x10] sm:$0xff] }
 0xa3d   : > { %8506 = vmatprep.subr.mxu0 %v12303_v7  ;;  %5946 = vmatpush1.msra.mxu1 %v12198_v28  ;;  %v12457_v28 = vsub.f32 %v5110_v11, %v12433_v44  ;;  %v6137_v5 = vand.u32 4294901760, %v12470_v52  ;;  %v6151_v11 = vand.u32 4294901760, %v12494_v53 }
 0xa3e   : > { %5979 = vmatprep.mubr.f32.mxu1 %v12303_v7  ;;  %8507 = vmatpush3.msra.mxu0 %v12396_v42  ;;  %v12483_v22 = vsub.f32 %v5104_v8, %v12463_v0  ;;  %v6125_v18 = vand.u32 4294901760, %v6124_v1  ;;  %v6172_v1 = vand.u32 4294901760, %v12536_v3 }
 0xa3f   : > { %5981 = vmatmul.mubr.f32.vlgmr.msra.gmra.mxu1 %v12060_v6  ;;  %8508 = vmatprep.subr.mxu0 %v12303_v7  ;;  %v6130_v55 = vand.u32 4294901760, %v12457_v28  ;;  %v6138_v31 = vsub.f32 %v12470_v52, %v6137_v5  ;;  %v6152_v59 = vsub.f32 %v12494_v53, %v6151_v11 }
 0xa40   : > { %8535 = vmatprep.subr.mxu1 %v12303_v7  ;;  %8509 = vmatpush3.msra.mxu0 %v12403_v37  ;;  %v6144_v19 = vand.u32 4294901760, %v12483_v22 }
 0xa41   : > { %8536 = vmatpush3.msra.mxu1 %v6083_v27  ;;  %8510 = vmatprep.subr.mxu0 %v12303_v7  ;;  %v6131_v16 = vsub.f32 %v12457_v28, %v6130_v55  ;;  %v12526_v27 = vand.u32 4294901760, %v5089_v38  ;;  %v6139_v50 = vand.u32 4294901760, %v6138_v31  ;;  %v6153_v45 = vand.u32 4294901760, %v6152_v59 }
 0xa42   : > { %8537 = vmatprep.subr.mxu1 %v12303_v7  ;;  %8511 = vmatpush3.msra.mxu0 %v12416_v46  ;;  %v6145_v8 = vsub.f32 %v12483_v22, %v6144_v19 }
 0xa43   : > { %8538 = vmatpush3.msra.mxu1 %v6090_v60  ;;  %8512 = vmatprep.subr.mxu0 %v12303_v7  ;;  %v6132_v54 = vand.u32 4294901760, %v6131_v16  ;;  %v6158_v60 = vand.u32 4294901760, %v12506_v12  ;;  %v12547_v13 = vsub.f32 %v5089_v38, %v12526_v27 }
 0xa44   : > { %8539 = vmatprep.subr.mxu1 %v12303_v7  ;;  %8513 = vmatpush3.msra.mxu0 %v12429_v58  ;;  %v6146_v23 = vand.u32 4294901760, %v6145_v8 }
 0xa45   : > { %8540 = vmatpush3.msra.mxu1 %v6097_v36  ;;  %8514 = vmatprep.subr.mxu0 %v12303_v7  ;;  %v12538_v36 = vand.u32 4294901760, %v5086_v51  ;;  %v6159_v17 = vsub.f32 %v12506_v12, %v6158_v60  ;;  %v6179_v16 = vand.u32 4294901760, %v12547_v13 }
 0xa46   : > { %8541 = vmatprep.subr.mxu1 %v12303_v7  ;;  %8515 = vmatpush3.msra.mxu0 %v12433_v44 }
 0xa47   : > { %8542 = vmatpush3.msra.mxu1 %v6104_v62  ;;  %8516 = vmatprep.subr.mxu0 %v12303_v7  ;;  %v6165_v62 = vand.u32 4294901760, %v12524_v29  ;;  %v6160_v38 = vand.u32 4294901760, %v6159_v17 }
 0xa48   : > { %8543 = vmatprep.subr.mxu1 %v12303_v7  ;;  %8517 = vmatpush3.msra.mxu0 %v12451_v2 }
 0xa49   : > { %8544 = vmatpush3.msra.mxu1 %v6111_v48  ;;  %8518 = vmatprep.subr.mxu0 %v12303_v7  ;;  %v12557_v48 = vsub.f32 %v5086_v51, %v12538_v36 }
 0xa4a   : > { %8545 = vmatprep.subr.mxu1 %v12303_v7  ;;  %8519 = vmatpush3.msra.mxu0 %v12463_v0 }
 0xa4b   : > { %8546 = vmatpush3.msra.mxu1 %v6118_v47  ;;  %8520 = vmatprep.subr.mxu0 %v12303_v7  ;;  %v6166_v47 = vsub.f32 %v12524_v29, %v6165_v62  ;;  %v6186_v31 = vand.u32 4294901760, %v12557_v48 }
 0xa4c   : > { %8547 = vmatprep.subr.mxu1 %v12303_v7  ;;  %8521 = vmatpush3.msra.mxu0 %v12475_v56 }
 0xa4d   : > { %8548 = vmatpush3.msra.mxu1 %v6125_v18  ;;  %8522 = vmatprep.subr.mxu0 %v12303_v7  ;;  %v6173_v18 = vsub.f32 %v12536_v3, %v6172_v1  ;;  %v6167_v51 = vand.u32 4294901760, %v6166_v47 }
 0xa4e   : > { %8549 = vmatprep.subr.mxu1 %v12303_v7  ;;  %8523 = vmatpush3.msra.mxu0 %v12488_v57 }
 0xa4f   : > { %8550 = vmatpush3.msra.mxu1 %v6132_v54  ;;  %8524 = vmatprep.subr.mxu0 %v12303_v7  ;;  %v6180_v54 = vsub.f32 %v12547_v13, %v6179_v16  ;;  %v6174_v8 = vand.u32 4294901760, %v6173_v18 }
 0xa50   : > { %8551 = vmatprep.subr.mxu1 %v12303_v7  ;;  %8525 = vmatpush3.msra.mxu0 %v12502_v21 }
 0xa51   : > { %8552 = vmatpush3.msra.mxu1 %v6139_v50  ;;  %8526 = vmatprep.subr.mxu0 %v12303_v7  ;;  %v6187_v50 = vsub.f32 %v12557_v48, %v6186_v31  ;;  %v6181_v59 = vand.u32 4294901760, %v6180_v54 }
 0xa52   : > { %8553 = vmatprep.subr.mxu1 %v12303_v7  ;;  %8527 = vmatpush3.msra.mxu0 %v12514_v10 }
 0xa53   : > { %8554 = vmatpush3.msra.mxu1 %v6146_v23  ;;  %8528 = vmatprep.subr.mxu0 %v12303_v7 }
 0xa54   : > { %8555 = vmatprep.subr.mxu1 %v12303_v7  ;;  %8529 = vmatpush3.msra.mxu0 %v12526_v27 }
 0xa55   : > { %8556 = vmatpush3.msra.mxu1 %v6153_v45  ;;  %8530 = vmatprep.subr.mxu0 %v12303_v7 }
 0xa56   : > { %8557 = vmatprep.subr.mxu1 %v12303_v7  ;;  %8531 = vmatpush3.msra.mxu0 %v12538_v36 }
 0xa57   : > { %8558 = vmatpush3.msra.mxu1 %v6160_v38  ;;  %8532 = vmatprep.mubr.msk.f32.mxu0 %vm13255_vm8, %v12303_v7 }
 0xa58   : > { %8559 = vmatprep.subr.mxu1 %v12303_v7  ;;  %8570 = vmatprep.subr.mxu0 %v12303_v7 }
 0xa59   : > { %8533 = vmatmul.mubr.f32.vlgmr.msra.gmra.mxu0 %v12192_v41  ;;  %8560 = vmatpush3.msra.mxu1 %v6167_v51  ;;  %v6188_v41 = vand.u32 4294901760, %v6187_v50 }
 0xa5a   : > { %8571 = vmatpush3.msra.mxu0 %v12374_v49  ;;  %8561 = vmatprep.subr.mxu1 %v12303_v7 }
 0xa5b   : > { %8572 = vmatprep.subr.mxu0 %v12303_v7  ;;  %8562 = vmatpush3.msra.mxu1 %v6174_v8 }
 0xa5c   : > { %8573 = vmatpush3.msra.mxu0 %v12385_v35  ;;  %8563 = vmatprep.subr.mxu1 %v12303_v7 }
 0xa5d   : > { %8574 = vmatprep.subr.mxu0 %v12303_v7  ;;  %8564 = vmatpush3.msra.mxu1 %v6181_v59 }
 0xa5e   : > { %8575 = vmatpush3.msra.mxu0 %v12394_v63  ;;  %8565 = vmatprep.subr.mxu1 %v12303_v7 }
 0xa5f   : > { %8576 = vmatprep.subr.mxu0 %v12303_v7  ;;  %8566 = vmatpush3.msra.mxu1 %v6188_v41 }
 0xa60   : > { %8567 = vmatprep.mubr.msk.f32.mxu1 %vm13255_vm8, %v12303_v7  ;;  %8577 = vmatpush3.msra.mxu0 %v12411_v33 }
 0xa61   : > { %8568 = vmatmul.mubr.f32.vlgmr.msra.gmra.mxu1 %v12060_v6  ;;  %8578 = vmatprep.subr.mxu0 %v12303_v7 }
 0xa62   : > { %8605 = vmatprep.subr.mxu1 %v12303_v7  ;;  %8579 = vmatpush3.msra.mxu0 %v12424_v15 }
 0xa63   : > { %8606 = vmatpush3.msra.mxu1 %v12357_v39  ;;  %8580 = vmatprep.subr.mxu0 %v12303_v7 }
 0xa64   : > { %8607 = vmatprep.subr.mxu1 %v12303_v7  ;;  %8581 = vmatpush3.msra.mxu0 %v12438_v61 }
 0xa65   : > { %8608 = vmatpush3.msra.mxu1 %v12365_v34  ;;  %8582 = vmatprep.subr.mxu0 %v12303_v7 }
 0xa66   : > { %8609 = vmatprep.subr.mxu1 %v12303_v7  ;;  %8583 = vmatpush3.msra.mxu0 %v12449_v9 }
 0xa67   : > { %8610 = vmatpush3.msra.mxu1 %v12376_v40  ;;  %8584 = vmatprep.subr.mxu0 %v12303_v7 }
 0xa68   : > { %8611 = vmatprep.subr.mxu1 %v12303_v7  ;;  %8585 = vmatpush3.msra.mxu0 %v12457_v28 }
 0xa69   : > { %8612 = vmatpush3.msra.mxu1 %v12396_v42  ;;  %8586 = vmatprep.subr.mxu0 %v12303_v7 }
 0xa6a   : > { %8613 = vmatprep.subr.mxu1 %v12303_v7  ;;  %8587 = vmatpush3.msra.mxu0 %v12470_v52 }
 0xa6b   : > { %8614 = vmatpush3.msra.mxu1 %v12403_v37  ;;  %8588 = vmatprep.subr.mxu0 %v12303_v7 }
 0xa6c   : > { %8615 = vmatprep.subr.mxu1 %v12303_v7  ;;  %8589 = vmatpush3.msra.mxu0 %v12483_v22 }
 0xa6d   : > { %8616 = vmatpush3.msra.mxu1 %v12416_v46  ;;  %8590 = vmatprep.subr.mxu0 %v12303_v7 }
 0xa6e   : > { %8617 = vmatprep.subr.mxu1 %v12303_v7  ;;  %8591 = vmatpush3.msra.mxu0 %v12494_v53 }
 0xa6f   : > { %8618 = vmatpush3.msra.mxu1 %v12429_v58  ;;  %8592 = vmatprep.subr.mxu0 %v12303_v7 }
 0xa70   : > { %8619 = vmatprep.subr.mxu1 %v12303_v7  ;;  %8593 = vmatpush3.msra.mxu0 %v12506_v12 }
 0xa71   : > { %8620 = vmatpush3.msra.mxu1 %v12433_v44  ;;  %8594 = vmatprep.subr.mxu0 %v12303_v7 }
 0xa72   : > { %8621 = vmatprep.subr.mxu1 %v12303_v7  ;;  %8595 = vmatpush3.msra.mxu0 %v12524_v29 }
 0xa73   : > { %8622 = vmatpush3.msra.mxu1 %v12451_v2  ;;  %8596 = vmatprep.subr.mxu0 %v12303_v7 }
 0xa74   : > { %8623 = vmatprep.subr.mxu1 %v12303_v7  ;;  %8597 = vmatpush3.msra.mxu0 %v12536_v3 }
 0xa75   : > { %8624 = vmatpush3.msra.mxu1 %v12463_v0  ;;  %8598 = vmatprep.subr.mxu0 %v12303_v7 }
 0xa76   : > { %8625 = vmatprep.subr.mxu1 %v12303_v7  ;;  %8599 = vmatpush3.msra.mxu0 %v12547_v13 }
 0xa77   : > { %8626 = vmatpush3.msra.mxu1 %v12475_v56  ;;  %8600 = vmatprep.subr.mxu0 %v12303_v7 }
 0xa78   : > { %8627 = vmatprep.subr.mxu1 %v12303_v7  ;;  %8601 = vmatpush3.msra.mxu0 %v12557_v48 }
 0xa79   : > { %8602 = vmatprep.mubr.msk.f32.mxu0 %vm13255_vm8, %v12303_v7  ;;  %8628 = vmatpush3.msra.mxu1 %v12488_v57 }
 0xa7a   : > { %8603 = vmatmul.mubr.f32.vlgmr.msra.gmra.mxu0 %v13318_v14  ;;  %8629 = vmatprep.subr.mxu1 %v12303_v7  ;;  %v6666_v14 = vpop.permute.xlu1 %6665 }
 0xa7b   : > { %8640 = vmatprep.subr.mxu0 %v12303_v7  ;;  %8630 = vmatpush3.msra.mxu1 %v12502_v21 }
 0xa7c   : > { %8641 = vmatpush3.msra.mxu0 %v6081_v43  ;;  %8631 = vmatprep.subr.mxu1 %v12303_v7 }
 0xa7d   : > { %8642 = vmatprep.subr.mxu0 %v12303_v7  ;;  %8632 = vmatpush3.msra.mxu1 %v12514_v10 }
 0xa7e   : > { %8643 = vmatpush3.msra.mxu0 %v6088_v4  ;;  %8633 = vmatprep.subr.mxu1 %v12303_v7  ;;  %v6664_v49 = vpop.permute.xlu1 %6663 }
 0xa7f   : > { %8644 = vmatprep.subr.mxu0 %v12303_v7  ;;  %8634 = vmatpush3.msra.mxu1 %v12526_v27  ;;  %v6669_v63 = vsel %vm13350_vm5, %v6664_v49, %v6666_v14  ;;  %v13354_v49 = vld [vmem:[#allocation23_spill] sm:$0xff] }
 0xa80   : > { %8645 = vmatpush3.msra.mxu0 %v6095_v20  ;;  %8635 = vmatprep.subr.mxu1 %v12303_v7 }
 0xa81   : > { %8646 = vmatprep.subr.mxu0 %v12303_v7  ;;  %8636 = vmatpush3.msra.mxu1 %v12538_v36 }
 0xa82   : > { %8637 = vmatprep.mubr.msk.f32.mxu1 %vm13255_vm8, %v12303_v7  ;;  %8647 = vmatpush3.msra.mxu0 %v6102_v24 }
 0xa83   : > { %8638 = vmatmul.mubr.f32.vlgmr.msra.gmra.mxu1 %v13326_v26  ;;  %8648 = vmatprep.subr.mxu0 %v12303_v7  ;;  %v6657_v26 = vld [vmem:[%s12890_s6] sm:$0xff] }
 0xa84   : > { %8675 = vmatprep.subr.mxu1 %v12303_v7  ;;  %8649 = vmatpush3.msra.mxu0 %v6109_v25 }
 0xa85   : > { %8676 = vmatpush3.msra.mxu1 %v12357_v39  ;;  %8650 = vmatprep.subr.mxu0 %v12303_v7  ;;  %v6673_v39 = vsel %vm6671_vm0, %v6657_v26, 0 }
 0xa86   : > { %8677 = vmatprep.subr.mxu1 %v12303_v7  ;;  %8651 = vmatpush3.msra.mxu0 %v6116_v30 }
 0xa87   : > { %8678 = vmatpush3.msra.mxu1 %v12365_v34  ;;  %8652 = vmatprep.subr.mxu0 %v12303_v7  ;;  %v6668_v34 = vpop.permute.xlu0 %6667 }
 0xa88   : > { %8679 = vmatprep.subr.mxu1 %v12303_v7  ;;  %8653 = vmatpush3.msra.mxu0 %v6123_v32  ;;  %v6670_v35 = vsel %vm13349_vm2, %v6666_v14, %v6668_v34  ;;  %v6679_v9 = vsel %vm13353_vm11, %v6668_v34, 0 }
 0xa89   : > { %8680 = vmatpush3.msra.mxu1 %v12376_v40  ;;  %8654 = vmatprep.subr.mxu0 %v12303_v7  ;;  %v12701_v40 = vand.u32 4294901760, %v6673_v39  ;;  %v7177_v25 = vand.u32 4294901760, %v6679_v9 }
 0xa8a   : > { %8681 = vmatprep.subr.mxu1 %v12303_v7  ;;  %8655 = vmatpush3.msra.mxu0 %v6130_v55 }
 0xa8b   : > { %8682 = vmatpush3.msra.mxu1 %v12396_v42  ;;  %8656 = vmatprep.subr.mxu0 %v12303_v7  ;;  %v6677_v42 = vsel %vm13351_vm7, %v6670_v35, 0  ;;  %v12717_v43 = vsub.f32 %v6673_v39, %v12701_v40  ;;  %v7254_v30 = vsub.f32 %v6679_v9, %v7177_v25 }
 0xa8c   : > { %8683 = vmatprep.subr.mxu1 %v12303_v7  ;;  %8657 = vmatpush3.msra.mxu0 %v6137_v5  ;;  %v12725_v4 = vand.u32 4294901760, %v6677_v42 }
 0xa8d   : > { %8684 = vmatpush3.msra.mxu1 %v12403_v37  ;;  %8658 = vmatprep.subr.mxu0 %v12303_v7  ;;  %v6675_v37 = vsel %vm13352_vm9, %v6669_v63, 0 }
 0xa8e   : > { %8685 = vmatprep.subr.mxu1 %v12303_v7  ;;  %8659 = vmatpush3.msra.mxu0 %v6144_v19  ;;  %v12729_v33 = vand.u32 4294901760, %v6675_v37  ;;  %v6790_v20 = vsub.f32 %v6677_v42, %v12725_v4 }
 0xa8f   : > { %8686 = vmatpush3.msra.mxu1 %v12416_v46  ;;  %8660 = vmatprep.subr.mxu0 %v12303_v7  ;;  %v12735_v46 = vand.u32 4294901760, %v12717_v43 }
 0xa90   : > { %8687 = vmatprep.subr.mxu1 %v12303_v7  ;;  %8661 = vmatpush3.msra.mxu0 %v6151_v11  ;;  %v6796_v15 = vsub.f32 %v6675_v37, %v12729_v33 }
 0xa91   : > { %8688 = vmatpush3.msra.mxu1 %v12429_v58  ;;  %8662 = vmatprep.subr.mxu0 %v12303_v7  ;;  %v6751_v58 = vsub.f32 %v12717_v43, %v12735_v46 }
 0xa92   : > { %8689 = vmatprep.subr.mxu1 %v12303_v7  ;;  %8663 = vmatpush3.msra.mxu0 %v6158_v60  ;;  %v6797_v24 = vand.u32 4294901760, %v6796_v15 }
 0xa93   : > { %8690 = vmatpush3.msra.mxu1 %v12433_v44  ;;  %8664 = vmatprep.subr.mxu0 %v12303_v7  ;;  %v6791_v44 = vand.u32 4294901760, %v6790_v20  ;;  %v6752_v61 = vand.u32 4294901760, %v6751_v58 }
 0xa94   : > { %8691 = vmatprep.subr.mxu1 %v12303_v7  ;;  %8665 = vmatpush3.msra.mxu0 %v6165_v62  ;;  %v6798_v28 = vsub.f32 %v6796_v15, %v6797_v24 }
 0xa95   : > { %8692 = vmatpush3.msra.mxu1 %v12451_v2  ;;  %8666 = vmatprep.subr.mxu0 %v12303_v7  ;;  %v6792_v2 = vsub.f32 %v6790_v20, %v6791_v44 }
 0xa96   : > { %8693 = vmatprep.subr.mxu1 %v12303_v7  ;;  %8667 = vmatpush3.msra.mxu0 %v6172_v1  ;;  %v6799_v52 = vand.u32 4294901760, %v6798_v28 }
 0xa97   : > { %8694 = vmatpush3.msra.mxu1 %v12463_v0  ;;  %8668 = vmatprep.subr.mxu0 %v12303_v7  ;;  %v6793_v0 = vand.u32 4294901760, %v6792_v2 }
 0xa98   : > { %8695 = vmatprep.subr.mxu1 %v12303_v7  ;;  %8669 = vmatpush3.msra.mxu0 %v6179_v16 }
 0xa99   : > { %8696 = vmatpush3.msra.mxu1 %v12475_v56  ;;  %8670 = vmatprep.subr.mxu0 %v12303_v7  ;;  %v7255_v56 = vand.u32 4294901760, %v7254_v30 }
 0xa9a   : > { %8697 = vmatprep.subr.mxu1 %v12303_v7  ;;  %8671 = vmatpush3.msra.mxu0 %v6186_v31 }
 0xa9b   : > { %8672 = vmatprep.mubr.msk.f32.mxu0 %vm13255_vm8, %v12303_v7  ;;  %8698 = vmatpush3.msra.mxu1 %v12488_v57 }
 0xa9c   : > { %8673 = vmatmul.mubr.f32.vlgmr.msra.gmra.mxu0 %v12060_v6  ;;  %8699 = vmatprep.subr.mxu1 %v12303_v7 }
 0xa9d   : > { %6712 = vmatprep.subr.mxu0 %v12725_v4  ;;  %8700 = vmatpush3.msra.mxu1 %v12502_v21 }
 0xa9e   : > { %6714 = vmatpush1.msra.mxu0 %v12729_v33  ;;  %8701 = vmatprep.subr.mxu1 %v12303_v7 }
 0xa9f   : > { %6873 = vmatprep.subr.mxu0 %v6790_v20  ;;  %8702 = vmatpush3.msra.mxu1 %v12514_v10 }
 0xaa0   : > { %6747 = vmatprep.mubr.f32.mxu0 %v12303_v7  ;;  %8703 = vmatprep.subr.mxu1 %v12303_v7 }
 0xaa1   : > { %6753 = vmatmul.mubr.f32.vlgmr.msra.gmra.mxu0 %v6752_v61  ;;  %8704 = vmatpush3.msra.mxu1 %v12526_v27 }
 0xaa2   : > { %6876 = vmatpush1.msra.mxu0 %v6796_v15  ;;  %8705 = vmatprep.subr.mxu1 %v12303_v7 }
 0xaa3   : > { %7027 = vmatprep.subr.mxu0 %v6791_v44  ;;  %8706 = vmatpush3.msra.mxu1 %v12538_v36 }
 0xaa4   : > { %8707 = vmatprep.mubr.msk.f32.mxu1 %vm13255_vm8, %v12303_v7  ;;  %6909 = vmatprep.mubr.f32.mxu0 %v12303_v7 }
 0xaa5   : > { %8708 = vmatmul.mubr.f32.vlgmr.msra.gmra.mxu1 %v12060_v6  ;;  %6794 = vmatprep.subr.mxu1 %v6793_v0  ;;  %v7256_v6 = vsub.f32 %v7254_v30, %v7255_v56 }
 0xaa6   : > { %6912 = vmatmul.mubr.f32.vlgmr.msra.gmra.mxu0 %v12717_v43  ;;  %6800 = vmatpush1.msra.mxu1 %v6799_v52 }
 0xaa7   : > { %7031 = vmatpush1.msra.mxu0 %v6797_v24  ;;  %6949 = vmatprep.subr.mxu1 %v12725_v4  ;;  %v7257_v32 = vand.u32 4294901760, %v7256_v6 }
 0xaa8   : > { %6833 = vmatprep.mubr.f32.mxu1 %v12303_v7  ;;  %7064 = vmatprep.mubr.f32.mxu0 %v12303_v7 }
 0xaa9   : > { %8710 = vmatprep.subr.mxu0 %v12303_v7  ;;  %6835 = vmatmul.mubr.f32.vlgmr.msra.gmra.mxu1 %v12701_v40 }
 0xaaa   : > { %7066 = vmatmul.mubr.f32.vlgmr.msra.gmra.mxu0 %v12701_v40  ;;  %6951 = vmatpush1.msra.mxu1 %v12729_v33 }
 0xaab   : > { %8711 = vmatpush3.msra.mxu0 %v7177_v25  ;;  %7103 = vmatprep.subr.mxu1 %v12725_v4 }
 0xaac   : > { %6984 = vmatprep.mubr.f32.mxu1 %v12303_v7  ;;  %8712 = vmatprep.mubr.msk.f32.mxu0 %vm13255_vm8, %v12303_v7 }
 0xaad   : > { %8720 = vmatprep.subr.mxu0 %v12303_v7  ;;  %6988 = vmatmul.mubr.f32.vlgmr.msra.gmra.mxu1 %v12735_v46 }
 0xaae   : > { %8713 = vmatmul.mubr.f32.vlgmr.msra.gmra.mxu0 %v6752_v61  ;;  %7105 = vmatpush1.msra.mxu1 %v12729_v33  ;;  %v13356_v33 = vld [vmem:[#allocation24_spill] sm:$0xff] }
 0xaaf   : > { %8721 = vmatpush3.msra.mxu0 %v7254_v30  ;;  %7138 = vmatprep.mubr.f32.mxu1 %v12303_v7 }
 0xab0   : > { %8715 = vmatprep.subr.mxu1 %v12303_v7  ;;  %8722 = vmatprep.mubr.msk.f32.mxu0 %vm13255_vm8, %v12303_v7 }
 0xab1   : > { %8730 = vmatprep.subr.mxu0 %v12303_v7  ;;  %7140 = vmatmul.mubr.f32.vlgmr.msra.gmra.mxu1 %v12701_v40 }
 0xab2   : > { %8723 = vmatmul.mubr.f32.vlgmr.msra.gmra.mxu0 %v12717_v43  ;;  %8716 = vmatpush3.msra.mxu1 %v7257_v32  ;;  %v13355_v43 = vld [vmem:[#allocation25_spill] sm:$0xff] }
 0xab3   : > { %8731 = vmatpush3.msra.mxu0 %v7255_v56  ;;  %8717 = vmatprep.mubr.msk.f32.mxu1 %vm13255_vm8, %v12303_v7 }
 0xab4   : > { %8725 = vmatprep.subr.mxu1 %v12303_v7  ;;  %8732 = vmatprep.mubr.msk.f32.mxu0 %vm13255_vm8, %v12303_v7  ;;  %v5235_v55 = vpop.f32.mrf.mxu0 }
 0xab5   : > { %8718 = vmatmul.mubr.f32.vlgmr.msra.gmra.mxu1 %v12701_v40 }
 0xab6   : > { %8733 = vmatmul.mubr.f32.vlgmr.msra.gmra.mxu0 %v12701_v40  ;;  %8726 = vmatpush3.msra.mxu1 %v7177_v25  ;;  %v5237_v53 = vpop.f32.mrf.mxu0 }
 0xab7   : > { %8727 = vmatprep.mubr.msk.f32.mxu1 %vm13255_vm8, %v12303_v7  ;;  %8735 = vmatprep.subr.mxu1 %v12303_v7 }
 0xab9   : > { %8728 = vmatmul.mubr.f32.vlgmr.msra.gmra.mxu1 %v12735_v46 }
 0xaba   : > { %8736 = vmatpush3.msra.mxu1 %v7177_v25  ;;  %8737 = vmatprep.mubr.msk.f32.mxu1 %vm13255_vm8, %v12303_v7 }
 0xabb   : > { %v5467_v22 = vpop.f32.mrf.mxu1 }
 0xabc   : > { %v5468_v57 = vadd.f32 %v5467_v22, %v5235_v55 }
 0xabd   : > { %8738 = vmatmul.mubr.f32.vlgmr.msra.gmra.mxu1 %v12701_v40  ;;  %v5469_v5 = vpop.f32.mrf.mxu1 }
 0xabe   : > { %v5470_v21 = vadd.f32 %v5469_v5, %v5237_v53 }
 0xad4   : > { %v5604_v12 = vpop.f32.mrf.mxu0 }
 0xad5   : > { %v5605_v19 = vadd.f32 %v5604_v12, %v5468_v57 }
 0xad6   : > { %v5606_v10 = vpop.f32.mrf.mxu0 }
 0xad7   : > { %v5607_v11 = vadd.f32 %v5606_v10, %v5470_v21 }
 0xadd   : > { %v5710_v29 = vpop.f32.mrf.mxu1 }
 0xade   : > { %v5711_v27 = vadd.f32 %v5710_v29, %v5605_v19 }
 0xadf   : > { %v5712_v60 = vpop.f32.mrf.mxu1 }
 0xae0   : > { %v5713_v3 = vadd.f32 %v5712_v60, %v5607_v11 }
 0xaf6   : > { %v5878_v36 = vpop.f32.mrf.mxu0 }
 0xaf7   : > { %v5879_v13 = vadd.f32 %v5878_v36, %v5711_v27 }
 0xaf8   : > { %v5880_v62 = vpop.f32.mrf.mxu0 }
 0xaf9   : > { %v5881_v23 = vadd.f32 %v5880_v62, %v5713_v3 }
 0xaff   : > { %v5982_v7 = vpop.f32.mrf.mxu1 }
 0xb00   : > { %v12811_v17 = vadd.f32 %v5982_v7, %v5879_v13 }
 0xb01   : > { %v5984_v48 = vpop.f32.mrf.mxu1 }
 0xb02   : > { %v12813_v1 = vadd.f32 %v5984_v48, %v5881_v23  ;;  %v6628_v37 = vmul.f32 %v12811_v17, %v13355_v43 }
 0xb04   : > { %v6629_v40 = vmul.f32 %v12813_v1, %v13354_v49 }
 0xb06   : > { %v6631_v15 = vadd.f32 %v6629_v40, %v6628_v37 }
 0xb19   : > { %v6074_v45 = vpop.f32.mrf.mxu0 }
 0xb1b   : > { %v8534_v47 = vpop.f32.mrf.mxu0 }
 0xb21   : > { %v6225_v16 = vpop.f32.mrf.mxu1 }
 0xb22   : > { %v6226_v50 = vadd.f32 %v6225_v16, %v6074_v45 }
 0xb23   : > { %v8569_v38 = vpop.f32.mrf.mxu1 }
 0xb3a   : > { %v6329_v18 = vpop.f32.mrf.mxu0 }
 0xb3b   : > { %v6330_v41 = vadd.f32 %v6329_v18, %v6226_v50 }
 0xb3c   : > { %v8604_v31 = vpop.f32.mrf.mxu0 }
 0xb43   : > { %v6418_v51 = vpop.f32.mrf.mxu1 }
 0xb44   : > { %v6419_v26 = vadd.f32 %v6418_v51, %v6330_v41 }
 0xb45   : > { %v8639_v54 = vpop.f32.mrf.mxu1 }
 0xb5c   : > { %v6537_v8 = vpop.f32.mrf.mxu0 }
 0xb5d   : > { %v6538_v34 = vadd.f32 %v6537_v8, %v6419_v26 }
 0xb5e   : > { %v8674_v59 = vpop.f32.mrf.mxu0 }
 0xb61   : > { %v6754_v14 = vpop.f32.mrf.mxu0 }
 0xb63   : > { %v6756_v39 = vpop.f32.mrf.mxu0 }
 0xb65   : > { %v6624_v35 = vpop.f32.mrf.mxu1 }
 0xb66   : > { %v6625_v63 = vadd.f32 %v6624_v35, %v6538_v34  ;;  %v6913_v42 = vpop.f32.mrf.mxu0 }
 0xb67   : > { %v8709_v4 = vpop.f32.mrf.mxu1 }
 0xb68   : > { %v6630_v46 = vmul.f32 %v6625_v63, %v13356_v33  ;;  %v6915_v20 = vpop.f32.mrf.mxu0 }
 0xb69   : > { %v6836_v44 = vpop.f32.mrf.mxu1 }
 0xb6a   : > { %v6632_v58 = vsel %vm336_vm1, %v6630_v46, 0.0  ;;  %v7067_v61 = vpop.f32.mrf.mxu0  ;;  %v6837_v9 = vadd.f32 %v6836_v44, %v6754_v14 }
 0xb6b   : > { %v6633_v24 = vadd.f32 %v6632_v58, %v6631_v15  ;;  %v6838_v2 = vpop.f32.mrf.mxu1 }
 0xb6c   : > { %v7069_v25 = vpop.f32.mrf.mxu0  ;;  %v6839_v28 = vadd.f32 %v6838_v2, %v6756_v39  ;;  %v6914_v56 = vadd.f32 %v6913_v42, %v6837_v9 }
 0xb6d   : > { %6634 = vadd.xlane.f32.xlu0 %v6633_v24  ;;  %v6989_v0 = vpop.f32.mrf.mxu1 }
 0xb6e   : > { %v7218_v30 = vpop.f32.mrf.mxu0  ;;  %v6916_v52 = vadd.f32 %v6915_v20, %v6839_v28  ;;  %v6990_v53 = vadd.f32 %v6989_v0, %v6914_v56 }
 0xb6f   : > { %v6991_v6 = vpop.f32.mrf.mxu1 }
 0xb70   : > { %v8714_v32 = vpop.f32.mrf.mxu0  ;;  %v6992_v55 = vadd.f32 %v6991_v6, %v6916_v52  ;;  %v7068_v29 = vadd.f32 %v7067_v61, %v6990_v53 }
 0xb71   : > { %v7141_v22 = vpop.f32.mrf.mxu1 }
 0xb72   : > { %v7368_v57 = vpop.f32.mrf.mxu0  ;;  %v7070_v12 = vadd.f32 %v7069_v25, %v6992_v55  ;;  %v7142_v23 = vadd.f32 %v7141_v22, %v7068_v29 }
 0xb73   : > { %v7143_v5 = vpop.f32.mrf.mxu1 }
 0xb74   : > { %v8724_v21 = vpop.f32.mrf.mxu0  ;;  %v7144_v36 = vadd.f32 %v7143_v5, %v7070_v12  ;;  %v7592_v38 = vmul.f32 %v7142_v23, %v13355_v43 }
 0xb75   : > { %v7294_v19 = vpop.f32.mrf.mxu1 }
 0xb76   : > { %v7516_v10 = vpop.f32.mrf.mxu0  ;;  %v7295_v11 = vadd.f32 %v7294_v19, %v7218_v30  ;;  %v7593_v45 = vmul.f32 %v7144_v36, %v13354_v49  ;;  %v7627_v19 = vstv %s7757_s25 }
 0xb77   : > { %v8719_v27 = vpop.f32.mrf.mxu1 }
 0xb78   : > { %v8734_v60 = vpop.f32.mrf.mxu0  ;;  %v7369_v3 = vadd.f32 %v7368_v57, %v7295_v11  ;;  %v7595_v51 = vadd.f32 %v7593_v45, %v7592_v38 }
 0xb79   : > { %v7442_v13 = vpop.f32.mrf.mxu1 }
 0xb7a   : > { %v7443_v62 = vadd.f32 %v7442_v13, %v7369_v3 }
 0xb7b   : > { %v8729_v7 = vpop.f32.mrf.mxu1 }
 0xb7c   : > { %v7517_v48 = vadd.f32 %v7516_v10, %v7443_v62 }
 0xb7d   : > { %v7588_v47 = vpop.f32.mrf.mxu1 }
 0xb7e   : > { %v7589_v16 = vadd.f32 %v7588_v47, %v7517_v48 }
 0xb7f   : > { %v8739_v18 = vpop.f32.mrf.mxu1 }
 0xb80   : > { %v7594_v31 = vmul.f32 %v7589_v16, %v13356_v33 }
 0xb82   : > { %v7596_v54 = vsel %vm336_vm1, %v7594_v31, 0.0 }
 0xb83   : > { %v7597_v8 = vadd.f32 %v7596_v54, %v7595_v51 }
 0xb85   : > { %7598 = vadd.xlane.f32.xlu1 %v7597_v8 }
 0xbf6   : > { %v6635_v50 = vpop.xlane.xlu0 %6634 }
 0xbf7   : > { %v6636_v59 = vmul.f32 0.00390625, %v6635_v50 }
 0xbf9   : > { %v6637_v41 = vsub.f32 %v12811_v17, %v6636_v59  ;;  %v6638_v14 = vsub.f32 %v12813_v1, %v6636_v59  ;;  %v6639_v26 = vsub.f32 %v6625_v63, %v6636_v59 }
 0xbfb   : > { %v6640_v39 = vmul.f32 %v6637_v41, %v13355_v43  ;;  %v6641_v34 = vmul.f32 %v6638_v14, %v13354_v49  ;;  %v6642_v40 = vmul.f32 %v6639_v26, %v13356_v33 }
 0xbfd   : > { %v6643_v35 = vmul.f32 %v6640_v39, %v6640_v39  ;;  %v6644_v42 = vmul.f32 %v6641_v34, %v6641_v34  ;;  %v6645_v37 = vmul.f32 %v6642_v40, %v6642_v40 }
 0xbff   : > { %v6646_v4 = vadd.f32 %v6644_v42, %v6643_v35  ;;  %v6647_v46 = vsel %vm336_vm1, %v6645_v37, 0.0 }
 0xc01   : > { %v6648_v20 = vadd.f32 %v6647_v46, %v6646_v4 }
 0xc03   : > { %6649 = vadd.xlane.f32.xlu0 %v6648_v20 }
 0xc0e   : > { %v7599_v15 = vpop.xlane.xlu1 %7598 }
 0xc0f   : > { %v7600_v58 = vmul.f32 0.00390625, %v7599_v15 }
 0xc11   : > { %v7601_v17 = vsub.f32 %v7142_v23, %v7600_v58  ;;  %v7602_v44 = vsub.f32 %v7144_v36, %v7600_v58  ;;  %v7603_v1 = vsub.f32 %v7589_v16, %v7600_v58 }
 0xc13   : > { %v7604_v63 = vmul.f32 %v7601_v17, %v13355_v43  ;;  %v7605_v61 = vmul.f32 %v7602_v44, %v13354_v49  ;;  %v7606_v24 = vmul.f32 %v7603_v1, %v13356_v33 }
 0xc15   : > { %v7607_v9 = vmul.f32 %v7604_v63, %v7604_v63  ;;  %v7608_v2 = vmul.f32 %v7605_v61, %v7605_v61  ;;  %v7609_v25 = vmul.f32 %v7606_v24, %v7606_v24 }
 0xc17   : > { %v7610_v28 = vadd.f32 %v7608_v2, %v7607_v9  ;;  %v7611_v0 = vsel %vm336_vm1, %v7609_v25, 0.0 }
 0xc19   : > { %v7612_v30 = vadd.f32 %v7611_v0, %v7610_v28 }
 0xc1b   : > { %7613 = vadd.xlane.f32.xlu0 %v7612_v30 }
 0xc8c   : > { %v6650_v52 = vpop.xlane.xlu0 %6649 }
 0xc8d   : > { %v6651_v56 = vmul.f32 0.00390625, %v6650_v52 }
 0xc8f   : > { %v6652_v6 = vadd.f32 1e-05, %v6651_v56 }
 0xc91   : > { %8884 = vrsqrt.f32 %v6652_v6 }
 0xc9e   : > { %v8885_v49 = vpop.eup %8884 }
 0xc9f   : > { %v6654_v22 = vmul.f32 %v8885_v49, %v6637_v41  ;;  %v6655_v57 = vmul.f32 %v8885_v49, %v6638_v14  ;;  %v6656_v53 = vmul.f32 %v8885_v49, %v6639_v26 }
 0xca4   : > { %v7614_v32 = vpop.xlane.xlu0 %7613 }
 0xca5   : > { %v7615_v55 = vmul.f32 0.00390625, %v7614_v32 }
 0xca7   : > { %v7616_v43 = vadd.f32 1e-05, %v7615_v55 }
 0xca9   : > { %8886 = vrsqrt.f32 %v7616_v43 }
 0xcb6   : > { %v8887_v33 = vpop.eup %8886 }
 0xcb7   : > { %v7618_v5 = vmul.f32 %v8887_v33, %v7601_v17  ;;  %v7619_v21 = vmul.f32 %v8887_v33, %v7602_v44  ;;  %v7620_v12 = vmul.f32 %v8887_v33, %v7603_v1 }
 0xcb9   : > { %v7621_v10 = vadd.f32 %v7618_v5, %v6654_v22  ;;  %v7622_v11 = vadd.f32 %v7619_v21, %v6655_v57  ;;  %v7623_v29 = vadd.f32 %v7620_v12, %v6656_v53 }
 0xcbb   : > { %vm7624_vm8 = vcmp.ge.f32.partialorder %v7621_v10, 0.0  ;;  %vm7625_vm12 = vcmp.ge.f32.partialorder %v7622_v11, 0.0  ;;  %vm7626_vm13 = vcmp.ge.f32.partialorder %v7623_v29, 0.0  ;;  %v7628_v27 = vmul.f32 %v7627_v19, %v7621_v10 }
 0xcbc   : > { %v7629_v60 = vmul.f32 %v7627_v19, %v7622_v11  ;;  %v7630_v3 = vmul.f32 %v7627_v19, %v7623_v29 }
 0xcbd   : > { %v7631_v36 = vsel %vm7624_vm8, %v7621_v10, %v7628_v27 }
 0xcbe   : > { %v7632_v13 = vsel %vm7625_vm12, %v7622_v11, %v7629_v60  ;;  %v7633_v62 = vsel %vm7626_vm13, %v7623_v29, %v7630_v3  ;;  %7634 = vst [vmem:[%s319_s8] sm:$0xff] %v7631_v36 }
 0xcbf   : > { %7635 = vst [vmem:[%s319_s8 + $0x8] sm:$0xff] %v7632_v13  ;;  %7636 = vst.msk [vmem:[%s319_s8 + $0x10] sm:$0xff] %vm336_vm1, %v7633_v62 }
 0xcc0   : > { %8971 = shalt.err (!%p8968_p5)
}
 0xcc1   : > { %s8972_s14 = scalar_lea.hbm %s12840_s30, 384  ;;  %s8976_s12 = scalar_lea.hbm %s13357_s9, 768 }
 0xcc2   : > { %p8973_p7 = scmp.ne.s32.totalorder %s12840_s30, %s8972_s14  ;;  %p8977_p4 = scmp.lt.s32.totalorder %s12840_s30, %s13357_s9 }
 0xcc3   : > { %p8978_p8 = scmp.lt.s32.totalorder %s8976_s12, %s8972_s14 }
 0xcc4   : > { %p8974_p10 = pnand %p8973_p7, %p13358_p12 }
 0xcc5   : > { %p8979_p3 = por %p8978_p8, %p8977_p4 }
 0xcc6   : > { %p8975_p6 = pneg %p8974_p10 }
 0xcc8   : > { %p8980_p11 = pnand %p8979_p3, %p8975_p6 }
 0xcca   : > { %8983 = shalt.err (!%p8980_p11)
}
 0xccb   : > { %8752 = dma.vmem_to_hbm [thread:$0]  (%p13358_p12), %s12842_s13, 384, %s12840_s30, %s7638_s28  }
 0xccc PF: > { %s13359_s21 = sld [smem:[#allocation16_spill]] }
 0xccd   : > { %s13360_s4 = sld [smem:[#allocation20_spill]] }
 0xcce   : > { %s13361_s18 = sld [smem:[#allocation19_spill]] }
 0xcd2   : > { %s7664_s7 = sand.u32 1, %s13359_s21  }
 0xcd3   : > { %p13362_p9 = scmp.ne.s32.totalorder %s13360_s4, 0  ;;  %s7665_s1 = scalar_lea.sflag [#allocation6], %s7664_s7 }
 0xcd4   : > { %p13363_p1 = scmp.ge.s32.totalorder %s13361_s18, 2 }
 0xcd6   : > { %p8766_p13 = pnand %p13363_p1, %p13362_p9 }
 0xcd8   : > { %p8767_p0 = pneg %p8766_p13 }
 0xcda   : > { %9013 = dma.done.wait (%p8767_p0), %s7665_s1, 384  }
 0xcdb   : > { %9015 = vsyncadd (%p8767_p0), %s7665_s1, 4294966912  ;;  %s13364_s27 = sld [smem:[#allocation21_spill]] }
 0xcdc   : > { %s13365_s24 = sld [smem:[#allocation17_spill]] }
 0xcdd   : > { %s13366_s25 = sld [smem:[#allocation18_spill]] }
 0xcde   : > { %s13367_s26 = sld [smem:[#allocation22_spill]] }
 0xce1   : > { %p22_p2 = scmp.ge.s32.totalorder %s13364_s27, 4  }
 0xce3   :  { %24 = sbr.rel (!%p22_p2) target bundleno = 14 (0xe), region = 102 }
 0xce8   :  { %7670 = vsyncpa [#allocation5], 1 }
 0xce9   :  { %7672 = vsyncpa [#allocation5 + $0x1], 1 }
 0xcea   :  { %7673 = vsyncpa [#allocation10], 1 }
 0xceb   :  { %7674 = vsyncpa [#allocation6], 1 }
 0xcec   :  { %7676 = vsyncpa [#allocation6 + $0x1], 1 }
 0xced   :  { %7677 = vsyncpa [#allocation7], 1 }
 0xcee   :  { %7679 = vsyncpa [#allocation7 + $0x1], 1 }

</bundles_post_ra>
